<compile_context>
chip_gen: v6e
topology: v6e:2x2x1
jax: 0.10.0
libtpu: 0.0.40
codegen_flags: <defaults>
</compile_context>

<pallas_src>
import functools

import jax
import jax.numpy as jnp
from jax.experimental import pallas as pl
from jax.experimental.pallas import tpu as pltpu


_WPAD = 8  # left/right halo pad of the W (sublane) axis -> tile-aligned interior


# ----------------------------- fused Pallas kernel --------------------------------

def _fused_forward_kernel(x_ref, w0_ref, s0_ref, wl_ref, sl_ref,
                          fc1_ref, s5_ref, fc2_ref, s6_ref, fc3_ref, b3_ref,
                          o_ref, xpad_ref, hbuf_ref,
                          *, B, H, W, C):
    N = B * H * W
    HW = H * W
    L = wl_ref.shape[0]
    HID = fc1_ref.shape[2]
    WP = _WPAD

    # ---- conv0 (1x1) + BN0 + ReLU: one small MXU matmul (K zero-padded to 8) ----
    act = jnp.dot(x_ref[...], w0_ref[...], preferred_element_type=jnp.float32)
    act = jnp.maximum(act + s0_ref[...], 0.0)                    # (N, C)
    shortcut = act

    # ---- zero ONLY the halo frame of the padded buffer (interior is rewritten
    #      every layer); every store below is sublane-tile aligned ----
    xpad_ref[:, :, 0:WP, :] = jnp.zeros((B, H + 2, WP, C), jnp.float32)
    xpad_ref[:, :, WP + W:2 * WP + W, :] = jnp.zeros((B, H + 2, WP, C), jnp.float32)
    xpad_ref[:, 0:1, WP:WP + W, :] = jnp.zeros((B, 1, W, C), jnp.float32)
    xpad_ref[:, H + 1:H + 2, WP:WP + W, :] = jnp.zeros((B, 1, W, C), jnp.float32)

    # ---- residual 3x3 conv layers: per layer ONE aligned interior store, then
    #      9 shifted-window reads feeding 9 accumulated (N,C)@(C,C) MXU matmuls ----
    for l in range(L):                                           # static unroll, L = 2
        xpad_ref[:, 1:H + 1, WP:WP + W, :] = act.reshape(B, H, W, C)
        y = jnp.zeros((N, C), jnp.float32)
        for dy in range(3):
            for dx in range(3):
                win = xpad_ref[:, dy:dy + H, WP - 1 + dx:WP - 1 + dx + W, :]
                y = y + jnp.dot(win.reshape(N, C), wl_ref[l, dy * 3 + dx],
                                preferred_element_type=jnp.float32)
        act = jnp.maximum(y + sl_ref[l], 0.0) + shortcut         # BN shift, ReLU, residual

    # ---- fc1 + BN5 without materializing the (B, H*W*C) flatten:
    #      out1[b, j] = sum_{r, c} act[b*HW + r, c] * fc1[c, r, j]
    #      channel-wise VPU broadcast-FMA accumulation, then per-batch row reduction ----
    acts = [act[b * HW:(b + 1) * HW, :] for b in range(B)]       # (HW, C) per batch
    vacc = [jnp.zeros((HW, HID), jnp.float32) for _ in range(B)]
    for c in range(C):                                           # static unroll, C = 32
        wc = fc1_ref[c]                                          # (HW, HID)
        for b in range(B):
            vacc[b] = vacc[b] + acts[b][:, c:c + 1] * wc
    for b in range(B):
        hbuf_ref[b:b + 1, :] = jnp.sum(vacc[b], axis=0, keepdims=True)

    # ---- FC head: fc1+BN5+ReLU, fc2+BN6+ReLU, fc3+sigmoid (BN scales pre-folded) ----
    h = jnp.maximum(hbuf_ref[...] + s5_ref[...], 0.0)            # (B, HID)
    h = jnp.dot(h, fc2_ref[...], preferred_element_type=jnp.float32)
    h = jnp.maximum(h + s6_ref[...], 0.0)
    z = jnp.sum(h * fc3_ref[...], axis=-1, keepdims=True) + b3_ref[...]
    o_ref[...] = jax.nn.sigmoid(z)


# ----------------------------- wrapper ---------------------------------------------

def _vmem_spec():
    return pl.BlockSpec(memory_space=pltpu.MemorySpace.VMEM)


@jax.jit
def forward(x_nchw, kp):
    B, Cin, H, W = x_nchw.shape
    C = kp["w0"].shape[1]
    K0 = kp["w0"].shape[0]            # conv0 contraction dim (zero-padded to >= 8)
    HID = kp["fc2"].shape[0]
    N = B * H * W

    # NCHW -> rows ordered (b, h, w), channels last; pad K columns to match padded w0
    x2 = jnp.transpose(x_nchw, (0, 2, 3, 1)).reshape(N, Cin)
    if K0 > Cin:
        x2 = jnp.concatenate([x2, jnp.zeros((N, K0 - Cin), jnp.float32)], axis=1)

    kernel = functools.partial(_fused_forward_kernel, B=B, H=H, W=W, C=C)
    out = pl.pallas_call(
        kernel,
        out_shape=jax.ShapeDtypeStruct((B, 1), jnp.float32),
        in_specs=[_vmem_spec() for _ in range(11)],
        out_specs=_vmem_spec(),
        scratch_shapes=[
            pltpu.VMEM((B, H + 2, 2 * _WPAD + W, C), jnp.float32),   # halo buffer
            pltpu.VMEM((B, HID), jnp.float32),                       # fc1 staging rows
        ],
    )(x2, kp["w0"], kp["s0"], kp["wl"], kp["sl"],
      kp["fc1"], kp["s5"], kp["fc2"], kp["s6"], kp["fc3"], kp["b3"])
    return out


# ----------------------------- parameter preparation -------------------------------

def fold_bn(bias, gamma, beta, mean, var, eps=0.01):
    inv = gamma / jnp.sqrt(var + eps)
    scale = inv
    shift = (bias - mean) * inv + beta
    return (scale.reshape(1, -1).astype(jnp.float32),
            shift.reshape(1, -1).astype(jnp.float32))


def make_params(key, cin, c, h, w, hidden1, num_layers):
    ks = iter(jax.random.split(key, 64))

    def bn(dim, bias):
        gamma = 1.0 + 0.1 * jax.random.normal(next(ks), (dim,))
        beta = 0.1 * jax.random.normal(next(ks), (dim,))
        mean = 0.1 * jax.random.normal(next(ks), (dim,))
        var = 1.0 + 0.1 * jnp.abs(jax.random.normal(next(ks), (dim,)))
        return fold_bn(bias, gamma, beta, mean, var)

    p = {}
    p["conv0_w"] = 0.2 * jax.random.normal(next(ks), (cin, c), jnp.float32)
    b0 = 0.1 * jax.random.normal(next(ks), (c,))
    p["bn0_scale"], p["bn0_shift"] = bn(c, b0)

    p["layers_w"], p["layers_scale"], p["layers_shift"] = [], [], []
    for _ in range(num_layers - 1):
        p["layers_w"].append(0.1 * jax.random.normal(next(ks), (3, 3, c, c), jnp.float32))
        bl = 0.1 * jax.random.normal(next(ks), (c,))
        s, t = bn(c, bl)
        p["layers_scale"].append(s)
        p["layers_shift"].append(t)

    feat = c * h * w
    p["fc1_w"] = 0.05 * jax.random.normal(next(ks), (feat, hidden1), jnp.float32)
    p["bn5_scale"], p["bn5_shift"] = bn(hidden1, 0.1 * jax.random.normal(next(ks), (hidden1,)))
    p["fc2_w"] = 0.1 * jax.random.normal(next(ks), (hidden1, hidden1), jnp.float32)
    p["bn6_scale"], p["bn6_shift"] = bn(hidden1, 0.1 * jax.random.normal(next(ks), (hidden1,)))
    p["fc3_w"] = 0.1 * jax.random.normal(next(ks), (hidden1, 1), jnp.float32)
    p["fc3_b"] = 0.1 * jax.random.normal(next(ks), (1, 1), jnp.float32)
    return p


def prepare_params(p, h, w):
    """Fold BN scales into weights; repack conv / fc weights for the fused kernel."""
    cin, c = p["conv0_w"].shape
    hid = p["fc1_w"].shape[1]
    kp = {}
    w0 = (p["conv0_w"] * p["bn0_scale"]).astype(jnp.float32)                  # (Cin, C)
    if cin < 8:                                                               # pad K to 8
        w0 = jnp.concatenate([w0, jnp.zeros((8 - cin, c), jnp.float32)], axis=0)
    kp["w0"] = w0
    kp["s0"] = p["bn0_shift"]                                                 # (1, C)
    kp["wl"] = jnp.stack(
        [(wl * sl.reshape(1, 1, 1, -1)).reshape(9, c, c).astype(jnp.float32)
         for wl, sl in zip(p["layers_w"], p["layers_scale"])])                # (L,9,C,C)
    kp["sl"] = jnp.stack(p["layers_shift"])                                   # (L, 1, C)
    # fc1: torch flattens NCHW as (c, h, w) -> rows reshape directly to (C, H*W, HID)
    kp["fc1"] = (p["fc1_w"] * p["bn5_scale"]).reshape(c, h * w, hid).astype(jnp.float32)
    kp["s5"] = p["bn5_shift"]
    kp["fc2"] = (p["fc2_w"] * p["bn6_scale"]).astype(jnp.float32)
    kp["s6"] = p["bn6_shift"]
    kp["fc3"] = p["fc3_w"].reshape(1, hid).astype(jnp.float32)                # row vector
    kp["b3"] = p["fc3_b"].astype(jnp.float32)                                 # (1, 1)
    return kp


# ----------------------------- pure-JAX reference ----------------------------------

def reference_forward(x_nchw, params):
    B = x_nchw.shape[0]
    x = jnp.einsum("bchw,cd->bdhw", x_nchw, params["conv0_w"])
    x = x * params["bn0_scale"].reshape(1, -1, 1, 1) + params["bn0_shift"].reshape(1, -1, 1, 1)
    x = jnp.maximum(x, 0.0)
    shortcut = x
    for wl, sl, tl in zip(params["layers_w"], params["layers_scale"], params["layers_shift"]):
        y = jax.lax.conv_general_dilated(x, wl, (1, 1), "SAME",
                                         dimension_numbers=("NCHW", "HWIO", "NCHW"))
        y = y * sl.reshape(1, -1, 1, 1) + tl.reshape(1, -1, 1, 1)
        x = jnp.maximum(y, 0.0) + shortcut
    x = x.reshape(B, -1)
    h = jnp.maximum((x @ params["fc1_w"]) * params["bn5_scale"] + params["bn5_shift"], 0.0)
    h = jnp.maximum((h @ params["fc2_w"]) * params["bn6_scale"] + params["bn6_shift"], 0.0)
    return jax.nn.sigmoid(h @ params["fc3_w"] + params["fc3_b"])


# ----------------------------- main -------------------------------------------------

if __name__ == "__main__":
    # args: len(inputs_type)=4, out_channel0=out_channel1=32, Nbatch=4 (H),
    #       word_size=16 (W), numLayers=3, hidden1=32, batch=2
    B, Cin, C, H, W, HID, NLAYERS = 2, 4, 32, 4, 16, 32, 3

    key = jax.random.PRNGKey(0)
    kx, kparam = jax.random.split(key)
    x = jax.random.normal(kx, (B, Cin, H, W), jnp.float32)   # NCHW like PyTorch
    params = make_params(kparam, Cin, C, H, W, HID, NLAYERS)
    kparams = prepare_params(params, H, W)

    out = jax.block_until_ready(forward(x, kparams))
    ref = jax.block_until_ready(reference_forward(x, params))

    assert out.shape == (B, 1), out.shape
    assert bool(jnp.all(jnp.isfinite(out)))
    assert jnp.allclose(out, ref, rtol=1e-4, atol=1e-4), (out, ref)
    print("KERNEL_OK")
</pallas_src>

<mosaic_0001>
module attributes {stable_mosaic.version = 11 : i64} {
  func.func @_fused_forward_kernel(%arg0: memref<128x8xf32, #tpu.memory_space<vmem>>, %arg1: memref<8x32xf32, #tpu.memory_space<vmem>>, %arg2: memref<1x32xf32, #tpu.memory_space<vmem>>, %arg3: memref<2x9x32x32xf32, #tpu.memory_space<vmem>>, %arg4: memref<2x1x32xf32, #tpu.memory_space<vmem>>, %arg5: memref<32x64x32xf32, #tpu.memory_space<vmem>>, %arg6: memref<1x32xf32, #tpu.memory_space<vmem>>, %arg7: memref<32x32xf32, #tpu.memory_space<vmem>>, %arg8: memref<1x32xf32, #tpu.memory_space<vmem>>, %arg9: memref<1x32xf32, #tpu.memory_space<vmem>>, %arg10: memref<1x1xf32, #tpu.memory_space<vmem>>, %arg11: memref<2x1xf32, #tpu.memory_space<vmem>>, %arg12: memref<2x6x32x32xf32, #tpu.memory_space<vmem>>, %arg13: memref<2x32xf32, #tpu.memory_space<vmem>>) attributes {dimension_semantics = [], scalar_prefetch = 0 : i64, scratch_operands = 2 : i64, tpu.core_type = #tpu.core_type<tc>} {
    %c0 = arith.constant 0 : index
    %c0_0 = arith.constant 0 : index
    %0 = vector.load %arg0[%c0, %c0_0] : memref<128x8xf32, #tpu.memory_space<vmem>>, vector<128x8xf32>
    %c0_1 = arith.constant 0 : index
    %c0_2 = arith.constant 0 : index
    %1 = vector.load %arg1[%c0_1, %c0_2] : memref<8x32xf32, #tpu.memory_space<vmem>>, vector<8x32xf32>
    %cst = arith.constant dense<0.000000e+00> : vector<128x32xf32>
    %2 = tpu.matmul %0, %1, %cst {dimension_numbers = #tpu.dot_dimension_numbers<[1], [0], [0], [1], [0, 0, 1, 1], [], []>} : vector<128x8xf32>, vector<8x32xf32>, vector<128x32xf32> -> vector<128x32xf32>
    %c0_3 = arith.constant 0 : index
    %c0_4 = arith.constant 0 : index
    %3 = vector.load %arg2[%c0_3, %c0_4] : memref<1x32xf32, #tpu.memory_space<vmem>>, vector<1x32xf32>
    %4 = vector.broadcast %3 : vector<1x32xf32> to vector<128x32xf32>
    %5 = arith.addf %2, %4 : vector<128x32xf32>
    %cst_5 = arith.constant 0.000000e+00 : f32
    %6 = vector.broadcast %cst_5 : f32 to vector<128x32xf32>
    %7 = arith.maximumf %5, %6 : vector<128x32xf32>
    %cst_6 = arith.constant 0.000000e+00 : f32
    %8 = vector.broadcast %cst_6 : f32 to vector<2x6x8x32xf32>
    %c0_7 = arith.constant 0 : index
    %c0_8 = arith.constant 0 : index
    %c0_9 = arith.constant 0 : index
    %c0_10 = arith.constant 0 : index
    %9 = vector.load %arg12[%c0_7, %c0_8, %c0_9, %c0_10] : memref<2x6x32x32xf32, #tpu.memory_space<vmem>>, vector<2x6x8x32xf32>
    tpu.vector_store %arg12[%c0_7, %c0_8, %c0_9, %c0_10], %8 {strides = array<i32>} : memref<2x6x32x32xf32, #tpu.memory_space<vmem>>, vector<2x6x8x32xf32>,
    %cst_11 = arith.constant 0.000000e+00 : f32
    %10 = vector.broadcast %cst_11 : f32 to vector<2x6x8x32xf32>
    %c0_12 = arith.constant 0 : index
    %c0_13 = arith.constant 0 : index
    %c24 = arith.constant 24 : index
    %c0_14 = arith.constant 0 : index
    %11 = vector.load %arg12[%c0_12, %c0_13, %c24, %c0_14] : memref<2x6x32x32xf32, #tpu.memory_space<vmem>>, vector<2x6x8x32xf32>
    tpu.vector_store %arg12[%c0_12, %c0_13, %c24, %c0_14], %10 {strides = array<i32>} : memref<2x6x32x32xf32, #tpu.memory_space<vmem>>, vector<2x6x8x32xf32>,
    %cst_15 = arith.constant 0.000000e+00 : f32
    %12 = vector.broadcast %cst_15 : f32 to vector<2x1x16x32xf32>
    %c0_16 = arith.constant 0 : index
    %c0_17 = arith.constant 0 : index
    %c8 = arith.constant 8 : index
    %c0_18 = arith.constant 0 : index
    %13 = vector.load %arg12[%c0_16, %c0_17, %c8, %c0_18] : memref<2x6x32x32xf32, #tpu.memory_space<vmem>>, vector<2x1x16x32xf32>
    tpu.vector_store %arg12[%c0_16, %c0_17, %c8, %c0_18], %12 {strides = array<i32>} : memref<2x6x32x32xf32, #tpu.memory_space<vmem>>, vector<2x1x16x32xf32>,
    %cst_19 = arith.constant 0.000000e+00 : f32
    %14 = vector.broadcast %cst_19 : f32 to vector<2x1x16x32xf32>
    %c0_20 = arith.constant 0 : index
    %c5 = arith.constant 5 : index
    %c8_21 = arith.constant 8 : index
    %c0_22 = arith.constant 0 : index
    %15 = vector.load %arg12[%c0_20, %c5, %c8_21, %c0_22] : memref<2x6x32x32xf32, #tpu.memory_space<vmem>>, vector<2x1x16x32xf32>
    tpu.vector_store %arg12[%c0_20, %c5, %c8_21, %c0_22], %14 {strides = array<i32>} : memref<2x6x32x32xf32, #tpu.memory_space<vmem>>, vector<2x1x16x32xf32>,
    %16 = vector.shape_cast %7 : vector<128x32xf32> to vector<2x4x16x32xf32>
    %c0_23 = arith.constant 0 : index
    %c1 = arith.constant 1 : index
    %c8_24 = arith.constant 8 : index
    %c0_25 = arith.constant 0 : index
    %17 = vector.load %arg12[%c0_23, %c1, %c8_24, %c0_25] : memref<2x6x32x32xf32, #tpu.memory_space<vmem>>, vector<2x4x16x32xf32>
    tpu.vector_store %arg12[%c0_23, %c1, %c8_24, %c0_25], %16 {strides = array<i32>} : memref<2x6x32x32xf32, #tpu.memory_space<vmem>>, vector<2x4x16x32xf32>,
    %cst_26 = arith.constant 0.000000e+00 : f32
    %18 = vector.broadcast %cst_26 : f32 to vector<128x32xf32>
    %c0_27 = arith.constant 0 : index
    %c0_28 = arith.constant 0 : index
    %c7 = arith.constant 7 : index
    %c0_29 = arith.constant 0 : index
    %19 = vector.load %arg12[%c0_27, %c0_28, %c7, %c0_29] : memref<2x6x32x32xf32, #tpu.memory_space<vmem>>, vector<2x4x16x32xf32>
    %20 = vector.shape_cast %19 : vector<2x4x16x32xf32> to vector<128x32xf32>
    %c0_30 = arith.constant 0 : index
    %c0_31 = arith.constant 0 : index
    %c0_32 = arith.constant 0 : index
    %c0_33 = arith.constant 0 : index
    %21 = vector.load %arg3[%c0_30, %c0_31, %c0_32, %c0_33] : memref<2x9x32x32xf32, #tpu.memory_space<vmem>>, vector<1x1x32x32xf32>
    %22 = vector.shape_cast %21 : vector<1x1x32x32xf32> to vector<32x32xf32>
    %cst_34 = arith.constant dense<0.000000e+00> : vector<128x32xf32>
    %23 = tpu.matmul %20, %22, %cst_34 {dimension_numbers = #tpu.dot_dimension_numbers<[1], [0], [0], [1], [0, 0, 1, 1], [], []>} : vector<128x32xf32>, vector<32x32xf32>, vector<128x32xf32> -> vector<128x32xf32>
    %24 = arith.addf %18, %23 : vector<128x32xf32>
    %c0_35 = arith.constant 0 : index
    %c0_36 = arith.constant 0 : index
    %c8_37 = arith.constant 8 : index
    %c0_38 = arith.constant 0 : index
    %25 = vector.load %arg12[%c0_35, %c0_36, %c8_37, %c0_38] : memref<2x6x32x32xf32, #tpu.memory_space<vmem>>, vector<2x4x16x32xf32>
    %26 = vector.shape_cast %25 : vector<2x4x16x32xf32> to vector<128x32xf32>
    %c0_39 = arith.constant 0 : index
    %c1_40 = arith.constant 1 : index
    %c0_41 = arith.constant 0 : index
    %c0_42 = arith.constant 0 : index
    %27 = vector.load %arg3[%c0_39, %c1_40, %c0_41, %c0_42] : memref<2x9x32x32xf32, #tpu.memory_space<vmem>>, vector<1x1x32x32xf32>
    %28 = vector.shape_cast %27 : vector<1x1x32x32xf32> to vector<32x32xf32>
    %cst_43 = arith.constant dense<0.000000e+00> : vector<128x32xf32>
    %29 = tpu.matmul %26, %28, %cst_43 {dimension_numbers = #tpu.dot_dimension_numbers<[1], [0], [0], [1], [0, 0, 1, 1], [], []>} : vector<128x32xf32>, vector<32x32xf32>, vector<128x32xf32> -> vector<128x32xf32>
    %30 = arith.addf %24, %29 : vector<128x32xf32>
    %c0_44 = arith.constant 0 : index
    %c0_45 = arith.constant 0 : index
    %c9 = arith.constant 9 : index
    %c0_46 = arith.constant 0 : index
    %31 = vector.load %arg12[%c0_44, %c0_45, %c9, %c0_46] : memref<2x6x32x32xf32, #tpu.memory_space<vmem>>, vector<2x4x16x32xf32>
    %32 = vector.shape_cast %31 : vector<2x4x16x32xf32> to vector<128x32xf32>
    %c0_47 = arith.constant 0 : index
    %c2 = arith.constant 2 : index
    %c0_48 = arith.constant 0 : index
    %c0_49 = arith.constant 0 : index
    %33 = vector.load %arg3[%c0_47, %c2, %c0_48, %c0_49] : memref<2x9x32x32xf32, #tpu.memory_space<vmem>>, vector<1x1x32x32xf32>
    %34 = vector.shape_cast %33 : vector<1x1x32x32xf32> to vector<32x32xf32>
    %cst_50 = arith.constant dense<0.000000e+00> : vector<128x32xf32>
    %35 = tpu.matmul %32, %34, %cst_50 {dimension_numbers = #tpu.dot_dimension_numbers<[1], [0], [0], [1], [0, 0, 1, 1], [], []>} : vector<128x32xf32>, vector<32x32xf32>, vector<128x32xf32> -> vector<128x32xf32>
    %36 = arith.addf %30, %35 : vector<128x32xf32>
    %c0_51 = arith.constant 0 : index
    %c1_52 = arith.constant 1 : index
    %c7_53 = arith.constant 7 : index
    %c0_54 = arith.constant 0 : index
    %37 = vector.load %arg12[%c0_51, %c1_52, %c7_53, %c0_54] : memref<2x6x32x32xf32, #tpu.memory_space<vmem>>, vector<2x4x16x32xf32>
    %38 = vector.shape_cast %37 : vector<2x4x16x32xf32> to vector<128x32xf32>
    %c0_55 = arith.constant 0 : index
    %c3 = arith.constant 3 : index
    %c0_56 = arith.constant 0 : index
    %c0_57 = arith.constant 0 : index
    %39 = vector.load %arg3[%c0_55, %c3, %c0_56, %c0_57] : memref<2x9x32x32xf32, #tpu.memory_space<vmem>>, vector<1x1x32x32xf32>
    %40 = vector.shape_cast %39 : vector<1x1x32x32xf32> to vector<32x32xf32>
    %cst_58 = arith.constant dense<0.000000e+00> : vector<128x32xf32>
    %41 = tpu.matmul %38, %40, %cst_58 {dimension_numbers = #tpu.dot_dimension_numbers<[1], [0], [0], [1], [0, 0, 1, 1], [], []>} : vector<128x32xf32>, vector<32x32xf32>, vector<128x32xf32> -> vector<128x32xf32>
    %42 = arith.addf %36, %41 : vector<128x32xf32>
    %c0_59 = arith.constant 0 : index
    %c1_60 = arith.constant 1 : index
    %c8_61 = arith.constant 8 : index
    %c0_62 = arith.constant 0 : index
    %43 = vector.load %arg12[%c0_59, %c1_60, %c8_61, %c0_62] : memref<2x6x32x32xf32, #tpu.memory_space<vmem>>, vector<2x4x16x32xf32>
    %44 = vector.shape_cast %43 : vector<2x4x16x32xf32> to vector<128x32xf32>
    %c0_63 = arith.constant 0 : index
    %c4 = arith.constant 4 : index
    %c0_64 = arith.constant 0 : index
    %c0_65 = arith.constant 0 : index
    %45 = vector.load %arg3[%c0_63, %c4, %c0_64, %c0_65] : memref<2x9x32x32xf32, #tpu.memory_space<vmem>>, vector<1x1x32x32xf32>
    %46 = vector.shape_cast %45 : vector<1x1x32x32xf32> to vector<32x32xf32>
    %cst_66 = arith.constant dense<0.000000e+00> : vector<128x32xf32>
    %47 = tpu.matmul %44, %46, %cst_66 {dimension_numbers = #tpu.dot_dimension_numbers<[1], [0], [0], [1], [0, 0, 1, 1], [], []>} : vector<128x32xf32>, vector<32x32xf32>, vector<128x32xf32> -> vector<128x32xf32>
    %48 = arith.addf %42, %47 : vector<128x32xf32>
    %c0_67 = arith.constant 0 : index
    %c1_68 = arith.constant 1 : index
    %c9_69 = arith.constant 9 : index
    %c0_70 = arith.constant 0 : index
    %49 = vector.load %arg12[%c0_67, %c1_68, %c9_69, %c0_70] : memref<2x6x32x32xf32, #tpu.memory_space<vmem>>, vector<2x4x16x32xf32>
    %50 = vector.shape_cast %49 : vector<2x4x16x32xf32> to vector<128x32xf32>
    %c0_71 = arith.constant 0 : index
    %c5_72 = arith.constant 5 : index
    %c0_73 = arith.constant 0 : index
    %c0_74 = arith.constant 0 : index
    %51 = vector.load %arg3[%c0_71, %c5_72, %c0_73, %c0_74] : memref<2x9x32x32xf32, #tpu.memory_space<vmem>>, vector<1x1x32x32xf32>
    %52 = vector.shape_cast %51 : vector<1x1x32x32xf32> to vector<32x32xf32>
    %cst_75 = arith.constant dense<0.000000e+00> : vector<128x32xf32>
    %53 = tpu.matmul %50, %52, %cst_75 {dimension_numbers = #tpu.dot_dimension_numbers<[1], [0], [0], [1], [0, 0, 1, 1], [], []>} : vector<128x32xf32>, vector<32x32xf32>, vector<128x32xf32> -> vector<128x32xf32>
    %54 = arith.addf %48, %53 : vector<128x32xf32>
    %c0_76 = arith.constant 0 : index
    %c2_77 = arith.constant 2 : index
    %c7_78 = arith.constant 7 : index
    %c0_79 = arith.constant 0 : index
    %55 = vector.load %arg12[%c0_76, %c2_77, %c7_78, %c0_79] : memref<2x6x32x32xf32, #tpu.memory_space<vmem>>, vector<2x4x16x32xf32>
    %56 = vector.shape_cast %55 : vector<2x4x16x32xf32> to vector<128x32xf32>
    %c0_80 = arith.constant 0 : index
    %c6 = arith.constant 6 : index
    %c0_81 = arith.constant 0 : index
    %c0_82 = arith.constant 0 : index
    %57 = vector.load %arg3[%c0_80, %c6, %c0_81, %c0_82] : memref<2x9x32x32xf32, #tpu.memory_space<vmem>>, vector<1x1x32x32xf32>
    %58 = vector.shape_cast %57 : vector<1x1x32x32xf32> to vector<32x32xf32>
    %cst_83 = arith.constant dense<0.000000e+00> : vector<128x32xf32>
    %59 = tpu.matmul %56, %58, %cst_83 {dimension_numbers = #tpu.dot_dimension_numbers<[1], [0], [0], [1], [0, 0, 1, 1], [], []>} : vector<128x32xf32>, vector<32x32xf32>, vector<128x32xf32> -> vector<128x32xf32>
    %60 = arith.addf %54, %59 : vector<128x32xf32>
    %c0_84 = arith.constant 0 : index
    %c2_85 = arith.constant 2 : index
    %c8_86 = arith.constant 8 : index
    %c0_87 = arith.constant 0 : index
    %61 = vector.load %arg12[%c0_84, %c2_85, %c8_86, %c0_87] : memref<2x6x32x32xf32, #tpu.memory_space<vmem>>, vector<2x4x16x32xf32>
    %62 = vector.shape_cast %61 : vector<2x4x16x32xf32> to vector<128x32xf32>
    %c0_88 = arith.constant 0 : index
    %c7_89 = arith.constant 7 : index
    %c0_90 = arith.constant 0 : index
    %c0_91 = arith.constant 0 : index
    %63 = vector.load %arg3[%c0_88, %c7_89, %c0_90, %c0_91] : memref<2x9x32x32xf32, #tpu.memory_space<vmem>>, vector<1x1x32x32xf32>
    %64 = vector.shape_cast %63 : vector<1x1x32x32xf32> to vector<32x32xf32>
    %cst_92 = arith.constant dense<0.000000e+00> : vector<128x32xf32>
    %65 = tpu.matmul %62, %64, %cst_92 {dimension_numbers = #tpu.dot_dimension_numbers<[1], [0], [0], [1], [0, 0, 1, 1], [], []>} : vector<128x32xf32>, vector<32x32xf32>, vector<128x32xf32> -> vector<128x32xf32>
    %66 = arith.addf %60, %65 : vector<128x32xf32>
    %c0_93 = arith.constant 0 : index
    %c2_94 = arith.constant 2 : index
    %c9_95 = arith.constant 9 : index
    %c0_96 = arith.constant 0 : index
    %67 = vector.load %arg12[%c0_93, %c2_94, %c9_95, %c0_96] : memref<2x6x32x32xf32, #tpu.memory_space<vmem>>, vector<2x4x16x32xf32>
    %68 = vector.shape_cast %67 : vector<2x4x16x32xf32> to vector<128x32xf32>
    %c0_97 = arith.constant 0 : index
    %c8_98 = arith.constant 8 : index
    %c0_99 = arith.constant 0 : index
    %c0_100 = arith.constant 0 : index
    %69 = vector.load %arg3[%c0_97, %c8_98, %c0_99, %c0_100] : memref<2x9x32x32xf32, #tpu.memory_space<vmem>>, vector<1x1x32x32xf32>
    %70 = vector.shape_cast %69 : vector<1x1x32x32xf32> to vector<32x32xf32>
    %cst_101 = arith.constant dense<0.000000e+00> : vector<128x32xf32>
    %71 = tpu.matmul %68, %70, %cst_101 {dimension_numbers = #tpu.dot_dimension_numbers<[1], [0], [0], [1], [0, 0, 1, 1], [], []>} : vector<128x32xf32>, vector<32x32xf32>, vector<128x32xf32> -> vector<128x32xf32>
    %72 = arith.addf %66, %71 : vector<128x32xf32>
    %c0_102 = arith.constant 0 : index
    %c0_103 = arith.constant 0 : index
    %c0_104 = arith.constant 0 : index
    %73 = vector.load %arg4[%c0_102, %c0_103, %c0_104] : memref<2x1x32xf32, #tpu.memory_space<vmem>>, vector<1x1x32xf32>
    %74 = vector.shape_cast %73 : vector<1x1x32xf32> to vector<1x32xf32>
    %75 = vector.broadcast %74 : vector<1x32xf32> to vector<128x32xf32>
    %76 = arith.addf %72, %75 : vector<128x32xf32>
    %cst_105 = arith.constant 0.000000e+00 : f32
    %77 = vector.broadcast %cst_105 : f32 to vector<128x32xf32>
    %78 = arith.maximumf %76, %77 : vector<128x32xf32>
    %79 = arith.addf %78, %7 : vector<128x32xf32>
    %80 = vector.shape_cast %79 : vector<128x32xf32> to vector<2x4x16x32xf32>
    %c0_106 = arith.constant 0 : index
    %c1_107 = arith.constant 1 : index
    %c8_108 = arith.constant 8 : index
    %c0_109 = arith.constant 0 : index
    %81 = vector.load %arg12[%c0_106, %c1_107, %c8_108, %c0_109] : memref<2x6x32x32xf32, #tpu.memory_space<vmem>>, vector<2x4x16x32xf32>
    tpu.vector_store %arg12[%c0_106, %c1_107, %c8_108, %c0_109], %80 {strides = array<i32>} : memref<2x6x32x32xf32, #tpu.memory_space<vmem>>, vector<2x4x16x32xf32>,
    %cst_110 = arith.constant 0.000000e+00 : f32
    %82 = vector.broadcast %cst_110 : f32 to vector<128x32xf32>
    %c0_111 = arith.constant 0 : index
    %c0_112 = arith.constant 0 : index
    %c7_113 = arith.constant 7 : index
    %c0_114 = arith.constant 0 : index
    %83 = vector.load %arg12[%c0_111, %c0_112, %c7_113, %c0_114] : memref<2x6x32x32xf32, #tpu.memory_space<vmem>>, vector<2x4x16x32xf32>
    %84 = vector.shape_cast %83 : vector<2x4x16x32xf32> to vector<128x32xf32>
    %c1_115 = arith.constant 1 : index
    %c0_116 = arith.constant 0 : index
    %c0_117 = arith.constant 0 : index
    %c0_118 = arith.constant 0 : index
    %85 = vector.load %arg3[%c1_115, %c0_116, %c0_117, %c0_118] : memref<2x9x32x32xf32, #tpu.memory_space<vmem>>, vector<1x1x32x32xf32>
    %86 = vector.shape_cast %85 : vector<1x1x32x32xf32> to vector<32x32xf32>
    %cst_119 = arith.constant dense<0.000000e+00> : vector<128x32xf32>
    %87 = tpu.matmul %84, %86, %cst_119 {dimension_numbers = #tpu.dot_dimension_numbers<[1], [0], [0], [1], [0, 0, 1, 1], [], []>} : vector<128x32xf32>, vector<32x32xf32>, vector<128x32xf32> -> vector<128x32xf32>
    %88 = arith.addf %82, %87 : vector<128x32xf32>
    %c0_120 = arith.constant 0 : index
    %c0_121 = arith.constant 0 : index
    %c8_122 = arith.constant 8 : index
    %c0_123 = arith.constant 0 : index
    %89 = vector.load %arg12[%c0_120, %c0_121, %c8_122, %c0_123] : memref<2x6x32x32xf32, #tpu.memory_space<vmem>>, vector<2x4x16x32xf32>
    %90 = vector.shape_cast %89 : vector<2x4x16x32xf32> to vector<128x32xf32>
    %c1_124 = arith.constant 1 : index
    %c1_125 = arith.constant 1 : index
    %c0_126 = arith.constant 0 : index
    %c0_127 = arith.constant 0 : index
    %91 = vector.load %arg3[%c1_124, %c1_125, %c0_126, %c0_127] : memref<2x9x32x32xf32, #tpu.memory_space<vmem>>, vector<1x1x32x32xf32>
    %92 = vector.shape_cast %91 : vector<1x1x32x32xf32> to vector<32x32xf32>
    %cst_128 = arith.constant dense<0.000000e+00> : vector<128x32xf32>
    %93 = tpu.matmul %90, %92, %cst_128 {dimension_numbers = #tpu.dot_dimension_numbers<[1], [0], [0], [1], [0, 0, 1, 1], [], []>} : vector<128x32xf32>, vector<32x32xf32>, vector<128x32xf32> -> vector<128x32xf32>
    %94 = arith.addf %88, %93 : vector<128x32xf32>
    %c0_129 = arith.constant 0 : index
    %c0_130 = arith.constant 0 : index
    %c9_131 = arith.constant 9 : index
    %c0_132 = arith.constant 0 : index
    %95 = vector.load %arg12[%c0_129, %c0_130, %c9_131, %c0_132] : memref<2x6x32x32xf32, #tpu.memory_space<vmem>>, vector<2x4x16x32xf32>
    %96 = vector.shape_cast %95 : vector<2x4x16x32xf32> to vector<128x32xf32>
    %c1_133 = arith.constant 1 : index
    %c2_134 = arith.constant 2 : index
    %c0_135 = arith.constant 0 : index
    %c0_136 = arith.constant 0 : index
    %97 = vector.load %arg3[%c1_133, %c2_134, %c0_135, %c0_136] : memref<2x9x32x32xf32, #tpu.memory_space<vmem>>, vector<1x1x32x32xf32>
    %98 = vector.shape_cast %97 : vector<1x1x32x32xf32> to vector<32x32xf32>
    %cst_137 = arith.constant dense<0.000000e+00> : vector<128x32xf32>
    %99 = tpu.matmul %96, %98, %cst_137 {dimension_numbers = #tpu.dot_dimension_numbers<[1], [0], [0], [1], [0, 0, 1, 1], [], []>} : vector<128x32xf32>, vector<32x32xf32>, vector<128x32xf32> -> vector<128x32xf32>
    %100 = arith.addf %94, %99 : vector<128x32xf32>
    %c0_138 = arith.constant 0 : index
    %c1_139 = arith.constant 1 : index
    %c7_140 = arith.constant 7 : index
    %c0_141 = arith.constant 0 : index
    %101 = vector.load %arg12[%c0_138, %c1_139, %c7_140, %c0_141] : memref<2x6x32x32xf32, #tpu.memory_space<vmem>>, vector<2x4x16x32xf32>
    %102 = vector.shape_cast %101 : vector<2x4x16x32xf32> to vector<128x32xf32>
    %c1_142 = arith.constant 1 : index
    %c3_143 = arith.constant 3 : index
    %c0_144 = arith.constant 0 : index
    %c0_145 = arith.constant 0 : index
    %103 = vector.load %arg3[%c1_142, %c3_143, %c0_144, %c0_145] : memref<2x9x32x32xf32, #tpu.memory_space<vmem>>, vector<1x1x32x32xf32>
    %104 = vector.shape_cast %103 : vector<1x1x32x32xf32> to vector<32x32xf32>
    %cst_146 = arith.constant dense<0.000000e+00> : vector<128x32xf32>
    %105 = tpu.matmul %102, %104, %cst_146 {dimension_numbers = #tpu.dot_dimension_numbers<[1], [0], [0], [1], [0, 0, 1, 1], [], []>} : vector<128x32xf32>, vector<32x32xf32>, vector<128x32xf32> -> vector<128x32xf32>
    %106 = arith.addf %100, %105 : vector<128x32xf32>
    %c0_147 = arith.constant 0 : index
    %c1_148 = arith.constant 1 : index
    %c8_149 = arith.constant 8 : index
    %c0_150 = arith.constant 0 : index
    %107 = vector.load %arg12[%c0_147, %c1_148, %c8_149, %c0_150] : memref<2x6x32x32xf32, #tpu.memory_space<vmem>>, vector<2x4x16x32xf32>
    %108 = vector.shape_cast %107 : vector<2x4x16x32xf32> to vector<128x32xf32>
    %c1_151 = arith.constant 1 : index
    %c4_152 = arith.constant 4 : index
    %c0_153 = arith.constant 0 : index
    %c0_154 = arith.constant 0 : index
    %109 = vector.load %arg3[%c1_151, %c4_152, %c0_153, %c0_154] : memref<2x9x32x32xf32, #tpu.memory_space<vmem>>, vector<1x1x32x32xf32>
    %110 = vector.shape_cast %109 : vector<1x1x32x32xf32> to vector<32x32xf32>
    %cst_155 = arith.constant dense<0.000000e+00> : vector<128x32xf32>
    %111 = tpu.matmul %108, %110, %cst_155 {dimension_numbers = #tpu.dot_dimension_numbers<[1], [0], [0], [1], [0, 0, 1, 1], [], []>} : vector<128x32xf32>, vector<32x32xf32>, vector<128x32xf32> -> vector<128x32xf32>
    %112 = arith.addf %106, %111 : vector<128x32xf32>
    %c0_156 = arith.constant 0 : index
    %c1_157 = arith.constant 1 : index
    %c9_158 = arith.constant 9 : index
    %c0_159 = arith.constant 0 : index
    %113 = vector.load %arg12[%c0_156, %c1_157, %c9_158, %c0_159] : memref<2x6x32x32xf32, #tpu.memory_space<vmem>>, vector<2x4x16x32xf32>
    %114 = vector.shape_cast %113 : vector<2x4x16x32xf32> to vector<128x32xf32>
    %c1_160 = arith.constant 1 : index
    %c5_161 = arith.constant 5 : index
    %c0_162 = arith.constant 0 : index
    %c0_163 = arith.constant 0 : index
    %115 = vector.load %arg3[%c1_160, %c5_161, %c0_162, %c0_163] : memref<2x9x32x32xf32, #tpu.memory_space<vmem>>, vector<1x1x32x32xf32>
    %116 = vector.shape_cast %115 : vector<1x1x32x32xf32> to vector<32x32xf32>
    %cst_164 = arith.constant dense<0.000000e+00> : vector<128x32xf32>
    %117 = tpu.matmul %114, %116, %cst_164 {dimension_numbers = #tpu.dot_dimension_numbers<[1], [0], [0], [1], [0, 0, 1, 1], [], []>} : vector<128x32xf32>, vector<32x32xf32>, vector<128x32xf32> -> vector<128x32xf32>
    %118 = arith.addf %112, %117 : vector<128x32xf32>
    %c0_165 = arith.constant 0 : index
    %c2_166 = arith.constant 2 : index
    %c7_167 = arith.constant 7 : index
    %c0_168 = arith.constant 0 : index
    %119 = vector.load %arg12[%c0_165, %c2_166, %c7_167, %c0_168] : memref<2x6x32x32xf32, #tpu.memory_space<vmem>>, vector<2x4x16x32xf32>
    %120 = vector.shape_cast %119 : vector<2x4x16x32xf32> to vector<128x32xf32>
    %c1_169 = arith.constant 1 : index
    %c6_170 = arith.constant 6 : index
    %c0_171 = arith.constant 0 : index
    %c0_172 = arith.constant 0 : index
    %121 = vector.load %arg3[%c1_169, %c6_170, %c0_171, %c0_172] : memref<2x9x32x32xf32, #tpu.memory_space<vmem>>, vector<1x1x32x32xf32>
    %122 = vector.shape_cast %121 : vector<1x1x32x32xf32> to vector<32x32xf32>
    %cst_173 = arith.constant dense<0.000000e+00> : vector<128x32xf32>
    %123 = tpu.matmul %120, %122, %cst_173 {dimension_numbers = #tpu.dot_dimension_numbers<[1], [0], [0], [1], [0, 0, 1, 1], [], []>} : vector<128x32xf32>, vector<32x32xf32>, vector<128x32xf32> -> vector<128x32xf32>
    %124 = arith.addf %118, %123 : vector<128x32xf32>
    %c0_174 = arith.constant 0 : index
    %c2_175 = arith.constant 2 : index
    %c8_176 = arith.constant 8 : index
    %c0_177 = arith.constant 0 : index
    %125 = vector.load %arg12[%c0_174, %c2_175, %c8_176, %c0_177] : memref<2x6x32x32xf32, #tpu.memory_space<vmem>>, vector<2x4x16x32xf32>
    %126 = vector.shape_cast %125 : vector<2x4x16x32xf32> to vector<128x32xf32>
    %c1_178 = arith.constant 1 : index
    %c7_179 = arith.constant 7 : index
    %c0_180 = arith.constant 0 : index
    %c0_181 = arith.constant 0 : index
    %127 = vector.load %arg3[%c1_178, %c7_179, %c0_180, %c0_181] : memref<2x9x32x32xf32, #tpu.memory_space<vmem>>, vector<1x1x32x32xf32>
    %128 = vector.shape_cast %127 : vector<1x1x32x32xf32> to vector<32x32xf32>
    %cst_182 = arith.constant dense<0.000000e+00> : vector<128x32xf32>
    %129 = tpu.matmul %126, %128, %cst_182 {dimension_numbers = #tpu.dot_dimension_numbers<[1], [0], [0], [1], [0, 0, 1, 1], [], []>} : vector<128x32xf32>, vector<32x32xf32>, vector<128x32xf32> -> vector<128x32xf32>
    %130 = arith.addf %124, %129 : vector<128x32xf32>
    %c0_183 = arith.constant 0 : index
    %c2_184 = arith.constant 2 : index
    %c9_185 = arith.constant 9 : index
    %c0_186 = arith.constant 0 : index
    %131 = vector.load %arg12[%c0_183, %c2_184, %c9_185, %c0_186] : memref<2x6x32x32xf32, #tpu.memory_space<vmem>>, vector<2x4x16x32xf32>
    %132 = vector.shape_cast %131 : vector<2x4x16x32xf32> to vector<128x32xf32>
    %c1_187 = arith.constant 1 : index
    %c8_188 = arith.constant 8 : index
    %c0_189 = arith.constant 0 : index
    %c0_190 = arith.constant 0 : index
    %133 = vector.load %arg3[%c1_187, %c8_188, %c0_189, %c0_190] : memref<2x9x32x32xf32, #tpu.memory_space<vmem>>, vector<1x1x32x32xf32>
    %134 = vector.shape_cast %133 : vector<1x1x32x32xf32> to vector<32x32xf32>
    %cst_191 = arith.constant dense<0.000000e+00> : vector<128x32xf32>
    %135 = tpu.matmul %132, %134, %cst_191 {dimension_numbers = #tpu.dot_dimension_numbers<[1], [0], [0], [1], [0, 0, 1, 1], [], []>} : vector<128x32xf32>, vector<32x32xf32>, vector<128x32xf32> -> vector<128x32xf32>
    %136 = arith.addf %130, %135 : vector<128x32xf32>
    %c1_192 = arith.constant 1 : index
    %c0_193 = arith.constant 0 : index
    %c0_194 = arith.constant 0 : index
    %137 = vector.load %arg4[%c1_192, %c0_193, %c0_194] : memref<2x1x32xf32, #tpu.memory_space<vmem>>, vector<1x1x32xf32>
    %138 = vector.shape_cast %137 : vector<1x1x32xf32> to vector<1x32xf32>
    %139 = vector.broadcast %138 : vector<1x32xf32> to vector<128x32xf32>
    %140 = arith.addf %136, %139 : vector<128x32xf32>
    %cst_195 = arith.constant 0.000000e+00 : f32
    %141 = vector.broadcast %cst_195 : f32 to vector<128x32xf32>
    %142 = arith.maximumf %140, %141 : vector<128x32xf32>
    %143 = arith.addf %142, %7 : vector<128x32xf32>
    %144 = vector.extract_strided_slice %143 {offsets = [0, 0], sizes = [64, 32], strides = [1, 1]} : vector<128x32xf32> to vector<64x32xf32>
    %145 = vector.extract_strided_slice %143 {offsets = [64, 0], sizes = [64, 32], strides = [1, 1]} : vector<128x32xf32> to vector<64x32xf32>
    %cst_196 = arith.constant 0.000000e+00 : f32
    %146 = vector.broadcast %cst_196 : f32 to vector<64x32xf32>
    %cst_197 = arith.constant 0.000000e+00 : f32
    %147 = vector.broadcast %cst_197 : f32 to vector<64x32xf32>
    %c0_198 = arith.constant 0 : index
    %c0_199 = arith.constant 0 : index
    %c0_200 = arith.constant 0 : index
    %148 = vector.load %arg5[%c0_198, %c0_199, %c0_200] : memref<32x64x32xf32, #tpu.memory_space<vmem>>, vector<1x64x32xf32>
    %149 = vector.shape_cast %148 : vector<1x64x32xf32> to vector<64x32xf32>
    %150 = vector.extract_strided_slice %144 {offsets = [0, 0], sizes = [64, 1], strides = [1, 1]} : vector<64x32xf32> to vector<64x1xf32>
    %151 = vector.broadcast %150 : vector<64x1xf32> to vector<64x32xf32>
    %152 = arith.mulf %151, %149 : vector<64x32xf32>
    %153 = arith.addf %146, %152 : vector<64x32xf32>
    %154 = vector.extract_strided_slice %145 {offsets = [0, 0], sizes = [64, 1], strides = [1, 1]} : vector<64x32xf32> to vector<64x1xf32>
    %155 = vector.broadcast %154 : vector<64x1xf32> to vector<64x32xf32>
    %156 = arith.mulf %155, %149 : vector<64x32xf32>
    %157 = arith.addf %147, %156 : vector<64x32xf32>
    %c1_201 = arith.constant 1 : index
    %c0_202 = arith.constant 0 : index
    %c0_203 = arith.constant 0 : index
    %158 = vector.load %arg5[%c1_201, %c0_202, %c0_203] : memref<32x64x32xf32, #tpu.memory_space<vmem>>, vector<1x64x32xf32>
    %159 = vector.shape_cast %158 : vector<1x64x32xf32> to vector<64x32xf32>
    %160 = vector.extract_strided_slice %144 {offsets = [0, 1], sizes = [64, 1], strides = [1, 1]} : vector<64x32xf32> to vector<64x1xf32>
    %161 = vector.broadcast %160 : vector<64x1xf32> to vector<64x32xf32>
    %162 = arith.mulf %161, %159 : vector<64x32xf32>
    %163 = arith.addf %153, %162 : vector<64x32xf32>
    %164 = vector.extract_strided_slice %145 {offsets = [0, 1], sizes = [64, 1], strides = [1, 1]} : vector<64x32xf32> to vector<64x1xf32>
    %165 = vector.broadcast %164 : vector<64x1xf32> to vector<64x32xf32>
    %166 = arith.mulf %165, %159 : vector<64x32xf32>
    %167 = arith.addf %157, %166 : vector<64x32xf32>
    %c2_204 = arith.constant 2 : index
    %c0_205 = arith.constant 0 : index
    %c0_206 = arith.constant 0 : index
    %168 = vector.load %arg5[%c2_204, %c0_205, %c0_206] : memref<32x64x32xf32, #tpu.memory_space<vmem>>, vector<1x64x32xf32>
    %169 = vector.shape_cast %168 : vector<1x64x32xf32> to vector<64x32xf32>
    %170 = vector.extract_strided_slice %144 {offsets = [0, 2], sizes = [64, 1], strides = [1, 1]} : vector<64x32xf32> to vector<64x1xf32>
    %171 = vector.broadcast %170 : vector<64x1xf32> to vector<64x32xf32>
    %172 = arith.mulf %171, %169 : vector<64x32xf32>
    %173 = arith.addf %163, %172 : vector<64x32xf32>
    %174 = vector.extract_strided_slice %145 {offsets = [0, 2], sizes = [64, 1], strides = [1, 1]} : vector<64x32xf32> to vector<64x1xf32>
    %175 = vector.broadcast %174 : vector<64x1xf32> to vector<64x32xf32>
    %176 = arith.mulf %175, %169 : vector<64x32xf32>
    %177 = arith.addf %167, %176 : vector<64x32xf32>
    %c3_207 = arith.constant 3 : index
    %c0_208 = arith.constant 0 : index
    %c0_209 = arith.constant 0 : index
    %178 = vector.load %arg5[%c3_207, %c0_208, %c0_209] : memref<32x64x32xf32, #tpu.memory_space<vmem>>, vector<1x64x32xf32>
    %179 = vector.shape_cast %178 : vector<1x64x32xf32> to vector<64x32xf32>
    %180 = vector.extract_strided_slice %144 {offsets = [0, 3], sizes = [64, 1], strides = [1, 1]} : vector<64x32xf32> to vector<64x1xf32>
    %181 = vector.broadcast %180 : vector<64x1xf32> to vector<64x32xf32>
    %182 = arith.mulf %181, %179 : vector<64x32xf32>
    %183 = arith.addf %173, %182 : vector<64x32xf32>
    %184 = vector.extract_strided_slice %145 {offsets = [0, 3], sizes = [64, 1], strides = [1, 1]} : vector<64x32xf32> to vector<64x1xf32>
    %185 = vector.broadcast %184 : vector<64x1xf32> to vector<64x32xf32>
    %186 = arith.mulf %185, %179 : vector<64x32xf32>
    %187 = arith.addf %177, %186 : vector<64x32xf32>
    %c4_210 = arith.constant 4 : index
    %c0_211 = arith.constant 0 : index
    %c0_212 = arith.constant 0 : index
    %188 = vector.load %arg5[%c4_210, %c0_211, %c0_212] : memref<32x64x32xf32, #tpu.memory_space<vmem>>, vector<1x64x32xf32>
    %189 = vector.shape_cast %188 : vector<1x64x32xf32> to vector<64x32xf32>
    %190 = vector.extract_strided_slice %144 {offsets = [0, 4], sizes = [64, 1], strides = [1, 1]} : vector<64x32xf32> to vector<64x1xf32>
    %191 = vector.broadcast %190 : vector<64x1xf32> to vector<64x32xf32>
    %192 = arith.mulf %191, %189 : vector<64x32xf32>
    %193 = arith.addf %183, %192 : vector<64x32xf32>
    %194 = vector.extract_strided_slice %145 {offsets = [0, 4], sizes = [64, 1], strides = [1, 1]} : vector<64x32xf32> to vector<64x1xf32>
    %195 = vector.broadcast %194 : vector<64x1xf32> to vector<64x32xf32>
    %196 = arith.mulf %195, %189 : vector<64x32xf32>
    %197 = arith.addf %187, %196 : vector<64x32xf32>
    %c5_213 = arith.constant 5 : index
    %c0_214 = arith.constant 0 : index
    %c0_215 = arith.constant 0 : index
    %198 = vector.load %arg5[%c5_213, %c0_214, %c0_215] : memref<32x64x32xf32, #tpu.memory_space<vmem>>, vector<1x64x32xf32>
    %199 = vector.shape_cast %198 : vector<1x64x32xf32> to vector<64x32xf32>
    %200 = vector.extract_strided_slice %144 {offsets = [0, 5], sizes = [64, 1], strides = [1, 1]} : vector<64x32xf32> to vector<64x1xf32>
    %201 = vector.broadcast %200 : vector<64x1xf32> to vector<64x32xf32>
    %202 = arith.mulf %201, %199 : vector<64x32xf32>
    %203 = arith.addf %193, %202 : vector<64x32xf32>
    %204 = vector.extract_strided_slice %145 {offsets = [0, 5], sizes = [64, 1], strides = [1, 1]} : vector<64x32xf32> to vector<64x1xf32>
    %205 = vector.broadcast %204 : vector<64x1xf32> to vector<64x32xf32>
    %206 = arith.mulf %205, %199 : vector<64x32xf32>
    %207 = arith.addf %197, %206 : vector<64x32xf32>
    %c6_216 = arith.constant 6 : index
    %c0_217 = arith.constant 0 : index
    %c0_218 = arith.constant 0 : index
    %208 = vector.load %arg5[%c6_216, %c0_217, %c0_218] : memref<32x64x32xf32, #tpu.memory_space<vmem>>, vector<1x64x32xf32>
    %209 = vector.shape_cast %208 : vector<1x64x32xf32> to vector<64x32xf32>
    %210 = vector.extract_strided_slice %144 {offsets = [0, 6], sizes = [64, 1], strides = [1, 1]} : vector<64x32xf32> to vector<64x1xf32>
    %211 = vector.broadcast %210 : vector<64x1xf32> to vector<64x32xf32>
    %212 = arith.mulf %211, %209 : vector<64x32xf32>
    %213 = arith.addf %203, %212 : vector<64x32xf32>
    %214 = vector.extract_strided_slice %145 {offsets = [0, 6], sizes = [64, 1], strides = [1, 1]} : vector<64x32xf32> to vector<64x1xf32>
    %215 = vector.broadcast %214 : vector<64x1xf32> to vector<64x32xf32>
    %216 = arith.mulf %215, %209 : vector<64x32xf32>
    %217 = arith.addf %207, %216 : vector<64x32xf32>
    %c7_219 = arith.constant 7 : index
    %c0_220 = arith.constant 0 : index
    %c0_221 = arith.constant 0 : index
    %218 = vector.load %arg5[%c7_219, %c0_220, %c0_221] : memref<32x64x32xf32, #tpu.memory_space<vmem>>, vector<1x64x32xf32>
    %219 = vector.shape_cast %218 : vector<1x64x32xf32> to vector<64x32xf32>
    %220 = vector.extract_strided_slice %144 {offsets = [0, 7], sizes = [64, 1], strides = [1, 1]} : vector<64x32xf32> to vector<64x1xf32>
    %221 = vector.broadcast %220 : vector<64x1xf32> to vector<64x32xf32>
    %222 = arith.mulf %221, %219 : vector<64x32xf32>
    %223 = arith.addf %213, %222 : vector<64x32xf32>
    %224 = vector.extract_strided_slice %145 {offsets = [0, 7], sizes = [64, 1], strides = [1, 1]} : vector<64x32xf32> to vector<64x1xf32>
    %225 = vector.broadcast %224 : vector<64x1xf32> to vector<64x32xf32>
    %226 = arith.mulf %225, %219 : vector<64x32xf32>
    %227 = arith.addf %217, %226 : vector<64x32xf32>
    %c8_222 = arith.constant 8 : index
    %c0_223 = arith.constant 0 : index
    %c0_224 = arith.constant 0 : index
    %228 = vector.load %arg5[%c8_222, %c0_223, %c0_224] : memref<32x64x32xf32, #tpu.memory_space<vmem>>, vector<1x64x32xf32>
    %229 = vector.shape_cast %228 : vector<1x64x32xf32> to vector<64x32xf32>
    %230 = vector.extract_strided_slice %144 {offsets = [0, 8], sizes = [64, 1], strides = [1, 1]} : vector<64x32xf32> to vector<64x1xf32>
    %231 = vector.broadcast %230 : vector<64x1xf32> to vector<64x32xf32>
    %232 = arith.mulf %231, %229 : vector<64x32xf32>
    %233 = arith.addf %223, %232 : vector<64x32xf32>
    %234 = vector.extract_strided_slice %145 {offsets = [0, 8], sizes = [64, 1], strides = [1, 1]} : vector<64x32xf32> to vector<64x1xf32>
    %235 = vector.broadcast %234 : vector<64x1xf32> to vector<64x32xf32>
    %236 = arith.mulf %235, %229 : vector<64x32xf32>
    %237 = arith.addf %227, %236 : vector<64x32xf32>
    %c9_225 = arith.constant 9 : index
    %c0_226 = arith.constant 0 : index
    %c0_227 = arith.constant 0 : index
    %238 = vector.load %arg5[%c9_225, %c0_226, %c0_227] : memref<32x64x32xf32, #tpu.memory_space<vmem>>, vector<1x64x32xf32>
    %239 = vector.shape_cast %238 : vector<1x64x32xf32> to vector<64x32xf32>
    %240 = vector.extract_strided_slice %144 {offsets = [0, 9], sizes = [64, 1], strides = [1, 1]} : vector<64x32xf32> to vector<64x1xf32>
    %241 = vector.broadcast %240 : vector<64x1xf32> to vector<64x32xf32>
    %242 = arith.mulf %241, %239 : vector<64x32xf32>
    %243 = arith.addf %233, %242 : vector<64x32xf32>
    %244 = vector.extract_strided_slice %145 {offsets = [0, 9], sizes = [64, 1], strides = [1, 1]} : vector<64x32xf32> to vector<64x1xf32>
    %245 = vector.broadcast %244 : vector<64x1xf32> to vector<64x32xf32>
    %246 = arith.mulf %245, %239 : vector<64x32xf32>
    %247 = arith.addf %237, %246 : vector<64x32xf32>
    %c10 = arith.constant 10 : index
    %c0_228 = arith.constant 0 : index
    %c0_229 = arith.constant 0 : index
    %248 = vector.load %arg5[%c10, %c0_228, %c0_229] : memref<32x64x32xf32, #tpu.memory_space<vmem>>, vector<1x64x32xf32>
    %249 = vector.shape_cast %248 : vector<1x64x32xf32> to vector<64x32xf32>
    %250 = vector.extract_strided_slice %144 {offsets = [0, 10], sizes = [64, 1], strides = [1, 1]} : vector<64x32xf32> to vector<64x1xf32>
    %251 = vector.broadcast %250 : vector<64x1xf32> to vector<64x32xf32>
    %252 = arith.mulf %251, %249 : vector<64x32xf32>
    %253 = arith.addf %243, %252 : vector<64x32xf32>
    %254 = vector.extract_strided_slice %145 {offsets = [0, 10], sizes = [64, 1], strides = [1, 1]} : vector<64x32xf32> to vector<64x1xf32>
    %255 = vector.broadcast %254 : vector<64x1xf32> to vector<64x32xf32>
    %256 = arith.mulf %255, %249 : vector<64x32xf32>
    %257 = arith.addf %247, %256 : vector<64x32xf32>
    %c11 = arith.constant 11 : index
    %c0_230 = arith.constant 0 : index
    %c0_231 = arith.constant 0 : index
    %258 = vector.load %arg5[%c11, %c0_230, %c0_231] : memref<32x64x32xf32, #tpu.memory_space<vmem>>, vector<1x64x32xf32>
    %259 = vector.shape_cast %258 : vector<1x64x32xf32> to vector<64x32xf32>
    %260 = vector.extract_strided_slice %144 {offsets = [0, 11], sizes = [64, 1], strides = [1, 1]} : vector<64x32xf32> to vector<64x1xf32>
    %261 = vector.broadcast %260 : vector<64x1xf32> to vector<64x32xf32>
    %262 = arith.mulf %261, %259 : vector<64x32xf32>
    %263 = arith.addf %253, %262 : vector<64x32xf32>
    %264 = vector.extract_strided_slice %145 {offsets = [0, 11], sizes = [64, 1], strides = [1, 1]} : vector<64x32xf32> to vector<64x1xf32>
    %265 = vector.broadcast %264 : vector<64x1xf32> to vector<64x32xf32>
    %266 = arith.mulf %265, %259 : vector<64x32xf32>
    %267 = arith.addf %257, %266 : vector<64x32xf32>
    %c12 = arith.constant 12 : index
    %c0_232 = arith.constant 0 : index
    %c0_233 = arith.constant 0 : index
    %268 = vector.load %arg5[%c12, %c0_232, %c0_233] : memref<32x64x32xf32, #tpu.memory_space<vmem>>, vector<1x64x32xf32>
    %269 = vector.shape_cast %268 : vector<1x64x32xf32> to vector<64x32xf32>
    %270 = vector.extract_strided_slice %144 {offsets = [0, 12], sizes = [64, 1], strides = [1, 1]} : vector<64x32xf32> to vector<64x1xf32>
    %271 = vector.broadcast %270 : vector<64x1xf32> to vector<64x32xf32>
    %272 = arith.mulf %271, %269 : vector<64x32xf32>
    %273 = arith.addf %263, %272 : vector<64x32xf32>
    %274 = vector.extract_strided_slice %145 {offsets = [0, 12], sizes = [64, 1], strides = [1, 1]} : vector<64x32xf32> to vector<64x1xf32>
    %275 = vector.broadcast %274 : vector<64x1xf32> to vector<64x32xf32>
    %276 = arith.mulf %275, %269 : vector<64x32xf32>
    %277 = arith.addf %267, %276 : vector<64x32xf32>
    %c13 = arith.constant 13 : index
    %c0_234 = arith.constant 0 : index
    %c0_235 = arith.constant 0 : index
    %278 = vector.load %arg5[%c13, %c0_234, %c0_235] : memref<32x64x32xf32, #tpu.memory_space<vmem>>, vector<1x64x32xf32>
    %279 = vector.shape_cast %278 : vector<1x64x32xf32> to vector<64x32xf32>
    %280 = vector.extract_strided_slice %144 {offsets = [0, 13], sizes = [64, 1], strides = [1, 1]} : vector<64x32xf32> to vector<64x1xf32>
    %281 = vector.broadcast %280 : vector<64x1xf32> to vector<64x32xf32>
    %282 = arith.mulf %281, %279 : vector<64x32xf32>
    %283 = arith.addf %273, %282 : vector<64x32xf32>
    %284 = vector.extract_strided_slice %145 {offsets = [0, 13], sizes = [64, 1], strides = [1, 1]} : vector<64x32xf32> to vector<64x1xf32>
    %285 = vector.broadcast %284 : vector<64x1xf32> to vector<64x32xf32>
    %286 = arith.mulf %285, %279 : vector<64x32xf32>
    %287 = arith.addf %277, %286 : vector<64x32xf32>
    %c14 = arith.constant 14 : index
    %c0_236 = arith.constant 0 : index
    %c0_237 = arith.constant 0 : index
    %288 = vector.load %arg5[%c14, %c0_236, %c0_237] : memref<32x64x32xf32, #tpu.memory_space<vmem>>, vector<1x64x32xf32>
    %289 = vector.shape_cast %288 : vector<1x64x32xf32> to vector<64x32xf32>
    %290 = vector.extract_strided_slice %144 {offsets = [0, 14], sizes = [64, 1], strides = [1, 1]} : vector<64x32xf32> to vector<64x1xf32>
    %291 = vector.broadcast %290 : vector<64x1xf32> to vector<64x32xf32>
    %292 = arith.mulf %291, %289 : vector<64x32xf32>
    %293 = arith.addf %283, %292 : vector<64x32xf32>
    %294 = vector.extract_strided_slice %145 {offsets = [0, 14], sizes = [64, 1], strides = [1, 1]} : vector<64x32xf32> to vector<64x1xf32>
    %295 = vector.broadcast %294 : vector<64x1xf32> to vector<64x32xf32>
    %296 = arith.mulf %295, %289 : vector<64x32xf32>
    %297 = arith.addf %287, %296 : vector<64x32xf32>
    %c15 = arith.constant 15 : index
    %c0_238 = arith.constant 0 : index
    %c0_239 = arith.constant 0 : index
    %298 = vector.load %arg5[%c15, %c0_238, %c0_239] : memref<32x64x32xf32, #tpu.memory_space<vmem>>, vector<1x64x32xf32>
    %299 = vector.shape_cast %298 : vector<1x64x32xf32> to vector<64x32xf32>
    %300 = vector.extract_strided_slice %144 {offsets = [0, 15], sizes = [64, 1], strides = [1, 1]} : vector<64x32xf32> to vector<64x1xf32>
    %301 = vector.broadcast %300 : vector<64x1xf32> to vector<64x32xf32>
    %302 = arith.mulf %301, %299 : vector<64x32xf32>
    %303 = arith.addf %293, %302 : vector<64x32xf32>
    %304 = vector.extract_strided_slice %145 {offsets = [0, 15], sizes = [64, 1], strides = [1, 1]} : vector<64x32xf32> to vector<64x1xf32>
    %305 = vector.broadcast %304 : vector<64x1xf32> to vector<64x32xf32>
    %306 = arith.mulf %305, %299 : vector<64x32xf32>
    %307 = arith.addf %297, %306 : vector<64x32xf32>
    %c16 = arith.constant 16 : index
    %c0_240 = arith.constant 0 : index
    %c0_241 = arith.constant 0 : index
    %308 = vector.load %arg5[%c16, %c0_240, %c0_241] : memref<32x64x32xf32, #tpu.memory_space<vmem>>, vector<1x64x32xf32>
    %309 = vector.shape_cast %308 : vector<1x64x32xf32> to vector<64x32xf32>
    %310 = vector.extract_strided_slice %144 {offsets = [0, 16], sizes = [64, 1], strides = [1, 1]} : vector<64x32xf32> to vector<64x1xf32>
    %311 = vector.broadcast %310 : vector<64x1xf32> to vector<64x32xf32>
    %312 = arith.mulf %311, %309 : vector<64x32xf32>
    %313 = arith.addf %303, %312 : vector<64x32xf32>
    %314 = vector.extract_strided_slice %145 {offsets = [0, 16], sizes = [64, 1], strides = [1, 1]} : vector<64x32xf32> to vector<64x1xf32>
    %315 = vector.broadcast %314 : vector<64x1xf32> to vector<64x32xf32>
    %316 = arith.mulf %315, %309 : vector<64x32xf32>
    %317 = arith.addf %307, %316 : vector<64x32xf32>
    %c17 = arith.constant 17 : index
    %c0_242 = arith.constant 0 : index
    %c0_243 = arith.constant 0 : index
    %318 = vector.load %arg5[%c17, %c0_242, %c0_243] : memref<32x64x32xf32, #tpu.memory_space<vmem>>, vector<1x64x32xf32>
    %319 = vector.shape_cast %318 : vector<1x64x32xf32> to vector<64x32xf32>
    %320 = vector.extract_strided_slice %144 {offsets = [0, 17], sizes = [64, 1], strides = [1, 1]} : vector<64x32xf32> to vector<64x1xf32>
    %321 = vector.broadcast %320 : vector<64x1xf32> to vector<64x32xf32>
    %322 = arith.mulf %321, %319 : vector<64x32xf32>
    %323 = arith.addf %313, %322 : vector<64x32xf32>
    %324 = vector.extract_strided_slice %145 {offsets = [0, 17], sizes = [64, 1], strides = [1, 1]} : vector<64x32xf32> to vector<64x1xf32>
    %325 = vector.broadcast %324 : vector<64x1xf32> to vector<64x32xf32>
    %326 = arith.mulf %325, %319 : vector<64x32xf32>
    %327 = arith.addf %317, %326 : vector<64x32xf32>
    %c18 = arith.constant 18 : index
    %c0_244 = arith.constant 0 : index
    %c0_245 = arith.constant 0 : index
    %328 = vector.load %arg5[%c18, %c0_244, %c0_245] : memref<32x64x32xf32, #tpu.memory_space<vmem>>, vector<1x64x32xf32>
    %329 = vector.shape_cast %328 : vector<1x64x32xf32> to vector<64x32xf32>
    %330 = vector.extract_strided_slice %144 {offsets = [0, 18], sizes = [64, 1], strides = [1, 1]} : vector<64x32xf32> to vector<64x1xf32>
    %331 = vector.broadcast %330 : vector<64x1xf32> to vector<64x32xf32>
    %332 = arith.mulf %331, %329 : vector<64x32xf32>
    %333 = arith.addf %323, %332 : vector<64x32xf32>
    %334 = vector.extract_strided_slice %145 {offsets = [0, 18], sizes = [64, 1], strides = [1, 1]} : vector<64x32xf32> to vector<64x1xf32>
    %335 = vector.broadcast %334 : vector<64x1xf32> to vector<64x32xf32>
    %336 = arith.mulf %335, %329 : vector<64x32xf32>
    %337 = arith.addf %327, %336 : vector<64x32xf32>
    %c19 = arith.constant 19 : index
    %c0_246 = arith.constant 0 : index
    %c0_247 = arith.constant 0 : index
    %338 = vector.load %arg5[%c19, %c0_246, %c0_247] : memref<32x64x32xf32, #tpu.memory_space<vmem>>, vector<1x64x32xf32>
    %339 = vector.shape_cast %338 : vector<1x64x32xf32> to vector<64x32xf32>
    %340 = vector.extract_strided_slice %144 {offsets = [0, 19], sizes = [64, 1], strides = [1, 1]} : vector<64x32xf32> to vector<64x1xf32>
    %341 = vector.broadcast %340 : vector<64x1xf32> to vector<64x32xf32>
    %342 = arith.mulf %341, %339 : vector<64x32xf32>
    %343 = arith.addf %333, %342 : vector<64x32xf32>
    %344 = vector.extract_strided_slice %145 {offsets = [0, 19], sizes = [64, 1], strides = [1, 1]} : vector<64x32xf32> to vector<64x1xf32>
    %345 = vector.broadcast %344 : vector<64x1xf32> to vector<64x32xf32>
    %346 = arith.mulf %345, %339 : vector<64x32xf32>
    %347 = arith.addf %337, %346 : vector<64x32xf32>
    %c20 = arith.constant 20 : index
    %c0_248 = arith.constant 0 : index
    %c0_249 = arith.constant 0 : index
    %348 = vector.load %arg5[%c20, %c0_248, %c0_249] : memref<32x64x32xf32, #tpu.memory_space<vmem>>, vector<1x64x32xf32>
    %349 = vector.shape_cast %348 : vector<1x64x32xf32> to vector<64x32xf32>
    %350 = vector.extract_strided_slice %144 {offsets = [0, 20], sizes = [64, 1], strides = [1, 1]} : vector<64x32xf32> to vector<64x1xf32>
    %351 = vector.broadcast %350 : vector<64x1xf32> to vector<64x32xf32>
    %352 = arith.mulf %351, %349 : vector<64x32xf32>
    %353 = arith.addf %343, %352 : vector<64x32xf32>
    %354 = vector.extract_strided_slice %145 {offsets = [0, 20], sizes = [64, 1], strides = [1, 1]} : vector<64x32xf32> to vector<64x1xf32>
    %355 = vector.broadcast %354 : vector<64x1xf32> to vector<64x32xf32>
    %356 = arith.mulf %355, %349 : vector<64x32xf32>
    %357 = arith.addf %347, %356 : vector<64x32xf32>
    %c21 = arith.constant 21 : index
    %c0_250 = arith.constant 0 : index
    %c0_251 = arith.constant 0 : index
    %358 = vector.load %arg5[%c21, %c0_250, %c0_251] : memref<32x64x32xf32, #tpu.memory_space<vmem>>, vector<1x64x32xf32>
    %359 = vector.shape_cast %358 : vector<1x64x32xf32> to vector<64x32xf32>
    %360 = vector.extract_strided_slice %144 {offsets = [0, 21], sizes = [64, 1], strides = [1, 1]} : vector<64x32xf32> to vector<64x1xf32>
    %361 = vector.broadcast %360 : vector<64x1xf32> to vector<64x32xf32>
    %362 = arith.mulf %361, %359 : vector<64x32xf32>
    %363 = arith.addf %353, %362 : vector<64x32xf32>
    %364 = vector.extract_strided_slice %145 {offsets = [0, 21], sizes = [64, 1], strides = [1, 1]} : vector<64x32xf32> to vector<64x1xf32>
    %365 = vector.broadcast %364 : vector<64x1xf32> to vector<64x32xf32>
    %366 = arith.mulf %365, %359 : vector<64x32xf32>
    %367 = arith.addf %357, %366 : vector<64x32xf32>
    %c22 = arith.constant 22 : index
    %c0_252 = arith.constant 0 : index
    %c0_253 = arith.constant 0 : index
    %368 = vector.load %arg5[%c22, %c0_252, %c0_253] : memref<32x64x32xf32, #tpu.memory_space<vmem>>, vector<1x64x32xf32>
    %369 = vector.shape_cast %368 : vector<1x64x32xf32> to vector<64x32xf32>
    %370 = vector.extract_strided_slice %144 {offsets = [0, 22], sizes = [64, 1], strides = [1, 1]} : vector<64x32xf32> to vector<64x1xf32>
    %371 = vector.broadcast %370 : vector<64x1xf32> to vector<64x32xf32>
    %372 = arith.mulf %371, %369 : vector<64x32xf32>
    %373 = arith.addf %363, %372 : vector<64x32xf32>
    %374 = vector.extract_strided_slice %145 {offsets = [0, 22], sizes = [64, 1], strides = [1, 1]} : vector<64x32xf32> to vector<64x1xf32>
    %375 = vector.broadcast %374 : vector<64x1xf32> to vector<64x32xf32>
    %376 = arith.mulf %375, %369 : vector<64x32xf32>
    %377 = arith.addf %367, %376 : vector<64x32xf32>
    %c23 = arith.constant 23 : index
    %c0_254 = arith.constant 0 : index
    %c0_255 = arith.constant 0 : index
    %378 = vector.load %arg5[%c23, %c0_254, %c0_255] : memref<32x64x32xf32, #tpu.memory_space<vmem>>, vector<1x64x32xf32>
    %379 = vector.shape_cast %378 : vector<1x64x32xf32> to vector<64x32xf32>
    %380 = vector.extract_strided_slice %144 {offsets = [0, 23], sizes = [64, 1], strides = [1, 1]} : vector<64x32xf32> to vector<64x1xf32>
    %381 = vector.broadcast %380 : vector<64x1xf32> to vector<64x32xf32>
    %382 = arith.mulf %381, %379 : vector<64x32xf32>
    %383 = arith.addf %373, %382 : vector<64x32xf32>
    %384 = vector.extract_strided_slice %145 {offsets = [0, 23], sizes = [64, 1], strides = [1, 1]} : vector<64x32xf32> to vector<64x1xf32>
    %385 = vector.broadcast %384 : vector<64x1xf32> to vector<64x32xf32>
    %386 = arith.mulf %385, %379 : vector<64x32xf32>
    %387 = arith.addf %377, %386 : vector<64x32xf32>
    %c24_256 = arith.constant 24 : index
    %c0_257 = arith.constant 0 : index
    %c0_258 = arith.constant 0 : index
    %388 = vector.load %arg5[%c24_256, %c0_257, %c0_258] : memref<32x64x32xf32, #tpu.memory_space<vmem>>, vector<1x64x32xf32>
    %389 = vector.shape_cast %388 : vector<1x64x32xf32> to vector<64x32xf32>
    %390 = vector.extract_strided_slice %144 {offsets = [0, 24], sizes = [64, 1], strides = [1, 1]} : vector<64x32xf32> to vector<64x1xf32>
    %391 = vector.broadcast %390 : vector<64x1xf32> to vector<64x32xf32>
    %392 = arith.mulf %391, %389 : vector<64x32xf32>
    %393 = arith.addf %383, %392 : vector<64x32xf32>
    %394 = vector.extract_strided_slice %145 {offsets = [0, 24], sizes = [64, 1], strides = [1, 1]} : vector<64x32xf32> to vector<64x1xf32>
    %395 = vector.broadcast %394 : vector<64x1xf32> to vector<64x32xf32>
    %396 = arith.mulf %395, %389 : vector<64x32xf32>
    %397 = arith.addf %387, %396 : vector<64x32xf32>
    %c25 = arith.constant 25 : index
    %c0_259 = arith.constant 0 : index
    %c0_260 = arith.constant 0 : index
    %398 = vector.load %arg5[%c25, %c0_259, %c0_260] : memref<32x64x32xf32, #tpu.memory_space<vmem>>, vector<1x64x32xf32>
    %399 = vector.shape_cast %398 : vector<1x64x32xf32> to vector<64x32xf32>
    %400 = vector.extract_strided_slice %144 {offsets = [0, 25], sizes = [64, 1], strides = [1, 1]} : vector<64x32xf32> to vector<64x1xf32>
    %401 = vector.broadcast %400 : vector<64x1xf32> to vector<64x32xf32>
    %402 = arith.mulf %401, %399 : vector<64x32xf32>
    %403 = arith.addf %393, %402 : vector<64x32xf32>
    %404 = vector.extract_strided_slice %145 {offsets = [0, 25], sizes = [64, 1], strides = [1, 1]} : vector<64x32xf32> to vector<64x1xf32>
    %405 = vector.broadcast %404 : vector<64x1xf32> to vector<64x32xf32>
    %406 = arith.mulf %405, %399 : vector<64x32xf32>
    %407 = arith.addf %397, %406 : vector<64x32xf32>
    %c26 = arith.constant 26 : index
    %c0_261 = arith.constant 0 : index
    %c0_262 = arith.constant 0 : index
    %408 = vector.load %arg5[%c26, %c0_261, %c0_262] : memref<32x64x32xf32, #tpu.memory_space<vmem>>, vector<1x64x32xf32>
    %409 = vector.shape_cast %408 : vector<1x64x32xf32> to vector<64x32xf32>
    %410 = vector.extract_strided_slice %144 {offsets = [0, 26], sizes = [64, 1], strides = [1, 1]} : vector<64x32xf32> to vector<64x1xf32>
    %411 = vector.broadcast %410 : vector<64x1xf32> to vector<64x32xf32>
    %412 = arith.mulf %411, %409 : vector<64x32xf32>
    %413 = arith.addf %403, %412 : vector<64x32xf32>
    %414 = vector.extract_strided_slice %145 {offsets = [0, 26], sizes = [64, 1], strides = [1, 1]} : vector<64x32xf32> to vector<64x1xf32>
    %415 = vector.broadcast %414 : vector<64x1xf32> to vector<64x32xf32>
    %416 = arith.mulf %415, %409 : vector<64x32xf32>
    %417 = arith.addf %407, %416 : vector<64x32xf32>
    %c27 = arith.constant 27 : index
    %c0_263 = arith.constant 0 : index
    %c0_264 = arith.constant 0 : index
    %418 = vector.load %arg5[%c27, %c0_263, %c0_264] : memref<32x64x32xf32, #tpu.memory_space<vmem>>, vector<1x64x32xf32>
    %419 = vector.shape_cast %418 : vector<1x64x32xf32> to vector<64x32xf32>
    %420 = vector.extract_strided_slice %144 {offsets = [0, 27], sizes = [64, 1], strides = [1, 1]} : vector<64x32xf32> to vector<64x1xf32>
    %421 = vector.broadcast %420 : vector<64x1xf32> to vector<64x32xf32>
    %422 = arith.mulf %421, %419 : vector<64x32xf32>
    %423 = arith.addf %413, %422 : vector<64x32xf32>
    %424 = vector.extract_strided_slice %145 {offsets = [0, 27], sizes = [64, 1], strides = [1, 1]} : vector<64x32xf32> to vector<64x1xf32>
    %425 = vector.broadcast %424 : vector<64x1xf32> to vector<64x32xf32>
    %426 = arith.mulf %425, %419 : vector<64x32xf32>
    %427 = arith.addf %417, %426 : vector<64x32xf32>
    %c28 = arith.constant 28 : index
    %c0_265 = arith.constant 0 : index
    %c0_266 = arith.constant 0 : index
    %428 = vector.load %arg5[%c28, %c0_265, %c0_266] : memref<32x64x32xf32, #tpu.memory_space<vmem>>, vector<1x64x32xf32>
    %429 = vector.shape_cast %428 : vector<1x64x32xf32> to vector<64x32xf32>
    %430 = vector.extract_strided_slice %144 {offsets = [0, 28], sizes = [64, 1], strides = [1, 1]} : vector<64x32xf32> to vector<64x1xf32>
    %431 = vector.broadcast %430 : vector<64x1xf32> to vector<64x32xf32>
    %432 = arith.mulf %431, %429 : vector<64x32xf32>
    %433 = arith.addf %423, %432 : vector<64x32xf32>
    %434 = vector.extract_strided_slice %145 {offsets = [0, 28], sizes = [64, 1], strides = [1, 1]} : vector<64x32xf32> to vector<64x1xf32>
    %435 = vector.broadcast %434 : vector<64x1xf32> to vector<64x32xf32>
    %436 = arith.mulf %435, %429 : vector<64x32xf32>
    %437 = arith.addf %427, %436 : vector<64x32xf32>
    %c29 = arith.constant 29 : index
    %c0_267 = arith.constant 0 : index
    %c0_268 = arith.constant 0 : index
    %438 = vector.load %arg5[%c29, %c0_267, %c0_268] : memref<32x64x32xf32, #tpu.memory_space<vmem>>, vector<1x64x32xf32>
    %439 = vector.shape_cast %438 : vector<1x64x32xf32> to vector<64x32xf32>
    %440 = vector.extract_strided_slice %144 {offsets = [0, 29], sizes = [64, 1], strides = [1, 1]} : vector<64x32xf32> to vector<64x1xf32>
    %441 = vector.broadcast %440 : vector<64x1xf32> to vector<64x32xf32>
    %442 = arith.mulf %441, %439 : vector<64x32xf32>
    %443 = arith.addf %433, %442 : vector<64x32xf32>
    %444 = vector.extract_strided_slice %145 {offsets = [0, 29], sizes = [64, 1], strides = [1, 1]} : vector<64x32xf32> to vector<64x1xf32>
    %445 = vector.broadcast %444 : vector<64x1xf32> to vector<64x32xf32>
    %446 = arith.mulf %445, %439 : vector<64x32xf32>
    %447 = arith.addf %437, %446 : vector<64x32xf32>
    %c30 = arith.constant 30 : index
    %c0_269 = arith.constant 0 : index
    %c0_270 = arith.constant 0 : index
    %448 = vector.load %arg5[%c30, %c0_269, %c0_270] : memref<32x64x32xf32, #tpu.memory_space<vmem>>, vector<1x64x32xf32>
    %449 = vector.shape_cast %448 : vector<1x64x32xf32> to vector<64x32xf32>
    %450 = vector.extract_strided_slice %144 {offsets = [0, 30], sizes = [64, 1], strides = [1, 1]} : vector<64x32xf32> to vector<64x1xf32>
    %451 = vector.broadcast %450 : vector<64x1xf32> to vector<64x32xf32>
    %452 = arith.mulf %451, %449 : vector<64x32xf32>
    %453 = arith.addf %443, %452 : vector<64x32xf32>
    %454 = vector.extract_strided_slice %145 {offsets = [0, 30], sizes = [64, 1], strides = [1, 1]} : vector<64x32xf32> to vector<64x1xf32>
    %455 = vector.broadcast %454 : vector<64x1xf32> to vector<64x32xf32>
    %456 = arith.mulf %455, %449 : vector<64x32xf32>
    %457 = arith.addf %447, %456 : vector<64x32xf32>
    %c31 = arith.constant 31 : index
    %c0_271 = arith.constant 0 : index
    %c0_272 = arith.constant 0 : index
    %458 = vector.load %arg5[%c31, %c0_271, %c0_272] : memref<32x64x32xf32, #tpu.memory_space<vmem>>, vector<1x64x32xf32>
    %459 = vector.shape_cast %458 : vector<1x64x32xf32> to vector<64x32xf32>
    %460 = vector.extract_strided_slice %144 {offsets = [0, 31], sizes = [64, 1], strides = [1, 1]} : vector<64x32xf32> to vector<64x1xf32>
    %461 = vector.broadcast %460 : vector<64x1xf32> to vector<64x32xf32>
    %462 = arith.mulf %461, %459 : vector<64x32xf32>
    %463 = arith.addf %453, %462 : vector<64x32xf32>
    %464 = vector.extract_strided_slice %145 {offsets = [0, 31], sizes = [64, 1], strides = [1, 1]} : vector<64x32xf32> to vector<64x1xf32>
    %465 = vector.broadcast %464 : vector<64x1xf32> to vector<64x32xf32>
    %466 = arith.mulf %465, %459 : vector<64x32xf32>
    %467 = arith.addf %457, %466 : vector<64x32xf32>
    %cst_273 = arith.constant dense<0.000000e+00> : vector<32xf32>
    %468 = vector.multi_reduction <add>, %463, %cst_273 [0] : vector<64x32xf32> to vector<32xf32>
    %469 = vector.shape_cast %468 : vector<32xf32> to vector<1x32xf32>
    %c0_274 = arith.constant 0 : index
    %c0_275 = arith.constant 0 : index
    %470 = vector.load %arg13[%c0_274, %c0_275] : memref<2x32xf32, #tpu.memory_space<vmem>>, vector<1x32xf32>
    tpu.vector_store %arg13[%c0_274, %c0_275], %469 {strides = array<i32>} : memref<2x32xf32, #tpu.memory_space<vmem>>, vector<1x32xf32>,
    %cst_276 = arith.constant dense<0.000000e+00> : vector<32xf32>
    %471 = vector.multi_reduction <add>, %467, %cst_276 [0] : vector<64x32xf32> to vector<32xf32>
    %472 = vector.shape_cast %471 : vector<32xf32> to vector<1x32xf32>
    %c1_277 = arith.constant 1 : index
    %c0_278 = arith.constant 0 : index
    %473 = vector.load %arg13[%c1_277, %c0_278] : memref<2x32xf32, #tpu.memory_space<vmem>>, vector<1x32xf32>
    tpu.vector_store %arg13[%c1_277, %c0_278], %472 {strides = array<i32>} : memref<2x32xf32, #tpu.memory_space<vmem>>, vector<1x32xf32>,
    %c0_279 = arith.constant 0 : index
    %c0_280 = arith.constant 0 : index
    %474 = vector.load %arg13[%c0_279, %c0_280] : memref<2x32xf32, #tpu.memory_space<vmem>>, vector<2x32xf32>
    %c0_281 = arith.constant 0 : index
    %c0_282 = arith.constant 0 : index
    %475 = vector.load %arg6[%c0_281, %c0_282] : memref<1x32xf32, #tpu.memory_space<vmem>>, vector<1x32xf32>
    %476 = vector.broadcast %475 : vector<1x32xf32> to vector<2x32xf32>
    %477 = arith.addf %474, %476 : vector<2x32xf32>
    %cst_283 = arith.constant 0.000000e+00 : f32
    %478 = vector.broadcast %cst_283 : f32 to vector<2x32xf32>
    %479 = arith.maximumf %477, %478 : vector<2x32xf32>
    %c0_284 = arith.constant 0 : index
    %c0_285 = arith.constant 0 : index
    %480 = vector.load %arg7[%c0_284, %c0_285] : memref<32x32xf32, #tpu.memory_space<vmem>>, vector<32x32xf32>
    %cst_286 = arith.constant dense<0.000000e+00> : vector<2x32xf32>
    %481 = tpu.matmul %479, %480, %cst_286 {dimension_numbers = #tpu.dot_dimension_numbers<[1], [0], [0], [1], [0, 0, 1, 1], [], []>} : vector<2x32xf32>, vector<32x32xf32>, vector<2x32xf32> -> vector<2x32xf32>
    %c0_287 = arith.constant 0 : index
    %c0_288 = arith.constant 0 : index
    %482 = vector.load %arg8[%c0_287, %c0_288] : memref<1x32xf32, #tpu.memory_space<vmem>>, vector<1x32xf32>
    %483 = vector.broadcast %482 : vector<1x32xf32> to vector<2x32xf32>
    %484 = arith.addf %481, %483 : vector<2x32xf32>
    %cst_289 = arith.constant 0.000000e+00 : f32
    %485 = vector.broadcast %cst_289 : f32 to vector<2x32xf32>
    %486 = arith.maximumf %484, %485 : vector<2x32xf32>
    %c0_290 = arith.constant 0 : index
    %c0_291 = arith.constant 0 : index
    %487 = vector.load %arg9[%c0_290, %c0_291] : memref<1x32xf32, #tpu.memory_space<vmem>>, vector<1x32xf32>
    %488 = vector.broadcast %487 : vector<1x32xf32> to vector<2x32xf32>
    %489 = arith.mulf %486, %488 : vector<2x32xf32>
    %cst_292 = arith.constant dense<0.000000e+00> : vector<2xf32>
    %490 = vector.multi_reduction <add>, %489, %cst_292 [1] : vector<2x32xf32> to vector<2xf32>
    %491 = vector.shape_cast %490 : vector<2xf32> to vector<2x1xf32>
    %c0_293 = arith.constant 0 : index
    %c0_294 = arith.constant 0 : index
    %492 = vector.load %arg10[%c0_293, %c0_294] : memref<1x1xf32, #tpu.memory_space<vmem>>, vector<1x1xf32>
    %493 = vector.broadcast %492 : vector<1x1xf32> to vector<2x1xf32>
    %494 = arith.addf %491, %493 : vector<2x1xf32>
    %495 = arith.negf %494 : vector<2x1xf32>
    %496 = math.exp %495 : vector<2x1xf32>
    %cst_295 = arith.constant 1.000000e+00 : f32
    %497 = vector.broadcast %cst_295 : f32 to vector<2x1xf32>
    %498 = arith.addf %497, %496 : vector<2x1xf32>
    %499 = arith.divf %497, %498 : vector<2x1xf32>
    %c0_296 = arith.constant 0 : index
    %c0_297 = arith.constant 0 : index
    %500 = vector.load %arg11[%c0_296, %c0_297] : memref<2x1xf32, #tpu.memory_space<vmem>>, vector<2x1xf32>
    tpu.vector_store %arg11[%c0_296, %c0_297], %499 {strides = array<i32>} : memref<2x1xf32, #tpu.memory_space<vmem>>, vector<2x1xf32>,
    return
  }
}

</mosaic_0001>

<bundles_post_ra>
// kernel: forward.1
= control target key start
LH: loop header
LB: loop body
LE: loop exit
PB: predicated region body
PF: predicated region fallthrough
CT: control target
= control target key end

     0   :  { %vm64_vm0 = vcmask 64512   ;;  %vm274_vm1 = vcmask 261120   ;;  %v16127_v19 = vmov 0.0   ;;  %vm10378_vm2 = vmmov 0   ;;  %s16115_s1 = inlined_call_operand.vmem [shape: f32[8,32], index: 1, kind: input, shape index: {}]   ;;  %s16116_s0 = inlined_call_operand.vmem [shape: f32[128,8], index: 0, kind: input, shape index: {}]   ;;  %s16117_s3 = inlined_call_operand.vmem [shape: f32[2,9,32,32], index: 3, kind: input, shape index: {}]   ;;  %s16118_s2 = inlined_call_operand.vmem [shape: f32[1,32], index: 2, kind: input, shape index: {}]   ;;  %s16119_s4 = inlined_call_operand.vmem [shape: f32[2,1,32], index: 4, kind: input, shape index: {}]   ;;  %s16120_s5 = inlined_call_operand.vmem [shape: f32[32,64,32], index: 5, kind: input, shape index: {}]   ;;  %s16121_s7 = inlined_call_operand.vmem [shape: f32[32,32], index: 7, kind: input, shape index: {}]   ;;  %s16122_s6 = inlined_call_operand.vmem [shape: f32[1,32], index: 6, kind: input, shape index: {}]   ;;  %s16123_s10 = inlined_call_operand.<no memory space> [shape: f32[1,1], index: 10, kind: input, shape index: {}]   ;;  %s16124_s8 = inlined_call_operand.vmem [shape: f32[1,32], index: 8, kind: input, shape index: {}]   ;;  %s16125_s9 = inlined_call_operand.vmem [shape: f32[1,32], index: 9, kind: input, shape index: {}]   ;;  %s16126_s11 = inlined_call_operand.vmem [shape: f32[2,1], index: 11, kind: output, shape index: {}]  }
   0x1   :  { %v56_v0 = vld [vmem:[%s16115_s1] sm:$0xff]  ;;  %v41_v2 = vld [vmem:[%s16116_s0 + $0x8] sm:$0xff]  ;;  %v42_v3 = vld [vmem:[%s16116_s0 + $0x10] sm:$0xff]  ;;  %299 = vst.msk [vmem:[#allocation2 + $0x8] sm:$0xff] %vm274_vm1, %v16127_v19  ;;  %vm7924_vm3 = vcmask 253952   ;;  %vm8051_vm4 = vcmask 254976  }
   0x2   :  { %v40_v1 = vld [vmem:[%s16116_s0] sm:$0xff]  ;;  %9087 = vmatprep.subr.mxu0 %v56_v0  ;;  %9700 = vmatprep.subr.mxu1 %v56_v0  ;;  %v50_v4 = vld [vmem:[%s16116_s0 + $0x50] sm:$0xff]  ;;  %v43_v5 = vld [vmem:[%s16116_s0 + $0x18] sm:$0xff]  ;;  %275 = vst.msk [vmem:[#allocation2] sm:$0xff] %vm274_vm1, %v16127_v19  ;;  %vm8069_vm5 = vcmask 1024  }
   0x3   :  { %9089 = vmatprep.mubr.msk.f32.mxu0 %vm64_vm0, %v40_v1  ;;  %9088 = vmatpush3.msra.mxu0 %v56_v0  ;;  %v51_v6 = vld [vmem:[%s16116_s0 + $0x58] sm:$0xff]  ;;  %v52_v7 = vld [vmem:[%s16116_s0 + $0x60] sm:$0xff]  ;;  %v53_v10 = vld [vmem:[%s16116_s0 + $0x68] sm:$0xff]  ;;  %276 = vst.msk [vmem:[#allocation2 + $0x20] sm:$0xff] %vm274_vm1, %v16127_v19 }
   0x4   :  { %9090 = vmatmul.mubr.msk.f32.vlgmr.msra.gmra.mxu0 %vm64_vm0, %v41_v2  ;;  %9701 = vmatpush3.msra.mxu1 %v56_v0  ;;  %v44_v8 = vld [vmem:[%s16116_s0 + $0x20] sm:$0xff]  ;;  %v8095_v9 = vld [vmem:[%s16117_s3 + $0x38] sm:$0xff]  ;;  %v54_v11 = vld [vmem:[%s16116_s0 + $0x70] sm:$0xff]  ;;  %277 = vst.msk [vmem:[#allocation2 + $0x40] sm:$0xff] %vm274_vm1, %v16127_v19 }
   0x5   :  { %9092 = vmatprep.mubr.msk.f32.mxu0 %vm64_vm0, %v42_v3  ;;  %9104 = vmatprep.mubr.msk.f32.mxu1 %vm64_vm0, %v50_v4  ;;  %v45_v12 = vld [vmem:[%s16116_s0 + $0x28] sm:$0xff]  ;;  %v46_v13 = vld [vmem:[%s16116_s0 + $0x30] sm:$0xff]  ;;  %v55_v14 = vld [vmem:[%s16116_s0 + $0x78] sm:$0xff]  ;;  %278 = vst.msk [vmem:[#allocation2 + $0x60] sm:$0xff] %vm274_vm1, %v16127_v19 }
   0x6   :  { %9105 = vmatmul.mubr.msk.f32.vlgmr.msra.gmra.mxu1 %vm64_vm0, %v51_v6  ;;  %9113 = vmatprep.subr.mxu1 %v8095_v9  ;;  %v47_v15 = vld [vmem:[%s16116_s0 + $0x38] sm:$0xff]  ;;  %v48_v16 = vld [vmem:[%s16116_s0 + $0x40] sm:$0xff]  ;;  %v49_v17 = vld [vmem:[%s16116_s0 + $0x48] sm:$0xff]  ;;  %279 = vst.msk [vmem:[#allocation2 + $0x80] sm:$0xff] %vm274_vm1, %v16127_v19 }
   0x7   :  { %9107 = vmatprep.mubr.msk.f32.mxu1 %vm64_vm0, %v52_v7  ;;  %9114 = vmatpush3.msra.mxu1 %v8095_v9  ;;  %v344_v18 = vld [vmem:[%s16117_s3 + $0x18] sm:$0xff]  ;;  %280 = vst.msk [vmem:[#allocation2 + $0xa0] sm:$0xff] %vm274_vm1, %v16127_v19  ;;  %281 = vst.msk [vmem:[#allocation2 + $0xc0] sm:$0xff] %vm274_vm1, %v16127_v19  ;;  %v8094_v20 = vld [vmem:[%s16117_s3 + $0x30] sm:$0xff] }
   0x8   :  { %9093 = vmatmul.mubr.msk.f32.gmra.mxu0 %vm64_vm0, %v43_v5  ;;  %282 = vst.msk [vmem:[#allocation2 + $0xe0] sm:$0xff] %vm274_vm1, %v16127_v19  ;;  %283 = vst.msk [vmem:[#allocation2 + $0x100] sm:$0xff] %vm274_vm1, %v16127_v19  ;;  %9145 = vmatprep.subr.mxu0 %v344_v18  ;;  %v343_v21 = vld [vmem:[%s16117_s3 + $0x10] sm:$0xff]  ;;  %v8093_v22 = vld [vmem:[%s16117_s3 + $0x28] sm:$0xff] }
   0x9   :  { %9095 = vmatprep.mubr.msk.f32.mxu0 %vm64_vm0, %v44_v8  ;;  %284 = vst.msk [vmem:[#allocation2 + $0x120] sm:$0xff] %vm274_vm1, %v16127_v19  ;;  %285 = vst.msk [vmem:[#allocation2 + $0x140] sm:$0xff] %vm274_vm1, %v16127_v19  ;;  %9146 = vmatpush3.msra.mxu0 %v344_v18  ;;  %v342_v23 = vld [vmem:[%s16117_s3 + $0x8] sm:$0xff]  ;;  %v8092_v24 = vld [vmem:[%s16117_s3 + $0x20] sm:$0xff] }
   0xa   :  { %9108 = vmatmul.mubr.msk.f32.gmra.mxu1 %vm64_vm0, %v53_v10  ;;  %286 = vst.msk [vmem:[#allocation2 + $0x160] sm:$0xff] %vm274_vm1, %v16127_v19  ;;  %287 = vst.msk [vmem:[#allocation2 + $0x18] sm:$0xff] %vm274_vm1, %v16127_v19  ;;  %9115 = vmatprep.subr.mxu1 %v8094_v20  ;;  %v341_v25 = vld [vmem:[%s16117_s3] sm:$0xff]  ;;  %v345_v26 = vld [vmem:[#allocation2 + $0x8] sm:$0xff] }
   0xb   :  { %9110 = vmatprep.mubr.msk.f32.mxu1 %vm64_vm0, %v54_v11  ;;  %288 = vst.msk [vmem:[#allocation2 + $0x38] sm:$0xff] %vm274_vm1, %v16127_v19  ;;  %289 = vst.msk [vmem:[#allocation2 + $0x58] sm:$0xff] %vm274_vm1, %v16127_v19  ;;  %9147 = vmatprep.subr.mxu0 %v343_v21  ;;  %v325_v27 = vld [vmem:[#allocation2 + $0x7] sm:$0xff]  ;;  %v8131_v30 = vld [vmem:[%s16117_s3 + $0x58] sm:$0xff] }
   0xc   :  { %9096 = vmatmul.mubr.msk.f32.gmra.mxu0 %vm64_vm0, %v45_v12  ;;  %290 = vst.msk [vmem:[#allocation2 + $0x78] sm:$0xff] %vm274_vm1, %v16127_v19  ;;  %291 = vst.msk [vmem:[#allocation2 + $0x98] sm:$0xff] %vm274_vm1, %v16127_v19  ;;  %9116 = vmatpush3.msra.mxu1 %v8094_v20  ;;  %v8130_v31 = vld [vmem:[%s16117_s3 + $0x50] sm:$0xff]  ;;  %v8129_v32 = vld [vmem:[%s16117_s3 + $0x48] sm:$0xff] }
   0xd   :  { %9098 = vmatprep.mubr.msk.f32.mxu0 %vm64_vm0, %v46_v13  ;;  %292 = vst.msk [vmem:[#allocation2 + $0xb8] sm:$0xff] %vm274_vm1, %v16127_v19  ;;  %293 = vst.msk [vmem:[#allocation2 + $0xd8] sm:$0xff] %vm274_vm1, %v16127_v19  ;;  %9148 = vmatpush3.msra.mxu0 %v343_v21  ;;  %v8128_v33 = vld [vmem:[%s16117_s3 + $0x40] sm:$0xff]  ;;  %v8151_v34 = vld [vmem:[%s16117_s3 + $0x78] sm:$0xff] }
   0xe   :  { %9111 = vmatmul.mubr.msk.f32.gmra.mxu1 %vm64_vm0, %v55_v14  ;;  %294 = vst.msk [vmem:[#allocation2 + $0xf8] sm:$0xff] %vm274_vm1, %v16127_v19  ;;  %295 = vst.msk [vmem:[#allocation2 + $0x118] sm:$0xff] %vm274_vm1, %v16127_v19  ;;  %9117 = vmatprep.subr.mxu1 %v8093_v22  ;;  %v8150_v35 = vld [vmem:[%s16117_s3 + $0x70] sm:$0xff]  ;;  %v8149_v36 = vld [vmem:[%s16117_s3 + $0x68] sm:$0xff] }
   0xf   :  { %296 = vst.msk [vmem:[#allocation2 + $0x138] sm:$0xff] %vm274_vm1, %v16127_v19  ;;  %297 = vst.msk [vmem:[#allocation2 + $0x158] sm:$0xff] %vm274_vm1, %v16127_v19  ;;  %9149 = vmatprep.subr.mxu0 %v342_v23  ;;  %9118 = vmatpush3.msra.mxu1 %v8093_v22  ;;  %v8148_v37 = vld [vmem:[%s16117_s3 + $0x60] sm:$0xff]  ;;  %v10625_v38 = vld [vmem:[%s16117_s3 + $0x98] sm:$0xff] }
  0x10   :  { %9099 = vmatmul.mubr.msk.f32.gmra.mxu0 %vm64_vm0, %v47_v15  ;;  %298 = vst.msk [vmem:[#allocation2 + $0x178] sm:$0xff] %vm274_vm1, %v16127_v19  ;;  %300 = vst.msk [vmem:[#allocation2 + $0x10] sm:$0xff] %vm274_vm1, %v16127_v19  ;;  %9119 = vmatprep.subr.mxu1 %v8092_v24  ;;  %v10631_v39 = vld [vmem:[%s16117_s3 + $0xb8] sm:$0xff]  ;;  %v10637_v40 = vld [vmem:[%s16118_s2] ss:$0 sm:$0xff] }
  0x11   :  { %9101 = vmatprep.mubr.msk.f32.mxu0 %vm64_vm0, %v48_v16  ;;  %301 = vst.msk [vmem:[#allocation2 + $0xc8] sm:$0xff] %vm274_vm1, %v16127_v19  ;;  %302 = vst.msk [vmem:[#allocation2 + $0xd0] sm:$0xff] %vm274_vm1, %v16127_v19  ;;  %9150 = vmatpush3.msra.mxu0 %v342_v23 }
  0x12   :  { %304 = vst.msk [vmem:[#allocation2 + $0xa8] sm:$0xff] %vm274_vm1, %v16127_v19  ;;  %305 = vst.msk [vmem:[#allocation2 + $0xb0] sm:$0xff] %vm274_vm1, %v16127_v19  ;;  %9151 = vmatprep.subr.mxu0 %v341_v25  ;;  %9120 = vmatpush3.msra.mxu1 %v8092_v24 }
  0x13   :  { %306 = vst.msk [vmem:[#allocation2 + $0x168] sm:$0xff] %vm274_vm1, %v16127_v19  ;;  %307 = vst.msk [vmem:[#allocation2 + $0x170] sm:$0xff] %vm274_vm1, %v16127_v19  ;;  %9121 = vmatprep.mubr.msk.f32.mxu1 %vm274_vm1, %v345_v26  ;;  %9152 = vmatpush3.msra.mxu0 %v341_v25 }
  0x14   :  { %9102 = vmatmul.mubr.msk.f32.gmra.mxu0 %vm64_vm0, %v49_v17  ;;  %9177 = vmatprep.subr.mxu1 %v8131_v30 }
  0x15   :  { %9153 = vmatprep.mubr.msk.f32.mxu0 %vm274_vm1, %v325_v27  ;;  %9209 = vmatprep.subr.mxu0 %v8151_v34 }
  0x17   :  { %v346_v28 = vld [vmem:[#allocation2 + $0x10] sm:$0xff] }
  0x18   :  { %v326_v29 = vld [vmem:[#allocation2 + $0xf] sm:$0xff]  ;;  %9122 = vmatmul.mubr.msk.f32.vlgmr.msra.gmra.mxu1 %vm274_vm1, %v346_v28 }
  0x19   :  { %9154 = vmatmul.mubr.msk.f32.vlgmr.msra.gmra.mxu0 %vm274_vm1, %v326_v29  ;;  %9178 = vmatpush3.msra.mxu1 %v8131_v30 }
  0x1a   :  { %9179 = vmatprep.subr.mxu1 %v8130_v31  ;;  %9210 = vmatpush3.msra.mxu0 %v8151_v34  ;;  %v353_v34 = vld [vmem:[#allocation2 + $0xc8] sm:$0xff] }
  0x1b   :  { %9180 = vmatpush3.msra.mxu1 %v8130_v31  ;;  %9211 = vmatprep.subr.mxu0 %v8150_v35 }
  0x1c   :  { %9181 = vmatprep.subr.mxu1 %v8129_v32  ;;  %9212 = vmatpush3.msra.mxu0 %v8150_v35  ;;  %v333_v35 = vld [vmem:[#allocation2 + $0xc7] sm:$0xff] }
  0x1d   :  { %9182 = vmatpush3.msra.mxu1 %v8129_v32  ;;  %9213 = vmatprep.subr.mxu0 %v8149_v36 }
  0x1e   :  { %9183 = vmatprep.subr.mxu1 %v8128_v33  ;;  %9214 = vmatpush3.msra.mxu0 %v8149_v36 }
  0x1f   :  { %9184 = vmatpush3.msra.mxu1 %v8128_v33  ;;  %9215 = vmatprep.subr.mxu0 %v8148_v37 }
  0x20   :  { %9241 = vmatprep.subr.mxu1 %v10625_v38  ;;  %9216 = vmatpush3.msra.mxu0 %v8148_v37 }
  0x21   :  { %9273 = vmatprep.subr.mxu0 %v10631_v39 }
  0xc4   :  { %v9091_v41 = vpop.f32.mrf.mxu0 }
  0xc5   :  { %v185_v42 = vadd.f32 %v9091_v41, %v10637_v40 }
  0xc6   :  { %v179_v43 = vpop.f32.mrf.mxu0  ;;  %v9106_v44 = vpop.f32.mrf.mxu1 }
  0xc7   :  { %v10640_v45 = vmax.f32 %v185_v42, 0.0  ;;  %v180_v46 = vadd.f32 %v10637_v40, %v179_v43  ;;  %v235_v47 = vadd.f32 %v9106_v44, %v10637_v40  ;;  %v354_v42 = vld [vmem:[#allocation2 + $0xd0] sm:$0xff] }
  0xc8   :  { %v9094_v48 = vpop.f32.mrf.mxu0  ;;  %v229_v49 = vpop.f32.mrf.mxu1  ;;  %v334_v43 = vld [vmem:[#allocation2 + $0xcf] sm:$0xff] }
  0xc9   :  { %16280 = vst [vmem:[#allocation5_spill] sm:$0xff] %v10640_v45  ;;  %310 = vst.msk [vmem:[#allocation2 + $0x30] sm:$0xff] %vm274_vm1, %v10640_v45  ;;  %v10646_v50 = vmax.f32 %v180_v46, 0.0  ;;  %v195_v51 = vadd.f32 %v9094_v48, %v10637_v40  ;;  %v10649_v52 = vmax.f32 %v235_v47, 0.0  ;;  %v230_v53 = vadd.f32 %v10637_v40, %v229_v49 }
  0xca   :  { %v189_v54 = vpop.f32.mrf.mxu0  ;;  %v9109_v55 = vpop.f32.mrf.mxu1 }
  0xcb   :  { %16281 = vst [vmem:[#allocation6_spill] sm:$0xff] %v10646_v50  ;;  %16282 = vst [vmem:[#allocation7_spill] sm:$0xff] %v10649_v52  ;;  %v10654_v56 = vmax.f32 %v195_v51, 0.0  ;;  %v190_v57 = vadd.f32 %v10637_v40, %v189_v54  ;;  %v10659_v58 = vmax.f32 %v230_v53, 0.0  ;;  %v245_v59 = vadd.f32 %v9109_v55, %v10637_v40 }
  0xcc   :  { %309 = vst.msk [vmem:[#allocation2 + $0x28] sm:$0xff] %vm274_vm1, %v10646_v50  ;;  %320 = vst.msk [vmem:[#allocation2 + $0x110] sm:$0xff] %vm274_vm1, %v10649_v52  ;;  %v9097_v60 = vpop.f32.mrf.mxu0  ;;  %v239_v61 = vpop.f32.mrf.mxu1 }
  0xcd   :  { %16283 = vst [vmem:[#allocation8_spill] sm:$0xff] %v10654_v56  ;;  %16284 = vst [vmem:[#allocation9_spill] sm:$0xff] %v10659_v58  ;;  %v10664_v62 = vmax.f32 %v190_v57, 0.0  ;;  %v205_v63 = vadd.f32 %v9097_v60, %v10637_v40  ;;  %v10669_v0 = vmax.f32 %v245_v59, 0.0  ;;  %v240_v1 = vadd.f32 %v10637_v40, %v239_v61  ;;  %v752_v59 = vld [vmem:[#allocation2 + $0x9] sm:$0xff] }
  0xce   :  { %312 = vst.msk [vmem:[#allocation2 + $0x50] sm:$0xff] %vm274_vm1, %v10654_v56  ;;  %319 = vst.msk [vmem:[#allocation2 + $0x108] sm:$0xff] %vm274_vm1, %v10659_v58  ;;  %v199_v2 = vpop.f32.mrf.mxu0  ;;  %v9112_v3 = vpop.f32.mrf.mxu1 }
  0xcf   :  { %16285 = vst [vmem:[#allocation10_spill] sm:$0xff] %v10664_v62  ;;  %16286 = vst [vmem:[#allocation11_spill] sm:$0xff] %v10669_v0  ;;  %v10674_v4 = vmax.f32 %v205_v63, 0.0  ;;  %v200_v5 = vadd.f32 %v10637_v40, %v199_v2  ;;  %v10679_v6 = vmax.f32 %v240_v1, 0.0  ;;  %v255_v7 = vadd.f32 %v9112_v3, %v10637_v40  ;;  %v753_v63 = vld [vmem:[#allocation2 + $0x11] sm:$0xff] }
  0xd0   :  { %311 = vst.msk [vmem:[#allocation2 + $0x48] sm:$0xff] %vm274_vm1, %v10664_v62  ;;  %322 = vst.msk [vmem:[#allocation2 + $0x130] sm:$0xff] %vm274_vm1, %v10669_v0  ;;  %v9100_v8 = vpop.f32.mrf.mxu0  ;;  %v249_v9 = vpop.f32.mrf.mxu1  ;;  %v10707_v21 = vld [vmem:[#allocation2 + $0x30] sm:$0xff] }
  0xd1   :  { %16287 = vst [vmem:[#allocation12_spill] sm:$0xff] %v10674_v4  ;;  %16288 = vst [vmem:[#allocation13_spill] sm:$0xff] %v10679_v6  ;;  %v10684_v10 = vmax.f32 %v200_v5, 0.0  ;;  %v215_v11 = vadd.f32 %v9100_v8, %v10637_v40  ;;  %v10689_v12 = vmax.f32 %v255_v7, 0.0  ;;  %v250_v13 = vadd.f32 %v10637_v40, %v249_v9  ;;  %v8170_v1 = vld [vmem:[%s16117_s3 + $0x90] sm:$0xff]  ;;  %v8169_v5 = vld [vmem:[%s16117_s3 + $0x88] sm:$0xff] }
  0xd2   :  { %314 = vst.msk [vmem:[#allocation2 + $0x70] sm:$0xff] %vm274_vm1, %v10674_v4  ;;  %321 = vst.msk [vmem:[#allocation2 + $0x128] sm:$0xff] %vm274_vm1, %v10679_v6  ;;  %v209_v14 = vpop.f32.mrf.mxu0  ;;  %v10835_v3 = vld [vmem:[#allocation2 + $0x31] sm:$0xff]  ;;  %v8168_v8 = vld [vmem:[%s16117_s3 + $0x80] sm:$0xff] }
  0xd3   :  { %16289 = vst [vmem:[#allocation14_spill] sm:$0xff] %v10684_v10  ;;  %16290 = vst [vmem:[#allocation15_spill] sm:$0xff] %v10689_v12  ;;  %v10692_v15 = vld [vmem:[#allocation2 + $0x28] sm:$0xff]  ;;  %v10700_v18 = vmax.f32 %v215_v11, 0.0  ;;  %v210_v20 = vadd.f32 %v10637_v40, %v209_v14  ;;  %v10711_v22 = vmax.f32 %v250_v13, 0.0  ;;  %v10799_v55 = vld [vmem:[#allocation2 + $0x110] sm:$0xff] }
  0xd4   :  { %v10694_v16 = vld [vmem:[#allocation2 + $0x27] sm:$0xff]  ;;  %v10696_v17 = vld [vmem:[#allocation2 + $0x2f] sm:$0xff]  ;;  %313 = vst.msk [vmem:[#allocation2 + $0x68] sm:$0xff] %vm274_vm1, %v10684_v10  ;;  %9124 = vmatprep.mubr.msk.f32.mxu1 %vm274_vm1, %v10692_v15  ;;  %324 = vst.msk [vmem:[#allocation2 + $0x150] sm:$0xff] %vm274_vm1, %v10689_v12  ;;  %v9103_v23 = vpop.f32.mrf.mxu0 }
  0xd5   :  { %16291 = vst [vmem:[#allocation16_spill] sm:$0xff] %v10700_v18  ;;  %9156 = vmatprep.mubr.msk.f32.mxu0 %vm274_vm1, %v10694_v16  ;;  %16292 = vst [vmem:[#allocation17_spill] sm:$0xff] %v10711_v22  ;;  %9125 = vmatmul.mubr.msk.f32.gmra.mxu1 %vm274_vm1, %v10707_v21  ;;  %v10719_v24 = vmax.f32 %v210_v20, 0.0  ;;  %v225_v25 = vadd.f32 %v9103_v23, %v10637_v40  ;;  %v10739_v32 = vld [vmem:[#allocation2 + $0x50] sm:$0xff]  ;;  %v10771_v44 = vld [vmem:[#allocation2 + $0x108] sm:$0xff] }
  0xd6   :  { %9157 = vmatmul.mubr.msk.f32.gmra.mxu0 %vm274_vm1, %v10696_v17  ;;  %316 = vst.msk [vmem:[#allocation2 + $0x90] sm:$0xff] %vm274_vm1, %v10700_v18  ;;  %323 = vst.msk [vmem:[#allocation2 + $0x148] sm:$0xff] %vm274_vm1, %v10711_v22  ;;  %v219_v26 = vpop.f32.mrf.mxu0  ;;  %v10773_v46 = vld [vmem:[#allocation2 + $0x107] sm:$0xff]  ;;  %v10801_v57 = vld [vmem:[#allocation2 + $0x10f] sm:$0xff] }
  0xd7   :  { %16293 = vst [vmem:[#allocation18_spill] sm:$0xff] %v10719_v24  ;;  %v10724_v27 = vld [vmem:[#allocation2 + $0x48] sm:$0xff]  ;;  %315 = vst.msk [vmem:[#allocation2 + $0x88] sm:$0xff] %vm274_vm1, %v10719_v24  ;;  %v10732_v30 = vmax.f32 %v225_v25, 0.0  ;;  %v220_v31 = vadd.f32 %v10637_v40, %v219_v26  ;;  %v10811_v60 = vld [vmem:[#allocation2 + $0x130] sm:$0xff] }
  0xd8   :  { %v10726_v28 = vld [vmem:[#allocation2 + $0x47] sm:$0xff]  ;;  %v10728_v29 = vld [vmem:[#allocation2 + $0x4f] sm:$0xff]  ;;  %9127 = vmatprep.mubr.msk.f32.mxu1 %vm274_vm1, %v10724_v27  ;;  %v8211_v23 = vld [vmem:[%s16117_s3 + $0xd8] sm:$0xff] }
  0xd9   :  { %16294 = vst [vmem:[#allocation19_spill] sm:$0xff] %v10732_v30  ;;  %9159 = vmatprep.mubr.msk.f32.mxu0 %vm274_vm1, %v10726_v28  ;;  %9128 = vmatmul.mubr.msk.f32.gmra.mxu1 %vm274_vm1, %v10739_v32  ;;  %318 = vst.msk [vmem:[#allocation2 + $0xf0] sm:$0xff] %vm274_vm1, %v10732_v30  ;;  %v10747_v33 = vmax.f32 %v220_v31, 0.0  ;;  %v10761_v41 = vld [vmem:[#allocation2 + $0x70] sm:$0xff]  ;;  %v10795_v53 = vld [vmem:[#allocation2 + $0x128] sm:$0xff] }
  0xda   :  { %9160 = vmatmul.mubr.msk.f32.gmra.mxu0 %vm274_vm1, %v10728_v29  ;;  %v10797_v54 = vld [vmem:[#allocation2 + $0x127] sm:$0xff]  ;;  %v10813_v61 = vld [vmem:[#allocation2 + $0x12f] sm:$0xff]  ;;  %v8231_v26 = vld [vmem:[%s16117_s3 + $0xf8] sm:$0xff] }
  0xdb   :  { %16295 = vst [vmem:[#allocation20_spill] sm:$0xff] %v10747_v33  ;;  %v10749_v36 = vld [vmem:[#allocation2 + $0x68] sm:$0xff]  ;;  %317 = vst.msk [vmem:[#allocation2 + $0xe8] sm:$0xff] %vm274_vm1, %v10747_v33  ;;  %v761_v25 = vld [vmem:[#allocation2 + $0xd1] sm:$0xff] }
  0xdc   :  { %v10751_v37 = vld [vmem:[#allocation2 + $0x67] sm:$0xff]  ;;  %v10753_v40 = vld [vmem:[#allocation2 + $0x6f] sm:$0xff]  ;;  %9130 = vmatprep.mubr.msk.f32.mxu1 %vm274_vm1, %v10749_v36  ;;  %v11312_v10 = vld [vmem:[%s16117_s3 + $0x1d8] sm:$0xff] }
  0xdd   :  { %9162 = vmatprep.mubr.msk.f32.mxu0 %vm274_vm1, %v10751_v37  ;;  %9131 = vmatmul.mubr.msk.f32.gmra.mxu1 %vm274_vm1, %v10761_v41  ;;  %v10828_v2 = vld [vmem:[#allocation2 + $0x29] sm:$0xff]  ;;  %16306 = vst [vmem:[#allocation31_spill] sm:$0xff] %v11312_v10 }
  0xde   :  { %9163 = vmatmul.mubr.msk.f32.gmra.mxu0 %vm274_vm1, %v10753_v40  ;;  %9133 = vmatprep.mubr.msk.f32.mxu1 %vm274_vm1, %v353_v34  ;;  %v10848_v7 = vld [vmem:[#allocation2 + $0x49] sm:$0xff] }
  0xdf   :  { %9165 = vmatprep.mubr.msk.f32.mxu0 %vm274_vm1, %v333_v35  ;;  %v8189_v9 = vld [vmem:[%s16117_s3 + $0xa8] sm:$0xff] }
  0xe0   :  { %v10785_v51 = vld [vmem:[#allocation2 + $0xf0] sm:$0xff]  ;;  %v10868_v13 = vld [vmem:[#allocation2 + $0x87] sm:$0xff] }
  0xe1   :  { %9134 = vmatmul.mubr.msk.f32.gmra.mxu1 %vm274_vm1, %v354_v42  ;;  %v10866_v11 = vld [vmem:[#allocation2 + $0x69] sm:$0xff]  ;;  %v10903_v34 = vld [vmem:[#allocation2 + $0xf1] sm:$0xff] }
  0xe2   :  { %9166 = vmatmul.mubr.msk.f32.gmra.mxu0 %vm274_vm1, %v334_v43  ;;  %v10775_v47 = vld [vmem:[#allocation2 + $0xe8] sm:$0xff]  ;;  %v10917_v43 = vld [vmem:[#allocation2 + $0x111] sm:$0xff] }
  0xe3   :  { %v10777_v48 = vld [vmem:[#allocation2 + $0xe7] sm:$0xff]  ;;  %v10779_v49 = vld [vmem:[#allocation2 + $0xef] sm:$0xff]  ;;  %9136 = vmatprep.mubr.msk.f32.mxu1 %vm274_vm1, %v10775_v47 }
  0xe4   :  { %9168 = vmatprep.mubr.msk.f32.mxu0 %vm274_vm1, %v10777_v48  ;;  %v760_v14 = vld [vmem:[#allocation2 + $0xc9] sm:$0xff] }
  0xe5   :  { %9137 = vmatmul.mubr.msk.f32.gmra.mxu1 %vm274_vm1, %v10785_v51  ;;  %v10879_v20 = vld [vmem:[#allocation2 + $0x8f] sm:$0xff]  ;;  %v10915_v42 = vld [vmem:[#allocation2 + $0x147] sm:$0xff] }
  0xe6   :  { %9169 = vmatmul.mubr.msk.f32.gmra.mxu0 %vm274_vm1, %v10779_v49  ;;  %9139 = vmatprep.mubr.msk.f32.mxu1 %vm274_vm1, %v10771_v44  ;;  %v10897_v31 = vld [vmem:[#allocation2 + $0xe9] sm:$0xff] }
  0xe7   :  { %9171 = vmatprep.mubr.msk.f32.mxu0 %vm274_vm1, %v10773_v46  ;;  %v10909_v35 = vld [vmem:[#allocation2 + $0x109] sm:$0xff] }
  0xe9   :  { %9140 = vmatmul.mubr.msk.f32.gmra.mxu1 %vm274_vm1, %v10799_v55 }
  0xea   :  { %9172 = vmatmul.mubr.msk.f32.gmra.mxu0 %vm274_vm1, %v10801_v57  ;;  %9142 = vmatprep.mubr.msk.f32.mxu1 %vm274_vm1, %v10795_v53 }
  0xeb   :  { %9174 = vmatprep.mubr.msk.f32.mxu0 %vm274_vm1, %v10797_v54 }
  0xed   :  { %9143 = vmatmul.mubr.msk.f32.gmra.mxu1 %vm274_vm1, %v10811_v60 }
  0xee   :  { %9175 = vmatmul.mubr.msk.f32.gmra.mxu0 %vm274_vm1, %v10813_v61  ;;  %9185 = vmatprep.mubr.msk.f32.mxu1 %vm274_vm1, %v752_v59  ;;  %v10931_v59 = vld [vmem:[#allocation2 + $0x131] sm:$0xff] }
  0xef   :  { %9217 = vmatprep.mubr.msk.f32.mxu0 %vm274_vm1, %v10694_v16  ;;  %v8188_v16 = vld [vmem:[%s16117_s3 + $0xa0] sm:$0xff] }
  0xf1   :  { %9186 = vmatmul.mubr.msk.f32.vlgmr.msra.gmra.mxu1 %vm274_vm1, %v753_v63  ;;  %v8210_v63 = vld [vmem:[%s16117_s3 + $0xd0] sm:$0xff] }
  0xf2   :  { %9218 = vmatmul.mubr.msk.f32.vlgmr.msra.gmra.mxu0 %vm274_vm1, %v10696_v17  ;;  %9242 = vmatpush3.msra.mxu1 %v10625_v38  ;;  %v8190_v38 = vld [vmem:[%s16117_s3 + $0xb0] sm:$0xff] }
  0xf3   :  { %9188 = vmatprep.mubr.msk.f32.mxu1 %vm274_vm1, %v10828_v2  ;;  %9220 = vmatprep.mubr.msk.f32.mxu0 %vm274_vm1, %v10726_v28  ;;  %v10877_v17 = vld [vmem:[#allocation2 + $0x71] sm:$0xff] }
  0xf4   :  { %9243 = vmatprep.subr.mxu1 %v8170_v1  ;;  %9274 = vmatpush3.msra.mxu0 %v10631_v39  ;;  %v10854_v39 = vld [vmem:[#allocation2 + $0x51] sm:$0xff] }
  0xf5   :  { %9244 = vmatpush3.msra.mxu1 %v8170_v1  ;;  %9275 = vmatprep.subr.mxu0 %v8190_v38  ;;  %v9123_v1 = vpop.f32.mrf.mxu1 }
  0xf6   :  { %9189 = vmatmul.mubr.msk.f32.gmra.mxu1 %vm274_vm1, %v10835_v3  ;;  %9221 = vmatmul.mubr.msk.f32.gmra.mxu0 %vm274_vm1, %v10728_v29 }
  0xf7   :  { %9191 = vmatprep.mubr.msk.f32.mxu1 %vm274_vm1, %v10848_v7  ;;  %9223 = vmatprep.mubr.msk.f32.mxu0 %vm274_vm1, %v10751_v37 }
  0xf8   :  { %9245 = vmatprep.subr.mxu1 %v8169_v5  ;;  %9276 = vmatpush3.msra.mxu0 %v8190_v38 }
  0xf9   :  { %9246 = vmatpush3.msra.mxu1 %v8169_v5  ;;  %9277 = vmatprep.subr.mxu0 %v8189_v9  ;;  %v9155_v5 = vpop.f32.mrf.mxu0 }
  0xfa   :  { %9192 = vmatmul.mubr.msk.f32.gmra.mxu1 %vm274_vm1, %v10854_v39  ;;  %9224 = vmatmul.mubr.msk.f32.gmra.mxu0 %vm274_vm1, %v10753_v40  ;;  %v10948_v38 = vadd.f32 %v9155_v5, %v9123_v1 }
  0xfb   :  { %9194 = vmatprep.mubr.msk.f32.mxu1 %vm274_vm1, %v10866_v11  ;;  %9226 = vmatprep.mubr.msk.f32.mxu0 %vm274_vm1, %v10868_v13 }
  0xfc   :  { %9247 = vmatprep.subr.mxu1 %v8168_v8  ;;  %9278 = vmatpush3.msra.mxu0 %v8189_v9  ;;  %v10978_v9 = vld [vmem:[#allocation2 + $0x89] sm:$0xff] }
  0xfd   :  { %9248 = vmatpush3.msra.mxu1 %v8168_v8  ;;  %9279 = vmatprep.subr.mxu0 %v8188_v16  ;;  %v1218_v8 = vld [vmem:[#allocation2 + $0x88] sm:$0xff] }
  0xfe   :  { %9195 = vmatmul.mubr.msk.f32.gmra.mxu1 %vm274_vm1, %v10877_v17  ;;  %9227 = vmatmul.mubr.msk.f32.gmra.mxu0 %vm274_vm1, %v10879_v20 }
  0xff   :  { %9229 = vmatprep.mubr.msk.f32.mxu0 %vm274_vm1, %v10777_v48  ;;  %9197 = vmatprep.mubr.msk.f32.mxu1 %vm274_vm1, %v760_v14  ;;  %v10923_v48 = vld [vmem:[#allocation2 + $0x129] sm:$0xff]  ;;  %v8228_v14 = vld [vmem:[%s16117_s3 + $0xe0] sm:$0xff] }
 0x100   :  { %9305 = vmatprep.subr.mxu1 %v8211_v23  ;;  %9280 = vmatpush3.msra.mxu0 %v8188_v16  ;;  %v1219_v16 = vld [vmem:[#allocation2 + $0x90] sm:$0xff] }
 0x101   :  { %9337 = vmatprep.subr.mxu0 %v8231_v26 }
 0x102   :  { %9198 = vmatmul.mubr.msk.f32.gmra.mxu1 %vm274_vm1, %v761_v25  ;;  %9230 = vmatmul.mubr.msk.f32.gmra.mxu0 %vm274_vm1, %v10779_v49  ;;  %v10929_v49 = vld [vmem:[#allocation2 + $0x14f] sm:$0xff]  ;;  %v8251_v25 = vld [vmem:[%s16117_s3 + $0x118] sm:$0xff] }
 0x103   :  { %9200 = vmatprep.mubr.msk.f32.mxu1 %vm274_vm1, %v10897_v31  ;;  %9232 = vmatprep.mubr.msk.f32.mxu0 %vm274_vm1, %v10773_v46 }
 0x106   :  { %9201 = vmatmul.mubr.msk.f32.gmra.mxu1 %vm274_vm1, %v10903_v34  ;;  %9233 = vmatmul.mubr.msk.f32.gmra.mxu0 %vm274_vm1, %v10801_v57 }
 0x107   :  { %9203 = vmatprep.mubr.msk.f32.mxu1 %vm274_vm1, %v10909_v35  ;;  %9235 = vmatprep.mubr.msk.f32.mxu0 %vm274_vm1, %v10797_v54 }
 0x10a   :  { %9204 = vmatmul.mubr.msk.f32.gmra.mxu1 %vm274_vm1, %v10917_v43  ;;  %9236 = vmatmul.mubr.msk.f32.gmra.mxu0 %vm274_vm1, %v10813_v61 }
 0x10b   :  { %9206 = vmatprep.mubr.msk.f32.mxu1 %vm274_vm1, %v10923_v48  ;;  %9238 = vmatprep.mubr.msk.f32.mxu0 %vm274_vm1, %v10915_v42 }
 0x10e   :  { %9207 = vmatmul.mubr.msk.f32.gmra.mxu1 %vm274_vm1, %v10931_v59  ;;  %9239 = vmatmul.mubr.msk.f32.gmra.mxu0 %vm274_vm1, %v10929_v49 }
 0x10f   :  { %9249 = vmatprep.mubr.msk.f32.mxu1 %vm274_vm1, %v10692_v15  ;;  %9281 = vmatprep.mubr.msk.f32.mxu0 %vm274_vm1, %v10828_v2  ;;  %v8209_v15 = vld [vmem:[%s16117_s3 + $0xc8] sm:$0xff]  ;;  %v8208_v2 = vld [vmem:[%s16117_s3 + $0xc0] sm:$0xff] }
 0x112   :  { %9250 = vmatmul.mubr.msk.f32.vlgmr.msra.gmra.mxu1 %vm274_vm1, %v10707_v21  ;;  %9282 = vmatmul.mubr.msk.f32.vlgmr.msra.gmra.mxu0 %vm274_vm1, %v10835_v3  ;;  %v8230_v21 = vld [vmem:[%s16117_s3 + $0xf0] sm:$0xff]  ;;  %v8229_v3 = vld [vmem:[%s16117_s3 + $0xe8] sm:$0xff] }
 0x113   :  { %9306 = vmatpush3.msra.mxu1 %v8211_v23  ;;  %9252 = vmatprep.mubr.msk.f32.mxu1 %vm274_vm1, %v10724_v27  ;;  %v10986_v23 = vld [vmem:[#allocation2 + $0x91] sm:$0xff] }
 0x114   :  { %9284 = vmatprep.mubr.msk.f32.mxu0 %vm274_vm1, %v10848_v7  ;;  %9307 = vmatprep.subr.mxu1 %v8210_v63 }
 0x115   :  { %9308 = vmatpush3.msra.mxu1 %v8210_v63  ;;  %9338 = vmatpush3.msra.mxu0 %v8231_v26  ;;  %v1227_v26 = vld [vmem:[#allocation2 + $0x150] sm:$0xff] }
 0x116   :  { %9253 = vmatmul.mubr.msk.f32.gmra.mxu1 %vm274_vm1, %v10739_v32  ;;  %9285 = vmatmul.mubr.msk.f32.gmra.mxu0 %vm274_vm1, %v10854_v39 }
 0x117   :  { %9255 = vmatprep.mubr.msk.f32.mxu1 %vm274_vm1, %v10749_v36  ;;  %9287 = vmatprep.mubr.msk.f32.mxu0 %vm274_vm1, %v10866_v11 }
 0x118   :  { %9309 = vmatprep.subr.mxu1 %v8209_v15  ;;  %9339 = vmatprep.subr.mxu0 %v8230_v21 }
 0x119   :  { %9310 = vmatpush3.msra.mxu1 %v8209_v15  ;;  %9340 = vmatpush3.msra.mxu0 %v8230_v21  ;;  %v8270_v15 = vld [vmem:[%s16117_s3 + $0x128] sm:$0xff] }
 0x11a   :  { %9256 = vmatmul.mubr.msk.f32.gmra.mxu1 %vm274_vm1, %v10761_v41  ;;  %9288 = vmatmul.mubr.msk.f32.gmra.mxu0 %vm274_vm1, %v10877_v17 }
 0x11b   :  { %9258 = vmatprep.mubr.msk.f32.mxu1 %vm274_vm1, %v1218_v8  ;;  %9290 = vmatprep.mubr.msk.f32.mxu0 %vm274_vm1, %v10978_v9 }
 0x11c   :  { %9311 = vmatprep.subr.mxu1 %v8208_v2  ;;  %9341 = vmatprep.subr.mxu0 %v8229_v3 }
 0x11d   :  { %9312 = vmatpush3.msra.mxu1 %v8208_v2  ;;  %9342 = vmatpush3.msra.mxu0 %v8229_v3  ;;  %v8273_v3 = vld [vmem:[%s16117_s3 + $0x140] sm:$0xff] }
 0x11e   :  { %9259 = vmatmul.mubr.msk.f32.gmra.mxu1 %vm274_vm1, %v1219_v16  ;;  %9291 = vmatmul.mubr.msk.f32.gmra.mxu0 %vm274_vm1, %v10986_v23 }
 0x11f   :  { %9261 = vmatprep.mubr.msk.f32.mxu1 %vm274_vm1, %v10775_v47  ;;  %9293 = vmatprep.mubr.msk.f32.mxu0 %vm274_vm1, %v10897_v31  ;;  %v1226_v47 = vld [vmem:[#allocation2 + $0x148] sm:$0xff]  ;;  %v11023_v31 = vld [vmem:[#allocation2 + $0x151] sm:$0xff] }
 0x120   :  { %9343 = vmatprep.subr.mxu0 %v8228_v14  ;;  %9369 = vmatprep.subr.mxu1 %v8251_v25 }
 0x121   :  { %9344 = vmatpush3.msra.mxu0 %v8228_v14  ;;  %v2455_v14 = vld [vmem:[#allocation2 + $0x8] sm:$0xff] }
 0x122   :  { %9262 = vmatmul.mubr.msk.f32.gmra.mxu1 %vm274_vm1, %v10785_v51  ;;  %9294 = vmatmul.mubr.msk.f32.gmra.mxu0 %vm274_vm1, %v10903_v34  ;;  %v11018_v51 = vld [vmem:[#allocation2 + $0x149] sm:$0xff] }
 0x123   :  { %9264 = vmatprep.mubr.msk.f32.mxu1 %vm274_vm1, %v10771_v44  ;;  %9296 = vmatprep.mubr.msk.f32.mxu0 %vm274_vm1, %v10909_v35  ;;  %v8250_v34 = vld [vmem:[%s16117_s3 + $0x110] sm:$0xff] }
 0x126   :  { %9265 = vmatmul.mubr.msk.f32.gmra.mxu1 %vm274_vm1, %v10799_v55  ;;  %9297 = vmatmul.mubr.msk.f32.gmra.mxu0 %vm274_vm1, %v10917_v43 }
 0x127   :  { %9267 = vmatprep.mubr.msk.f32.mxu1 %vm274_vm1, %v10795_v53  ;;  %9299 = vmatprep.mubr.msk.f32.mxu0 %vm274_vm1, %v10923_v48 }
 0x12a   :  { %9268 = vmatmul.mubr.msk.f32.gmra.mxu1 %vm274_vm1, %v10811_v60  ;;  %9300 = vmatmul.mubr.msk.f32.gmra.mxu0 %vm274_vm1, %v10931_v59 }
 0x12b   :  { %9270 = vmatprep.mubr.msk.f32.mxu1 %vm274_vm1, %v1226_v47  ;;  %9302 = vmatprep.mubr.msk.f32.mxu0 %vm274_vm1, %v11018_v51 }
 0x12e   :  { %9271 = vmatmul.mubr.msk.f32.gmra.mxu1 %vm274_vm1, %v1227_v26  ;;  %9303 = vmatmul.mubr.msk.f32.gmra.mxu0 %vm274_vm1, %v11023_v31 }
 0x12f   :  { %9313 = vmatprep.mubr.msk.f32.mxu1 %vm274_vm1, %v10726_v28  ;;  %9345 = vmatprep.mubr.msk.f32.mxu0 %vm274_vm1, %v10724_v27  ;;  %v8249_v27 = vld [vmem:[%s16117_s3 + $0x108] sm:$0xff] }
 0x130   :  { %v1679_v28 = vld [vmem:[#allocation2 + $0xa7] sm:$0xff] }
 0x132   :  { %9314 = vmatmul.mubr.msk.f32.vlgmr.msra.gmra.mxu1 %vm274_vm1, %v10728_v29  ;;  %9346 = vmatmul.mubr.msk.f32.vlgmr.msra.gmra.mxu0 %vm274_vm1, %v10739_v32  ;;  %v1909_v29 = vld [vmem:[#allocation2 + $0xa8] sm:$0xff]  ;;  %v8248_v32 = vld [vmem:[%s16117_s3 + $0x100] sm:$0xff] }
 0x133   :  { %9370 = vmatpush3.msra.mxu1 %v8251_v25  ;;  %9316 = vmatprep.mubr.msk.f32.mxu1 %vm274_vm1, %v10751_v37  ;;  %v1910_v37 = vld [vmem:[#allocation2 + $0xb0] sm:$0xff] }
 0x134   :  { %9348 = vmatprep.mubr.msk.f32.mxu0 %vm274_vm1, %v10749_v36  ;;  %9371 = vmatprep.subr.mxu1 %v8250_v34  ;;  %v1680_v36 = vld [vmem:[#allocation2 + $0xaf] sm:$0xff] }
 0x135   :  { %9372 = vmatpush3.msra.mxu1 %v8250_v34 }
 0x136   :  { %9317 = vmatmul.mubr.msk.f32.gmra.mxu1 %vm274_vm1, %v10753_v40  ;;  %9349 = vmatmul.mubr.msk.f32.gmra.mxu0 %vm274_vm1, %v10761_v41  ;;  %v1687_v40 = vld [vmem:[#allocation2 + $0x167] sm:$0xff] }
 0x137   :  { %9319 = vmatprep.mubr.msk.f32.mxu1 %vm274_vm1, %v10868_v13  ;;  %9351 = vmatprep.mubr.msk.f32.mxu0 %vm274_vm1, %v1218_v8  ;;  %v1917_v41 = vld [vmem:[#allocation2 + $0x168] sm:$0xff]  ;;  %v8269_v8 = vld [vmem:[%s16117_s3 + $0x120] sm:$0xff] }
 0x138   :  { %9373 = vmatprep.subr.mxu1 %v8249_v27 }
 0x139   :  { %9374 = vmatpush3.msra.mxu1 %v8249_v27 }
 0x13a   :  { %9320 = vmatmul.mubr.msk.f32.gmra.mxu1 %vm274_vm1, %v10879_v20  ;;  %9352 = vmatmul.mubr.msk.f32.gmra.mxu0 %vm274_vm1, %v1219_v16  ;;  %v2434_v16 = vld [vmem:[#allocation2 + $0x7] sm:$0xff] }
 0x13b   :  { %9322 = vmatprep.mubr.msk.f32.mxu1 %vm274_vm1, %v1679_v28  ;;  %9354 = vmatprep.mubr.msk.f32.mxu0 %vm274_vm1, %v1909_v29 }
 0x13c   :  { %9375 = vmatprep.subr.mxu1 %v8248_v32 }
 0x13d   :  { %9376 = vmatpush3.msra.mxu1 %v8248_v32 }
 0x13e   :  { %9323 = vmatmul.mubr.msk.f32.gmra.mxu1 %vm274_vm1, %v1680_v36  ;;  %9355 = vmatmul.mubr.msk.f32.gmra.mxu0 %vm274_vm1, %v1910_v37 }
 0x13f   :  { %9325 = vmatprep.mubr.msk.f32.mxu1 %vm274_vm1, %v10773_v46  ;;  %9357 = vmatprep.mubr.msk.f32.mxu0 %vm274_vm1, %v10771_v44  ;;  %v1688_v44 = vld [vmem:[#allocation2 + $0x16f] sm:$0xff] }
 0x140   :  { %v1918_v46 = vld [vmem:[#allocation2 + $0x170] sm:$0xff] }
 0x142   :  { %9326 = vmatmul.mubr.msk.f32.gmra.mxu1 %vm274_vm1, %v10801_v57  ;;  %9358 = vmatmul.mubr.msk.f32.gmra.mxu0 %vm274_vm1, %v10799_v55  ;;  %v2147_v55 = vld [vmem:[#allocation2 + $0x169] sm:$0xff]  ;;  %v2148_v57 = vld [vmem:[#allocation2 + $0x171] sm:$0xff] }
 0x143   :  { %9328 = vmatprep.mubr.msk.f32.mxu1 %vm274_vm1, %v10797_v54  ;;  %9360 = vmatprep.mubr.msk.f32.mxu0 %vm274_vm1, %v10795_v53  ;;  %v2139_v53 = vld [vmem:[#allocation2 + $0xa9] sm:$0xff]  ;;  %v2140_v54 = vld [vmem:[#allocation2 + $0xb1] sm:$0xff] }
 0x146   :  { %9329 = vmatmul.mubr.msk.f32.gmra.mxu1 %vm274_vm1, %v10813_v61  ;;  %9361 = vmatmul.mubr.msk.f32.gmra.mxu0 %vm274_vm1, %v10811_v60  ;;  %v8276_v60 = vld [vmem:[%s16117_s3 + $0x158] sm:$0xff]  ;;  %v8275_v61 = vld [vmem:[%s16117_s3 + $0x150] sm:$0xff] }
 0x147   :  { %9331 = vmatprep.mubr.msk.f32.mxu1 %vm274_vm1, %v10915_v42  ;;  %9363 = vmatprep.mubr.msk.f32.mxu0 %vm274_vm1, %v1226_v47  ;;  %v2456_v47 = vld [vmem:[#allocation2 + $0x10] sm:$0xff] }
 0x148   :  { %9401 = vmatprep.subr.mxu0 %v8276_v60 }
 0x149   :  { %9402 = vmatpush3.msra.mxu0 %v8276_v60 }
 0x14a   :  { %9332 = vmatmul.mubr.msk.f32.gmra.mxu1 %vm274_vm1, %v10929_v49  ;;  %9364 = vmatmul.mubr.msk.f32.gmra.mxu0 %vm274_vm1, %v1227_v26 }
 0x14b   :  { %9334 = vmatprep.mubr.msk.f32.mxu1 %vm274_vm1, %v1687_v40  ;;  %9366 = vmatprep.mubr.msk.f32.mxu0 %vm274_vm1, %v1917_v41  ;;  %v8312_v41 = vld [vmem:[%s16117_s3 + $0x178] sm:$0xff] }
 0x14c   :  { %9403 = vmatprep.subr.mxu0 %v8275_v61 }
 0x14d   :  { %9404 = vmatpush3.msra.mxu0 %v8275_v61 }
 0x14e   :  { %9335 = vmatmul.mubr.msk.f32.gmra.mxu1 %vm274_vm1, %v1688_v44  ;;  %9367 = vmatmul.mubr.msk.f32.gmra.mxu0 %vm274_vm1, %v1918_v46 }
 0x14f   :  { %9377 = vmatprep.mubr.msk.f32.mxu1 %vm274_vm1, %v10848_v7  ;;  %v8274_v7 = vld [vmem:[%s16117_s3 + $0x148] sm:$0xff]  ;;  %9409 = vmatprep.mubr.msk.f32.mxu0 %vm274_vm1, %v2455_v14 }
 0x150   :  { %9405 = vmatprep.subr.mxu0 %v8274_v7 }
 0x151   :  { %9406 = vmatpush3.msra.mxu0 %v8274_v7 }
 0x152   :  { %9378 = vmatmul.mubr.msk.f32.vlgmr.msra.gmra.mxu1 %vm274_vm1, %v10854_v39  ;;  %v11126_v39 = vpop.f32.mrf.mxu1  ;;  %9407 = vmatprep.subr.mxu0 %v8273_v3 }
 0x153   :  { %9380 = vmatprep.mubr.msk.f32.mxu1 %vm274_vm1, %v10866_v11  ;;  %v11128_v11 = vpop.f32.mrf.mxu0  ;;  %9408 = vmatpush3.msra.mxu0 %v8273_v3 }
 0x154   :  { %9410 = vmatmul.mubr.msk.f32.vlgmr.msra.gmra.mxu0 %vm274_vm1, %v2456_v47  ;;  %9465 = vmatprep.subr.mxu0 %v8312_v41 }
 0x155   :  { %9466 = vmatpush3.msra.mxu0 %v8312_v41 }
 0x156   :  { %9381 = vmatmul.mubr.msk.f32.gmra.mxu1 %vm274_vm1, %v10877_v17 }
 0x157   :  { %9383 = vmatprep.mubr.msk.f32.mxu1 %vm274_vm1, %v10978_v9 }
 0x15a   :  { %9384 = vmatmul.mubr.msk.f32.gmra.mxu1 %vm274_vm1, %v10986_v23 }
 0x15b   :  { %9386 = vmatprep.mubr.msk.f32.mxu1 %vm274_vm1, %v2139_v53 }
 0x15e   :  { %9387 = vmatmul.mubr.msk.f32.gmra.mxu1 %vm274_vm1, %v2140_v54 }
 0x15f   :  { %9389 = vmatprep.mubr.msk.f32.mxu1 %vm274_vm1, %v10909_v35 }
 0x162   :  { %9390 = vmatmul.mubr.msk.f32.gmra.mxu1 %vm274_vm1, %v10917_v43  ;;  %v8272_v43 = vld [vmem:[%s16117_s3 + $0x138] sm:$0xff] }
 0x163   :  { %9392 = vmatprep.mubr.msk.f32.mxu1 %vm274_vm1, %v10923_v48  ;;  %9433 = vmatprep.subr.mxu1 %v8272_v43 }
 0x164   :  { %9434 = vmatpush3.msra.mxu1 %v8272_v43 }
 0x166   :  { %9393 = vmatmul.mubr.msk.f32.gmra.mxu1 %vm274_vm1, %v10931_v59  ;;  %v8271_v59 = vld [vmem:[%s16117_s3 + $0x130] sm:$0xff] }
 0x167   :  { %9395 = vmatprep.mubr.msk.f32.mxu1 %vm274_vm1, %v11018_v51  ;;  %9435 = vmatprep.subr.mxu1 %v8271_v59  ;;  %v2435_v51 = vld [vmem:[#allocation2 + $0xf] sm:$0xff] }
 0x168   :  { %9436 = vmatpush3.msra.mxu1 %v8271_v59 }
 0x169   :  { %9437 = vmatprep.subr.mxu1 %v8270_v15 }
 0x16a   :  { %9396 = vmatmul.mubr.msk.f32.gmra.mxu1 %vm274_vm1, %v11023_v31 }
 0x16b   :  { %9398 = vmatprep.mubr.msk.f32.mxu1 %vm274_vm1, %v2147_v55  ;;  %9438 = vmatpush3.msra.mxu1 %v8270_v15 }
 0x16c   :  { %9439 = vmatprep.subr.mxu1 %v8269_v8 }
 0x16d   :  { %9440 = vmatpush3.msra.mxu1 %v8269_v8 }
 0x16e   :  { %9399 = vmatmul.mubr.msk.f32.gmra.mxu1 %vm274_vm1, %v2148_v57 }
 0x16f   :  { %9441 = vmatprep.mubr.msk.f32.mxu1 %vm274_vm1, %v2434_v16  ;;  %v8309_v16 = vld [vmem:[%s16117_s3 + $0x160] sm:$0xff] }
 0x172   :  { %9442 = vmatmul.mubr.msk.f32.vlgmr.msra.gmra.mxu1 %vm274_vm1, %v2435_v51 }
 0x195   :  { %v9126_v13 = vpop.f32.mrf.mxu1 }
 0x196   :  { %v9158_v17 = vpop.f32.mrf.mxu0 }
 0x197   :  { %v11130_v20 = vadd.f32 %v9158_v17, %v9126_v13  ;;  %v11132_v35 = vpop.f32.mrf.mxu1  ;;  %v8311_v17 = vld [vmem:[%s16117_s3 + $0x170] sm:$0xff] }
 0x198   :  { %v11134_v42 = vpop.f32.mrf.mxu0  ;;  %9467 = vmatprep.subr.mxu0 %v8311_v17 }
 0x199   :  { %v9129_v48 = vpop.f32.mrf.mxu1  ;;  %9468 = vmatpush3.msra.mxu0 %v8311_v17 }
 0x19a   :  { %v9161_v49 = vpop.f32.mrf.mxu0 }
 0x19b   :  { %v11142_v63 = vadd.f32 %v9161_v49, %v9129_v48  ;;  %v11144_v1 = vpop.f32.mrf.mxu1 }
 0x19c   :  { %v11146_v5 = vpop.f32.mrf.mxu0 }
 0x19d   :  { %v9132_v21 = vpop.f32.mrf.mxu1 }
 0x19e   :  { %v9164_v2 = vpop.f32.mrf.mxu0 }
 0x19f   :  { %v11157_v9 = vadd.f32 %v9164_v2, %v9132_v21  ;;  %v11159_v23 = vpop.f32.mrf.mxu1 }
 0x1a0   :  { %v11161_v25 = vpop.f32.mrf.mxu0 }
 0x1a1   :  { %v9135_v26 = vpop.f32.mrf.mxu1 }
 0x1a2   :  { %v9167_v31 = vpop.f32.mrf.mxu0 }
 0x1a3   :  { %v11167_v34 = vadd.f32 %v9167_v31, %v9135_v26  ;;  %v11169_v27 = vpop.f32.mrf.mxu1  ;;  %v8331_v26 = vld [vmem:[%s16117_s3 + $0x190] sm:$0xff] }
 0x1a4   :  { %v11171_v28 = vpop.f32.mrf.mxu0 }
 0x1a5   :  { %v9138_v29 = vpop.f32.mrf.mxu1 }
 0x1a6   :  { %v9170_v32 = vpop.f32.mrf.mxu0 }
 0x1a7   :  { %v11173_v36 = vadd.f32 %v9170_v32, %v9138_v29  ;;  %v11175_v37 = vpop.f32.mrf.mxu1 }
 0x1a8   :  { %v11177_v40 = vpop.f32.mrf.mxu0 }
 0x1a9   :  { %v9141_v44 = vpop.f32.mrf.mxu1 }
 0x1aa   :  { %v9173_v46 = vpop.f32.mrf.mxu0 }
 0x1ab   :  { %v11182_v53 = vadd.f32 %v9173_v46, %v9141_v44  ;;  %v11184_v54 = vpop.f32.mrf.mxu1  ;;  %v8330_v46 = vld [vmem:[%s16117_s3 + $0x188] sm:$0xff] }
 0x1ac   :  { %v11186_v55 = vpop.f32.mrf.mxu0 }
 0x1ad   :  { %v9144_v57 = vpop.f32.mrf.mxu1 }
 0x1ae   :  { %v9176_v60 = vpop.f32.mrf.mxu0 }
 0x1af   :  { %v11188_v61 = vadd.f32 %v9176_v60, %v9144_v57  ;;  %v11190_v7 = vpop.f32.mrf.mxu1  ;;  %v8329_v57 = vld [vmem:[%s16117_s3 + $0x180] sm:$0xff]  ;;  %v11250_v60 = vld [vmem:[%s16117_s3 + $0x1b8] sm:$0xff] }
 0x1b0   :  { %v11192_v13 = vpop.f32.mrf.mxu0  ;;  %16296 = vst [vmem:[#allocation21_spill] sm:$0xff] %v11250_v60 }
 0x1b1   :  { %v9187_v43 = vpop.f32.mrf.mxu1 }
 0x1b2   :  { %v11197_v48 = vpop.f32.mrf.mxu0  ;;  %v11200_v49 = vadd.f32 %v9187_v43, %v10948_v38  ;;  %v8310_v38 = vld [vmem:[%s16117_s3 + $0x168] sm:$0xff] }
 0x1b3   :  { %v11202_v59 = vpop.f32.mrf.mxu1  ;;  %9469 = vmatprep.subr.mxu0 %v8310_v38 }
 0x1b4   :  { %v11204_v15 = vpop.f32.mrf.mxu0  ;;  %9470 = vmatpush3.msra.mxu0 %v8310_v38 }
 0x1b5   :  { %9471 = vmatprep.subr.mxu0 %v8309_v16 }
 0x1b6   :  { %v9190_v21 = vpop.f32.mrf.mxu1  ;;  %v11206_v2 = vpop.f32.mrf.mxu0  ;;  %9472 = vmatpush3.msra.mxu0 %v8309_v16 }
 0x1b7   :  { %v11209_v3 = vadd.f32 %v9190_v21, %v11130_v20  ;;  %v8332_v20 = vld [vmem:[%s16117_s3 + $0x198] sm:$0xff]  ;;  %9529 = vmatprep.subr.mxu0 %v11250_v60 }
 0x1b8   :  { %v11211_v8 = vpop.f32.mrf.mxu1  ;;  %v11213_v14 = vpop.f32.mrf.mxu0  ;;  %9497 = vmatprep.subr.mxu1 %v8332_v20 }
 0x1b9   :  { %9498 = vmatpush3.msra.mxu1 %v8332_v20 }
 0x1ba   :  { %v9193_v47 = vpop.f32.mrf.mxu1  ;;  %v11221_v51 = vpop.f32.mrf.mxu0  ;;  %9499 = vmatprep.subr.mxu1 %v8331_v26 }
 0x1bb   :  { %v11230_v31 = vadd.f32 %v9193_v47, %v11142_v63  ;;  %9500 = vmatpush3.msra.mxu1 %v8331_v26 }
 0x1bc   :  { %v11232_v29 = vpop.f32.mrf.mxu1  ;;  %v11234_v32 = vpop.f32.mrf.mxu0  ;;  %9501 = vmatprep.subr.mxu1 %v8330_v46 }
 0x1bd   :  { %9502 = vmatpush3.msra.mxu1 %v8330_v46 }
 0x1be   :  { %v9196_v41 = vpop.f32.mrf.mxu1  ;;  %v11236_v44 = vpop.f32.mrf.mxu0  ;;  %9503 = vmatprep.subr.mxu1 %v8329_v57 }
 0x1bf   :  { %v11242_v63 = vadd.f32 %v9196_v41, %v11157_v9  ;;  %9504 = vmatpush3.msra.mxu1 %v8329_v57 }
 0x1c0   :  { %v11252_v17 = vpop.f32.mrf.mxu1  ;;  %v11254_v43 = vpop.f32.mrf.mxu0  ;;  %9561 = vmatprep.subr.mxu1 %v11312_v10 }
 0x1c2   :  { %v9199_v9 = vpop.f32.mrf.mxu1  ;;  %v11257_v21 = vpop.f32.mrf.mxu0 }
 0x1c3   :  { %v11260_v38 = vadd.f32 %v9199_v9, %v11167_v34 }
 0x1c4   :  { %v11262_v16 = vpop.f32.mrf.mxu1  ;;  %v11264_v47 = vpop.f32.mrf.mxu0 }
 0x1c6   :  { %v9202_v20 = vpop.f32.mrf.mxu1  ;;  %v11266_v26 = vpop.f32.mrf.mxu0 }
 0x1c7   :  { %v11269_v41 = vadd.f32 %v9202_v20, %v11173_v36 }
 0x1c8   :  { %v11271_v46 = vpop.f32.mrf.mxu1  ;;  %v11273_v19 = vpop.f32.mrf.mxu0 }
 0x1c9   :  { %16297 = vst [vmem:[#allocation22_spill] sm:$0xff] %v11273_v19 }
 0x1ca   :  { %v9205_v60 = vpop.f32.mrf.mxu1  ;;  %v11275_v22 = vpop.f32.mrf.mxu0 }
 0x1cb   :  { %16298 = vst [vmem:[#allocation23_spill] sm:$0xff] %v11275_v22  ;;  %v11278_v34 = vadd.f32 %v9205_v60, %v11182_v53 }
 0x1cc   :  { %v11280_v57 = vpop.f32.mrf.mxu1  ;;  %v11282_v9 = vpop.f32.mrf.mxu0 }
 0x1cd   :  { %16299 = vst [vmem:[#allocation24_spill] sm:$0xff] %v11278_v34  ;;  %16300 = vst [vmem:[#allocation25_spill] sm:$0xff] %v11282_v9 }
 0x1ce   :  { %v9208_v12 = vpop.f32.mrf.mxu1  ;;  %v11284_v6 = vpop.f32.mrf.mxu0 }
 0x1cf   :  { %16301 = vst [vmem:[#allocation26_spill] sm:$0xff] %v11284_v6  ;;  %v11287_v36 = vadd.f32 %v9208_v12, %v11188_v61 }
 0x1d0   :  { %v11289_v20 = vpop.f32.mrf.mxu1  ;;  %v11291_v0 = vpop.f32.mrf.mxu0 }
 0x1d1   :  { %16302 = vst [vmem:[#allocation27_spill] sm:$0xff] %v11287_v36  ;;  %16303 = vst [vmem:[#allocation28_spill] sm:$0xff] %v11289_v20 }
 0x1d2   :  { %16304 = vst [vmem:[#allocation29_spill] sm:$0xff] %v11291_v0  ;;  %v9251_v58 = vpop.f32.mrf.mxu1  ;;  %v11293_v52 = vpop.f32.mrf.mxu0 }
 0x1d4   :  { %v1347_v33 = vpop.f32.mrf.mxu1  ;;  %v11295_v53 = vpop.f32.mrf.mxu0 }
 0x1d6   :  { %v11297_v60 = vpop.f32.mrf.mxu1  ;;  %v11299_v30 = vpop.f32.mrf.mxu0 }
 0x1d8   :  { %v11301_v24 = vpop.f32.mrf.mxu1  ;;  %v11303_v18 = vpop.f32.mrf.mxu0 }
 0x1da   :  { %v11305_v12 = vpop.f32.mrf.mxu1  ;;  %v11307_v61 = vpop.f32.mrf.mxu0 }
 0x1db   :  { %16305 = vst [vmem:[#allocation30_spill] sm:$0xff] %v11307_v61 }
 0x1dc   :  { %v11315_v4 = vpop.f32.mrf.mxu1  ;;  %v11317_v62 = vpop.f32.mrf.mxu0 }
 0x1dd   :  { %16307 = vst [vmem:[#allocation32_spill] sm:$0xff] %v11317_v62 }
 0x1de   :  { %v11319_v56 = vpop.f32.mrf.mxu1  ;;  %v11321_v50 = vpop.f32.mrf.mxu0 }
 0x1df   :  { %16308 = vst [vmem:[#allocation33_spill] sm:$0xff] %v11319_v56  ;;  %16309 = vst [vmem:[#allocation34_spill] sm:$0xff] %v11321_v50 }
 0x1e0   :  { %v11323_v45 = vpop.f32.mrf.mxu1  ;;  %v11325_v0 = vpop.f32.mrf.mxu0 }
 0x1e1   :  { %16310 = vst [vmem:[#allocation35_spill] sm:$0xff] %v11323_v45  ;;  %16311 = vst [vmem:[#allocation36_spill] sm:$0xff] %v11325_v0 }
 0x1e2   :  { %v11327_v6 = vpop.f32.mrf.mxu1  ;;  %v11329_v36 = vpop.f32.mrf.mxu0 }
 0x1e3   :  { %16312 = vst [vmem:[#allocation37_spill] sm:$0xff] %v11327_v6  ;;  %16313 = vst [vmem:[#allocation38_spill] sm:$0xff] %v11329_v36 }
 0x1e4   :  { %v11331_v9 = vpop.f32.mrf.mxu1  ;;  %v11333_v22 = vpop.f32.mrf.mxu0 }
 0x1e5   :  { %16314 = vst [vmem:[#allocation39_spill] sm:$0xff] %v11331_v9  ;;  %16315 = vst [vmem:[#allocation40_spill] sm:$0xff] %v11333_v22 }
 0x1e6   :  { %v11335_v10 = vpop.f32.mrf.mxu1  ;;  %v11337_v34 = vpop.f32.mrf.mxu0 }
 0x1e7   :  { %16316 = vst [vmem:[#allocation41_spill] sm:$0xff] %v11335_v10  ;;  %16317 = vst [vmem:[#allocation42_spill] sm:$0xff] %v11337_v34 }
 0x1e8   :  { %v11339_v62 = vpop.f32.mrf.mxu1  ;;  %v11341_v56 = vpop.f32.mrf.mxu0 }
 0x1e9   :  { %16318 = vst [vmem:[#allocation43_spill] sm:$0xff] %v11339_v62  ;;  %16319 = vst [vmem:[#allocation44_spill] sm:$0xff] %v11341_v56 }
 0x1ea   :  { %v11343_v50 = vpop.f32.mrf.mxu1  ;;  %v11345_v45 = vpop.f32.mrf.mxu0 }
 0x1eb   :  { %16320 = vst [vmem:[#allocation45_spill] sm:$0xff] %v11343_v50  ;;  %16321 = vst [vmem:[#allocation46_spill] sm:$0xff] %v11345_v45 }
 0x1ec   :  { %v11347_v0 = vpop.f32.mrf.mxu1  ;;  %v11349_v6 = vpop.f32.mrf.mxu0 }
 0x1ed   :  { %16322 = vst [vmem:[#allocation47_spill] sm:$0xff] %v11347_v0  ;;  %16323 = vst [vmem:[#allocation48_spill] sm:$0xff] %v11349_v6 }
 0x1ee   :  { %v11351_v36 = vpop.f32.mrf.mxu1  ;;  %v11353_v9 = vpop.f32.mrf.mxu0 }
 0x1ef   :  { %16324 = vst [vmem:[#allocation49_spill] sm:$0xff] %v11351_v36  ;;  %16325 = vst [vmem:[#allocation50_spill] sm:$0xff] %v11353_v9 }
 0x1f0   :  { %v11355_v22 = vpop.f32.mrf.mxu1  ;;  %v11357_v10 = vpop.f32.mrf.mxu0 }
 0x1f1   :  { %16326 = vst [vmem:[#allocation51_spill] sm:$0xff] %v11355_v22  ;;  %16327 = vst [vmem:[#allocation52_spill] sm:$0xff] %v11357_v10  ;;  %v674_v10 = vadd.f32 %v11128_v11, %v11126_v39 }
 0x1f2   :  { %v9315_v34 = vpop.f32.mrf.mxu1  ;;  %v9347_v62 = vpop.f32.mrf.mxu0 }
 0x1f4   :  { %v1808_v61 = vpop.f32.mrf.mxu1  ;;  %v11359_v56 = vpop.f32.mrf.mxu0 }
 0x1f5   :  { %16328 = vst [vmem:[#allocation53_spill] sm:$0xff] %v11359_v56 }
 0x1f6   :  { %v9318_v50 = vpop.f32.mrf.mxu1  ;;  %v11363_v45 = vpop.f32.mrf.mxu0 }
 0x1f7   :  { %16330 = vst [vmem:[#allocation55_spill] sm:$0xff] %v11363_v45 }
 0x1f8   :  { %v11361_v20 = vpop.f32.mrf.mxu1  ;;  %v11369_v36 = vpop.f32.mrf.mxu0 }
 0x1f9   :  { %16329 = vst [vmem:[#allocation54_spill] sm:$0xff] %v11361_v20  ;;  %16332 = vst [vmem:[#allocation57_spill] sm:$0xff] %v11369_v36  ;;  %v966_v20 = vadd.f32 %v11202_v59, %v674_v10  ;;  %v1197_v36 = vadd.f32 %v11197_v48, %v11200_v49  ;;  %v694_v10 = vadd.f32 %v11146_v5, %v11144_v1 }
 0x1fa   :  { %v11365_v0 = vpop.f32.mrf.mxu1  ;;  %v11377_v19 = vpop.f32.mrf.mxu0 }
 0x1fb   :  { %16335 = vst [vmem:[#allocation60_spill] sm:$0xff] %v11377_v19  ;;  %v1196_v39 = vadd.f32 %v11204_v15, %v966_v20  ;;  %v1427_v19 = vadd.f32 %v9251_v58, %v1197_v36  ;;  %v714_v15 = vadd.f32 %v11171_v28, %v11169_v27  ;;  %v16336_v36 = vld [vmem:[#allocation22_spill] sm:$0xff] }
 0x1fc   :  { %v11367_v6 = vpop.f32.mrf.mxu1 }
 0x1fd   :  { %16331 = vst [vmem:[#allocation56_spill] sm:$0xff] %v11367_v6  ;;  %v684_v6 = vadd.f32 %v11134_v42, %v11132_v35  ;;  %v704_v35 = vadd.f32 %v11161_v25, %v11159_v23  ;;  %v1199_v42 = vadd.f32 %v11206_v2, %v11209_v3  ;;  %v1426_v48 = vadd.f32 %v1347_v33, %v1196_v39 }
 0x1fe   :  { %v11371_v9 = vpop.f32.mrf.mxu1  ;;  %v724_v33 = vadd.f32 %v11177_v40, %v11175_v37  ;;  %v1201_v25 = vadd.f32 %v11221_v51, %v11230_v31  ;;  %v974_v27 = vadd.f32 %v11262_v16, %v714_v15  ;;  %v734_v2 = vadd.f32 %v11186_v55, %v11184_v54  ;;  %v16346_v15 = vld [vmem:[#allocation35_spill] sm:$0xff] }
 0x1ff   :  { %16333 = vst [vmem:[#allocation58_spill] sm:$0xff] %v11371_v9  ;;  %v11388_v9 = vpop.f32.mrf.mxu0  ;;  %v968_v11 = vadd.f32 %v11211_v8, %v684_v6  ;;  %v970_v6 = vadd.f32 %v11232_v29, %v694_v10  ;;  %v972_v5 = vadd.f32 %v11252_v17, %v704_v35  ;;  %v1657_v8 = vadd.f32 %v11293_v52, %v1427_v19  ;;  %v16344_v10 = vld [vmem:[#allocation25_spill] sm:$0xff] }
 0x200   :  { %v11373_v22 = vpop.f32.mrf.mxu1  ;;  %v1429_v23 = vadd.f32 %v11297_v60, %v1199_v42  ;;  %v1656_v3 = vadd.f32 %v11295_v53, %v1426_v48  ;;  %v744_v37 = vadd.f32 %v11192_v13, %v11190_v7  ;;  %v976_v51 = vadd.f32 %v11271_v46, %v724_v33  ;;  %v16345_v42 = vld [vmem:[#allocation32_spill] sm:$0xff] }
 0x201   :  { %16334 = vst [vmem:[#allocation59_spill] sm:$0xff] %v11373_v22  ;;  %v11402_v49 = vpop.f32.mrf.mxu0  ;;  %v1198_v1 = vadd.f32 %v11213_v14, %v968_v11  ;;  %v1888_v19 = vadd.f32 %v9315_v34, %v1657_v8  ;;  %v1200_v40 = vadd.f32 %v11234_v32, %v970_v6  ;;  %v1431_v31 = vadd.f32 %v11305_v12, %v1201_v25  ;;  %v11456_v12 = vld [vmem:[%s16119_s4] ss:$0 sm:$0xff]  ;;  %v16347_v8 = vld [vmem:[#allocation27_spill] sm:$0xff] }
 0x202   :  { %v11379_v56 = vpop.f32.mrf.mxu1  ;;  %v1203_v54 = vadd.f32 %v11236_v44, %v11242_v63  ;;  %v1202_v55 = vadd.f32 %v11254_v43, %v972_v5  ;;  %v1887_v17 = vadd.f32 %v1808_v61, %v1656_v3  ;;  %v1205_v16 = vadd.f32 %v11257_v21, %v11260_v38  ;;  %v16337_v21 = vld [vmem:[#allocation28_spill] sm:$0xff]  ;;  %v16343_v61 = vld [vmem:[#allocation54_spill] sm:$0xff]  ;;  %v16349_v25 = vld [vmem:[#allocation55_spill] sm:$0xff] }
 0x203   :  { %v1428_v14 = vadd.f32 %v11301_v24, %v1198_v1  ;;  %v11424_v52 = vpop.f32.mrf.mxu0  ;;  %v1659_v24 = vadd.f32 %v11299_v30, %v1429_v23  ;;  %v1204_v7 = vadd.f32 %v11264_v47, %v974_v27  ;;  %v978_v13 = vadd.f32 %v11280_v57, %v734_v2  ;;  %v16338_v47 = vld [vmem:[#allocation30_spill] sm:$0xff]  ;;  %v16339_v57 = vld [vmem:[#allocation33_spill] sm:$0xff] }
 0x204   :  { %v11382_v45 = vpop.f32.mrf.mxu1  ;;  %v1430_v32 = vadd.f32 %v11315_v4, %v1200_v40  ;;  %v1207_v34 = vadd.f32 %v11266_v26, %v11269_v41  ;;  %v2118_v63 = vadd.f32 %v9347_v62, %v1888_v19  ;;  %v1206_v20 = vadd.f32 %v16336_v36, %v976_v51  ;;  %v16340_v26 = vld [vmem:[#allocation24_spill] sm:$0xff]  ;;  %v16348_v23 = vld [vmem:[#allocation26_spill] sm:$0xff]  ;;  %v16350_v19 = vld [vmem:[#allocation29_spill] sm:$0xff] }
 0x205   :  { %v1658_v44 = vadd.f32 %v11303_v18, %v1428_v14  ;;  %v1890_v43 = vadd.f32 %v9318_v50, %v1659_v24  ;;  %v11447_v30 = vpop.f32.mrf.mxu0  ;;  %v980_v38 = vadd.f32 %v16337_v21, %v744_v37  ;;  %v1661_v53 = vadd.f32 %v16338_v47, %v1431_v31  ;;  %v16341_v18 = vld [vmem:[#allocation23_spill] sm:$0xff]  ;;  %v16342_v50 = vld [vmem:[#allocation53_spill] sm:$0xff]  ;;  %v16351_v40 = vld [vmem:[#allocation34_spill] sm:$0xff] }
 0x206   :  { %v11390_v22 = vpop.f32.mrf.mxu1  ;;  %v1433_v60 = vadd.f32 %v16339_v57, %v1203_v54  ;;  %v1209_v62 = vadd.f32 %v16341_v18, %v16340_v26  ;;  %v2117_v41 = vadd.f32 %v16342_v50, %v1887_v17  ;;  %v1208_v35 = vadd.f32 %v16344_v10, %v978_v13  ;;  %v16352_v31 = vld [vmem:[#allocation37_spill] sm:$0xff]  ;;  %v16356_v21 = vld [vmem:[#allocation39_spill] sm:$0xff]  ;;  %v16358_v57 = vld [vmem:[#allocation58_spill] sm:$0xff] }
 0x207   :  { %v1889_v39 = vadd.f32 %v16343_v61, %v1658_v44  ;;  %v1660_v48 = vadd.f32 %v16345_v42, %v1430_v32  ;;  %v1432_v6 = vadd.f32 %v16346_v15, %v1202_v55  ;;  %v1892_v1 = vadd.f32 %v11365_v0, %v1661_v53  ;;  %v11471_v2 = vpop.f32.mrf.mxu0  ;;  %v16353_v0 = vld [vmem:[#allocation56_spill] sm:$0xff]  ;;  %v16354_v17 = vld [vmem:[#allocation57_spill] sm:$0xff] }
 0x208   :  { %v11396_v59 = vpop.f32.mrf.mxu1  ;;  %v11468_v33 = vadd.f32 %v16348_v23, %v16347_v8  ;;  %v2120_v27 = vadd.f32 %v16349_v25, %v1890_v43  ;;  %v11475_v37 = vadd.f32 %v16350_v19, %v980_v38  ;;  %v1663_v51 = vadd.f32 %v16351_v40, %v1433_v60  ;;  %v16355_v43 = vld [vmem:[#allocation36_spill] sm:$0xff]  ;;  %v16361_v10 = vld [vmem:[#allocation41_spill] sm:$0xff]  ;;  %v16362_v15 = vld [vmem:[#allocation59_spill] sm:$0xff] }
 0x209   :  { %v1435_v54 = vadd.f32 %v16352_v31, %v1205_v16  ;;  %v1891_v55 = vadd.f32 %v16353_v0, %v1660_v48  ;;  %v2119_v13 = vadd.f32 %v16354_v17, %v1889_v39  ;;  %v1662_v36 = vadd.f32 %v16355_v43, %v1432_v6  ;;  %v16357_v53 = vld [vmem:[#allocation60_spill] sm:$0xff]  ;;  %v9362_v26 = vpop.f32.mrf.mxu0  ;;  %v16359_v16 = vld [vmem:[#allocation5_spill] sm:$0xff]  ;;  %v16360_v39 = vld [vmem:[#allocation38_spill] sm:$0xff] }
 0x20a   :  { %v11407_v58 = vpop.f32.mrf.mxu1  ;;  %v1434_v47 = vadd.f32 %v16356_v21, %v1204_v7  ;;  %v2122_v38 = vadd.f32 %v16357_v53, %v1892_v1  ;;  %v1437_v42 = vadd.f32 %v16361_v10, %v1207_v34  ;;  %v16363_v1 = vld [vmem:[#allocation6_spill] sm:$0xff]  ;;  %v16366_v31 = vld [vmem:[#allocation8_spill] sm:$0xff] }
 0x20b   :  { %v2121_v48 = vadd.f32 %v11388_v9, %v1891_v55  ;;  %v1893_v7 = vadd.f32 %v16362_v15, %v1662_v36  ;;  %v16367_v17 = vld [vmem:[#allocation42_spill] sm:$0xff]  ;;  %v16370_v53 = vld [vmem:[#allocation44_spill] sm:$0xff] }
 0x20c   :  { %v11418_v28 = vpop.f32.mrf.mxu1  ;;  %v16375_v15 = vld [vmem:[#allocation14_spill] sm:$0xff] }
 0x20e   :  { %v11431_v29 = vpop.f32.mrf.mxu1 }
 0x210   :  { %v11442_v46 = vpop.f32.mrf.mxu1 }
 0x212   :  { %v9379_v4 = vpop.f32.mrf.mxu1 }
 0x213   :  { %v2348_v11 = vadd.f32 %v9379_v4, %v2118_v63  ;;  %v1894_v4 = vadd.f32 %v16358_v57, %v1663_v51  ;;  %v2088_v51 = vpop.f32.mrf.mxu0  ;;  %v16371_v57 = vld [vmem:[#allocation47_spill] sm:$0xff] }
 0x214   :  { %v2268_v5 = vpop.f32.mrf.mxu1 }
 0x215   :  { %v2371_v3 = vadd.f32 %v11456_v12, %v2348_v11  ;;  %v2347_v14 = vadd.f32 %v2268_v5, %v2117_v41  ;;  %v1665_v11 = vadd.f32 %v16360_v39, %v1435_v54  ;;  %v2124_v40 = vadd.f32 %v11402_v49, %v1894_v4 }
 0x216   :  { %v9382_v24 = vpop.f32.mrf.mxu1  ;;  %v1438_v4 = vadd.f32 %v16371_v57, %v1208_v35 }
 0x217   :  { %v2387_v32 = vmax.f32 %v2371_v3, 0.0  ;;  %v2370_v44 = vadd.f32 %v11456_v12, %v2347_v14  ;;  %v2350_v63 = vadd.f32 %v9382_v24, %v2120_v27  ;;  %v16364_v27 = vld [vmem:[#allocation40_spill] sm:$0xff]  ;;  %v16365_v14 = vld [vmem:[#allocation43_spill] sm:$0xff]  ;;  %v1896_v34 = vadd.f32 %v11379_v56, %v1665_v11  ;;  %v16369_v56 = vld [vmem:[#allocation10_spill] sm:$0xff] }
 0x218   :  { %v2278_v60 = vpop.f32.mrf.mxu1  ;;  %v1664_v3 = vadd.f32 %v16364_v27, %v1434_v47  ;;  %v1436_v19 = vadd.f32 %v16365_v14, %v1206_v20  ;;  %v2123_v20 = vadd.f32 %v11424_v52, %v1893_v7  ;;  %v16373_v11 = vld [vmem:[#allocation46_spill] sm:$0xff]  ;;  %v16377_v27 = vld [vmem:[#allocation51_spill] sm:$0xff] }
 0x219   :  { %v2403_v18 = vadd.f32 %v2387_v32, %v16359_v16  ;;  %v2386_v50 = vmax.f32 %v2370_v44, 0.0  ;;  %v2373_v41 = vadd.f32 %v11456_v12, %v2350_v63  ;;  %v2349_v61 = vadd.f32 %v2278_v60, %v2119_v13  ;;  %v16368_v32 = vld [vmem:[#allocation45_spill] sm:$0xff] }
 0x21a   :  { %v9385_v6 = vpop.f32.mrf.mxu1  ;;  %v1667_v13 = vadd.f32 %v16367_v17, %v1437_v42  ;;  %v1439_v44 = vadd.f32 %v16368_v32, %v1209_v62  ;;  %v1895_v49 = vadd.f32 %v11382_v45, %v1664_v3  ;;  %v2126_v60 = vadd.f32 %v11447_v30, %v1896_v34  ;;  %v16372_v45 = vld [vmem:[#allocation12_spill] sm:$0xff]  ;;  %v16374_v42 = vld [vmem:[#allocation49_spill] sm:$0xff] }
 0x21b   :  { %2419 = vst.msk [vmem:[#allocation2 + $0x30] sm:$0xff] %vm274_vm1, %v2403_v18  ;;  %v2402_v5 = vadd.f32 %v2386_v50, %v16363_v1  ;;  %v2389_v8 = vmax.f32 %v2373_v41, 0.0  ;;  %v2372_v23 = vadd.f32 %v11456_v12, %v2349_v61  ;;  %v2352_v25 = vadd.f32 %v9385_v6, %v2122_v38  ;;  %v9365_v18 = vpop.f32.mrf.mxu0 }
 0x21c   :  { %v2288_v9 = vpop.f32.mrf.mxu1  ;;  %v1666_v38 = vadd.f32 %v16370_v53, %v1436_v19  ;;  %v1898_v62 = vadd.f32 %v11390_v22, %v1667_v13  ;;  %v1669_v10 = vadd.f32 %v16373_v11, %v1439_v44  ;;  %v2125_v35 = vadd.f32 %v11471_v2, %v1895_v49 }
 0x21d   :  { %2418 = vst.msk [vmem:[#allocation2 + $0x28] sm:$0xff] %vm274_vm1, %v2402_v5  ;;  %v2405_v54 = vadd.f32 %v2389_v8, %v16366_v31  ;;  %v2388_v0 = vmax.f32 %v2372_v23, 0.0  ;;  %v2375_v55 = vadd.f32 %v11456_v12, %v2352_v25  ;;  %v2351_v24 = vadd.f32 %v2288_v9, %v2121_v48  ;;  %v16376_v23 = vld [vmem:[#allocation48_spill] sm:$0xff]  ;;  %v2098_v34 = vpop.f32.mrf.mxu0 }
 0x21e   :  { %v9388_v63 = vpop.f32.mrf.mxu1  ;;  %v1441_v48 = vadd.f32 %v16374_v42, %v11468_v33  ;;  %v1897_v30 = vadd.f32 %v11396_v59, %v1666_v38  ;;  %v1668_v25 = vadd.f32 %v16376_v23, %v1438_v4  ;;  %v1440_v3 = vadd.f32 %v16377_v27, %v11475_v37  ;;  %v16378_v9 = vld [vmem:[#allocation16_spill] sm:$0xff]  ;;  %v16379_v37 = vld [vmem:[#allocation50_spill] sm:$0xff] }
 0x21f   :  { %2421 = vst.msk [vmem:[#allocation2 + $0x50] sm:$0xff] %vm274_vm1, %v2405_v54  ;;  %v2404_v43 = vadd.f32 %v2388_v0, %v16369_v56  ;;  %v2391_v36 = vmax.f32 %v2375_v55, 0.0  ;;  %v2374_v21 = vadd.f32 %v11456_v12, %v2351_v24  ;;  %v2354_v47 = vadd.f32 %v9388_v63, %v2124_v40  ;;  %v9368_v44 = vpop.f32.mrf.mxu0 }
 0x220   :  { %v2298_v52 = vpop.f32.mrf.mxu1  ;;  %v2128_v14 = vadd.f32 %v9362_v26, %v1898_v62  ;;  %v1900_v33 = vadd.f32 %v11407_v58, %v1669_v10  ;;  %v1671_v26 = vadd.f32 %v16379_v37, %v1441_v48  ;;  %v2127_v17 = vadd.f32 %v2088_v51, %v1897_v30  ;;  %v16383_v10 = vld [vmem:[#allocation20_spill] sm:$0xff] }
 0x221   :  { %2420 = vst.msk [vmem:[#allocation2 + $0x48] sm:$0xff] %vm274_vm1, %v2404_v43  ;;  %v2407_v50 = vadd.f32 %v2391_v36, %v16372_v45  ;;  %v2390_v41 = vmax.f32 %v2374_v21, 0.0  ;;  %v2377_v61 = vadd.f32 %v11456_v12, %v2354_v47  ;;  %v2353_v39 = vadd.f32 %v2298_v52, %v2123_v20  ;;  %v16380_v20 = vld [vmem:[#allocation18_spill] sm:$0xff]  ;;  %v16381_v21 = vld [vmem:[#allocation52_spill] sm:$0xff]  ;;  %v2108_v11 = vpop.f32.mrf.mxu0 }
 0x222   :  { %v9391_v22 = vpop.f32.mrf.mxu1  ;;  %v11541_v58 = vld [vmem:[#allocation2 + $0x30] sm:$0xff]  ;;  %v1899_v13 = vadd.f32 %v11418_v28, %v1668_v25  ;;  %v1670_v51 = vadd.f32 %v16381_v21, %v1440_v3  ;;  %v2130_v47 = vadd.f32 %v9365_v18, %v1900_v33  ;;  %v1902_v28 = vadd.f32 %v11431_v29, %v1671_v26  ;;  %v16387_v21 = vld [vmem:[#allocation13_spill] sm:$0xff] }
 0x223   :  { %2423 = vst.msk [vmem:[#allocation2 + $0x70] sm:$0xff] %vm274_vm1, %v2407_v50  ;;  %v2406_v7 = vadd.f32 %v2390_v41, %v16375_v15  ;;  %v2393_v6 = vmax.f32 %v2377_v61, 0.0  ;;  %v2376_v5 = vadd.f32 %v11456_v12, %v2353_v39  ;;  %v2356_v8 = vadd.f32 %v9391_v22, %v2126_v60  ;;  %v16382_v60 = vld [vmem:[#allocation19_spill] sm:$0xff]  ;;  %v2463_v22 = vld [vmem:[#allocation2 + $0xc8] sm:$0xff] }
 0x224   :  { %v2308_v2 = vpop.f32.mrf.mxu1  ;;  %v11528_v19 = vld [vmem:[#allocation2 + $0x28] sm:$0xff]  ;;  %v2129_v18 = vadd.f32 %v2098_v34, %v1899_v13  ;;  %v1901_v61 = vadd.f32 %v11442_v46, %v1670_v51  ;;  %v16384_v25 = vld [vmem:[#allocation7_spill] sm:$0xff] }
 0x225   :  { %v11530_v59 = vld [vmem:[#allocation2 + $0x27] sm:$0xff]  ;;  %v11532_v40 = vld [vmem:[#allocation2 + $0x2f] sm:$0xff]  ;;  %2422 = vst.msk [vmem:[#allocation2 + $0x68] sm:$0xff] %vm274_vm1, %v2406_v7  ;;  %v2409_v54 = vadd.f32 %v2393_v6, %v16378_v9  ;;  %v2392_v0 = vmax.f32 %v2376_v5, 0.0  ;;  %v2379_v55 = vadd.f32 %v11456_v12, %v2356_v8  ;;  %v2355_v24 = vadd.f32 %v2308_v2, %v2125_v35  ;;  %9412 = vmatprep.mubr.msk.f32.mxu0 %vm274_vm1, %v11528_v19 }
 0x226   :  { %9444 = vmatprep.mubr.msk.f32.mxu1 %vm274_vm1, %v11530_v59  ;;  %v9394_v32 = vpop.f32.mrf.mxu1  ;;  %9413 = vmatmul.mubr.msk.f32.gmra.mxu0 %vm274_vm1, %v11541_v58  ;;  %v11567_v29 = vld [vmem:[#allocation2 + $0x50] sm:$0xff]  ;;  %v2442_v7 = vld [vmem:[#allocation2 + $0xc7] sm:$0xff]  ;;  %v2132_v6 = vadd.f32 %v9368_v44, %v1902_v28  ;;  %v2131_v34 = vadd.f32 %v2108_v11, %v1901_v61 }
 0x227   :  { %9445 = vmatmul.mubr.msk.f32.gmra.mxu1 %vm274_vm1, %v11532_v40  ;;  %2425 = vst.msk [vmem:[#allocation2 + $0x90] sm:$0xff] %vm274_vm1, %v2409_v54  ;;  %v2408_v49 = vadd.f32 %v2392_v0, %v16380_v20  ;;  %v2395_v63 = vmax.f32 %v2379_v55, 0.0  ;;  %v2378_v43 = vadd.f32 %v11456_v12, %v2355_v24  ;;  %v2358_v36 = vadd.f32 %v9394_v32, %v2128_v14  ;;  %v16385_v0 = vld [vmem:[#allocation9_spill] sm:$0xff]  ;;  %v2443_v13 = vld [vmem:[#allocation2 + $0xcf] sm:$0xff] }
 0x228   :  { %v2318_v53 = vpop.f32.mrf.mxu1  ;;  %v11554_v38 = vld [vmem:[#allocation2 + $0x48] sm:$0xff]  ;;  %v16386_v44 = vld [vmem:[#allocation11_spill] sm:$0xff] }
 0x229   :  { %v11556_v57 = vld [vmem:[#allocation2 + $0x47] sm:$0xff]  ;;  %v11558_v4 = vld [vmem:[#allocation2 + $0x4f] sm:$0xff]  ;;  %2424 = vst.msk [vmem:[#allocation2 + $0x88] sm:$0xff] %vm274_vm1, %v2408_v49  ;;  %v2411_v62 = vadd.f32 %v2395_v63, %v16382_v60  ;;  %v2394_v52 = vmax.f32 %v2378_v43, 0.0  ;;  %v2381_v50 = vadd.f32 %v11456_v12, %v2358_v36  ;;  %v2357_v41 = vadd.f32 %v2318_v53, %v2127_v17  ;;  %9415 = vmatprep.mubr.msk.f32.mxu0 %vm274_vm1, %v11554_v38 }
 0x22a   :  { %9447 = vmatprep.mubr.msk.f32.mxu1 %vm274_vm1, %v11556_v57  ;;  %v9397_v39 = vpop.f32.mrf.mxu1  ;;  %9416 = vmatmul.mubr.msk.f32.gmra.mxu0 %vm274_vm1, %v11567_v29  ;;  %v11590_v2 = vld [vmem:[#allocation2 + $0x70] sm:$0xff] }
 0x22b   :  { %9448 = vmatmul.mubr.msk.f32.gmra.mxu1 %vm274_vm1, %v11558_v4  ;;  %2427 = vst.msk [vmem:[#allocation2 + $0xf0] sm:$0xff] %vm274_vm1, %v2411_v62  ;;  %v2410_v42 = vadd.f32 %v2394_v52, %v16383_v10  ;;  %v2397_v48 = vmax.f32 %v2381_v50, 0.0  ;;  %v2380_v35 = vadd.f32 %v11456_v12, %v2357_v41  ;;  %v2360_v30 = vadd.f32 %v9397_v39, %v2130_v47  ;;  %v2464_v17 = vld [vmem:[#allocation2 + $0xd0] sm:$0xff] }
 0x22c   :  { %v2328_v46 = vpop.f32.mrf.mxu1  ;;  %v11577_v5 = vld [vmem:[#allocation2 + $0x68] sm:$0xff]  ;;  %v16388_v50 = vld [vmem:[#allocation15_spill] sm:$0xff] }
 0x22d   :  { %v11579_v8 = vld [vmem:[#allocation2 + $0x67] sm:$0xff]  ;;  %v11581_v23 = vld [vmem:[#allocation2 + $0x6f] sm:$0xff]  ;;  %2426 = vst.msk [vmem:[#allocation2 + $0xe8] sm:$0xff] %vm274_vm1, %v2410_v42  ;;  %v2413_v27 = vadd.f32 %v2397_v48, %v16384_v25  ;;  %v2396_v3 = vmax.f32 %v2380_v35, 0.0  ;;  %v2383_v14 = vadd.f32 %v11456_v12, %v2360_v30  ;;  %v2359_v33 = vadd.f32 %v2328_v46, %v2129_v18  ;;  %9418 = vmatprep.mubr.msk.f32.mxu0 %vm274_vm1, %v11577_v5 }
 0x22e   :  { %9450 = vmatprep.mubr.msk.f32.mxu1 %vm274_vm1, %v11579_v8  ;;  %v9400_v54 = vpop.f32.mrf.mxu1  ;;  %9419 = vmatmul.mubr.msk.f32.gmra.mxu0 %vm274_vm1, %v11590_v2  ;;  %v2862_v30 = vld [vmem:[#allocation2 + $0x9] sm:$0xff] }
 0x22f   :  { %9451 = vmatmul.mubr.msk.f32.gmra.mxu1 %vm274_vm1, %v11581_v23  ;;  %2429 = vst.msk [vmem:[#allocation2 + $0x110] sm:$0xff] %vm274_vm1, %v2413_v27  ;;  %v2412_v55 = vadd.f32 %v2396_v3, %v16385_v0  ;;  %v2399_v24 = vmax.f32 %v2383_v14, 0.0  ;;  %v2382_v37 = vadd.f32 %v11456_v12, %v2359_v33  ;;  %v2362_v26 = vadd.f32 %v9400_v54, %v2132_v6  ;;  %v2863_v27 = vld [vmem:[#allocation2 + $0x11] sm:$0xff]  ;;  %v11671_v14 = vld [vmem:[#allocation2 + $0x29] sm:$0xff] }
 0x230   :  { %9421 = vmatprep.mubr.msk.f32.mxu0 %vm274_vm1, %v2463_v22  ;;  %9453 = vmatprep.mubr.msk.f32.mxu1 %vm274_vm1, %v2442_v7  ;;  %v2338_v32 = vpop.f32.mrf.mxu1  ;;  %v8351_v3 = vld [vmem:[%s16117_s3 + $0x1b0] sm:$0xff]  ;;  %v16390_v33 = vld [vmem:[#allocation21_spill] sm:$0xff] }
 0x231   :  { %2428 = vst.msk [vmem:[#allocation2 + $0x108] sm:$0xff] %vm274_vm1, %v2412_v55  ;;  %v2415_v49 = vadd.f32 %v2399_v24, %v16386_v44  ;;  %v2398_v63 = vmax.f32 %v2382_v37, 0.0  ;;  %v2385_v43 = vadd.f32 %v11456_v12, %v2362_v26  ;;  %v2361_v36 = vadd.f32 %v2338_v32, %v2131_v34  ;;  %v8350_v34 = vld [vmem:[%s16117_s3 + $0x1a8] sm:$0xff]  ;;  %v16391_v54 = vld [vmem:[#allocation31_spill] sm:$0xff]  ;;  %v8349_v37 = vld [vmem:[%s16117_s3 + $0x1a0] sm:$0xff] }
 0x232   :  { %9422 = vmatmul.mubr.msk.f32.gmra.mxu0 %vm274_vm1, %v2464_v17  ;;  %v11621_v61 = vld [vmem:[#allocation2 + $0xf0] sm:$0xff]  ;;  %v8370_v26 = vld [vmem:[%s16117_s3 + $0x1c8] sm:$0xff] }
 0x233   :  { %9454 = vmatmul.mubr.msk.f32.gmra.mxu1 %vm274_vm1, %v2443_v13  ;;  %2431 = vst.msk [vmem:[#allocation2 + $0x130] sm:$0xff] %vm274_vm1, %v2415_v49  ;;  %v2414_v51 = vadd.f32 %v2398_v63, %v16387_v21  ;;  %v2401_v47 = vmax.f32 %v2385_v43, 0.0  ;;  %v2384_v28 = vadd.f32 %v11456_v12, %v2361_v36  ;;  %v16389_v12 = vld [vmem:[#allocation17_spill] sm:$0xff]  ;;  %v11697_v24 = vld [vmem:[#allocation2 + $0x51] sm:$0xff] }
 0x234   :  { %v11609_v53 = vld [vmem:[#allocation2 + $0xe8] sm:$0xff]  ;;  %v8369_v49 = vld [vmem:[%s16117_s3 + $0x1c0] sm:$0xff]  ;;  %v11720_v63 = vld [vmem:[#allocation2 + $0x71] sm:$0xff] }
 0x235   :  { %v11611_v62 = vld [vmem:[#allocation2 + $0xe7] sm:$0xff]  ;;  %v11613_v52 = vld [vmem:[#allocation2 + $0xef] sm:$0xff]  ;;  %2430 = vst.msk [vmem:[#allocation2 + $0x128] sm:$0xff] %vm274_vm1, %v2414_v51  ;;  %v2417_v41 = vadd.f32 %v2401_v47, %v16388_v50  ;;  %v2400_v18 = vmax.f32 %v2384_v28, 0.0  ;;  %9424 = vmatprep.mubr.msk.f32.mxu0 %vm274_vm1, %v11609_v53  ;;  %v8392_v36 = vld [vmem:[%s16117_s3 + $0x1f8] sm:$0xff] }
 0x236   :  { %9456 = vmatprep.mubr.msk.f32.mxu1 %vm274_vm1, %v11611_v62  ;;  %9425 = vmatmul.mubr.msk.f32.gmra.mxu0 %vm274_vm1, %v11621_v61  ;;  %v11640_v35 = vld [vmem:[#allocation2 + $0x110] sm:$0xff]  ;;  %v11711_v13 = vld [vmem:[#allocation2 + $0x87] sm:$0xff]  ;;  %v8412_v47 = vld [vmem:[%s16117_s3 + $0x218] sm:$0xff] }
 0x237   :  { %9457 = vmatmul.mubr.msk.f32.gmra.mxu1 %vm274_vm1, %v11613_v52  ;;  %2433 = vst.msk [vmem:[#allocation2 + $0x150] sm:$0xff] %vm274_vm1, %v2417_v41  ;;  %v2416_v39 = vadd.f32 %v2400_v18, %v16389_v12  ;;  %v11691_v55 = vld [vmem:[#allocation2 + $0x49] sm:$0xff]  ;;  %v2871_v51 = vld [vmem:[#allocation2 + $0xd1] sm:$0xff] }
 0x238   :  { %v11629_v11 = vld [vmem:[#allocation2 + $0x108] sm:$0xff] }
 0x239   :  { %v11631_v42 = vld [vmem:[#allocation2 + $0x107] sm:$0xff]  ;;  %v11633_v48 = vld [vmem:[#allocation2 + $0x10f] sm:$0xff]  ;;  %2432 = vst.msk [vmem:[#allocation2 + $0x148] sm:$0xff] %vm274_vm1, %v2416_v39  ;;  %9427 = vmatprep.mubr.msk.f32.mxu0 %vm274_vm1, %v11629_v11 }
 0x23a   :  { %9459 = vmatprep.mubr.msk.f32.mxu1 %vm274_vm1, %v11631_v42  ;;  %9428 = vmatmul.mubr.msk.f32.gmra.mxu0 %vm274_vm1, %v11640_v35  ;;  %v11656_v46 = vld [vmem:[#allocation2 + $0x130] sm:$0xff] }
 0x23b   :  { %9460 = vmatmul.mubr.msk.f32.gmra.mxu1 %vm274_vm1, %v11633_v48  ;;  %v11709_v17 = vld [vmem:[#allocation2 + $0x69] sm:$0xff] }
 0x23c   :  { %v11646_v22 = vld [vmem:[#allocation2 + $0x128] sm:$0xff] }
 0x23d   :  { %v11648_v7 = vld [vmem:[#allocation2 + $0x127] sm:$0xff]  ;;  %v11650_v6 = vld [vmem:[#allocation2 + $0x12f] sm:$0xff]  ;;  %9430 = vmatprep.mubr.msk.f32.mxu0 %vm274_vm1, %v11646_v22 }
 0x23e   :  { %9462 = vmatprep.mubr.msk.f32.mxu1 %vm274_vm1, %v11648_v7  ;;  %9431 = vmatmul.mubr.msk.f32.gmra.mxu0 %vm274_vm1, %v11656_v46  ;;  %v2870_v32 = vld [vmem:[#allocation2 + $0xc9] sm:$0xff] }
 0x23f   :  { %9463 = vmatmul.mubr.msk.f32.gmra.mxu1 %vm274_vm1, %v11650_v6  ;;  %9473 = vmatprep.mubr.msk.f32.mxu0 %vm274_vm1, %v2862_v30  ;;  %v11722_v43 = vld [vmem:[#allocation2 + $0x8f] sm:$0xff] }
 0x240   :  { %9505 = vmatprep.mubr.msk.f32.mxu1 %vm274_vm1, %v11530_v59  ;;  %v11678_v59 = vld [vmem:[#allocation2 + $0x31] sm:$0xff]  ;;  %v11740_v28 = vld [vmem:[#allocation2 + $0xe9] sm:$0xff] }
 0x241   :  { %v11752_v41 = vld [vmem:[#allocation2 + $0x109] sm:$0xff]  ;;  %v11772_v30 = vld [vmem:[#allocation2 + $0x131] sm:$0xff] }
 0x242   :  { %9474 = vmatmul.mubr.msk.f32.vlgmr.msra.gmra.mxu0 %vm274_vm1, %v2863_v27  ;;  %v11764_v18 = vld [vmem:[#allocation2 + $0x129] sm:$0xff] }
 0x243   :  { %9506 = vmatmul.mubr.msk.f32.vlgmr.msra.gmra.mxu1 %vm274_vm1, %v11532_v40  ;;  %9530 = vmatpush3.msra.mxu0 %v16390_v33  ;;  %v8371_v40 = vld [vmem:[%s16117_s3 + $0x1d0] sm:$0xff]  ;;  %v11766_v39 = vld [vmem:[#allocation2 + $0x147] sm:$0xff]  ;;  %v9411_v33 = vpop.f32.mrf.mxu0 }
 0x244   :  { %9476 = vmatprep.mubr.msk.f32.mxu0 %vm274_vm1, %v11671_v14  ;;  %9508 = vmatprep.mubr.msk.f32.mxu1 %vm274_vm1, %v11556_v57  ;;  %v11774_v27 = vld [vmem:[#allocation2 + $0x14f] sm:$0xff] }
 0x245   :  { %9531 = vmatprep.subr.mxu0 %v8351_v3  ;;  %9562 = vmatpush3.msra.mxu1 %v16391_v54  ;;  %v8410_v54 = vld [vmem:[%s16117_s3 + $0x208] sm:$0xff] }
 0x246   :  { %9532 = vmatpush3.msra.mxu0 %v8351_v3  ;;  %9563 = vmatprep.subr.mxu1 %v8371_v40  ;;  %v8391_v3 = vld [vmem:[%s16117_s3 + $0x1f0] sm:$0xff] }
 0x247   :  { %9477 = vmatmul.mubr.msk.f32.gmra.mxu0 %vm274_vm1, %v11678_v59  ;;  %9509 = vmatmul.mubr.msk.f32.gmra.mxu1 %vm274_vm1, %v11558_v4 }
 0x248   :  { %9479 = vmatprep.mubr.msk.f32.mxu0 %vm274_vm1, %v11691_v55  ;;  %9511 = vmatprep.mubr.msk.f32.mxu1 %vm274_vm1, %v11579_v8 }
 0x249   :  { %9533 = vmatprep.subr.mxu0 %v8350_v34  ;;  %9564 = vmatpush3.msra.mxu1 %v8371_v40  ;;  %v3328_v40 = vld [vmem:[#allocation2 + $0x88] sm:$0xff] }
 0x24a   :  { %9534 = vmatpush3.msra.mxu0 %v8350_v34  ;;  %9565 = vmatprep.subr.mxu1 %v8370_v26  ;;  %v9443_v34 = vpop.f32.mrf.mxu1 }
 0x24b   :  { %9480 = vmatmul.mubr.msk.f32.gmra.mxu0 %vm274_vm1, %v11697_v24  ;;  %9512 = vmatmul.mubr.msk.f32.gmra.mxu1 %vm274_vm1, %v11581_v23 }
 0x24c   :  { %9482 = vmatprep.mubr.msk.f32.mxu0 %vm274_vm1, %v11709_v17  ;;  %9514 = vmatprep.mubr.msk.f32.mxu1 %vm274_vm1, %v11711_v13 }
 0x24d   :  { %9535 = vmatprep.subr.mxu0 %v8349_v37  ;;  %9566 = vmatpush3.msra.mxu1 %v8370_v26  ;;  %v8409_v26 = vld [vmem:[%s16117_s3 + $0x200] sm:$0xff] }
 0x24e   :  { %9536 = vmatpush3.msra.mxu0 %v8349_v37  ;;  %9567 = vmatprep.subr.mxu1 %v8369_v49  ;;  %v11821_v37 = vld [vmem:[#allocation2 + $0x89] sm:$0xff] }
 0x24f   :  { %9483 = vmatmul.mubr.msk.f32.gmra.mxu0 %vm274_vm1, %v11720_v63  ;;  %9515 = vmatmul.mubr.msk.f32.gmra.mxu1 %vm274_vm1, %v11722_v43 }
 0x250   :  { %9517 = vmatprep.mubr.msk.f32.mxu1 %vm274_vm1, %v11611_v62  ;;  %9485 = vmatprep.mubr.msk.f32.mxu0 %vm274_vm1, %v2870_v32  ;;  %v11746_v62 = vld [vmem:[#allocation2 + $0xf1] sm:$0xff] }
 0x251   :  { %9593 = vmatprep.subr.mxu0 %v8392_v36  ;;  %9568 = vmatpush3.msra.mxu1 %v8369_v49  ;;  %v3329_v32 = vld [vmem:[#allocation2 + $0x90] sm:$0xff] }
 0x252   :  { %9625 = vmatprep.subr.mxu1 %v8412_v47  ;;  %v11829_v49 = vld [vmem:[#allocation2 + $0x91] sm:$0xff] }
 0x253   :  { %9486 = vmatmul.mubr.msk.f32.gmra.mxu0 %vm274_vm1, %v2871_v51  ;;  %9518 = vmatmul.mubr.msk.f32.gmra.mxu1 %vm274_vm1, %v11613_v52  ;;  %v11758_v52 = vld [vmem:[#allocation2 + $0x111] sm:$0xff]  ;;  %v16392_v51 = vmov 0.0  }
 0x254   :  { %9488 = vmatprep.mubr.msk.f32.mxu0 %vm274_vm1, %v11740_v28  ;;  %9520 = vmatprep.mubr.msk.f32.mxu1 %vm274_vm1, %v11631_v42 }
 0x257   :  { %9489 = vmatmul.mubr.msk.f32.gmra.mxu0 %vm274_vm1, %v11746_v62  ;;  %9521 = vmatmul.mubr.msk.f32.gmra.mxu1 %vm274_vm1, %v11633_v48 }
 0x258   :  { %9491 = vmatprep.mubr.msk.f32.mxu0 %vm274_vm1, %v11752_v41  ;;  %9523 = vmatprep.mubr.msk.f32.mxu1 %vm274_vm1, %v11648_v7 }
 0x25b   :  { %9492 = vmatmul.mubr.msk.f32.gmra.mxu0 %vm274_vm1, %v11758_v52  ;;  %9524 = vmatmul.mubr.msk.f32.gmra.mxu1 %vm274_vm1, %v11650_v6 }
 0x25c   :  { %9494 = vmatprep.mubr.msk.f32.mxu0 %vm274_vm1, %v11764_v18  ;;  %9526 = vmatprep.mubr.msk.f32.mxu1 %vm274_vm1, %v11766_v39 }
 0x25f   :  { %9495 = vmatmul.mubr.msk.f32.gmra.mxu0 %vm274_vm1, %v11772_v30  ;;  %9527 = vmatmul.mubr.msk.f32.gmra.mxu1 %vm274_vm1, %v11774_v27 }
 0x260   :  { %9537 = vmatprep.mubr.msk.f32.mxu0 %vm274_vm1, %v11528_v19  ;;  %9569 = vmatprep.mubr.msk.f32.mxu1 %vm274_vm1, %v11671_v14  ;;  %v11793_v19 = vadd.f32 %v9443_v34, %v9411_v33  ;;  %v8411_v14 = vld [vmem:[%s16117_s3 + $0x210] sm:$0xff] }
 0x263   :  { %9538 = vmatmul.mubr.msk.f32.vlgmr.msra.gmra.mxu0 %vm274_vm1, %v11541_v58  ;;  %9570 = vmatmul.mubr.msk.f32.vlgmr.msra.gmra.mxu1 %vm274_vm1, %v11678_v59  ;;  %v8390_v58 = vld [vmem:[%s16117_s3 + $0x1e8] sm:$0xff]  ;;  %v8389_v59 = vld [vmem:[%s16117_s3 + $0x1e0] sm:$0xff] }
 0x264   :  { %9594 = vmatpush3.msra.mxu0 %v8392_v36  ;;  %9540 = vmatprep.mubr.msk.f32.mxu0 %vm274_vm1, %v11554_v38  ;;  %v8432_v36 = vld [vmem:[%s16117_s3 + $0x238] sm:$0xff] }
 0x265   :  { %9572 = vmatprep.mubr.msk.f32.mxu1 %vm274_vm1, %v11691_v55  ;;  %9595 = vmatprep.subr.mxu0 %v8391_v3 }
 0x266   :  { %9596 = vmatpush3.msra.mxu0 %v8391_v3  ;;  %9626 = vmatpush3.msra.mxu1 %v8412_v47  ;;  %v3337_v47 = vld [vmem:[#allocation2 + $0x150] sm:$0xff] }
 0x267   :  { %9541 = vmatmul.mubr.msk.f32.gmra.mxu0 %vm274_vm1, %v11567_v29  ;;  %9573 = vmatmul.mubr.msk.f32.gmra.mxu1 %vm274_vm1, %v11697_v24 }
 0x268   :  { %9543 = vmatprep.mubr.msk.f32.mxu0 %vm274_vm1, %v11577_v5  ;;  %9575 = vmatprep.mubr.msk.f32.mxu1 %vm274_vm1, %v11709_v17 }
 0x269   :  { %9597 = vmatprep.subr.mxu0 %v8390_v58  ;;  %9627 = vmatprep.subr.mxu1 %v8411_v14 }
 0x26a   :  { %9598 = vmatpush3.msra.mxu0 %v8390_v58  ;;  %9628 = vmatpush3.msra.mxu1 %v8411_v14 }
 0x26b   :  { %9544 = vmatmul.mubr.msk.f32.gmra.mxu0 %vm274_vm1, %v11590_v2  ;;  %9576 = vmatmul.mubr.msk.f32.gmra.mxu1 %vm274_vm1, %v11720_v63 }
 0x26c   :  { %9546 = vmatprep.mubr.msk.f32.mxu0 %vm274_vm1, %v3328_v40  ;;  %9578 = vmatprep.mubr.msk.f32.mxu1 %vm274_vm1, %v11821_v37 }
 0x26d   :  { %9599 = vmatprep.subr.mxu0 %v8389_v59  ;;  %9629 = vmatprep.subr.mxu1 %v8410_v54 }
 0x26e   :  { %9600 = vmatpush3.msra.mxu0 %v8389_v59  ;;  %9630 = vmatpush3.msra.mxu1 %v8410_v54 }
 0x26f   :  { %9547 = vmatmul.mubr.msk.f32.gmra.mxu0 %vm274_vm1, %v3329_v32  ;;  %9579 = vmatmul.mubr.msk.f32.gmra.mxu1 %vm274_vm1, %v11829_v49 }
 0x270   :  { %9549 = vmatprep.mubr.msk.f32.mxu0 %vm274_vm1, %v11609_v53  ;;  %9581 = vmatprep.mubr.msk.f32.mxu1 %vm274_vm1, %v11740_v28  ;;  %v3336_v53 = vld [vmem:[#allocation2 + $0x148] sm:$0xff]  ;;  %v11867_v28 = vld [vmem:[#allocation2 + $0x151] sm:$0xff] }
 0x271   :  { %9631 = vmatprep.subr.mxu1 %v8409_v26  ;;  %9657 = vmatprep.subr.mxu0 %v8432_v36 }
 0x272   :  { %9632 = vmatpush3.msra.mxu1 %v8409_v26 }
 0x273   :  { %9550 = vmatmul.mubr.msk.f32.gmra.mxu0 %vm274_vm1, %v11621_v61  ;;  %9582 = vmatmul.mubr.msk.f32.gmra.mxu1 %vm274_vm1, %v11746_v62  ;;  %v11862_v61 = vld [vmem:[#allocation2 + $0x149] sm:$0xff] }
 0x274   :  { %9552 = vmatprep.mubr.msk.f32.mxu0 %vm274_vm1, %v11629_v11  ;;  %9584 = vmatprep.mubr.msk.f32.mxu1 %vm274_vm1, %v11752_v41  ;;  %v8431_v62 = vld [vmem:[%s16117_s3 + $0x230] sm:$0xff] }
 0x275   :  { %9689 = vmatprep.subr.mxu1 %v16392_v51  ;;  %v16423_v51 = vmov 25  }
 0x277   :  { %9553 = vmatmul.mubr.msk.f32.gmra.mxu0 %vm274_vm1, %v11640_v35  ;;  %9585 = vmatmul.mubr.msk.f32.gmra.mxu1 %vm274_vm1, %v11758_v52 }
 0x278   :  { %9555 = vmatprep.mubr.msk.f32.mxu0 %vm274_vm1, %v11646_v22  ;;  %9587 = vmatprep.mubr.msk.f32.mxu1 %vm274_vm1, %v11764_v18 }
 0x27b   :  { %9556 = vmatmul.mubr.msk.f32.gmra.mxu0 %vm274_vm1, %v11656_v46  ;;  %9588 = vmatmul.mubr.msk.f32.gmra.mxu1 %vm274_vm1, %v11772_v30 }
 0x27c   :  { %9558 = vmatprep.mubr.msk.f32.mxu0 %vm274_vm1, %v3336_v53  ;;  %9590 = vmatprep.mubr.msk.f32.mxu1 %vm274_vm1, %v11862_v61 }
 0x27f   :  { %9559 = vmatmul.mubr.msk.f32.gmra.mxu0 %vm274_vm1, %v3337_v47  ;;  %9591 = vmatmul.mubr.msk.f32.gmra.mxu1 %vm274_vm1, %v11867_v28 }
 0x280   :  { %9601 = vmatprep.mubr.msk.f32.mxu0 %vm274_vm1, %v11556_v57  ;;  %9633 = vmatprep.mubr.msk.f32.mxu1 %vm274_vm1, %v11554_v38  ;;  %v8430_v38 = vld [vmem:[%s16117_s3 + $0x228] sm:$0xff] }
 0x281   :  { %v3788_v57 = vld [vmem:[#allocation2 + $0xa7] sm:$0xff] }
 0x283   :  { %9602 = vmatmul.mubr.msk.f32.vlgmr.msra.gmra.mxu0 %vm274_vm1, %v11558_v4  ;;  %9634 = vmatmul.mubr.msk.f32.vlgmr.msra.gmra.mxu1 %vm274_vm1, %v11567_v29  ;;  %v4018_v4 = vld [vmem:[#allocation2 + $0xa8] sm:$0xff]  ;;  %v8429_v29 = vld [vmem:[%s16117_s3 + $0x220] sm:$0xff] }
 0x284   :  { %9658 = vmatpush3.msra.mxu0 %v8432_v36  ;;  %9604 = vmatprep.mubr.msk.f32.mxu0 %vm274_vm1, %v11579_v8  ;;  %v4019_v8 = vld [vmem:[#allocation2 + $0xb0] sm:$0xff] }
 0x285   :  { %9636 = vmatprep.mubr.msk.f32.mxu1 %vm274_vm1, %v11577_v5  ;;  %9659 = vmatprep.subr.mxu0 %v8431_v62  ;;  %v3789_v5 = vld [vmem:[#allocation2 + $0xaf] sm:$0xff] }
 0x286   :  { %9660 = vmatpush3.msra.mxu0 %v8431_v62 }
 0x287   :  { %9605 = vmatmul.mubr.msk.f32.gmra.mxu0 %vm274_vm1, %v11581_v23  ;;  %9637 = vmatmul.mubr.msk.f32.gmra.mxu1 %vm274_vm1, %v11590_v2  ;;  %v3796_v23 = vld [vmem:[#allocation2 + $0x167] sm:$0xff] }
 0x288   :  { %9607 = vmatprep.mubr.msk.f32.mxu0 %vm274_vm1, %v11711_v13  ;;  %9639 = vmatprep.mubr.msk.f32.mxu1 %vm274_vm1, %v3328_v40  ;;  %v4026_v2 = vld [vmem:[#allocation2 + $0x168] sm:$0xff] }
 0x289   :  { %9661 = vmatprep.subr.mxu0 %v8430_v38 }
 0x28a   :  { %9662 = vmatpush3.msra.mxu0 %v8430_v38 }
 0x28b   :  { %9608 = vmatmul.mubr.msk.f32.gmra.mxu0 %vm274_vm1, %v11722_v43  ;;  %9640 = vmatmul.mubr.msk.f32.gmra.mxu1 %vm274_vm1, %v3329_v32 }
 0x28c   :  { %9610 = vmatprep.mubr.msk.f32.mxu0 %vm274_vm1, %v3788_v57  ;;  %9642 = vmatprep.mubr.msk.f32.mxu1 %vm274_vm1, %v4018_v4 }
 0x28d   :  { %9663 = vmatprep.subr.mxu0 %v8429_v29 }
 0x28e   :  { %9664 = vmatpush3.msra.mxu0 %v8429_v29 }
 0x28f   :  { %9611 = vmatmul.mubr.msk.f32.gmra.mxu0 %vm274_vm1, %v3789_v5  ;;  %9643 = vmatmul.mubr.msk.f32.gmra.mxu1 %vm274_vm1, %v4019_v8 }
 0x290   :  { %9613 = vmatprep.mubr.msk.f32.mxu0 %vm274_vm1, %v11631_v42  ;;  %9645 = vmatprep.mubr.msk.f32.mxu1 %vm274_vm1, %v11629_v11  ;;  %v3797_v11 = vld [vmem:[#allocation2 + $0x16f] sm:$0xff] }
 0x291   :  { %v4027_v42 = vld [vmem:[#allocation2 + $0x170] sm:$0xff] }
 0x293   :  { %9614 = vmatmul.mubr.msk.f32.gmra.mxu0 %vm274_vm1, %v11633_v48  ;;  %9646 = vmatmul.mubr.msk.f32.gmra.mxu1 %vm274_vm1, %v11640_v35  ;;  %v4248_v48 = vld [vmem:[#allocation2 + $0xa9] sm:$0xff]  ;;  %v4249_v35 = vld [vmem:[#allocation2 + $0xb1] sm:$0xff] }
 0x294   :  { %9616 = vmatprep.mubr.msk.f32.mxu0 %vm274_vm1, %v11648_v7  ;;  %9648 = vmatprep.mubr.msk.f32.mxu1 %vm274_vm1, %v11646_v22  ;;  %v4256_v22 = vld [vmem:[#allocation2 + $0x169] sm:$0xff]  ;;  %v4257_v7 = vld [vmem:[#allocation2 + $0x171] sm:$0xff] }
 0x297   :  { %9617 = vmatmul.mubr.msk.f32.gmra.mxu0 %vm274_vm1, %v11650_v6  ;;  %9649 = vmatmul.mubr.msk.f32.gmra.mxu1 %vm274_vm1, %v11656_v46  ;;  %v2590_v6 = vpop.f32.mrf.mxu0  ;;  %v2783_v46 = vpop.f32.mrf.mxu1 }
 0x298   :  { %9619 = vmatprep.mubr.msk.f32.mxu0 %vm274_vm1, %v11766_v39  ;;  %9651 = vmatprep.mubr.msk.f32.mxu1 %vm274_vm1, %v3336_v53  ;;  %v16209_v39 = vmov 1  }
 0x299   :  { %9737 = vset.pattern.permute.xlu1 %v16209_v39 }
 0x29b   :  { %9620 = vmatmul.mubr.msk.f32.gmra.mxu0 %vm274_vm1, %v11774_v27  ;;  %9652 = vmatmul.mubr.msk.f32.gmra.mxu1 %vm274_vm1, %v3337_v47 }
 0x29c   :  { %9622 = vmatprep.mubr.msk.f32.mxu0 %vm274_vm1, %v3796_v23  ;;  %9654 = vmatprep.mubr.msk.f32.mxu1 %vm274_vm1, %v4026_v2 }
 0x29f   :  { %9623 = vmatmul.mubr.msk.f32.gmra.mxu0 %vm274_vm1, %v3797_v11  ;;  %9655 = vmatmul.mubr.msk.f32.gmra.mxu1 %vm274_vm1, %v4027_v42 }
 0x2a0   :  { %9665 = vmatprep.mubr.msk.f32.mxu0 %vm274_vm1, %v11691_v55 }
 0x2a3   :  { %9666 = vmatmul.mubr.msk.f32.vlgmr.msra.gmra.mxu0 %vm274_vm1, %v11697_v24 }
 0x2a4   :  { %9668 = vmatprep.mubr.msk.f32.mxu0 %vm274_vm1, %v11709_v17 }
 0x2a7   :  { %9669 = vmatmul.mubr.msk.f32.gmra.mxu0 %vm274_vm1, %v11720_v63 }
 0x2a8   :  { %9671 = vmatprep.mubr.msk.f32.mxu0 %vm274_vm1, %v11821_v37 }
 0x2ab   :  { %9672 = vmatmul.mubr.msk.f32.gmra.mxu0 %vm274_vm1, %v11829_v49 }
 0x2ac   :  { %9674 = vmatprep.mubr.msk.f32.mxu0 %vm274_vm1, %v4248_v48 }
 0x2af   :  { %9675 = vmatmul.mubr.msk.f32.gmra.mxu0 %vm274_vm1, %v4249_v35 }
 0x2b0   :  { %9677 = vmatprep.mubr.msk.f32.mxu0 %vm274_vm1, %v11752_v41 }
 0x2b3   :  { %9678 = vmatmul.mubr.msk.f32.gmra.mxu0 %vm274_vm1, %v11758_v52 }
 0x2b4   :  { %9680 = vmatprep.mubr.msk.f32.mxu0 %vm274_vm1, %v11764_v18 }
 0x2b7   :  { %9681 = vmatmul.mubr.msk.f32.gmra.mxu0 %vm274_vm1, %v11772_v30  ;;  %v16171_v30 = vmov 0  }
 0x2b8   :  { %9683 = vmatprep.mubr.msk.f32.mxu0 %vm274_vm1, %v11862_v61  ;;  %9736 = vset.pattern.permute.xlu0 %v16171_v30 }
 0x2bb   :  { %9684 = vmatmul.mubr.msk.f32.gmra.mxu0 %vm274_vm1, %v11867_v28 }
 0x2bc   :  { %9686 = vmatprep.mubr.msk.f32.mxu0 %vm274_vm1, %v4256_v22 }
 0x2bf   :  { %9687 = vmatmul.mubr.msk.f32.gmra.mxu0 %vm274_vm1, %v4257_v7 }
 0x2e6   :  { %v9414_v55 = vpop.f32.mrf.mxu0 }
 0x2e7   :  { %v9446_v24 = vpop.f32.mrf.mxu1 }
 0x2e8   :  { %v2799_v17 = vadd.f32 %v9446_v24, %v9414_v55  ;;  %v2600_v13 = vpop.f32.mrf.mxu0 }
 0x2e9   :  { %v2793_v63 = vpop.f32.mrf.mxu1 }
 0x2ea   :  { %v2794_v43 = vadd.f32 %v2793_v63, %v2600_v13  ;;  %v9417_v41 = vpop.f32.mrf.mxu0  ;;  %v2784_v13 = vadd.f32 %v2783_v46, %v2590_v6 }
 0x2eb   :  { %v9449_v52 = vpop.f32.mrf.mxu1 }
 0x2ec   :  { %v2809_v18 = vadd.f32 %v9449_v52, %v9417_v41  ;;  %v2610_v27 = vpop.f32.mrf.mxu0 }
 0x2ed   :  { %v2803_v3 = vpop.f32.mrf.mxu1 }
 0x2ee   :  { %v2804_v33 = vadd.f32 %v2803_v3, %v2610_v27  ;;  %v9420_v34 = vpop.f32.mrf.mxu0 }
 0x2ef   :  { %v9452_v58 = vpop.f32.mrf.mxu1 }
 0x2f0   :  { %v2819_v14 = vadd.f32 %v9452_v58, %v9420_v34  ;;  %v2620_v59 = vpop.f32.mrf.mxu0 }
 0x2f1   :  { %v2813_v54 = vpop.f32.mrf.mxu1 }
 0x2f2   :  { %v2814_v40 = vadd.f32 %v2813_v54, %v2620_v59  ;;  %v9423_v37 = vpop.f32.mrf.mxu0 }
 0x2f3   :  { %v9455_v26 = vpop.f32.mrf.mxu1 }
 0x2f4   :  { %v2829_v32 = vadd.f32 %v9455_v26, %v9423_v37  ;;  %v2630_v49 = vpop.f32.mrf.mxu0 }
 0x2f5   :  { %v2823_v36 = vpop.f32.mrf.mxu1 }
 0x2f6   :  { %v2824_v53 = vadd.f32 %v2823_v36, %v2630_v49  ;;  %v9426_v61 = vpop.f32.mrf.mxu0 }
 0x2f7   :  { %v9458_v47 = vpop.f32.mrf.mxu1 }
 0x2f8   :  { %v2839_v28 = vadd.f32 %v9458_v47, %v9426_v61  ;;  %v2640_v62 = vpop.f32.mrf.mxu0 }
 0x2f9   :  { %v2833_v38 = vpop.f32.mrf.mxu1 }
 0x2fa   :  { %v2834_v57 = vadd.f32 %v2833_v38, %v2640_v62  ;;  %v9429_v4 = vpop.f32.mrf.mxu0 }
 0x2fb   :  { %v9461_v29 = vpop.f32.mrf.mxu1 }
 0x2fc   :  { %v2849_v5 = vadd.f32 %v9461_v29, %v9429_v4  ;;  %v2650_v8 = vpop.f32.mrf.mxu0 }
 0x2fd   :  { %v2843_v23 = vpop.f32.mrf.mxu1 }
 0x2fe   :  { %v2844_v2 = vadd.f32 %v2843_v23, %v2650_v8  ;;  %v9432_v11 = vpop.f32.mrf.mxu0 }
 0x2ff   :  { %v9464_v42 = vpop.f32.mrf.mxu1 }
 0x300   :  { %v2859_v48 = vadd.f32 %v9464_v42, %v9432_v11  ;;  %v2660_v35 = vpop.f32.mrf.mxu0 }
 0x301   :  { %v2853_v22 = vpop.f32.mrf.mxu1 }
 0x302   :  { %v11963_v7 = vadd.f32 %v2853_v22, %v2660_v35  ;;  %v9475_v55 = vpop.f32.mrf.mxu0 }
 0x303   :  { %v11965_v24 = vpop.f32.mrf.mxu1  ;;  %v11968_v63 = vadd.f32 %v9475_v55, %v11793_v19 }
 0x304   :  { %v2997_v41 = vpop.f32.mrf.mxu0 }
 0x305   :  { %v3227_v52 = vpop.f32.mrf.mxu1  ;;  %v3076_v27 = vadd.f32 %v2997_v41, %v2784_v13 }
 0x307   :  { %v9478_v3 = vpop.f32.mrf.mxu0  ;;  %v9510_v34 = vpop.f32.mrf.mxu1  ;;  %v3306_v58 = vadd.f32 %v3227_v52, %v3076_v27 }
 0x308   :  { %v3079_v59 = vadd.f32 %v9478_v3, %v2799_v17 }
 0x309   :  { %v3007_v54 = vpop.f32.mrf.mxu0  ;;  %v3237_v37 = vpop.f32.mrf.mxu1 }
 0x30a   :  { %v3309_v26 = vadd.f32 %v9510_v34, %v3079_v59  ;;  %v3078_v49 = vadd.f32 %v3007_v54, %v2794_v43 }
 0x30b   :  { %v9481_v36 = vpop.f32.mrf.mxu0  ;;  %v9513_v61 = vpop.f32.mrf.mxu1 }
 0x30c   :  { %v3308_v47 = vadd.f32 %v3237_v37, %v3078_v49  ;;  %v3081_v62 = vadd.f32 %v9481_v36, %v2809_v18 }
 0x30d   :  { %v3017_v38 = vpop.f32.mrf.mxu0  ;;  %v3247_v6 = vpop.f32.mrf.mxu1 }
 0x30e   :  { %v3311_v46 = vadd.f32 %v9513_v61, %v3081_v62  ;;  %v3080_v19 = vadd.f32 %v3017_v38, %v2804_v33 }
 0x30f   :  { %v9484_v4 = vpop.f32.mrf.mxu0  ;;  %v9516_v29 = vpop.f32.mrf.mxu1 }
 0x310   :  { %v3310_v8 = vadd.f32 %v3247_v6, %v3080_v19  ;;  %v3083_v23 = vadd.f32 %v9484_v4, %v2819_v14 }
 0x311   :  { %v3027_v11 = vpop.f32.mrf.mxu0  ;;  %v3257_v42 = vpop.f32.mrf.mxu1 }
 0x312   :  { %v3313_v35 = vadd.f32 %v9516_v29, %v3083_v23  ;;  %v3082_v17 = vadd.f32 %v3027_v11, %v2814_v40 }
 0x313   :  { %v9487_v22 = vpop.f32.mrf.mxu0  ;;  %v9519_v55 = vpop.f32.mrf.mxu1 }
 0x314   :  { %v3312_v13 = vadd.f32 %v3257_v42, %v3082_v17  ;;  %v3085_v43 = vadd.f32 %v9487_v22, %v2829_v32 }
 0x315   :  { %v3037_v41 = vpop.f32.mrf.mxu0  ;;  %v3267_v52 = vpop.f32.mrf.mxu1 }
 0x316   :  { %v3315_v27 = vadd.f32 %v9519_v55, %v3085_v43  ;;  %v3084_v18 = vadd.f32 %v3037_v41, %v2824_v53 }
 0x317   :  { %v9490_v3 = vpop.f32.mrf.mxu0  ;;  %v9522_v34 = vpop.f32.mrf.mxu1 }
 0x318   :  { %v3314_v59 = vadd.f32 %v3267_v52, %v3084_v18  ;;  %v3087_v33 = vadd.f32 %v9490_v3, %v2839_v28 }
 0x319   :  { %v3047_v54 = vpop.f32.mrf.mxu0  ;;  %v3277_v37 = vpop.f32.mrf.mxu1 }
 0x31a   :  { %v3317_v49 = vadd.f32 %v9522_v34, %v3087_v33  ;;  %v3086_v14 = vadd.f32 %v3047_v54, %v2834_v57 }
 0x31b   :  { %v9493_v36 = vpop.f32.mrf.mxu0  ;;  %v9525_v61 = vpop.f32.mrf.mxu1 }
 0x31c   :  { %v3316_v62 = vadd.f32 %v3277_v37, %v3086_v14  ;;  %v3089_v40 = vadd.f32 %v9493_v36, %v2849_v5 }
 0x31d   :  { %v3057_v38 = vpop.f32.mrf.mxu0  ;;  %v3287_v6 = vpop.f32.mrf.mxu1 }
 0x31e   :  { %v3319_v19 = vadd.f32 %v9525_v61, %v3089_v40  ;;  %v3088_v32 = vadd.f32 %v3057_v38, %v2844_v2 }
 0x31f   :  { %v9496_v4 = vpop.f32.mrf.mxu0  ;;  %v9528_v29 = vpop.f32.mrf.mxu1 }
 0x320   :  { %v3318_v23 = vadd.f32 %v3287_v6, %v3088_v32  ;;  %v3091_v53 = vadd.f32 %v9496_v4, %v2859_v48 }
 0x321   :  { %v3067_v11 = vpop.f32.mrf.mxu0  ;;  %v3297_v42 = vpop.f32.mrf.mxu1 }
 0x322   :  { %v3321_v17 = vadd.f32 %v9528_v29, %v3091_v53  ;;  %v3090_v28 = vadd.f32 %v3067_v11, %v11963_v7 }
 0x323   :  { %v11971_v22 = vpop.f32.mrf.mxu0  ;;  %v11973_v57 = vpop.f32.mrf.mxu1 }
 0x324   :  { %v3320_v55 = vadd.f32 %v3297_v42, %v3090_v28 }
 0x325   :  { %v3457_v43 = vpop.f32.mrf.mxu0  ;;  %v3687_v5 = vpop.f32.mrf.mxu1 }
 0x326   :  { %v3536_v41 = vadd.f32 %v3457_v43, %v3306_v58 }
 0x327   :  { %v9542_v52 = vpop.f32.mrf.mxu0  ;;  %v9574_v18 = vpop.f32.mrf.mxu1 }
 0x328   :  { %v3766_v2 = vadd.f32 %v3687_v5, %v3536_v41  ;;  %v3539_v3 = vadd.f32 %v9542_v52, %v3309_v26 }
 0x329   :  { %v3467_v34 = vpop.f32.mrf.mxu0  ;;  %v3697_v33 = vpop.f32.mrf.mxu1 }
 0x32a   :  { %v3769_v48 = vadd.f32 %v9574_v18, %v3539_v3  ;;  %v3538_v54 = vadd.f32 %v3467_v34, %v3308_v47 }
 0x32b   :  { %v9545_v37 = vpop.f32.mrf.mxu0  ;;  %v9577_v14 = vpop.f32.mrf.mxu1 }
 0x32c   :  { %v3768_v36 = vadd.f32 %v3697_v33, %v3538_v54  ;;  %v3541_v7 = vadd.f32 %v9545_v37, %v3311_v46 }
 0x32d   :  { %v3477_v61 = vpop.f32.mrf.mxu0  ;;  %v3707_v40 = vpop.f32.mrf.mxu1 }
 0x32e   :  { %v3771_v38 = vadd.f32 %v9577_v14, %v3541_v7  ;;  %v3540_v6 = vadd.f32 %v3477_v61, %v3310_v8 }
 0x32f   :  { %v9548_v32 = vpop.f32.mrf.mxu0  ;;  %v9580_v4 = vpop.f32.mrf.mxu1 }
 0x330   :  { %v3770_v29 = vadd.f32 %v3707_v40, %v3540_v6  ;;  %v3543_v58 = vadd.f32 %v9548_v32, %v3313_v35 }
 0x331   :  { %v3487_v53 = vpop.f32.mrf.mxu0  ;;  %v3717_v11 = vpop.f32.mrf.mxu1 }
 0x332   :  { %v3773_v42 = vadd.f32 %v9580_v4, %v3543_v58  ;;  %v3542_v26 = vadd.f32 %v3487_v53, %v3312_v13 }
 0x333   :  { %v9551_v28 = vpop.f32.mrf.mxu0  ;;  %v9583_v43 = vpop.f32.mrf.mxu1 }
 0x334   :  { %v3772_v5 = vadd.f32 %v3717_v11, %v3542_v26  ;;  %v3545_v47 = vadd.f32 %v9551_v28, %v3315_v27 }
 0x335   :  { %v3497_v41 = vpop.f32.mrf.mxu0  ;;  %v3727_v52 = vpop.f32.mrf.mxu1 }
 0x336   :  { %v3775_v18 = vadd.f32 %v9583_v43, %v3545_v47  ;;  %v3544_v46 = vadd.f32 %v3497_v41, %v3314_v59 }
 0x337   :  { %v9554_v3 = vpop.f32.mrf.mxu0  ;;  %v9586_v34 = vpop.f32.mrf.mxu1 }
 0x338   :  { %v3774_v33 = vadd.f32 %v3727_v52, %v3544_v46  ;;  %v3547_v8 = vadd.f32 %v9554_v3, %v3317_v49 }
 0x339   :  { %v3507_v54 = vpop.f32.mrf.mxu0  ;;  %v3737_v37 = vpop.f32.mrf.mxu1 }
 0x33a   :  { %v3777_v14 = vadd.f32 %v9586_v34, %v3547_v8  ;;  %v3546_v35 = vadd.f32 %v3507_v54, %v3316_v62 }
 0x33b   :  { %v9557_v7 = vpop.f32.mrf.mxu0  ;;  %v9589_v61 = vpop.f32.mrf.mxu1 }
 0x33c   :  { %v3776_v40 = vadd.f32 %v3737_v37, %v3546_v35  ;;  %v3549_v13 = vadd.f32 %v9557_v7, %v3319_v19 }
 0x33d   :  { %v3517_v6 = vpop.f32.mrf.mxu0  ;;  %v3747_v32 = vpop.f32.mrf.mxu1 }
 0x33e   :  { %v3779_v4 = vadd.f32 %v9589_v61, %v3549_v13  ;;  %v3548_v27 = vadd.f32 %v3517_v6, %v3318_v23 }
 0x33f   :  { %v9560_v58 = vpop.f32.mrf.mxu0  ;;  %v9592_v53 = vpop.f32.mrf.mxu1 }
 0x340   :  { %v3778_v11 = vadd.f32 %v3747_v32, %v3548_v27  ;;  %v3551_v59 = vadd.f32 %v9560_v58, %v3321_v17 }
 0x341   :  { %v3527_v26 = vpop.f32.mrf.mxu0  ;;  %v3757_v28 = vpop.f32.mrf.mxu1 }
 0x342   :  { %v3781_v43 = vadd.f32 %v9592_v53, %v3551_v59  ;;  %v3550_v49 = vadd.f32 %v3527_v26, %v3320_v55 }
 0x343   :  { %v9603_v47 = vpop.f32.mrf.mxu0  ;;  %v9635_v41 = vpop.f32.mrf.mxu1 }
 0x344   :  { %v3780_v52 = vadd.f32 %v3757_v28, %v3550_v49 }
 0x345   :  { %v3917_v62 = vpop.f32.mrf.mxu0  ;;  %v4147_v3 = vpop.f32.mrf.mxu1 }
 0x346   :  { %v3996_v46 = vadd.f32 %v3917_v62, %v3766_v2 }
 0x347   :  { %v9606_v34 = vpop.f32.mrf.mxu0  ;;  %v9638_v37 = vpop.f32.mrf.mxu1 }
 0x348   :  { %v3999_v19 = vadd.f32 %v9606_v34, %v3769_v48  ;;  %v3307_v48 = vadd.f32 %v11965_v24, %v11968_v63 }
 0x349   :  { %v3927_v8 = vpop.f32.mrf.mxu0  ;;  %v4157_v17 = vpop.f32.mrf.mxu1 }
 0x34a   :  { %v3998_v54 = vadd.f32 %v3927_v8, %v3768_v36 }
 0x34b   :  { %v9609_v23 = vpop.f32.mrf.mxu0  ;;  %v9641_v27 = vpop.f32.mrf.mxu1 }
 0x34c   :  { %v4001_v35 = vadd.f32 %v9609_v23, %v3771_v38  ;;  %v3537_v38 = vadd.f32 %v11971_v22, %v3307_v48 }
 0x34d   :  { %v3937_v7 = vpop.f32.mrf.mxu0  ;;  %v4167_v36 = vpop.f32.mrf.mxu1 }
 0x34e   :  { %v4000_v61 = vadd.f32 %v3937_v7, %v3770_v29 }
 0x34f   :  { %v9612_v13 = vpop.f32.mrf.mxu0 }
 0x350   :  { %v4003_v6 = vadd.f32 %v9612_v13, %v3773_v42 }
 0x351   :  { %v3947_v32 = vpop.f32.mrf.mxu0 }
 0x352   :  { %v4002_v55 = vadd.f32 %v3947_v32, %v3772_v5  ;;  %v9644_v5 = vpop.f32.mrf.mxu1 }
 0x353   :  { %v9615_v58 = vpop.f32.mrf.mxu0 }
 0x354   :  { %v11975_v53 = vadd.f32 %v9615_v58, %v3775_v18  ;;  %v3767_v18 = vadd.f32 %v11973_v57, %v3537_v38  ;;  %v4177_v63 = vpop.f32.mrf.mxu1  ;;  %v11998_v57 = vld [vmem:[%s16119_s4 + $0x1] ss:$0 sm:$0xff] }
 0x355   :  { %v3957_v2 = vpop.f32.mrf.mxu0 }
 0x356   :  { %v11979_v59 = vadd.f32 %v3957_v2, %v3774_v33  ;;  %v3997_v8 = vadd.f32 %v9603_v47, %v3767_v18 }
 0x357   :  { %v9618_v26 = vpop.f32.mrf.mxu0 }
 0x358   :  { %v11982_v29 = vadd.f32 %v9618_v26, %v3777_v14  ;;  %v4227_v14 = vadd.f32 %v9635_v41, %v3997_v8  ;;  %v4228_v26 = vadd.f32 %v4157_v17, %v3998_v54 }
 0x359   :  { %v3967_v28 = vpop.f32.mrf.mxu0 }
 0x35a   :  { %v11984_v42 = vadd.f32 %v3967_v28, %v3776_v40  ;;  %v9647_v40 = vpop.f32.mrf.mxu1 }
 0x35b   :  { %v9621_v49 = vpop.f32.mrf.mxu0 }
 0x35c   :  { %v11987_v62 = vadd.f32 %v9621_v49, %v3779_v4  ;;  %v4226_v4 = vadd.f32 %v4147_v3, %v3996_v46  ;;  %v4231_v49 = vadd.f32 %v9641_v27, %v4001_v35  ;;  %v4233_v35 = vadd.f32 %v9644_v5, %v4003_v6 }
 0x35d   :  { %v3977_v34 = vpop.f32.mrf.mxu0  ;;  %v4235_v6 = vadd.f32 %v9647_v40, %v11975_v53 }
 0x35e   :  { %v11989_v24 = vadd.f32 %v3977_v34, %v3778_v11  ;;  %v4229_v11 = vadd.f32 %v9638_v37, %v3999_v19  ;;  %v4230_v34 = vadd.f32 %v4167_v36, %v4000_v61  ;;  %v16173_v36 = vmov 3  }
 0x35f   :  { %v9624_v33 = vpop.f32.mrf.mxu0 }
 0x360   :  { %v11991_v23 = vadd.f32 %v9624_v33, %v3781_v43  ;;  %v4187_v43 = vpop.f32.mrf.mxu1 }
 0x361   :  { %v3987_v22 = vpop.f32.mrf.mxu0 }
 0x362   :  { %v11993_v7 = vadd.f32 %v3987_v22, %v3780_v52  ;;  %v9650_v19 = vpop.f32.mrf.mxu1 }
 0x363   :  { %v9667_v13 = vpop.f32.mrf.mxu0  ;;  %v4237_v53 = vadd.f32 %v9650_v19, %v11982_v29 }
 0x364   :  { %v4457_v32 = vadd.f32 %v9667_v13, %v4227_v14  ;;  %v4197_v33 = vpop.f32.mrf.mxu1  ;;  %v4232_v14 = vadd.f32 %v4177_v63, %v4002_v55 }
 0x365   :  { %v4377_v47 = vpop.f32.mrf.mxu0 }
 0x366   :  { %v4481_v58 = vadd.f32 %v11998_v57, %v4457_v32  ;;  %v4456_v2 = vadd.f32 %v4377_v47, %v4226_v4  ;;  %v16175_v4 = vmov 2   ;;  %v9653_v63 = vpop.f32.mrf.mxu1 }
 0x367   :  { %v9670_v48 = vpop.f32.mrf.mxu0  ;;  %v4239_v29 = vadd.f32 %v9653_v63, %v11987_v62  ;;  %v16185_v63 = vmov 9  }
 0x368   :  { %v4497_v41 = vmax.f32 %v4481_v58, 0.0  ;;  %v12002_v52 = vadd.f32 %v11998_v57, %v4456_v2  ;;  %v4459_v38 = vadd.f32 %v9670_v48, %v4229_v11  ;;  %v4234_v11 = vadd.f32 %v4187_v43, %v11979_v59  ;;  %v4207_v59 = vpop.f32.mrf.mxu1 }
 0x369   :  { %v4387_v28 = vpop.f32.mrf.mxu0 }
 0x36a   :  { %v12005_v18 = vadd.f32 %v4497_v41, %v16359_v16  ;;  %v12008_v46 = vadd.f32 %v11998_v57, %v4459_v38  ;;  %v4458_v3 = vadd.f32 %v4387_v28, %v4228_v26  ;;  %v16177_v26 = vmov 5  }
 0x36b   :  { %v9673_v37 = vpop.f32.mrf.mxu0  ;;  %v16179_v41 = vmov 4   ;;  %v4236_v28 = vadd.f32 %v4197_v33, %v11984_v42  ;;  %v4238_v42 = vadd.f32 %v4207_v59, %v11989_v24  ;;  %v16189_v59 = vmov 11  }
 0x36c   :  { %16393 = vst [vmem:[#allocation22_spill] sm:$0xff] %v12005_v18  ;;  %v12011_v8 = vadd.f32 %v11998_v57, %v4458_v3  ;;  %v4461_v54 = vadd.f32 %v9673_v37, %v4231_v49  ;;  %4662 = vperm.xlu1 %9737, %v12005_v18   ;;  %4543 = vperm.xlu0 %9736, %v12005_v18   ;;  %v9656_v37 = vpop.f32.mrf.mxu1 }
 0x36d   :  { %v4397_v17 = vpop.f32.mrf.mxu0 }
 0x36e   :  { %v12016_v16 = vadd.f32 %v11998_v57, %v4461_v54  ;;  %v4460_v27 = vadd.f32 %v4397_v17, %v4230_v34  ;;  %v16181_v17 = vmov 7  }
 0x36f   :  { %v9676_v22 = vpop.f32.mrf.mxu0 }
 0x370   :  { %v12019_v13 = vadd.f32 %v11998_v57, %v4460_v27  ;;  %v4463_v61 = vadd.f32 %v9676_v22, %v4233_v35  ;;  %9739 = vset.pattern.permute.xlu1 %v16173_v36  ;;  %9738 = vset.pattern.permute.xlu0 %v16175_v4  ;;  %v16183_v35 = vmov 6   ;;  %v4217_v22 = vpop.f32.mrf.mxu1 }
 0x371   :  { %v4407_v32 = vpop.f32.mrf.mxu0  ;;  %4872 = vperm.xlu1 %9739, %v12005_v18   ;;  %4767 = vperm.xlu0 %9738, %v12005_v18   ;;  %v4240_v24 = vadd.f32 %v4217_v22, %v11993_v7  ;;  %v16191_v7 = vmov 10   ;;  %v16167_v22 = vmov 22  }
 0x372   :  { %v12027_v5 = vadd.f32 %v11998_v57, %v4463_v61  ;;  %v4462_v55 = vadd.f32 %v4407_v32, %v4232_v14  ;;  %v4241_v61 = vadd.f32 %v9656_v37, %v11991_v23  ;;  %v16201_v37 = vmov 17  }
 0x373   :  { %v9679_v47 = vpop.f32.mrf.mxu0 }
 0x374   :  { %v12031_v58 = vadd.f32 %v11998_v57, %v4462_v55  ;;  %v4465_v2 = vadd.f32 %v9679_v47, %v4235_v6  ;;  %v16187_v47 = vmov 8  }
 0x375   :  { %v4417_v48 = vpop.f32.mrf.mxu0  ;;  %9741 = vset.pattern.permute.xlu1 %v16177_v26  ;;  %9740 = vset.pattern.permute.xlu0 %v16179_v41 }
 0x376   :  { %v12037_v40 = vadd.f32 %v11998_v57, %v4465_v2  ;;  %v4464_v38 = vadd.f32 %v4417_v48, %v4234_v11  ;;  %5082 = vperm.xlu1 %9741, %v12005_v18   ;;  %4977 = vperm.xlu0 %9740, %v12005_v18  }
 0x377   :  { %v9682_v43 = vpop.f32.mrf.mxu0 }
 0x378   :  { %v12043_v49 = vadd.f32 %v11998_v57, %v4464_v38  ;;  %v4467_v3 = vadd.f32 %v9682_v43, %v4237_v53  ;;  %v16193_v43 = vmov 13  }
 0x379   :  { %v4427_v34 = vpop.f32.mrf.mxu0 }
 0x37a   :  { %v12047_v19 = vadd.f32 %v11998_v57, %v4467_v3  ;;  %v4466_v54 = vadd.f32 %v4427_v34, %v4236_v28  ;;  %9743 = vset.pattern.permute.xlu1 %v16181_v17  ;;  %9742 = vset.pattern.permute.xlu0 %v16183_v35  ;;  %v16195_v28 = vmov 12   ;;  %v16199_v3 = vmov 14  }
 0x37b   :  { %v9685_v27 = vpop.f32.mrf.mxu0  ;;  %5292 = vperm.xlu1 %9743, %v12005_v18   ;;  %5187 = vperm.xlu0 %9742, %v12005_v18   ;;  %v16203_v34 = vmov 16  }
 0x37c   :  { %v12055_v33 = vadd.f32 %v11998_v57, %v4466_v54  ;;  %v4469_v62 = vadd.f32 %v9685_v27, %v4239_v29  ;;  %v16205_v29 = vmov 19   ;;  %v16207_v54 = vmov 18  }
 0x37d   :  { %v4437_v14 = vpop.f32.mrf.mxu0  ;;  %v16211_v27 = vmov 21  }
 0x37e   :  { %v12059_v32 = vadd.f32 %v11998_v57, %v4469_v62  ;;  %v4468_v6 = vadd.f32 %v4437_v14, %v4238_v42  ;;  %v16213_v42 = vmov 20   ;;  %v16217_v62 = vmov 23  }
 0x37f   :  { %v9688_v55 = vpop.f32.mrf.mxu0  ;;  %9745 = vset.pattern.permute.xlu1 %v16185_v63  ;;  %9744 = vset.pattern.permute.xlu0 %v16187_v47  ;;  %v4496_v14 = vmax.f32 %v12002_v52, 0.0  ;;  %v16163_v52 = vmov 27  }
 0x380   :  { %v12065_v11 = vadd.f32 %v11998_v57, %v4468_v6  ;;  %v4471_v2 = vadd.f32 %v9688_v55, %v4241_v61  ;;  %5502 = vperm.xlu1 %9745, %v12005_v18   ;;  %5397 = vperm.xlu0 %9744, %v12005_v18   ;;  %v16215_v61 = vmov 25   ;;  %v16169_v6 = vmov 24  }
 0x381   :  { %v4447_v23 = vpop.f32.mrf.mxu0  ;;  %v12109_v55 = vadd.f32 %v4496_v14, %v16363_v1  ;;  %v4499_v14 = vmax.f32 %v12008_v46, 0.0 }
 0x382   :  { %v12070_v48 = vadd.f32 %v11998_v57, %v4471_v2  ;;  %v4470_v53 = vadd.f32 %v4447_v23, %v4240_v24  ;;  %v16165_v24 = vmov 26  }
 0x384   :  { %v12073_v38 = vadd.f32 %v11998_v57, %v4470_v53  ;;  %9747 = vset.pattern.permute.xlu1 %v16189_v59  ;;  %9746 = vset.pattern.permute.xlu0 %v16191_v7  ;;  %v16197_v57 = vmov 15  }
 0x385   :  { %5712 = vperm.xlu1 %9747, %v12005_v18   ;;  %5607 = vperm.xlu0 %9746, %v12005_v18  }
 0x389   :  { %9749 = vset.pattern.permute.xlu1 %v16193_v43  ;;  %9748 = vset.pattern.permute.xlu0 %v16195_v28 }
 0x38a   :  { %5922 = vperm.xlu1 %9749, %v12005_v18   ;;  %5817 = vperm.xlu0 %9748, %v12005_v18  }
 0x38e   :  { %9751 = vset.pattern.permute.xlu1 %v16197_v57  ;;  %9750 = vset.pattern.permute.xlu0 %v16199_v3 }
 0x38f   :  { %6132 = vperm.xlu1 %9751, %v12005_v18   ;;  %6027 = vperm.xlu0 %9750, %v12005_v18  }
 0x393   :  { %9753 = vset.pattern.permute.xlu1 %v16201_v37  ;;  %9752 = vset.pattern.permute.xlu0 %v16203_v34 }
 0x394   :  { %6342 = vperm.xlu1 %9753, %v12005_v18   ;;  %6237 = vperm.xlu0 %9752, %v12005_v18  }
 0x398   :  { %9755 = vset.pattern.permute.xlu1 %v16205_v29  ;;  %9754 = vset.pattern.permute.xlu0 %v16207_v54 }
 0x399   :  { %6552 = vperm.xlu1 %9755, %v12005_v18   ;;  %6447 = vperm.xlu0 %9754, %v12005_v18  }
 0x39d   :  { %9757 = vset.pattern.permute.xlu1 %v16211_v27  ;;  %9756 = vset.pattern.permute.xlu0 %v16213_v42 }
 0x39e   :  { %6762 = vperm.xlu1 %9757, %v12005_v18   ;;  %6657 = vperm.xlu0 %9756, %v12005_v18  }
 0x3a2   :  { %9759 = vset.pattern.permute.xlu1 %v16217_v62  ;;  %9758 = vset.pattern.permute.xlu0 %v16167_v22 }
 0x3a3   :  { %6972 = vperm.xlu1 %9759, %v12005_v18   ;;  %6867 = vperm.xlu0 %9758, %v12005_v18  }
 0x3a7   :  { %9761 = vset.pattern.permute.xlu1 %v16215_v61  ;;  %9760 = vset.pattern.permute.xlu0 %v16169_v6 }
 0x3a8   :  { %7182 = vperm.xlu1 %9761, %v12005_v18   ;;  %7077 = vperm.xlu0 %9760, %v12005_v18  }
 0x3ac   :  { %9762 = vset.pattern.permute.xlu1 %v16165_v24  ;;  %9764 = vset.pattern.permute.xlu0 %v16171_v30 }
 0x3ad   :  { %7287 = vperm.xlu1 %9762, %v12005_v18   ;;  %4538 = vperm.xlu0 %9764, %v12109_v55  }
 0x3b1   :  { %9763 = vset.pattern.permute.xlu1 %v16163_v52  ;;  %9765 = vset.pattern.permute.xlu0 %v16209_v39  ;;  %v12177_v52 = vadd.f32 %v4499_v14, %v16366_v31 }
 0x3b2   :  { %7392 = vperm.xlu1 %9763, %v12005_v18   ;;  %4658 = vperm.xlu0 %9765, %v12109_v55   ;;  %v16460_v18 = vmov 21  }
 0x3b6   :  { %9766 = vset.pattern.permute.xlu1 %v16175_v4  ;;  %9767 = vset.pattern.permute.xlu0 %v16173_v36 }
 0x3b7   :  { %4763 = vperm.xlu1 %9766, %v12109_v55   ;;  %4868 = vperm.xlu0 %9767, %v12109_v55  }
 0x3bb   :  { %9768 = vset.pattern.permute.xlu1 %v16179_v41  ;;  %9769 = vset.pattern.permute.xlu0 %v16177_v26 }
 0x3bc   :  { %4973 = vperm.xlu1 %9768, %v12109_v55   ;;  %5078 = vperm.xlu0 %9769, %v12109_v55  }
 0x3c0   :  { %9770 = vset.pattern.permute.xlu1 %v16183_v35  ;;  %9771 = vset.pattern.permute.xlu0 %v16181_v17 }
 0x3c1   :  { %5183 = vperm.xlu1 %9770, %v12109_v55   ;;  %5288 = vperm.xlu0 %9771, %v12109_v55  }
 0x3c5   :  { %9772 = vset.pattern.permute.xlu1 %v16187_v47  ;;  %9773 = vset.pattern.permute.xlu0 %v16185_v63 }
 0x3c6   :  { %5393 = vperm.xlu1 %9772, %v12109_v55   ;;  %5498 = vperm.xlu0 %9773, %v12109_v55  }
 0x3ca   :  { %9774 = vset.pattern.permute.xlu1 %v16191_v7  ;;  %9775 = vset.pattern.permute.xlu0 %v16189_v59 }
 0x3cb   :  { %5603 = vperm.xlu1 %9774, %v12109_v55   ;;  %5708 = vperm.xlu0 %9775, %v12109_v55  }
 0x3cf   :  { %9776 = vset.pattern.permute.xlu1 %v16195_v28  ;;  %9777 = vset.pattern.permute.xlu0 %v16193_v43 }
 0x3d0   :  { %5813 = vperm.xlu1 %9776, %v12109_v55   ;;  %5918 = vperm.xlu0 %9777, %v12109_v55  }
 0x3d4   :  { %9778 = vset.pattern.permute.xlu1 %v16199_v3  ;;  %9779 = vset.pattern.permute.xlu0 %v16197_v57 }
 0x3d5   :  { %6023 = vperm.xlu1 %9778, %v12109_v55   ;;  %6128 = vperm.xlu0 %9779, %v12109_v55  }
 0x3d9   :  { %9780 = vset.pattern.permute.xlu1 %v16203_v34  ;;  %9781 = vset.pattern.permute.xlu0 %v16201_v37 }
 0x3da   :  { %6233 = vperm.xlu1 %9780, %v12109_v55   ;;  %6338 = vperm.xlu0 %9781, %v12109_v55  }
 0x3de   :  { %9782 = vset.pattern.permute.xlu1 %v16207_v54  ;;  %9783 = vset.pattern.permute.xlu0 %v16205_v29 }
 0x3df   :  { %6443 = vperm.xlu1 %9782, %v12109_v55   ;;  %6548 = vperm.xlu0 %9783, %v12109_v55  }
 0x3e3   :  { %9784 = vset.pattern.permute.xlu1 %v16213_v42  ;;  %9785 = vset.pattern.permute.xlu0 %v16211_v27 }
 0x3e4   :  { %6653 = vperm.xlu1 %9784, %v12109_v55   ;;  %6758 = vperm.xlu0 %9785, %v12109_v55  }
 0x3e7   :  { %v12159_v1 = vpop.permute.xlu1 %4662  ;;  %v12161_v2 = vpop.permute.xlu0 %4543 }
 0x3e8   :  { %16394 = vst [vmem:[#allocation28_spill] sm:$0xff] %v12159_v1  ;;  %16395 = vst [vmem:[#allocation30_spill] sm:$0xff] %v12161_v2  ;;  %9786 = vset.pattern.permute.xlu1 %v16167_v22  ;;  %9787 = vset.pattern.permute.xlu0 %v16217_v62  ;;  %v16452_v2 = vmov 8   ;;  %v16453_v1 = vmov 17  }
 0x3e9   :  { %6863 = vperm.xlu1 %9786, %v12109_v55   ;;  %6968 = vperm.xlu0 %9787, %v12109_v55  }
 0x3ec   :  { %v12167_v23 = vpop.permute.xlu1 %4872  ;;  %v12169_v53 = vpop.permute.xlu0 %4767 }
 0x3ed   :  { %16396 = vst [vmem:[#allocation33_spill] sm:$0xff] %v12167_v23  ;;  %16397 = vst [vmem:[#allocation24_spill] sm:$0xff] %v12169_v53  ;;  %9788 = vset.pattern.permute.xlu1 %v16169_v6  ;;  %9789 = vset.pattern.permute.xlu0 %v16215_v61  ;;  %v4501_v61 = vmax.f32 %v12016_v16, 0.0  ;;  %v16428_v16 = vmov 0  }
 0x3ee   :  { %7073 = vperm.xlu1 %9788, %v12109_v55   ;;  %7178 = vperm.xlu0 %9789, %v12109_v55  }
 0x3f1   :  { %v12179_v24 = vpop.permute.xlu1 %5082  ;;  %v12181_v22 = vpop.permute.xlu0 %4977 }
 0x3f2   :  { %16398 = vst [vmem:[#allocation23_spill] sm:$0xff] %v12179_v24  ;;  %16399 = vst [vmem:[#allocation53_spill] sm:$0xff] %v12181_v22  ;;  %9790 = vset.pattern.permute.xlu1 %v16171_v30  ;;  %9791 = vset.pattern.permute.xlu0 %v16209_v39  ;;  %v16449_v22 = vmov 15  }
 0x3f3   :  { %4670 = vperm.xlu0 %9791, %v12177_v52   ;;  %4553 = vperm.xlu1 %9790, %v12177_v52  }
 0x3f6   :  { %v12187_v46 = vpop.permute.xlu1 %5292  ;;  %v12189_v6 = vpop.permute.xlu0 %5187 }
 0x3f7   :  { %16400 = vst [vmem:[#allocation54_spill] sm:$0xff] %v12187_v46  ;;  %16401 = vst [vmem:[#allocation25_spill] sm:$0xff] %v12189_v6  ;;  %9793 = vset.pattern.permute.xlu0 %v16173_v36  ;;  %9792 = vset.pattern.permute.xlu1 %v16175_v4  ;;  %v16446_v46 = vmov 13  }
 0x3f8   :  { %4880 = vperm.xlu0 %9793, %v12177_v52   ;;  %4775 = vperm.xlu1 %9792, %v12177_v52  }
 0x3fb   :  { %v12195_v31 = vpop.permute.xlu1 %5502  ;;  %v12197_v14 = vpop.permute.xlu0 %5397 }
 0x3fc   :  { %16402 = vst [vmem:[#allocation32_spill] sm:$0xff] %v12195_v31  ;;  %16403 = vst [vmem:[#allocation35_spill] sm:$0xff] %v12197_v14  ;;  %9795 = vset.pattern.permute.xlu0 %v16177_v26  ;;  %9794 = vset.pattern.permute.xlu1 %v16179_v41  ;;  %v16445_v14 = vmov 6  }
 0x3fd   :  { %5090 = vperm.xlu0 %9795, %v12177_v52   ;;  %4985 = vperm.xlu1 %9794, %v12177_v52  }
 0x400   :  { %v12203_v30 = vpop.permute.xlu1 %5712  ;;  %v12205_v36 = vpop.permute.xlu0 %5607 }
 0x401   :  { %16404 = vst [vmem:[#allocation27_spill] sm:$0xff] %v12203_v30  ;;  %16405 = vst [vmem:[#allocation26_spill] sm:$0xff] %v12205_v36  ;;  %9797 = vset.pattern.permute.xlu0 %v16181_v17  ;;  %9796 = vset.pattern.permute.xlu1 %v16183_v35  ;;  %v16442_v30 = vmov 11  }
 0x402   :  { %5300 = vperm.xlu0 %9797, %v12177_v52   ;;  %5195 = vperm.xlu1 %9796, %v12177_v52  }
 0x405   :  { %v12211_v4 = vpop.permute.xlu1 %5922  ;;  %v12213_v26 = vpop.permute.xlu0 %5817 }
 0x406   :  { %16406 = vst [vmem:[#allocation55_spill] sm:$0xff] %v12211_v4  ;;  %16407 = vst [vmem:[#allocation29_spill] sm:$0xff] %v12213_v26  ;;  %9799 = vset.pattern.permute.xlu0 %v16185_v63  ;;  %9798 = vset.pattern.permute.xlu1 %v16187_v47 }
 0x407   :  { %5510 = vperm.xlu0 %9799, %v12177_v52   ;;  %5405 = vperm.xlu1 %9798, %v12177_v52  }
 0x40a   :  { %v12219_v41 = vpop.permute.xlu1 %6132  ;;  %v12221_v17 = vpop.permute.xlu0 %6027 }
 0x40b   :  { %16408 = vst [vmem:[#allocation34_spill] sm:$0xff] %v12219_v41  ;;  %16409 = vst [vmem:[#allocation37_spill] sm:$0xff] %v12221_v17  ;;  %9801 = vset.pattern.permute.xlu0 %v16189_v59  ;;  %9800 = vset.pattern.permute.xlu1 %v16191_v7  ;;  %v16438_v41 = vmov 4   ;;  %v16439_v17 = vmov 9  }
 0x40c   :  { %5720 = vperm.xlu0 %9801, %v12177_v52   ;;  %5615 = vperm.xlu1 %9800, %v12177_v52  }
 0x40f   :  { %v12227_v35 = vpop.permute.xlu1 %6342  ;;  %v12229_v63 = vpop.permute.xlu0 %6237 }
 0x410   :  { %16410 = vst [vmem:[#allocation56_spill] sm:$0xff] %v12227_v35  ;;  %16411 = vst [vmem:[#allocation57_spill] sm:$0xff] %v12229_v63  ;;  %9803 = vset.pattern.permute.xlu0 %v16193_v43  ;;  %9802 = vset.pattern.permute.xlu1 %v16195_v28 }
 0x411   :  { %5930 = vperm.xlu0 %9803, %v12177_v52   ;;  %5825 = vperm.xlu1 %9802, %v12177_v52  }
 0x414   :  { %v12235_v47 = vpop.permute.xlu1 %6552  ;;  %v12237_v59 = vpop.permute.xlu0 %6447 }
 0x415   :  { %16412 = vst [vmem:[#allocation36_spill] sm:$0xff] %v12235_v47  ;;  %16413 = vst [vmem:[#allocation39_spill] sm:$0xff] %v12237_v59  ;;  %9805 = vset.pattern.permute.xlu0 %v16197_v57  ;;  %9804 = vset.pattern.permute.xlu1 %v16199_v3  ;;  %v16435_v59 = vmov 7  }
 0x416   :  { %6140 = vperm.xlu0 %9805, %v12177_v52   ;;  %6035 = vperm.xlu1 %9804, %v12177_v52  }
 0x419   :  { %v12243_v7 = vpop.permute.xlu1 %6762  ;;  %v12245_v43 = vpop.permute.xlu0 %6657 }
 0x41a   :  { %16414 = vst [vmem:[#allocation60_spill] sm:$0xff] %v12243_v7  ;;  %16415 = vst [vmem:[#allocation58_spill] sm:$0xff] %v12245_v43  ;;  %9807 = vset.pattern.permute.xlu0 %v16201_v37  ;;  %9806 = vset.pattern.permute.xlu1 %v16203_v34  ;;  %v16432_v43 = vmov 5  }
 0x41b   :  { %6350 = vperm.xlu0 %9807, %v12177_v52   ;;  %6245 = vperm.xlu1 %9806, %v12177_v52  }
 0x41e   :  { %v12251_v28 = vpop.permute.xlu1 %6972  ;;  %v12253_v57 = vpop.permute.xlu0 %6867 }
 0x41f   :  { %16416 = vst [vmem:[#allocation5_spill] sm:$0xff] %v12251_v28  ;;  %16417 = vst [vmem:[#allocation38_spill] sm:$0xff] %v12253_v57  ;;  %9809 = vset.pattern.permute.xlu0 %v16205_v29  ;;  %9808 = vset.pattern.permute.xlu1 %v16207_v54  ;;  %v16421_v54 = vmov 22  }
 0x420   :  { %6560 = vperm.xlu0 %9809, %v12177_v52   ;;  %6455 = vperm.xlu1 %9808, %v12177_v52  }
 0x423   :  { %v12259_v3 = vpop.permute.xlu1 %7182  ;;  %v12261_v37 = vpop.permute.xlu0 %7077 }
 0x424   :  { %16418 = vst [vmem:[#allocation41_spill] sm:$0xff] %v12259_v3  ;;  %16419 = vst [vmem:[#allocation59_spill] sm:$0xff] %v12261_v37  ;;  %9811 = vset.pattern.permute.xlu0 %v16211_v27  ;;  %9810 = vset.pattern.permute.xlu1 %v16213_v42  ;;  %v4498_v42 = vmax.f32 %v12011_v8, 0.0  ;;  %v12289_v3 = vadd.f32 %v4501_v61, %v16372_v45  ;;  %v16427_v8 = vmov 1   ;;  %v16431_v61 = vmov 2  }
 0x425   :  { %6770 = vperm.xlu0 %9811, %v12177_v52   ;;  %6665 = vperm.xlu1 %9810, %v12177_v52  }
 0x426   :  { %16426 = vst [vmem:[#allocation8_spill] sm:$0xff] %v12289_v3 }
 0x428   :  { %v12267_v34 = vpop.permute.xlu1 %7287  ;;  %v12269_v29 = vpop.permute.xlu0 %4538 }
 0x429   :  { %16420 = vst [vmem:[#allocation6_spill] sm:$0xff] %v12267_v34  ;;  %9813 = vset.pattern.permute.xlu0 %v16217_v62  ;;  %9812 = vset.pattern.permute.xlu1 %v16421_v54  ;;  %v16424_v34 = vmov 24   ;;  %v12286_v62 = vadd.f32 %v4498_v42, %v16369_v56  ;;  %v16429_v56 = vmov 3  }
 0x42a   :  { %6980 = vperm.xlu0 %9813, %v12177_v52   ;;  %6875 = vperm.xlu1 %9812, %v12177_v52  }
 0x42b   :  { %16425 = vst [vmem:[#allocation43_spill] sm:$0xff] %v12286_v62 }
 0x42d   :  { %v12275_v39 = vpop.permute.xlu1 %7392  ;;  %v12277_v27 = vpop.permute.xlu0 %4658 }
 0x42e   :  { %16422 = vst [vmem:[#allocation40_spill] sm:$0xff] %v12275_v39  ;;  %9815 = vset.pattern.permute.xlu0 %v16423_v51  ;;  %9814 = vset.pattern.permute.xlu1 %v16424_v34 }
 0x42f   :  { %7190 = vperm.xlu0 %9815, %v12177_v52   ;;  %7085 = vperm.xlu1 %9814, %v12177_v52  }
 0x432   :  { %v12291_v39 = vpop.permute.xlu1 %4763  ;;  %v12293_v37 = vpop.permute.xlu0 %4868 }
 0x433   :  { %9843 = vset.pattern.permute.xlu0 %v16427_v8  ;;  %9816 = vset.pattern.permute.xlu1 %v16428_v16 }
 0x434   :  { %4548 = vperm.xlu1 %9816, %v12286_v62   ;;  %4678 = vperm.xlu0 %9843, %v12289_v3  }
 0x437   :  { %v12299_v28 = vpop.permute.xlu1 %4973  ;;  %v12301_v57 = vpop.permute.xlu0 %5078 }
 0x438   :  { %9817 = vset.pattern.permute.xlu1 %v16427_v8  ;;  %9845 = vset.pattern.permute.xlu0 %v16429_v56 }
 0x439   :  { %4666 = vperm.xlu1 %9817, %v12286_v62   ;;  %4888 = vperm.xlu0 %9845, %v12289_v3  }
 0x43c   :  { %v12307_v45 = vpop.permute.xlu1 %5183  ;;  %v12309_v42 = vpop.permute.xlu0 %5288 }
 0x43d   :  { %16430 = vst [vmem:[#allocation42_spill] sm:$0xff] %v12309_v42  ;;  %9818 = vset.pattern.permute.xlu1 %v16431_v61  ;;  %9847 = vset.pattern.permute.xlu0 %v16432_v43 }
 0x43e   :  { %4771 = vperm.xlu1 %9818, %v12286_v62   ;;  %5098 = vperm.xlu0 %9847, %v12289_v3  }
 0x441   :  { %v12315_v7 = vpop.permute.xlu1 %5393  ;;  %v12317_v47 = vpop.permute.xlu0 %5498 }
 0x442   :  { %16433 = vst [vmem:[#allocation45_spill] sm:$0xff] %v12315_v7  ;;  %16434 = vst [vmem:[#allocation10_spill] sm:$0xff] %v12317_v47  ;;  %9819 = vset.pattern.permute.xlu1 %v16429_v56  ;;  %9849 = vset.pattern.permute.xlu0 %v16435_v59  ;;  %v16487_v47 = vmov 20   ;;  %v4503_v7 = vmax.f32 %v12027_v5, 0.0 }
 0x443   :  { %4876 = vperm.xlu1 %9819, %v12286_v62   ;;  %5308 = vperm.xlu0 %9849, %v12289_v3  }
 0x446   :  { %v12323_v35 = vpop.permute.xlu1 %5603  ;;  %v12325_v63 = vpop.permute.xlu0 %5708 }
 0x447   :  { %16436 = vst [vmem:[#allocation44_spill] sm:$0xff] %v12323_v35  ;;  %16437 = vst [vmem:[#allocation47_spill] sm:$0xff] %v12325_v63  ;;  %9820 = vset.pattern.permute.xlu1 %v16438_v41  ;;  %9851 = vset.pattern.permute.xlu0 %v16439_v17  ;;  %v16466_v63 = vmov 12  }
 0x448   :  { %4981 = vperm.xlu1 %9820, %v12286_v62   ;;  %5518 = vperm.xlu0 %9851, %v12289_v3  }
 0x44b   :  { %v12331_v4 = vpop.permute.xlu1 %5813  ;;  %v12333_v26 = vpop.permute.xlu0 %5918 }
 0x44c   :  { %16440 = vst [vmem:[#allocation12_spill] sm:$0xff] %v12331_v4  ;;  %16441 = vst [vmem:[#allocation46_spill] sm:$0xff] %v12333_v26  ;;  %9821 = vset.pattern.permute.xlu1 %v16432_v43  ;;  %9853 = vset.pattern.permute.xlu0 %v16442_v30  ;;  %v16463_v26 = vmov 23   ;;  %v4500_v4 = vmax.f32 %v12019_v13, 0.0 }
 0x44d   :  { %5086 = vperm.xlu1 %9821, %v12286_v62   ;;  %5728 = vperm.xlu0 %9853, %v12289_v3  }
 0x450   :  { %v12339_v36 = vpop.permute.xlu1 %6023  ;;  %v12341_v31 = vpop.permute.xlu0 %6128 }
 0x451   :  { %16443 = vst [vmem:[#allocation49_spill] sm:$0xff] %v12339_v36  ;;  %16444 = vst [vmem:[#allocation14_spill] sm:$0xff] %v12341_v31  ;;  %9822 = vset.pattern.permute.xlu1 %v16445_v14  ;;  %9855 = vset.pattern.permute.xlu0 %v16446_v46  ;;  %v16456_v31 = vmov 19   ;;  %v16459_v36 = vmov 10  }
 0x452   :  { %5191 = vperm.xlu1 %9822, %v12286_v62   ;;  %5938 = vperm.xlu0 %9855, %v12289_v3  }
 0x455   :  { %v12347_v6 = vpop.permute.xlu1 %6233  ;;  %v12349_v24 = vpop.permute.xlu0 %6338 }
 0x456   :  { %16447 = vst [vmem:[#allocation48_spill] sm:$0xff] %v12347_v6  ;;  %16448 = vst [vmem:[#allocation51_spill] sm:$0xff] %v12349_v24  ;;  %9823 = vset.pattern.permute.xlu1 %v16435_v59  ;;  %9857 = vset.pattern.permute.xlu0 %v16449_v22 }
 0x457   :  { %5296 = vperm.xlu1 %9823, %v12286_v62   ;;  %6148 = vperm.xlu0 %9857, %v12289_v3  }
 0x45a   :  { %v12355_v23 = vpop.permute.xlu1 %6443  ;;  %v12357_v53 = vpop.permute.xlu0 %6548 }
 0x45b   :  { %16450 = vst [vmem:[#allocation16_spill] sm:$0xff] %v12355_v23  ;;  %16451 = vst [vmem:[#allocation50_spill] sm:$0xff] %v12357_v53  ;;  %9824 = vset.pattern.permute.xlu1 %v16452_v2  ;;  %9859 = vset.pattern.permute.xlu0 %v16453_v1 }
 0x45c   :  { %5401 = vperm.xlu1 %9824, %v12286_v62   ;;  %6358 = vperm.xlu0 %9859, %v12289_v3  }
 0x45f   :  { %v12363_v24 = vpop.permute.xlu1 %6653  ;;  %v12365_v6 = vpop.permute.xlu0 %6758 }
 0x460   :  { %16454 = vst [vmem:[#allocation18_spill] sm:$0xff] %v12363_v24  ;;  %16455 = vst [vmem:[#allocation52_spill] sm:$0xff] %v12365_v6  ;;  %9825 = vset.pattern.permute.xlu1 %v16439_v17  ;;  %9861 = vset.pattern.permute.xlu0 %v16456_v31 }
 0x461   :  { %5506 = vperm.xlu1 %9825, %v12286_v62   ;;  %6568 = vperm.xlu0 %9861, %v12289_v3  }
 0x464   :  { %v12371_v53 = vpop.permute.xlu1 %6863  ;;  %v12373_v23 = vpop.permute.xlu0 %6968 }
 0x465   :  { %16457 = vst [vmem:[#allocation19_spill] sm:$0xff] %v12371_v53  ;;  %16458 = vst [vmem:[#allocation20_spill] sm:$0xff] %v12373_v23  ;;  %9826 = vset.pattern.permute.xlu1 %v16459_v36  ;;  %9863 = vset.pattern.permute.xlu0 %v16460_v18 }
 0x466   :  { %5611 = vperm.xlu1 %9826, %v12286_v62   ;;  %6778 = vperm.xlu0 %9863, %v12289_v3  }
 0x469   :  { %v12379_v6 = vpop.permute.xlu1 %7073  ;;  %v12381_v24 = vpop.permute.xlu0 %7178 }
 0x46a   :  { %16461 = vst [vmem:[#allocation7_spill] sm:$0xff] %v12379_v6  ;;  %16462 = vst [vmem:[#allocation9_spill] sm:$0xff] %v12381_v24  ;;  %9827 = vset.pattern.permute.xlu1 %v16442_v30  ;;  %9865 = vset.pattern.permute.xlu0 %v16463_v26  ;;  %v12397_v24 = vadd.f32 %v4500_v4, %v16375_v15 }
 0x46b   :  { %5716 = vperm.xlu1 %9827, %v12286_v62   ;;  %6988 = vperm.xlu0 %9865, %v12289_v3  }
 0x46c   :  { %16467 = vst [vmem:[#allocation15_spill] sm:$0xff] %v12397_v24 }
 0x46e   :  { %v12387_v23 = vpop.permute.xlu0 %4670  ;;  %v12389_v53 = vpop.permute.xlu1 %4553 }
 0x46f   :  { %16464 = vst [vmem:[#allocation11_spill] sm:$0xff] %v12387_v23  ;;  %16465 = vst [vmem:[#allocation13_spill] sm:$0xff] %v12389_v53  ;;  %9828 = vset.pattern.permute.xlu1 %v16466_v63  ;;  %9867 = vset.pattern.permute.xlu0 %v16423_v51  ;;  %v16472_v23 = vmov 14  }
 0x470   :  { %5821 = vperm.xlu1 %9828, %v12286_v62   ;;  %7198 = vperm.xlu0 %9867, %v12289_v3  }
 0x473   :  { %v12399_v6 = vpop.permute.xlu0 %4880  ;;  %v12401_v35 = vpop.permute.xlu1 %4775 }
 0x474   :  { %16468 = vst [vmem:[#allocation17_spill] sm:$0xff] %v12399_v6  ;;  %16469 = vst [vmem:[#allocation21_spill] sm:$0xff] %v12401_v35  ;;  %9829 = vset.pattern.permute.xlu1 %v16446_v46  ;;  %9868 = vset.pattern.permute.xlu0 %v16428_v16  ;;  %v16477_v6 = vmov 16   ;;  %v16482_v35 = vmov 18  }
 0x475   :  { %5926 = vperm.xlu1 %9829, %v12286_v62   ;;  %4558 = vperm.xlu0 %9868, %v12397_v24  }
 0x478   :  { %v12407_v13 = vpop.permute.xlu0 %5090  ;;  %v12409_v53 = vpop.permute.xlu1 %4985 }
 0x479   :  { %16470 = vst [vmem:[#allocation31_spill] sm:$0xff] %v12407_v13  ;;  %16471 = vst [vmem:[#allocation61_spill] sm:$0xff] %v12409_v53  ;;  %9830 = vset.pattern.permute.xlu1 %v16472_v23  ;;  %9870 = vset.pattern.permute.xlu0 %v16431_v61 }
 0x47a   :  { %6031 = vperm.xlu1 %9830, %v12286_v62   ;;  %4779 = vperm.xlu0 %9870, %v12397_v24  }
 0x47d   :  { %v12415_v15 = vpop.permute.xlu0 %5300  ;;  %v12417_v4 = vpop.permute.xlu1 %5195 }
 0x47e   :  { %16473 = vst [vmem:[#allocation62_spill] sm:$0xff] %v12415_v15  ;;  %16474 = vst [vmem:[#allocation63_spill] sm:$0xff] %v12417_v4  ;;  %9831 = vset.pattern.permute.xlu1 %v16449_v22  ;;  %9872 = vset.pattern.permute.xlu0 %v16438_v41 }
 0x47f   :  { %6136 = vperm.xlu1 %9831, %v12286_v62   ;;  %4989 = vperm.xlu0 %9872, %v12397_v24  }
 0x482   :  { %v12423_v13 = vpop.permute.xlu0 %5510  ;;  %v12425_v53 = vpop.permute.xlu1 %5405 }
 0x483   :  { %16475 = vst [vmem:[#allocation64_spill] sm:$0xff] %v12423_v13  ;;  %16476 = vst [vmem:[#allocation65_spill] sm:$0xff] %v12425_v53  ;;  %9832 = vset.pattern.permute.xlu1 %v16477_v6  ;;  %9874 = vset.pattern.permute.xlu0 %v16445_v14 }
 0x484   :  { %6241 = vperm.xlu1 %9832, %v12286_v62   ;;  %5199 = vperm.xlu0 %9874, %v12397_v24  }
 0x487   :  { %v12431_v15 = vpop.permute.xlu0 %5720  ;;  %v12433_v4 = vpop.permute.xlu1 %5615 }
 0x488   :  { %16478 = vst [vmem:[#allocation66_spill] sm:$0xff] %v12431_v15  ;;  %16479 = vst [vmem:[#allocation67_spill] sm:$0xff] %v12433_v4  ;;  %9833 = vset.pattern.permute.xlu1 %v16453_v1  ;;  %9876 = vset.pattern.permute.xlu0 %v16452_v2 }
 0x489   :  { %6346 = vperm.xlu1 %9833, %v12286_v62   ;;  %5409 = vperm.xlu0 %9876, %v12397_v24  }
 0x48c   :  { %v12439_v13 = vpop.permute.xlu0 %5930  ;;  %v12441_v53 = vpop.permute.xlu1 %5825 }
 0x48d   :  { %16480 = vst [vmem:[#allocation68_spill] sm:$0xff] %v12439_v13  ;;  %16481 = vst [vmem:[#allocation69_spill] sm:$0xff] %v12441_v53  ;;  %9834 = vset.pattern.permute.xlu1 %v16482_v35  ;;  %9878 = vset.pattern.permute.xlu0 %v16459_v36 }
 0x48e   :  { %6451 = vperm.xlu1 %9834, %v12286_v62   ;;  %5619 = vperm.xlu0 %9878, %v12397_v24  }
 0x491   :  { %v12447_v15 = vpop.permute.xlu0 %6140  ;;  %v12449_v4 = vpop.permute.xlu1 %6035 }
 0x492   :  { %16483 = vst [vmem:[#allocation70_spill] sm:$0xff] %v12447_v15  ;;  %16484 = vst [vmem:[#allocation71_spill] sm:$0xff] %v12449_v4  ;;  %9835 = vset.pattern.permute.xlu1 %v16456_v31  ;;  %9880 = vset.pattern.permute.xlu0 %v16466_v63 }
 0x493   :  { %6556 = vperm.xlu1 %9835, %v12286_v62   ;;  %5829 = vperm.xlu0 %9880, %v12397_v24  }
 0x496   :  { %v12455_v13 = vpop.permute.xlu0 %6350  ;;  %v12457_v53 = vpop.permute.xlu1 %6245 }
 0x497   :  { %16485 = vst [vmem:[#allocation72_spill] sm:$0xff] %v12455_v13  ;;  %16486 = vst [vmem:[#allocation73_spill] sm:$0xff] %v12457_v53  ;;  %9836 = vset.pattern.permute.xlu1 %v16487_v47  ;;  %9882 = vset.pattern.permute.xlu0 %v16472_v23 }
 0x498   :  { %6661 = vperm.xlu1 %9836, %v12286_v62   ;;  %6039 = vperm.xlu0 %9882, %v12397_v24  }
 0x49b   :  { %v12463_v15 = vpop.permute.xlu0 %6560  ;;  %v12465_v4 = vpop.permute.xlu1 %6455 }
 0x49c   :  { %16488 = vst [vmem:[#allocation74_spill] sm:$0xff] %v12463_v15  ;;  %16489 = vst [vmem:[#allocation75_spill] sm:$0xff] %v12465_v4  ;;  %9837 = vset.pattern.permute.xlu1 %v16460_v18  ;;  %9884 = vset.pattern.permute.xlu0 %v16477_v6 }
 0x49d   :  { %6766 = vperm.xlu1 %9837, %v12286_v62   ;;  %6249 = vperm.xlu0 %9884, %v12397_v24  }
 0x4a0   :  { %v12471_v13 = vpop.permute.xlu0 %6770  ;;  %v12473_v53 = vpop.permute.xlu1 %6665 }
 0x4a1   :  { %16490 = vst [vmem:[#allocation76_spill] sm:$0xff] %v12471_v13  ;;  %16491 = vst [vmem:[#allocation77_spill] sm:$0xff] %v12473_v53  ;;  %9838 = vset.pattern.permute.xlu1 %v16421_v54  ;;  %9886 = vset.pattern.permute.xlu0 %v16482_v35 }
 0x4a2   :  { %6871 = vperm.xlu1 %9838, %v12286_v62   ;;  %6459 = vperm.xlu0 %9886, %v12397_v24  }
 0x4a5   :  { %v12479_v15 = vpop.permute.xlu0 %6980  ;;  %v12481_v4 = vpop.permute.xlu1 %6875 }
 0x4a6   :  { %16492 = vst [vmem:[#allocation78_spill] sm:$0xff] %v12479_v15  ;;  %16493 = vst [vmem:[#allocation79_spill] sm:$0xff] %v12481_v4  ;;  %9839 = vset.pattern.permute.xlu1 %v16463_v26  ;;  %9888 = vset.pattern.permute.xlu0 %v16487_v47 }
 0x4a7   :  { %6976 = vperm.xlu1 %9839, %v12286_v62   ;;  %6669 = vperm.xlu0 %9888, %v12397_v24  }
 0x4aa   :  { %v12487_v13 = vpop.permute.xlu0 %7190  ;;  %v12489_v53 = vpop.permute.xlu1 %7085 }
 0x4ab   :  { %16494 = vst [vmem:[#allocation80_spill] sm:$0xff] %v12487_v13  ;;  %16495 = vst [vmem:[#allocation81_spill] sm:$0xff] %v12489_v53  ;;  %9840 = vset.pattern.permute.xlu1 %v16424_v34  ;;  %9890 = vset.pattern.permute.xlu0 %v16421_v54  ;;  %v12505_v13 = vadd.f32 %v4503_v7, %v16378_v9 }
 0x4ac   :  { %7081 = vperm.xlu1 %9840, %v12286_v62   ;;  %6879 = vperm.xlu0 %9890, %v12397_v24  }
 0x4ad   :  { %16498 = vst [vmem:[#allocation84_spill] sm:$0xff] %v12505_v13 }
 0x4af   :  { %v12495_v15 = vpop.permute.xlu1 %4548  ;;  %v12497_v4 = vpop.permute.xlu0 %4678 }
 0x4b0   :  { %16496 = vst [vmem:[#allocation82_spill] sm:$0xff] %v12495_v15  ;;  %16497 = vst [vmem:[#allocation83_spill] sm:$0xff] %v12497_v4  ;;  %9841 = vset.pattern.permute.xlu1 %v16423_v51  ;;  %9892 = vset.pattern.permute.xlu0 %v16424_v34  ;;  %v4508_v4 = vmax.f32 %v12065_v11, 0.0 }
 0x4b1   :  { %7186 = vperm.xlu1 %9841, %v12286_v62   ;;  %7089 = vperm.xlu0 %9892, %v12397_v24  }
 0x4b4   :  { %v12507_v53 = vpop.permute.xlu1 %4666  ;;  %v12509_v42 = vpop.permute.xlu0 %4888 }
 0x4b5   :  { %16499 = vst [vmem:[#allocation85_spill] sm:$0xff] %v12507_v53  ;;  %16500 = vst [vmem:[#allocation86_spill] sm:$0xff] %v12509_v42  ;;  %9842 = vset.pattern.permute.xlu1 %v16428_v16  ;;  %9895 = vset.pattern.permute.xlu0 %v16427_v8 }
 0x4b6   :  { %4563 = vperm.xlu1 %9842, %v12289_v3   ;;  %4686 = vperm.xlu0 %9895, %v12505_v13  }
 0x4b9   :  { %v12515_v5 = vpop.permute.xlu1 %4771  ;;  %v12517_v15 = vpop.permute.xlu0 %5098 }
 0x4ba   :  { %16501 = vst [vmem:[#allocation87_spill] sm:$0xff] %v12515_v5  ;;  %16502 = vst [vmem:[#allocation88_spill] sm:$0xff] %v12517_v15  ;;  %9844 = vset.pattern.permute.xlu1 %v16431_v61  ;;  %9897 = vset.pattern.permute.xlu0 %v16429_v56  ;;  %v4502_v15 = vmax.f32 %v12031_v58, 0.0 }
 0x4bb   :  { %4783 = vperm.xlu1 %9844, %v12289_v3   ;;  %4896 = vperm.xlu0 %9897, %v12505_v13  }
 0x4be   :  { %v12523_v9 = vpop.permute.xlu1 %4876  ;;  %v12525_v7 = vpop.permute.xlu0 %5308 }
 0x4bf   :  { %16503 = vst [vmem:[#allocation89_spill] sm:$0xff] %v12523_v9  ;;  %16504 = vst [vmem:[#allocation90_spill] sm:$0xff] %v12525_v7  ;;  %9846 = vset.pattern.permute.xlu1 %v16438_v41  ;;  %9899 = vset.pattern.permute.xlu0 %v16432_v43 }
 0x4c0   :  { %4993 = vperm.xlu1 %9846, %v12289_v3   ;;  %5106 = vperm.xlu0 %9899, %v12505_v13  }
 0x4c3   :  { %v12531_v5 = vpop.permute.xlu1 %4981  ;;  %v12533_v53 = vpop.permute.xlu0 %5518 }
 0x4c4   :  { %16505 = vst [vmem:[#allocation91_spill] sm:$0xff] %v12531_v5  ;;  %16506 = vst [vmem:[#allocation92_spill] sm:$0xff] %v12533_v53  ;;  %9848 = vset.pattern.permute.xlu1 %v16445_v14  ;;  %9901 = vset.pattern.permute.xlu0 %v16435_v59 }
 0x4c5   :  { %5203 = vperm.xlu1 %9848, %v12289_v3   ;;  %5316 = vperm.xlu0 %9901, %v12505_v13  }
 0x4c8   :  { %v12539_v9 = vpop.permute.xlu1 %5086  ;;  %v12541_v7 = vpop.permute.xlu0 %5728 }
 0x4c9   :  { %16507 = vst [vmem:[#allocation93_spill] sm:$0xff] %v12539_v9  ;;  %16508 = vst [vmem:[#allocation94_spill] sm:$0xff] %v12541_v7  ;;  %9850 = vset.pattern.permute.xlu1 %v16452_v2  ;;  %9903 = vset.pattern.permute.xlu0 %v16439_v17 }
 0x4ca   :  { %5413 = vperm.xlu1 %9850, %v12289_v3   ;;  %5526 = vperm.xlu0 %9903, %v12505_v13  }
 0x4cd   :  { %v12547_v5 = vpop.permute.xlu1 %5191  ;;  %v12549_v53 = vpop.permute.xlu0 %5938 }
 0x4ce   :  { %16509 = vst [vmem:[#allocation95_spill] sm:$0xff] %v12547_v5  ;;  %16510 = vst [vmem:[#allocation96_spill] sm:$0xff] %v12549_v53  ;;  %9852 = vset.pattern.permute.xlu1 %v16459_v36  ;;  %9905 = vset.pattern.permute.xlu0 %v16442_v30 }
 0x4cf   :  { %5623 = vperm.xlu1 %9852, %v12289_v3   ;;  %5736 = vperm.xlu0 %9905, %v12505_v13  }
 0x4d2   :  { %v12555_v9 = vpop.permute.xlu1 %5296  ;;  %v12557_v7 = vpop.permute.xlu0 %6148 }
 0x4d3   :  { %16511 = vst [vmem:[#allocation97_spill] sm:$0xff] %v12555_v9  ;;  %16512 = vst [vmem:[#allocation98_spill] sm:$0xff] %v12557_v7  ;;  %9854 = vset.pattern.permute.xlu1 %v16466_v63  ;;  %9907 = vset.pattern.permute.xlu0 %v16446_v46 }
 0x4d4   :  { %5833 = vperm.xlu1 %9854, %v12289_v3   ;;  %5946 = vperm.xlu0 %9907, %v12505_v13  }
 0x4d7   :  { %v12563_v5 = vpop.permute.xlu1 %5401  ;;  %v12565_v53 = vpop.permute.xlu0 %6358 }
 0x4d8   :  { %16513 = vst [vmem:[#allocation99_spill] sm:$0xff] %v12563_v5  ;;  %16514 = vst [vmem:[#allocation100_spill] sm:$0xff] %v12565_v53  ;;  %9856 = vset.pattern.permute.xlu1 %v16472_v23  ;;  %9909 = vset.pattern.permute.xlu0 %v16449_v22 }
 0x4d9   :  { %6043 = vperm.xlu1 %9856, %v12289_v3   ;;  %6156 = vperm.xlu0 %9909, %v12505_v13  }
 0x4dc   :  { %v12571_v9 = vpop.permute.xlu1 %5506  ;;  %v12573_v7 = vpop.permute.xlu0 %6568 }
 0x4dd   :  { %16515 = vst [vmem:[#allocation101_spill] sm:$0xff] %v12571_v9  ;;  %16516 = vst [vmem:[#allocation102_spill] sm:$0xff] %v12573_v7  ;;  %9858 = vset.pattern.permute.xlu1 %v16477_v6  ;;  %9911 = vset.pattern.permute.xlu0 %v16453_v1 }
 0x4de   :  { %6253 = vperm.xlu1 %9858, %v12289_v3   ;;  %6366 = vperm.xlu0 %9911, %v12505_v13  }
 0x4e1   :  { %v12579_v5 = vpop.permute.xlu1 %5611  ;;  %v12581_v53 = vpop.permute.xlu0 %6778 }
 0x4e2   :  { %16517 = vst [vmem:[#allocation103_spill] sm:$0xff] %v12579_v5  ;;  %16518 = vst [vmem:[#allocation104_spill] sm:$0xff] %v12581_v53  ;;  %9860 = vset.pattern.permute.xlu1 %v16482_v35  ;;  %9913 = vset.pattern.permute.xlu0 %v16456_v31 }
 0x4e3   :  { %6463 = vperm.xlu1 %9860, %v12289_v3   ;;  %6576 = vperm.xlu0 %9913, %v12505_v13  }
 0x4e6   :  { %v12587_v9 = vpop.permute.xlu1 %5716  ;;  %v12589_v7 = vpop.permute.xlu0 %6988 }
 0x4e7   :  { %16519 = vst [vmem:[#allocation105_spill] sm:$0xff] %v12587_v9  ;;  %16520 = vst [vmem:[#allocation106_spill] sm:$0xff] %v12589_v7  ;;  %9862 = vset.pattern.permute.xlu1 %v16487_v47  ;;  %9915 = vset.pattern.permute.xlu0 %v16460_v18 }
 0x4e8   :  { %6673 = vperm.xlu1 %9862, %v12289_v3   ;;  %6786 = vperm.xlu0 %9915, %v12505_v13  }
 0x4eb   :  { %v12595_v5 = vpop.permute.xlu1 %5821  ;;  %v12597_v53 = vpop.permute.xlu0 %7198 }
 0x4ec   :  { %16521 = vst [vmem:[#allocation107_spill] sm:$0xff] %v12595_v5  ;;  %16522 = vst [vmem:[#allocation108_spill] sm:$0xff] %v12597_v53  ;;  %9864 = vset.pattern.permute.xlu1 %v16421_v54  ;;  %9917 = vset.pattern.permute.xlu0 %v16463_v26  ;;  %v12613_v5 = vadd.f32 %v4502_v15, %v16380_v20 }
 0x4ed   :  { %6883 = vperm.xlu1 %9864, %v12289_v3   ;;  %6996 = vperm.xlu0 %9917, %v12505_v13  }
 0x4ee   :  { %16525 = vst [vmem:[#allocation111_spill] sm:$0xff] %v12613_v5 }
 0x4f0   :  { %v12603_v9 = vpop.permute.xlu1 %5926  ;;  %v12605_v7 = vpop.permute.xlu0 %4558 }
 0x4f1   :  { %16523 = vst [vmem:[#allocation109_spill] sm:$0xff] %v12603_v9  ;;  %16524 = vst [vmem:[#allocation110_spill] sm:$0xff] %v12605_v7  ;;  %9866 = vset.pattern.permute.xlu1 %v16424_v34  ;;  %9919 = vset.pattern.permute.xlu0 %v16423_v51 }
 0x4f2   :  { %7093 = vperm.xlu1 %9866, %v12289_v3   ;;  %7206 = vperm.xlu0 %9919, %v12505_v13  }
 0x4f5   :  { %v12615_v53 = vpop.permute.xlu1 %6031  ;;  %v12617_v42 = vpop.permute.xlu0 %4779 }
 0x4f6   :  { %16526 = vst [vmem:[#allocation112_spill] sm:$0xff] %v12615_v53  ;;  %16527 = vst [vmem:[#allocation113_spill] sm:$0xff] %v12617_v42  ;;  %9869 = vset.pattern.permute.xlu1 %v16427_v8  ;;  %9920 = vset.pattern.permute.xlu0 %v16428_v16 }
 0x4f7   :  { %4674 = vperm.xlu1 %9869, %v12397_v24   ;;  %4568 = vperm.xlu0 %9920, %v12613_v5  }
 0x4fa   :  { %v12623_v58 = vpop.permute.xlu1 %6136  ;;  %v12625_v9 = vpop.permute.xlu0 %4989 }
 0x4fb   :  { %16528 = vst [vmem:[#allocation114_spill] sm:$0xff] %v12623_v58  ;;  %16529 = vst [vmem:[#allocation115_spill] sm:$0xff] %v12625_v9  ;;  %9871 = vset.pattern.permute.xlu1 %v16429_v56  ;;  %9922 = vset.pattern.permute.xlu0 %v16431_v61  ;;  %v4505_v9 = vmax.f32 %v12037_v40, 0.0 }
 0x4fc   :  { %4884 = vperm.xlu1 %9871, %v12397_v24   ;;  %4787 = vperm.xlu0 %9922, %v12613_v5  }
 0x4ff   :  { %v12631_v20 = vpop.permute.xlu1 %6241  ;;  %v12633_v15 = vpop.permute.xlu0 %5199 }
 0x500   :  { %16530 = vst [vmem:[#allocation116_spill] sm:$0xff] %v12631_v20  ;;  %16531 = vst [vmem:[#allocation117_spill] sm:$0xff] %v12633_v15  ;;  %9873 = vset.pattern.permute.xlu1 %v16432_v43  ;;  %9924 = vset.pattern.permute.xlu0 %v16438_v41 }
 0x501   :  { %5094 = vperm.xlu1 %9873, %v12397_v24   ;;  %4997 = vperm.xlu0 %9924, %v12613_v5  }
 0x504   :  { %v12639_v58 = vpop.permute.xlu1 %6346  ;;  %v12641_v53 = vpop.permute.xlu0 %5409 }
 0x505   :  { %16532 = vst [vmem:[#allocation118_spill] sm:$0xff] %v12639_v58  ;;  %16533 = vst [vmem:[#allocation119_spill] sm:$0xff] %v12641_v53  ;;  %9875 = vset.pattern.permute.xlu1 %v16435_v59  ;;  %9926 = vset.pattern.permute.xlu0 %v16445_v14 }
 0x506   :  { %5304 = vperm.xlu1 %9875, %v12397_v24   ;;  %5207 = vperm.xlu0 %9926, %v12613_v5  }
 0x509   :  { %v12647_v20 = vpop.permute.xlu1 %6451  ;;  %v12649_v15 = vpop.permute.xlu0 %5619 }
 0x50a   :  { %16534 = vst [vmem:[#allocation120_spill] sm:$0xff] %v12647_v20  ;;  %16535 = vst [vmem:[#allocation121_spill] sm:$0xff] %v12649_v15  ;;  %9877 = vset.pattern.permute.xlu1 %v16439_v17  ;;  %9928 = vset.pattern.permute.xlu0 %v16452_v2 }
 0x50b   :  { %5514 = vperm.xlu1 %9877, %v12397_v24   ;;  %5417 = vperm.xlu0 %9928, %v12613_v5  }
 0x50e   :  { %v12655_v58 = vpop.permute.xlu1 %6556  ;;  %v12657_v53 = vpop.permute.xlu0 %5829 }
 0x50f   :  { %16536 = vst [vmem:[#allocation122_spill] sm:$0xff] %v12655_v58  ;;  %16537 = vst [vmem:[#allocation123_spill] sm:$0xff] %v12657_v53  ;;  %9879 = vset.pattern.permute.xlu1 %v16442_v30  ;;  %9930 = vset.pattern.permute.xlu0 %v16459_v36 }
 0x510   :  { %5724 = vperm.xlu1 %9879, %v12397_v24   ;;  %5627 = vperm.xlu0 %9930, %v12613_v5  }
 0x513   :  { %v12663_v20 = vpop.permute.xlu1 %6661  ;;  %v12665_v15 = vpop.permute.xlu0 %6039 }
 0x514   :  { %16538 = vst [vmem:[#allocation124_spill] sm:$0xff] %v12663_v20  ;;  %16539 = vst [vmem:[#allocation125_spill] sm:$0xff] %v12665_v15  ;;  %9881 = vset.pattern.permute.xlu1 %v16446_v46  ;;  %9932 = vset.pattern.permute.xlu0 %v16466_v63 }
 0x515   :  { %5934 = vperm.xlu1 %9881, %v12397_v24   ;;  %5837 = vperm.xlu0 %9932, %v12613_v5  }
 0x518   :  { %v12671_v58 = vpop.permute.xlu1 %6766  ;;  %v12673_v53 = vpop.permute.xlu0 %6249 }
 0x519   :  { %16540 = vst [vmem:[#allocation126_spill] sm:$0xff] %v12671_v58  ;;  %16541 = vst [vmem:[#allocation127_spill] sm:$0xff] %v12673_v53  ;;  %9883 = vset.pattern.permute.xlu1 %v16449_v22  ;;  %9934 = vset.pattern.permute.xlu0 %v16472_v23 }
 0x51a   :  { %6144 = vperm.xlu1 %9883, %v12397_v24   ;;  %6047 = vperm.xlu0 %9934, %v12613_v5  }
 0x51d   :  { %v12679_v20 = vpop.permute.xlu1 %6871  ;;  %v12681_v15 = vpop.permute.xlu0 %6459 }
 0x51e   :  { %16542 = vst [vmem:[#allocation128_spill] sm:$0xff] %v12679_v20  ;;  %16543 = vst [vmem:[#allocation129_spill] sm:$0xff] %v12681_v15  ;;  %9885 = vset.pattern.permute.xlu1 %v16453_v1  ;;  %9936 = vset.pattern.permute.xlu0 %v16477_v6 }
 0x51f   :  { %6354 = vperm.xlu1 %9885, %v12397_v24   ;;  %6257 = vperm.xlu0 %9936, %v12613_v5  }
 0x522   :  { %v12687_v58 = vpop.permute.xlu1 %6976  ;;  %v12689_v53 = vpop.permute.xlu0 %6669 }
 0x523   :  { %16544 = vst [vmem:[#allocation130_spill] sm:$0xff] %v12687_v58  ;;  %16545 = vst [vmem:[#allocation131_spill] sm:$0xff] %v12689_v53  ;;  %9887 = vset.pattern.permute.xlu1 %v16456_v31  ;;  %9938 = vset.pattern.permute.xlu0 %v16482_v35 }
 0x524   :  { %6564 = vperm.xlu1 %9887, %v12397_v24   ;;  %6467 = vperm.xlu0 %9938, %v12613_v5  }
 0x527   :  { %v12695_v20 = vpop.permute.xlu1 %7081  ;;  %v12697_v15 = vpop.permute.xlu0 %6879 }
 0x528   :  { %16546 = vst [vmem:[#allocation132_spill] sm:$0xff] %v12695_v20  ;;  %16547 = vst [vmem:[#allocation133_spill] sm:$0xff] %v12697_v15  ;;  %9889 = vset.pattern.permute.xlu1 %v16460_v18  ;;  %9940 = vset.pattern.permute.xlu0 %v16487_v47 }
 0x529   :  { %6774 = vperm.xlu1 %9889, %v12397_v24   ;;  %6677 = vperm.xlu0 %9940, %v12613_v5  }
 0x52c   :  { %v12703_v58 = vpop.permute.xlu1 %7186  ;;  %v12705_v53 = vpop.permute.xlu0 %7089 }
 0x52d   :  { %16548 = vst [vmem:[#allocation134_spill] sm:$0xff] %v12703_v58  ;;  %16549 = vst [vmem:[#allocation135_spill] sm:$0xff] %v12705_v53  ;;  %9891 = vset.pattern.permute.xlu1 %v16463_v26  ;;  %9942 = vset.pattern.permute.xlu0 %v16421_v54  ;;  %v12721_v58 = vadd.f32 %v4505_v9, %v16382_v60 }
 0x52e   :  { %6984 = vperm.xlu1 %9891, %v12397_v24   ;;  %6887 = vperm.xlu0 %9942, %v12613_v5  }
 0x531   :  { %v12711_v20 = vpop.permute.xlu1 %4563  ;;  %v12713_v15 = vpop.permute.xlu0 %4686 }
 0x532   :  { %16550 = vst [vmem:[#allocation136_spill] sm:$0xff] %v12713_v15  ;;  %9893 = vset.pattern.permute.xlu1 %v16423_v51  ;;  %9944 = vset.pattern.permute.xlu0 %v16424_v34 }
 0x533   :  { %7194 = vperm.xlu1 %9893, %v12397_v24   ;;  %7097 = vperm.xlu0 %9944, %v12613_v5  }
 0x536   :  { %v12723_v53 = vpop.permute.xlu1 %4783  ;;  %v12725_v42 = vpop.permute.xlu0 %4896 }
 0x537   :  { %16551 = vst [vmem:[#allocation137_spill] sm:$0xff] %v12723_v53  ;;  %16552 = vst [vmem:[#allocation138_spill] sm:$0xff] %v12725_v42  ;;  %9894 = vset.pattern.permute.xlu1 %v16428_v16  ;;  %9947 = vset.pattern.permute.xlu0 %v16427_v8 }
 0x538   :  { %4573 = vperm.xlu1 %9894, %v12505_v13   ;;  %4710 = vperm.xlu0 %9947, %v12721_v58  }
 0x53b   :  { %v12731_v40 = vpop.permute.xlu1 %4993  ;;  %v12733_v7 = vpop.permute.xlu0 %5106 }
 0x53c   :  { %16553 = vst [vmem:[#allocation139_spill] sm:$0xff] %v12731_v40  ;;  %16554 = vst [vmem:[#allocation140_spill] sm:$0xff] %v12733_v7  ;;  %9896 = vset.pattern.permute.xlu1 %v16431_v61  ;;  %9949 = vset.pattern.permute.xlu0 %v16429_v56  ;;  %v4504_v40 = vmax.f32 %v12043_v49, 0.0 }
 0x53d   :  { %4791 = vperm.xlu1 %9896, %v12505_v13   ;;  %4920 = vperm.xlu0 %9949, %v12721_v58  }
 0x540   :  { %v12739_v60 = vpop.permute.xlu1 %5203  ;;  %v12741_v9 = vpop.permute.xlu0 %5316 }
 0x541   :  { %16555 = vst [vmem:[#allocation141_spill] sm:$0xff] %v12739_v60  ;;  %16556 = vst [vmem:[#allocation142_spill] sm:$0xff] %v12741_v9  ;;  %9898 = vset.pattern.permute.xlu1 %v16438_v41  ;;  %9951 = vset.pattern.permute.xlu0 %v16432_v43 }
 0x542   :  { %5001 = vperm.xlu1 %9898, %v12505_v13   ;;  %5130 = vperm.xlu0 %9951, %v12721_v58  }
 0x545   :  { %v12747_v7 = vpop.permute.xlu1 %5413  ;;  %v12749_v42 = vpop.permute.xlu0 %5526 }
 0x546   :  { %16557 = vst [vmem:[#allocation143_spill] sm:$0xff] %v12747_v7  ;;  %16558 = vst [vmem:[#allocation144_spill] sm:$0xff] %v12749_v42  ;;  %9900 = vset.pattern.permute.xlu1 %v16445_v14  ;;  %9953 = vset.pattern.permute.xlu0 %v16435_v59 }
 0x547   :  { %5211 = vperm.xlu1 %9900, %v12505_v13   ;;  %5340 = vperm.xlu0 %9953, %v12721_v58  }
 0x54a   :  { %v12755_v9 = vpop.permute.xlu1 %5623  ;;  %v12757_v60 = vpop.permute.xlu0 %5736 }
 0x54b   :  { %16559 = vst [vmem:[#allocation145_spill] sm:$0xff] %v12755_v9  ;;  %16560 = vst [vmem:[#allocation146_spill] sm:$0xff] %v12757_v60  ;;  %9902 = vset.pattern.permute.xlu1 %v16452_v2  ;;  %9955 = vset.pattern.permute.xlu0 %v16439_v17 }
 0x54c   :  { %5421 = vperm.xlu1 %9902, %v12505_v13   ;;  %5550 = vperm.xlu0 %9955, %v12721_v58  }
 0x54f   :  { %v12763_v42 = vpop.permute.xlu1 %5833  ;;  %v12765_v7 = vpop.permute.xlu0 %5946 }
 0x550   :  { %16561 = vst [vmem:[#allocation147_spill] sm:$0xff] %v12763_v42  ;;  %16562 = vst [vmem:[#allocation148_spill] sm:$0xff] %v12765_v7  ;;  %9904 = vset.pattern.permute.xlu1 %v16459_v36  ;;  %9957 = vset.pattern.permute.xlu0 %v16442_v30 }
 0x551   :  { %5631 = vperm.xlu1 %9904, %v12505_v13   ;;  %5760 = vperm.xlu0 %9957, %v12721_v58  }
 0x554   :  { %v12771_v60 = vpop.permute.xlu1 %6043  ;;  %v12773_v9 = vpop.permute.xlu0 %6156 }
 0x555   :  { %16563 = vst [vmem:[#allocation149_spill] sm:$0xff] %v12771_v60  ;;  %16564 = vst [vmem:[#allocation150_spill] sm:$0xff] %v12773_v9  ;;  %9906 = vset.pattern.permute.xlu1 %v16466_v63  ;;  %9959 = vset.pattern.permute.xlu0 %v16446_v46 }
 0x556   :  { %5841 = vperm.xlu1 %9906, %v12505_v13   ;;  %5970 = vperm.xlu0 %9959, %v12721_v58  }
 0x559   :  { %v12779_v7 = vpop.permute.xlu1 %6253  ;;  %v12781_v42 = vpop.permute.xlu0 %6366 }
 0x55a   :  { %16565 = vst [vmem:[#allocation151_spill] sm:$0xff] %v12779_v7  ;;  %16566 = vst [vmem:[#allocation152_spill] sm:$0xff] %v12781_v42  ;;  %9908 = vset.pattern.permute.xlu1 %v16472_v23  ;;  %9961 = vset.pattern.permute.xlu0 %v16449_v22 }
 0x55b   :  { %6051 = vperm.xlu1 %9908, %v12505_v13   ;;  %6180 = vperm.xlu0 %9961, %v12721_v58  }
 0x55e   :  { %v12787_v9 = vpop.permute.xlu1 %6463  ;;  %v12789_v60 = vpop.permute.xlu0 %6576 }
 0x55f   :  { %16567 = vst [vmem:[#allocation153_spill] sm:$0xff] %v12787_v9  ;;  %16568 = vst [vmem:[#allocation154_spill] sm:$0xff] %v12789_v60  ;;  %9910 = vset.pattern.permute.xlu1 %v16477_v6  ;;  %9963 = vset.pattern.permute.xlu0 %v16453_v1 }
 0x560   :  { %6261 = vperm.xlu1 %9910, %v12505_v13   ;;  %6390 = vperm.xlu0 %9963, %v12721_v58  }
 0x563   :  { %v12795_v42 = vpop.permute.xlu1 %6673  ;;  %v12797_v7 = vpop.permute.xlu0 %6786 }
 0x564   :  { %16569 = vst [vmem:[#allocation155_spill] sm:$0xff] %v12795_v42  ;;  %16570 = vst [vmem:[#allocation156_spill] sm:$0xff] %v12797_v7  ;;  %9912 = vset.pattern.permute.xlu1 %v16482_v35  ;;  %9965 = vset.pattern.permute.xlu0 %v16456_v31 }
 0x565   :  { %6471 = vperm.xlu1 %9912, %v12505_v13   ;;  %6600 = vperm.xlu0 %9965, %v12721_v58  }
 0x568   :  { %v12803_v60 = vpop.permute.xlu1 %6883  ;;  %v12805_v9 = vpop.permute.xlu0 %6996 }
 0x569   :  { %16571 = vst [vmem:[#allocation157_spill] sm:$0xff] %v12803_v60  ;;  %16572 = vst [vmem:[#allocation158_spill] sm:$0xff] %v12805_v9  ;;  %9914 = vset.pattern.permute.xlu1 %v16487_v47  ;;  %9967 = vset.pattern.permute.xlu0 %v16460_v18 }
 0x56a   :  { %6681 = vperm.xlu1 %9914, %v12505_v13   ;;  %6810 = vperm.xlu0 %9967, %v12721_v58  }
 0x56d   :  { %v12811_v7 = vpop.permute.xlu1 %7093  ;;  %v12813_v42 = vpop.permute.xlu0 %7206 }
 0x56e   :  { %16573 = vst [vmem:[#allocation159_spill] sm:$0xff] %v12811_v7  ;;  %16574 = vst [vmem:[#allocation160_spill] sm:$0xff] %v12813_v42  ;;  %9916 = vset.pattern.permute.xlu1 %v16421_v54  ;;  %9969 = vset.pattern.permute.xlu0 %v16463_v26  ;;  %v12829_v42 = vadd.f32 %v4504_v40, %v16383_v10 }
 0x56f   :  { %6891 = vperm.xlu1 %9916, %v12505_v13   ;;  %7020 = vperm.xlu0 %9969, %v12721_v58  }
 0x572   :  { %v12819_v9 = vpop.permute.xlu1 %4674  ;;  %v12821_v60 = vpop.permute.xlu0 %4568 }
 0x573   :  { %16575 = vst [vmem:[#allocation161_spill] sm:$0xff] %v12819_v9  ;;  %16576 = vst [vmem:[#allocation162_spill] sm:$0xff] %v12821_v60  ;;  %9918 = vset.pattern.permute.xlu1 %v16424_v34  ;;  %9971 = vset.pattern.permute.xlu0 %v16423_v51 }
 0x574   :  { %7101 = vperm.xlu1 %9918, %v12505_v13   ;;  %7230 = vperm.xlu0 %9971, %v12721_v58  }
 0x577   :  { %v12831_v7 = vpop.permute.xlu1 %4884  ;;  %v12833_v15 = vpop.permute.xlu0 %4787 }
 0x578   :  { %16577 = vst [vmem:[#allocation163_spill] sm:$0xff] %v12831_v7  ;;  %16578 = vst [vmem:[#allocation164_spill] sm:$0xff] %v12833_v15  ;;  %9921 = vset.pattern.permute.xlu1 %v16427_v8  ;;  %9972 = vset.pattern.permute.xlu0 %v16428_v16 }
 0x579   :  { %4682 = vperm.xlu1 %9921, %v12613_v5   ;;  %4594 = vperm.xlu0 %9972, %v12829_v42  }
 0x57c   :  { %v12839_v49 = vpop.permute.xlu1 %5094  ;;  %v12841_v60 = vpop.permute.xlu0 %4997 }
 0x57d   :  { %16579 = vst [vmem:[#allocation165_spill] sm:$0xff] %v12839_v49  ;;  %16580 = vst [vmem:[#allocation166_spill] sm:$0xff] %v12841_v60  ;;  %9923 = vset.pattern.permute.xlu1 %v16429_v56  ;;  %9974 = vset.pattern.permute.xlu0 %v16431_v61  ;;  %v4507_v49 = vmax.f32 %v12047_v19, 0.0 }
 0x57e   :  { %4892 = vperm.xlu1 %9923, %v12613_v5   ;;  %4811 = vperm.xlu0 %9974, %v12829_v42  }
 0x581   :  { %v12847_v10 = vpop.permute.xlu1 %5304  ;;  %v12849_v40 = vpop.permute.xlu0 %5207 }
 0x582   :  { %16581 = vst [vmem:[#allocation167_spill] sm:$0xff] %v12847_v10  ;;  %16582 = vst [vmem:[#allocation168_spill] sm:$0xff] %v12849_v40  ;;  %9925 = vset.pattern.permute.xlu1 %v16432_v43  ;;  %9976 = vset.pattern.permute.xlu0 %v16438_v41 }
 0x583   :  { %5102 = vperm.xlu1 %9925, %v12613_v5   ;;  %5021 = vperm.xlu0 %9976, %v12829_v42  }
 0x586   :  { %v12855_v60 = vpop.permute.xlu1 %5514  ;;  %v12857_v15 = vpop.permute.xlu0 %5417 }
 0x587   :  { %16583 = vst [vmem:[#allocation169_spill] sm:$0xff] %v12855_v60  ;;  %16584 = vst [vmem:[#allocation170_spill] sm:$0xff] %v12857_v15  ;;  %9927 = vset.pattern.permute.xlu1 %v16435_v59  ;;  %9978 = vset.pattern.permute.xlu0 %v16445_v14 }
 0x588   :  { %5312 = vperm.xlu1 %9927, %v12613_v5   ;;  %5231 = vperm.xlu0 %9978, %v12829_v42  }
 0x58b   :  { %v12863_v40 = vpop.permute.xlu1 %5724  ;;  %v12865_v10 = vpop.permute.xlu0 %5627 }
 0x58c   :  { %16585 = vst [vmem:[#allocation171_spill] sm:$0xff] %v12863_v40  ;;  %16586 = vst [vmem:[#allocation172_spill] sm:$0xff] %v12865_v10  ;;  %9929 = vset.pattern.permute.xlu1 %v16439_v17  ;;  %9980 = vset.pattern.permute.xlu0 %v16452_v2 }
 0x58d   :  { %5522 = vperm.xlu1 %9929, %v12613_v5   ;;  %5441 = vperm.xlu0 %9980, %v12829_v42  }
 0x590   :  { %v12871_v15 = vpop.permute.xlu1 %5934  ;;  %v12873_v60 = vpop.permute.xlu0 %5837 }
 0x591   :  { %16587 = vst [vmem:[#allocation173_spill] sm:$0xff] %v12871_v15  ;;  %16588 = vst [vmem:[#allocation174_spill] sm:$0xff] %v12873_v60  ;;  %9931 = vset.pattern.permute.xlu1 %v16442_v30  ;;  %9982 = vset.pattern.permute.xlu0 %v16459_v36 }
 0x592   :  { %5732 = vperm.xlu1 %9931, %v12613_v5   ;;  %5651 = vperm.xlu0 %9982, %v12829_v42  }
 0x595   :  { %v12879_v10 = vpop.permute.xlu1 %6144  ;;  %v12881_v40 = vpop.permute.xlu0 %6047 }
 0x596   :  { %16589 = vst [vmem:[#allocation175_spill] sm:$0xff] %v12879_v10  ;;  %16590 = vst [vmem:[#allocation176_spill] sm:$0xff] %v12881_v40  ;;  %9933 = vset.pattern.permute.xlu1 %v16446_v46  ;;  %9984 = vset.pattern.permute.xlu0 %v16466_v63 }
 0x597   :  { %5942 = vperm.xlu1 %9933, %v12613_v5   ;;  %5861 = vperm.xlu0 %9984, %v12829_v42  }
 0x59a   :  { %v12887_v60 = vpop.permute.xlu1 %6354  ;;  %v12889_v15 = vpop.permute.xlu0 %6257 }
 0x59b   :  { %16591 = vst [vmem:[#allocation177_spill] sm:$0xff] %v12887_v60  ;;  %16592 = vst [vmem:[#allocation178_spill] sm:$0xff] %v12889_v15  ;;  %9935 = vset.pattern.permute.xlu1 %v16449_v22  ;;  %9986 = vset.pattern.permute.xlu0 %v16472_v23 }
 0x59c   :  { %6152 = vperm.xlu1 %9935, %v12613_v5   ;;  %6071 = vperm.xlu0 %9986, %v12829_v42  }
 0x59f   :  { %v12895_v40 = vpop.permute.xlu1 %6564  ;;  %v12897_v10 = vpop.permute.xlu0 %6467 }
 0x5a0   :  { %16593 = vst [vmem:[#allocation179_spill] sm:$0xff] %v12895_v40  ;;  %16594 = vst [vmem:[#allocation180_spill] sm:$0xff] %v12897_v10  ;;  %9937 = vset.pattern.permute.xlu1 %v16453_v1  ;;  %9988 = vset.pattern.permute.xlu0 %v16477_v6 }
 0x5a1   :  { %6362 = vperm.xlu1 %9937, %v12613_v5   ;;  %6281 = vperm.xlu0 %9988, %v12829_v42  }
 0x5a4   :  { %v12903_v15 = vpop.permute.xlu1 %6774  ;;  %v12905_v60 = vpop.permute.xlu0 %6677 }
 0x5a5   :  { %16595 = vst [vmem:[#allocation181_spill] sm:$0xff] %v12903_v15  ;;  %16596 = vst [vmem:[#allocation182_spill] sm:$0xff] %v12905_v60  ;;  %9939 = vset.pattern.permute.xlu1 %v16456_v31  ;;  %9990 = vset.pattern.permute.xlu0 %v16482_v35 }
 0x5a6   :  { %6572 = vperm.xlu1 %9939, %v12613_v5   ;;  %6491 = vperm.xlu0 %9990, %v12829_v42  }
 0x5a9   :  { %v12911_v10 = vpop.permute.xlu1 %6984  ;;  %v12913_v40 = vpop.permute.xlu0 %6887 }
 0x5aa   :  { %16597 = vst [vmem:[#allocation183_spill] sm:$0xff] %v12911_v10  ;;  %16598 = vst [vmem:[#allocation184_spill] sm:$0xff] %v12913_v40  ;;  %9941 = vset.pattern.permute.xlu1 %v16460_v18  ;;  %9992 = vset.pattern.permute.xlu0 %v16487_v47 }
 0x5ab   :  { %6782 = vperm.xlu1 %9941, %v12613_v5   ;;  %6701 = vperm.xlu0 %9992, %v12829_v42  }
 0x5ae   :  { %v12919_v60 = vpop.permute.xlu1 %7194  ;;  %v12921_v15 = vpop.permute.xlu0 %7097 }
 0x5af   :  { %16599 = vst [vmem:[#allocation185_spill] sm:$0xff] %v12919_v60  ;;  %16600 = vst [vmem:[#allocation186_spill] sm:$0xff] %v12921_v15  ;;  %9943 = vset.pattern.permute.xlu1 %v16463_v26  ;;  %9994 = vset.pattern.permute.xlu0 %v16421_v54  ;;  %v12937_v15 = vadd.f32 %v4507_v49, %v16384_v25 }
 0x5b0   :  { %6992 = vperm.xlu1 %9943, %v12613_v5   ;;  %6911 = vperm.xlu0 %9994, %v12829_v42  }
 0x5b3   :  { %v12927_v40 = vpop.permute.xlu1 %4573  ;;  %v12929_v10 = vpop.permute.xlu0 %4710 }
 0x5b4   :  { %16601 = vst [vmem:[#allocation187_spill] sm:$0xff] %v12927_v40  ;;  %9945 = vset.pattern.permute.xlu1 %v16423_v51  ;;  %9996 = vset.pattern.permute.xlu0 %v16424_v34 }
 0x5b5   :  { %7202 = vperm.xlu1 %9945, %v12613_v5   ;;  %7121 = vperm.xlu0 %9996, %v12829_v42  }
 0x5b8   :  { %v12939_v60 = vpop.permute.xlu1 %4791  ;;  %v12941_v7 = vpop.permute.xlu0 %4920 }
 0x5b9   :  { %16602 = vst [vmem:[#allocation188_spill] sm:$0xff] %v12939_v60  ;;  %9946 = vset.pattern.permute.xlu1 %v16428_v16  ;;  %10001 = vset.pattern.permute.xlu0 %v16427_v8 }
 0x5ba   :  { %4599 = vperm.xlu1 %9946, %v12721_v58   ;;  %4718 = vperm.xlu0 %10001, %v12937_v15  }
 0x5bd   :  { %v12947_v19 = vpop.permute.xlu1 %5001  ;;  %v12949_v9 = vpop.permute.xlu0 %5130 }
 0x5be   :  { %16603 = vst [vmem:[#allocation189_spill] sm:$0xff] %v12947_v19  ;;  %16604 = vst [vmem:[#allocation190_spill] sm:$0xff] %v12949_v9  ;;  %9948 = vset.pattern.permute.xlu1 %v16431_v61  ;;  %10003 = vset.pattern.permute.xlu0 %v16429_v56 }
 0x5bf   :  { %4815 = vperm.xlu1 %9948, %v12721_v58   ;;  %4928 = vperm.xlu0 %10003, %v12937_v15  }
 0x5c2   :  { %v12955_v25 = vpop.permute.xlu1 %5211  ;;  %v12957_v49 = vpop.permute.xlu0 %5340 }
 0x5c3   :  { %16605 = vst [vmem:[#allocation191_spill] sm:$0xff] %v12955_v25  ;;  %16606 = vst [vmem:[#allocation192_spill] sm:$0xff] %v12957_v49  ;;  %9950 = vset.pattern.permute.xlu1 %v16438_v41  ;;  %10005 = vset.pattern.permute.xlu0 %v16432_v43  ;;  %v4506_v49 = vmax.f32 %v12055_v33, 0.0 }
 0x5c4   :  { %5025 = vperm.xlu1 %9950, %v12721_v58   ;;  %5138 = vperm.xlu0 %10005, %v12937_v15  }
 0x5c7   :  { %v12963_v5 = vpop.permute.xlu1 %5421  ;;  %v12965_v19 = vpop.permute.xlu0 %5550 }
 0x5c8   :  { %16607 = vst [vmem:[#allocation193_spill] sm:$0xff] %v12963_v5  ;;  %16608 = vst [vmem:[#allocation194_spill] sm:$0xff] %v12965_v19  ;;  %9952 = vset.pattern.permute.xlu1 %v16445_v14  ;;  %10007 = vset.pattern.permute.xlu0 %v16435_v59 }
 0x5c9   :  { %5235 = vperm.xlu1 %9952, %v12721_v58   ;;  %5348 = vperm.xlu0 %10007, %v12937_v15  }
 0x5cc   :  { %v12971_v25 = vpop.permute.xlu1 %5631  ;;  %v12973_v60 = vpop.permute.xlu0 %5760 }
 0x5cd   :  { %16609 = vst [vmem:[#allocation195_spill] sm:$0xff] %v12971_v25  ;;  %16610 = vst [vmem:[#allocation196_spill] sm:$0xff] %v12973_v60  ;;  %9954 = vset.pattern.permute.xlu1 %v16452_v2  ;;  %10009 = vset.pattern.permute.xlu0 %v16439_v17 }
 0x5ce   :  { %5445 = vperm.xlu1 %9954, %v12721_v58   ;;  %5558 = vperm.xlu0 %10009, %v12937_v15  }
 0x5d1   :  { %v12979_v5 = vpop.permute.xlu1 %5841  ;;  %v12981_v19 = vpop.permute.xlu0 %5970 }
 0x5d2   :  { %16611 = vst [vmem:[#allocation197_spill] sm:$0xff] %v12979_v5  ;;  %16612 = vst [vmem:[#allocation198_spill] sm:$0xff] %v12981_v19  ;;  %9956 = vset.pattern.permute.xlu1 %v16459_v36  ;;  %10011 = vset.pattern.permute.xlu0 %v16442_v30 }
 0x5d3   :  { %5655 = vperm.xlu1 %9956, %v12721_v58   ;;  %5768 = vperm.xlu0 %10011, %v12937_v15  }
 0x5d6   :  { %v12987_v25 = vpop.permute.xlu1 %6051  ;;  %v12989_v60 = vpop.permute.xlu0 %6180 }
 0x5d7   :  { %16613 = vst [vmem:[#allocation199_spill] sm:$0xff] %v12987_v25  ;;  %16614 = vst [vmem:[#allocation200_spill] sm:$0xff] %v12989_v60  ;;  %9958 = vset.pattern.permute.xlu1 %v16466_v63  ;;  %10013 = vset.pattern.permute.xlu0 %v16446_v46 }
 0x5d8   :  { %5865 = vperm.xlu1 %9958, %v12721_v58   ;;  %5978 = vperm.xlu0 %10013, %v12937_v15  }
 0x5db   :  { %v12995_v5 = vpop.permute.xlu1 %6261  ;;  %v12997_v19 = vpop.permute.xlu0 %6390 }
 0x5dc   :  { %16615 = vst [vmem:[#allocation201_spill] sm:$0xff] %v12995_v5  ;;  %16616 = vst [vmem:[#allocation202_spill] sm:$0xff] %v12997_v19  ;;  %9960 = vset.pattern.permute.xlu1 %v16472_v23  ;;  %10015 = vset.pattern.permute.xlu0 %v16449_v22 }
 0x5dd   :  { %6075 = vperm.xlu1 %9960, %v12721_v58   ;;  %6188 = vperm.xlu0 %10015, %v12937_v15  }
 0x5e0   :  { %v13003_v25 = vpop.permute.xlu1 %6471  ;;  %v13005_v60 = vpop.permute.xlu0 %6600 }
 0x5e1   :  { %16617 = vst [vmem:[#allocation203_spill] sm:$0xff] %v13003_v25  ;;  %16618 = vst [vmem:[#allocation204_spill] sm:$0xff] %v13005_v60  ;;  %9962 = vset.pattern.permute.xlu1 %v16477_v6  ;;  %10017 = vset.pattern.permute.xlu0 %v16453_v1 }
 0x5e2   :  { %6285 = vperm.xlu1 %9962, %v12721_v58   ;;  %6398 = vperm.xlu0 %10017, %v12937_v15  }
 0x5e5   :  { %v13011_v5 = vpop.permute.xlu1 %6681  ;;  %v13013_v19 = vpop.permute.xlu0 %6810 }
 0x5e6   :  { %16619 = vst [vmem:[#allocation205_spill] sm:$0xff] %v13011_v5  ;;  %16620 = vst [vmem:[#allocation206_spill] sm:$0xff] %v13013_v19  ;;  %9964 = vset.pattern.permute.xlu1 %v16482_v35  ;;  %10019 = vset.pattern.permute.xlu0 %v16456_v31 }
 0x5e7   :  { %6495 = vperm.xlu1 %9964, %v12721_v58   ;;  %6608 = vperm.xlu0 %10019, %v12937_v15  }
 0x5ea   :  { %v13019_v25 = vpop.permute.xlu1 %6891  ;;  %v13021_v60 = vpop.permute.xlu0 %7020 }
 0x5eb   :  { %16621 = vst [vmem:[#allocation207_spill] sm:$0xff] %v13019_v25  ;;  %16622 = vst [vmem:[#allocation208_spill] sm:$0xff] %v13021_v60  ;;  %9966 = vset.pattern.permute.xlu1 %v16487_v47  ;;  %10021 = vset.pattern.permute.xlu0 %v16460_v18  ;;  %v13037_v25 = vadd.f32 %v4506_v49, %v16385_v0 }
 0x5ec   :  { %6705 = vperm.xlu1 %9966, %v12721_v58   ;;  %6818 = vperm.xlu0 %10021, %v12937_v15  }
 0x5ef   :  { %v13027_v5 = vpop.permute.xlu1 %7101  ;;  %v13029_v19 = vpop.permute.xlu0 %7230 }
 0x5f0   :  { %16623 = vst [vmem:[#allocation209_spill] sm:$0xff] %v13027_v5  ;;  %16624 = vst [vmem:[#allocation210_spill] sm:$0xff] %v13029_v19  ;;  %9968 = vset.pattern.permute.xlu1 %v16421_v54  ;;  %10023 = vset.pattern.permute.xlu0 %v16463_v26 }
 0x5f1   :  { %6915 = vperm.xlu1 %9968, %v12721_v58   ;;  %7028 = vperm.xlu0 %10023, %v12937_v15  }
 0x5f4   :  { %v13039_v60 = vpop.permute.xlu1 %4682  ;;  %v13041_v40 = vpop.permute.xlu0 %4594 }
 0x5f5   :  { %16625 = vst [vmem:[#allocation211_spill] sm:$0xff] %v13039_v60  ;;  %16626 = vst [vmem:[#allocation212_spill] sm:$0xff] %v13041_v40  ;;  %9970 = vset.pattern.permute.xlu1 %v16424_v34  ;;  %10027 = vset.pattern.permute.xlu0 %v16428_v16 }
 0x5f6   :  { %7125 = vperm.xlu1 %9970, %v12721_v58   ;;  %4604 = vperm.xlu0 %10027, %v13037_v25  }
 0x5f9   :  { %v13047_v33 = vpop.permute.xlu1 %4892  ;;  %v13049_v5 = vpop.permute.xlu0 %4811 }
 0x5fa   :  { %16627 = vst [vmem:[#allocation213_spill] sm:$0xff] %v13047_v33  ;;  %16628 = vst [vmem:[#allocation214_spill] sm:$0xff] %v13049_v5  ;;  %9973 = vset.pattern.permute.xlu1 %v16427_v8  ;;  %10029 = vset.pattern.permute.xlu0 %v16431_v61  ;;  %v4509_v5 = vmax.f32 %v12059_v32, 0.0 }
 0x5fb   :  { %4706 = vperm.xlu1 %9973, %v12829_v42   ;;  %4819 = vperm.xlu0 %10029, %v13037_v25  }
 0x5fe   :  { %v13055_v0 = vpop.permute.xlu1 %5102  ;;  %v13057_v49 = vpop.permute.xlu0 %5021 }
 0x5ff   :  { %16629 = vst [vmem:[#allocation215_spill] sm:$0xff] %v13055_v0  ;;  %16630 = vst [vmem:[#allocation216_spill] sm:$0xff] %v13057_v49  ;;  %9975 = vset.pattern.permute.xlu1 %v16429_v56  ;;  %10031 = vset.pattern.permute.xlu0 %v16438_v41 }
 0x600   :  { %4916 = vperm.xlu1 %9975, %v12829_v42   ;;  %5029 = vperm.xlu0 %10031, %v13037_v25  }
 0x603   :  { %v13063_v33 = vpop.permute.xlu1 %5312  ;;  %v13065_v60 = vpop.permute.xlu0 %5231 }
 0x604   :  { %16631 = vst [vmem:[#allocation217_spill] sm:$0xff] %v13063_v33  ;;  %16632 = vst [vmem:[#allocation218_spill] sm:$0xff] %v13065_v60  ;;  %9977 = vset.pattern.permute.xlu1 %v16432_v43  ;;  %10033 = vset.pattern.permute.xlu0 %v16445_v14 }
 0x605   :  { %5126 = vperm.xlu1 %9977, %v12829_v42   ;;  %5239 = vperm.xlu0 %10033, %v13037_v25  }
 0x608   :  { %v13071_v0 = vpop.permute.xlu1 %5522  ;;  %v13073_v49 = vpop.permute.xlu0 %5441 }
 0x609   :  { %16633 = vst [vmem:[#allocation219_spill] sm:$0xff] %v13071_v0  ;;  %16634 = vst [vmem:[#allocation220_spill] sm:$0xff] %v13073_v49  ;;  %9979 = vset.pattern.permute.xlu1 %v16435_v59  ;;  %10035 = vset.pattern.permute.xlu0 %v16452_v2 }
 0x60a   :  { %5336 = vperm.xlu1 %9979, %v12829_v42   ;;  %5449 = vperm.xlu0 %10035, %v13037_v25  }
 0x60d   :  { %v13079_v33 = vpop.permute.xlu1 %5732  ;;  %v13081_v60 = vpop.permute.xlu0 %5651 }
 0x60e   :  { %16635 = vst [vmem:[#allocation221_spill] sm:$0xff] %v13079_v33  ;;  %16636 = vst [vmem:[#allocation222_spill] sm:$0xff] %v13081_v60  ;;  %9981 = vset.pattern.permute.xlu1 %v16439_v17  ;;  %10037 = vset.pattern.permute.xlu0 %v16459_v36 }
 0x60f   :  { %5546 = vperm.xlu1 %9981, %v12829_v42   ;;  %5659 = vperm.xlu0 %10037, %v13037_v25  }
 0x612   :  { %v13087_v0 = vpop.permute.xlu1 %5942  ;;  %v13089_v49 = vpop.permute.xlu0 %5861 }
 0x613   :  { %16637 = vst [vmem:[#allocation223_spill] sm:$0xff] %v13087_v0  ;;  %16638 = vst [vmem:[#allocation224_spill] sm:$0xff] %v13089_v49  ;;  %9983 = vset.pattern.permute.xlu1 %v16442_v30  ;;  %10039 = vset.pattern.permute.xlu0 %v16466_v63 }
 0x614   :  { %5756 = vperm.xlu1 %9983, %v12829_v42   ;;  %5869 = vperm.xlu0 %10039, %v13037_v25  }
 0x617   :  { %v13095_v33 = vpop.permute.xlu1 %6152  ;;  %v13097_v60 = vpop.permute.xlu0 %6071 }
 0x618   :  { %16639 = vst [vmem:[#allocation225_spill] sm:$0xff] %v13095_v33  ;;  %16640 = vst [vmem:[#allocation226_spill] sm:$0xff] %v13097_v60  ;;  %9985 = vset.pattern.permute.xlu1 %v16446_v46  ;;  %10041 = vset.pattern.permute.xlu0 %v16472_v23 }
 0x619   :  { %5966 = vperm.xlu1 %9985, %v12829_v42   ;;  %6079 = vperm.xlu0 %10041, %v13037_v25  }
 0x61c   :  { %v13103_v0 = vpop.permute.xlu1 %6362  ;;  %v13105_v49 = vpop.permute.xlu0 %6281 }
 0x61d   :  { %16641 = vst [vmem:[#allocation227_spill] sm:$0xff] %v13103_v0  ;;  %16642 = vst [vmem:[#allocation228_spill] sm:$0xff] %v13105_v49  ;;  %9987 = vset.pattern.permute.xlu1 %v16449_v22  ;;  %10043 = vset.pattern.permute.xlu0 %v16477_v6 }
 0x61e   :  { %6176 = vperm.xlu1 %9987, %v12829_v42   ;;  %6289 = vperm.xlu0 %10043, %v13037_v25  }
 0x621   :  { %v13111_v33 = vpop.permute.xlu1 %6572  ;;  %v13113_v60 = vpop.permute.xlu0 %6491 }
 0x622   :  { %16643 = vst [vmem:[#allocation229_spill] sm:$0xff] %v13111_v33  ;;  %16644 = vst [vmem:[#allocation230_spill] sm:$0xff] %v13113_v60  ;;  %9989 = vset.pattern.permute.xlu1 %v16453_v1  ;;  %10045 = vset.pattern.permute.xlu0 %v16482_v35 }
 0x623   :  { %6386 = vperm.xlu1 %9989, %v12829_v42   ;;  %6499 = vperm.xlu0 %10045, %v13037_v25  }
 0x626   :  { %v13119_v0 = vpop.permute.xlu1 %6782  ;;  %v13121_v49 = vpop.permute.xlu0 %6701 }
 0x627   :  { %16645 = vst [vmem:[#allocation231_spill] sm:$0xff] %v13119_v0  ;;  %16646 = vst [vmem:[#allocation232_spill] sm:$0xff] %v13121_v49  ;;  %9991 = vset.pattern.permute.xlu1 %v16456_v31  ;;  %10047 = vset.pattern.permute.xlu0 %v16487_v47 }
 0x628   :  { %6596 = vperm.xlu1 %9991, %v12829_v42   ;;  %6709 = vperm.xlu0 %10047, %v13037_v25  }
 0x62b   :  { %v13127_v33 = vpop.permute.xlu1 %6992  ;;  %v13129_v60 = vpop.permute.xlu0 %6911 }
 0x62c   :  { %16647 = vst [vmem:[#allocation233_spill] sm:$0xff] %v13127_v33  ;;  %16648 = vst [vmem:[#allocation234_spill] sm:$0xff] %v13129_v60  ;;  %9993 = vset.pattern.permute.xlu1 %v16460_v18  ;;  %10049 = vset.pattern.permute.xlu0 %v16421_v54  ;;  %v13145_v33 = vadd.f32 %v4509_v5, %v16386_v44 }
 0x62d   :  { %6806 = vperm.xlu1 %9993, %v12829_v42   ;;  %6919 = vperm.xlu0 %10049, %v13037_v25  }
 0x630   :  { %v13135_v0 = vpop.permute.xlu1 %7202  ;;  %v13137_v49 = vpop.permute.xlu0 %7121 }
 0x631   :  { %16649 = vst [vmem:[#allocation235_spill] sm:$0xff] %v13135_v0  ;;  %16650 = vst [vmem:[#allocation236_spill] sm:$0xff] %v13137_v49  ;;  %9995 = vset.pattern.permute.xlu1 %v16463_v26  ;;  %10051 = vset.pattern.permute.xlu0 %v16424_v34  ;;  %v16653_v49 = vmov 26  }
 0x632   :  { %7016 = vperm.xlu1 %9995, %v12829_v42   ;;  %7129 = vperm.xlu0 %10051, %v13037_v25  }
 0x635   :  { %v13147_v60 = vpop.permute.xlu1 %4599  ;;  %v13149_v40 = vpop.permute.xlu0 %4718 }
 0x636   :  { %16651 = vst [vmem:[#allocation237_spill] sm:$0xff] %v13149_v40  ;;  %9997 = vset.pattern.permute.xlu1 %v16423_v51  ;;  %10055 = vset.pattern.permute.xlu0 %v16427_v8  ;;  %v16655_v40 = vmov 27  }
 0x637   :  { %7226 = vperm.xlu1 %9997, %v12829_v42   ;;  %4726 = vperm.xlu0 %10055, %v13145_v33  }
 0x63a   :  { %v13155_v32 = vpop.permute.xlu1 %4815  ;;  %v13157_v0 = vpop.permute.xlu0 %4928 }
 0x63b   :  { %16652 = vst [vmem:[#allocation238_spill] sm:$0xff] %v13157_v0  ;;  %9998 = vset.pattern.permute.xlu1 %v16653_v49  ;;  %10057 = vset.pattern.permute.xlu0 %v16429_v56 }
 0x63c   :  { %7331 = vperm.xlu1 %9998, %v12829_v42   ;;  %4936 = vperm.xlu0 %10057, %v13145_v33  }
 0x63f   :  { %v13163_v44 = vpop.permute.xlu1 %5025  ;;  %v13165_v5 = vpop.permute.xlu0 %5138 }
 0x640   :  { %16654 = vst [vmem:[#allocation239_spill] sm:$0xff] %v13165_v5  ;;  %9999 = vset.pattern.permute.xlu1 %v16655_v40  ;;  %10059 = vset.pattern.permute.xlu0 %v16432_v43 }
 0x641   :  { %7436 = vperm.xlu1 %9999, %v12829_v42   ;;  %5146 = vperm.xlu0 %10059, %v13145_v33  }
 0x644   :  { %v13171_v0 = vpop.permute.xlu1 %5235  ;;  %v13173_v19 = vpop.permute.xlu0 %5348 }
 0x645   :  { %16656 = vst [vmem:[#allocation240_spill] sm:$0xff] %v13171_v0  ;;  %16657 = vst [vmem:[#allocation241_spill] sm:$0xff] %v13173_v19  ;;  %10000 = vset.pattern.permute.xlu1 %v16428_v16  ;;  %10061 = vset.pattern.permute.xlu0 %v16435_v59 }
 0x646   :  { %4609 = vperm.xlu1 %10000, %v12937_v15   ;;  %5356 = vperm.xlu0 %10061, %v13145_v33  }
 0x649   :  { %v13179_v5 = vpop.permute.xlu1 %5445  ;;  %v13181_v53 = vpop.permute.xlu0 %5558 }
 0x64a   :  { %16658 = vst [vmem:[#allocation242_spill] sm:$0xff] %v13179_v5  ;;  %16659 = vst [vmem:[#allocation243_spill] sm:$0xff] %v13181_v53  ;;  %10002 = vset.pattern.permute.xlu1 %v16431_v61  ;;  %10063 = vset.pattern.permute.xlu0 %v16439_v17 }
 0x64b   :  { %4823 = vperm.xlu1 %10002, %v12937_v15   ;;  %5566 = vperm.xlu0 %10063, %v13145_v33  }
 0x64e   :  { %v13187_v19 = vpop.permute.xlu1 %5655  ;;  %v13189_v0 = vpop.permute.xlu0 %5768 }
 0x64f   :  { %16660 = vst [vmem:[#allocation244_spill] sm:$0xff] %v13187_v19  ;;  %16661 = vst [vmem:[#allocation245_spill] sm:$0xff] %v13189_v0  ;;  %10004 = vset.pattern.permute.xlu1 %v16438_v41  ;;  %10065 = vset.pattern.permute.xlu0 %v16442_v30 }
 0x650   :  { %5033 = vperm.xlu1 %10004, %v12937_v15   ;;  %5776 = vperm.xlu0 %10065, %v13145_v33  }
 0x653   :  { %v13195_v53 = vpop.permute.xlu1 %5865  ;;  %v13197_v5 = vpop.permute.xlu0 %5978 }
 0x654   :  { %16662 = vst [vmem:[#allocation246_spill] sm:$0xff] %v13195_v53  ;;  %16663 = vst [vmem:[#allocation247_spill] sm:$0xff] %v13197_v5  ;;  %10006 = vset.pattern.permute.xlu1 %v16445_v14  ;;  %10067 = vset.pattern.permute.xlu0 %v16446_v46 }
 0x655   :  { %5243 = vperm.xlu1 %10006, %v12937_v15   ;;  %5986 = vperm.xlu0 %10067, %v13145_v33  }
 0x658   :  { %v13203_v0 = vpop.permute.xlu1 %6075  ;;  %v13205_v19 = vpop.permute.xlu0 %6188 }
 0x659   :  { %16664 = vst [vmem:[#allocation248_spill] sm:$0xff] %v13203_v0  ;;  %16665 = vst [vmem:[#allocation249_spill] sm:$0xff] %v13205_v19  ;;  %10008 = vset.pattern.permute.xlu1 %v16452_v2  ;;  %10069 = vset.pattern.permute.xlu0 %v16449_v22 }
 0x65a   :  { %5453 = vperm.xlu1 %10008, %v12937_v15   ;;  %6196 = vperm.xlu0 %10069, %v13145_v33  }
 0x65d   :  { %v13211_v5 = vpop.permute.xlu1 %6285  ;;  %v13213_v53 = vpop.permute.xlu0 %6398 }
 0x65e   :  { %16666 = vst [vmem:[#allocation250_spill] sm:$0xff] %v13211_v5  ;;  %16667 = vst [vmem:[#allocation251_spill] sm:$0xff] %v13213_v53  ;;  %10010 = vset.pattern.permute.xlu1 %v16459_v36  ;;  %10071 = vset.pattern.permute.xlu0 %v16453_v1 }
 0x65f   :  { %5663 = vperm.xlu1 %10010, %v12937_v15   ;;  %6406 = vperm.xlu0 %10071, %v13145_v33  }
 0x662   :  { %v13219_v19 = vpop.permute.xlu1 %6495  ;;  %v13221_v0 = vpop.permute.xlu0 %6608 }
 0x663   :  { %16668 = vst [vmem:[#allocation252_spill] sm:$0xff] %v13219_v19  ;;  %16669 = vst [vmem:[#allocation253_spill] sm:$0xff] %v13221_v0  ;;  %10012 = vset.pattern.permute.xlu1 %v16466_v63  ;;  %10073 = vset.pattern.permute.xlu0 %v16456_v31 }
 0x664   :  { %5873 = vperm.xlu1 %10012, %v12937_v15   ;;  %6616 = vperm.xlu0 %10073, %v13145_v33  }
 0x667   :  { %v13227_v53 = vpop.permute.xlu1 %6705  ;;  %v13229_v5 = vpop.permute.xlu0 %6818 }
 0x668   :  { %16670 = vst [vmem:[#allocation254_spill] sm:$0xff] %v13227_v53  ;;  %16671 = vst [vmem:[#allocation255_spill] sm:$0xff] %v13229_v5  ;;  %10014 = vset.pattern.permute.xlu1 %v16472_v23  ;;  %10075 = vset.pattern.permute.xlu0 %v16460_v18  ;;  %v13245_v5 = vadd.f32 %v4508_v4, %v16387_v21 }
 0x669   :  { %6083 = vperm.xlu1 %10014, %v12937_v15   ;;  %6826 = vperm.xlu0 %10075, %v13145_v33  }
 0x66c   :  { %v13235_v0 = vpop.permute.xlu1 %6915  ;;  %v13237_v19 = vpop.permute.xlu0 %7028 }
 0x66d   :  { %16672 = vst [vmem:[#allocation256_spill] sm:$0xff] %v13237_v19  ;;  %10016 = vset.pattern.permute.xlu1 %v16477_v6  ;;  %10077 = vset.pattern.permute.xlu0 %v16463_v26 }
 0x66e   :  { %6293 = vperm.xlu1 %10016, %v12937_v15   ;;  %7036 = vperm.xlu0 %10077, %v13145_v33  }
 0x671   :  { %v13247_v53 = vpop.permute.xlu1 %7125  ;;  %v13249_v9 = vpop.permute.xlu0 %4604 }
 0x672   :  { %16673 = vst [vmem:[#allocation257_spill] sm:$0xff] %v13247_v53  ;;  %16674 = vst [vmem:[#allocation258_spill] sm:$0xff] %v13249_v9  ;;  %10018 = vset.pattern.permute.xlu1 %v16482_v35  ;;  %10079 = vset.pattern.permute.xlu0 %v16428_v16 }
 0x673   :  { %6503 = vperm.xlu1 %10018, %v12937_v15   ;;  %4614 = vperm.xlu0 %10079, %v13245_v5  }
 0x676   :  { %v13255_v11 = vpop.permute.xlu1 %4706  ;;  %v13257_v19 = vpop.permute.xlu0 %4819 }
 0x677   :  { %16675 = vst [vmem:[#allocation259_spill] sm:$0xff] %v13255_v11  ;;  %16676 = vst [vmem:[#allocation260_spill] sm:$0xff] %v13257_v19  ;;  %10020 = vset.pattern.permute.xlu1 %v16487_v47  ;;  %10081 = vset.pattern.permute.xlu0 %v16431_v61  ;;  %v4511_v11 = vmax.f32 %v12070_v48, 0.0 }
 0x678   :  { %6713 = vperm.xlu1 %10020, %v12937_v15   ;;  %4827 = vperm.xlu0 %10081, %v13245_v5  }
 0x67b   :  { %v13263_v21 = vpop.permute.xlu1 %4916  ;;  %v13265_v4 = vpop.permute.xlu0 %5029 }
 0x67c   :  { %16677 = vst [vmem:[#allocation261_spill] sm:$0xff] %v13263_v21  ;;  %16678 = vst [vmem:[#allocation262_spill] sm:$0xff] %v13265_v4  ;;  %10022 = vset.pattern.permute.xlu1 %v16421_v54  ;;  %10083 = vset.pattern.permute.xlu0 %v16438_v41 }
 0x67d   :  { %6923 = vperm.xlu1 %10022, %v12937_v15   ;;  %5037 = vperm.xlu0 %10083, %v13245_v5  }
 0x680   :  { %v13271_v19 = vpop.permute.xlu1 %5126  ;;  %v13273_v9 = vpop.permute.xlu0 %5239 }
 0x681   :  { %16679 = vst [vmem:[#allocation263_spill] sm:$0xff] %v13271_v19  ;;  %16680 = vst [vmem:[#allocation264_spill] sm:$0xff] %v13273_v9  ;;  %10024 = vset.pattern.permute.xlu1 %v16424_v34  ;;  %10085 = vset.pattern.permute.xlu0 %v16445_v14 }
 0x682   :  { %7133 = vperm.xlu1 %10024, %v12937_v15   ;;  %5247 = vperm.xlu0 %10085, %v13245_v5  }
 0x685   :  { %v13279_v4 = vpop.permute.xlu1 %5336  ;;  %v13281_v21 = vpop.permute.xlu0 %5449 }
 0x686   :  { %16681 = vst [vmem:[#allocation265_spill] sm:$0xff] %v13279_v4  ;;  %16682 = vst [vmem:[#allocation266_spill] sm:$0xff] %v13281_v21  ;;  %10025 = vset.pattern.permute.xlu1 %v16423_v51  ;;  %10087 = vset.pattern.permute.xlu0 %v16452_v2 }
 0x687   :  { %7238 = vperm.xlu1 %10025, %v12937_v15   ;;  %5457 = vperm.xlu0 %10087, %v13245_v5  }
 0x68a   :  { %v13287_v9 = vpop.permute.xlu1 %5546  ;;  %v13289_v19 = vpop.permute.xlu0 %5659 }
 0x68b   :  { %16683 = vst [vmem:[#allocation267_spill] sm:$0xff] %v13287_v9  ;;  %16684 = vst [vmem:[#allocation268_spill] sm:$0xff] %v13289_v19  ;;  %10026 = vset.pattern.permute.xlu1 %v16653_v49  ;;  %10089 = vset.pattern.permute.xlu0 %v16459_v36 }
 0x68c   :  { %7343 = vperm.xlu1 %10026, %v12937_v15   ;;  %5667 = vperm.xlu0 %10089, %v13245_v5  }
 0x68f   :  { %v13295_v21 = vpop.permute.xlu1 %5756  ;;  %v13297_v4 = vpop.permute.xlu0 %5869 }
 0x690   :  { %16685 = vst [vmem:[#allocation269_spill] sm:$0xff] %v13295_v21  ;;  %16686 = vst [vmem:[#allocation270_spill] sm:$0xff] %v13297_v4  ;;  %10028 = vset.pattern.permute.xlu1 %v16427_v8  ;;  %10091 = vset.pattern.permute.xlu0 %v16466_v63 }
 0x691   :  { %4714 = vperm.xlu1 %10028, %v13037_v25   ;;  %5877 = vperm.xlu0 %10091, %v13245_v5  }
 0x694   :  { %v13303_v19 = vpop.permute.xlu1 %5966  ;;  %v13305_v9 = vpop.permute.xlu0 %6079 }
 0x695   :  { %16687 = vst [vmem:[#allocation271_spill] sm:$0xff] %v13303_v19  ;;  %16688 = vst [vmem:[#allocation272_spill] sm:$0xff] %v13305_v9  ;;  %10030 = vset.pattern.permute.xlu1 %v16429_v56  ;;  %10093 = vset.pattern.permute.xlu0 %v16472_v23 }
 0x696   :  { %4924 = vperm.xlu1 %10030, %v13037_v25   ;;  %6087 = vperm.xlu0 %10093, %v13245_v5  }
 0x699   :  { %v13311_v4 = vpop.permute.xlu1 %6176  ;;  %v13313_v21 = vpop.permute.xlu0 %6289 }
 0x69a   :  { %16689 = vst [vmem:[#allocation273_spill] sm:$0xff] %v13311_v4  ;;  %16690 = vst [vmem:[#allocation274_spill] sm:$0xff] %v13313_v21  ;;  %10032 = vset.pattern.permute.xlu1 %v16432_v43  ;;  %10095 = vset.pattern.permute.xlu0 %v16477_v6 }
 0x69b   :  { %5134 = vperm.xlu1 %10032, %v13037_v25   ;;  %6297 = vperm.xlu0 %10095, %v13245_v5  }
 0x69e   :  { %v13319_v9 = vpop.permute.xlu1 %6386  ;;  %v13321_v19 = vpop.permute.xlu0 %6499 }
 0x69f   :  { %16691 = vst [vmem:[#allocation275_spill] sm:$0xff] %v13319_v9  ;;  %16692 = vst [vmem:[#allocation276_spill] sm:$0xff] %v13321_v19  ;;  %10034 = vset.pattern.permute.xlu1 %v16435_v59  ;;  %10097 = vset.pattern.permute.xlu0 %v16482_v35 }
 0x6a0   :  { %5344 = vperm.xlu1 %10034, %v13037_v25   ;;  %6507 = vperm.xlu0 %10097, %v13245_v5  }
 0x6a3   :  { %v13327_v21 = vpop.permute.xlu1 %6596  ;;  %v13329_v4 = vpop.permute.xlu0 %6709 }
 0x6a4   :  { %16693 = vst [vmem:[#allocation277_spill] sm:$0xff] %v13327_v21  ;;  %16694 = vst [vmem:[#allocation278_spill] sm:$0xff] %v13329_v4  ;;  %10036 = vset.pattern.permute.xlu1 %v16439_v17  ;;  %10099 = vset.pattern.permute.xlu0 %v16487_v47 }
 0x6a5   :  { %5554 = vperm.xlu1 %10036, %v13037_v25   ;;  %6717 = vperm.xlu0 %10099, %v13245_v5  }
 0x6a8   :  { %v13335_v19 = vpop.permute.xlu1 %6806  ;;  %v13337_v9 = vpop.permute.xlu0 %6919 }
 0x6a9   :  { %16695 = vst [vmem:[#allocation279_spill] sm:$0xff] %v13335_v19  ;;  %16696 = vst [vmem:[#allocation280_spill] sm:$0xff] %v13337_v9  ;;  %10038 = vset.pattern.permute.xlu1 %v16442_v30  ;;  %10101 = vset.pattern.permute.xlu0 %v16421_v54  ;;  %v13353_v9 = vadd.f32 %v4511_v11, %v16388_v50 }
 0x6aa   :  { %5764 = vperm.xlu1 %10038, %v13037_v25   ;;  %6927 = vperm.xlu0 %10101, %v13245_v5  }
 0x6ad   :  { %v13343_v4 = vpop.permute.xlu1 %7016  ;;  %v13345_v21 = vpop.permute.xlu0 %7129 }
 0x6ae   :  { %16697 = vst [vmem:[#allocation281_spill] sm:$0xff] %v13343_v4  ;;  %16698 = vst [vmem:[#allocation282_spill] sm:$0xff] %v13345_v21  ;;  %10040 = vset.pattern.permute.xlu1 %v16446_v46  ;;  %10103 = vset.pattern.permute.xlu0 %v16424_v34 }
 0x6af   :  { %5974 = vperm.xlu1 %10040, %v13037_v25   ;;  %7137 = vperm.xlu0 %10103, %v13245_v5  }
 0x6b2   :  { %v13355_v19 = vpop.permute.xlu1 %7226  ;;  %v13357_v53 = vpop.permute.xlu0 %4726 }
 0x6b3   :  { %16699 = vst [vmem:[#allocation283_spill] sm:$0xff] %v13355_v19  ;;  %16700 = vst [vmem:[#allocation284_spill] sm:$0xff] %v13357_v53  ;;  %10042 = vset.pattern.permute.xlu1 %v16449_v22  ;;  %10106 = vset.pattern.permute.xlu0 %v16427_v8 }
 0x6b4   :  { %6184 = vperm.xlu1 %10042, %v13037_v25   ;;  %4734 = vperm.xlu0 %10106, %v13353_v9  }
 0x6b7   :  { %v13363_v48 = vpop.permute.xlu1 %7331  ;;  %v13365_v21 = vpop.permute.xlu0 %4936 }
 0x6b8   :  { %16701 = vst [vmem:[#allocation285_spill] sm:$0xff] %v13363_v48  ;;  %16702 = vst [vmem:[#allocation286_spill] sm:$0xff] %v13365_v21  ;;  %10044 = vset.pattern.permute.xlu1 %v16453_v1  ;;  %10108 = vset.pattern.permute.xlu0 %v16429_v56 }
 0x6b9   :  { %6394 = vperm.xlu1 %10044, %v13037_v25   ;;  %4944 = vperm.xlu0 %10108, %v13353_v9  }
 0x6bc   :  { %v13371_v50 = vpop.permute.xlu1 %7436  ;;  %v13373_v11 = vpop.permute.xlu0 %5146 }
 0x6bd   :  { %16703 = vst [vmem:[#allocation287_spill] sm:$0xff] %v13371_v50  ;;  %16704 = vst [vmem:[#allocation288_spill] sm:$0xff] %v13373_v11  ;;  %10046 = vset.pattern.permute.xlu1 %v16456_v31  ;;  %10110 = vset.pattern.permute.xlu0 %v16432_v43 }
 0x6be   :  { %6604 = vperm.xlu1 %10046, %v13037_v25   ;;  %5154 = vperm.xlu0 %10110, %v13353_v9  }
 0x6c1   :  { %v13379_v48 = vpop.permute.xlu1 %4609  ;;  %v13381_v19 = vpop.permute.xlu0 %5356 }
 0x6c2   :  { %16705 = vst [vmem:[#allocation289_spill] sm:$0xff] %v13379_v48  ;;  %16706 = vst [vmem:[#allocation290_spill] sm:$0xff] %v13381_v19  ;;  %10048 = vset.pattern.permute.xlu1 %v16460_v18  ;;  %10112 = vset.pattern.permute.xlu0 %v16435_v59 }
 0x6c3   :  { %6814 = vperm.xlu1 %10048, %v13037_v25   ;;  %5364 = vperm.xlu0 %10112, %v13353_v9  }
 0x6c6   :  { %v13387_v50 = vpop.permute.xlu1 %4823  ;;  %v13389_v4 = vpop.permute.xlu0 %5566 }
 0x6c7   :  { %16707 = vst [vmem:[#allocation291_spill] sm:$0xff] %v13387_v50  ;;  %16708 = vst [vmem:[#allocation292_spill] sm:$0xff] %v13389_v4  ;;  %10050 = vset.pattern.permute.xlu1 %v16463_v26  ;;  %10114 = vset.pattern.permute.xlu0 %v16439_v17 }
 0x6c8   :  { %7024 = vperm.xlu1 %10050, %v13037_v25   ;;  %5574 = vperm.xlu0 %10114, %v13353_v9  }
 0x6cb   :  { %v13395_v19 = vpop.permute.xlu1 %5033  ;;  %v13397_v11 = vpop.permute.xlu0 %5776 }
 0x6cc   :  { %16709 = vst [vmem:[#allocation293_spill] sm:$0xff] %v13395_v19  ;;  %16710 = vst [vmem:[#allocation294_spill] sm:$0xff] %v13397_v11  ;;  %10052 = vset.pattern.permute.xlu1 %v16423_v51  ;;  %10116 = vset.pattern.permute.xlu0 %v16442_v30  ;;  %v4510_v19 = vmax.f32 %v12073_v38, 0.0 }
 0x6cd   :  { %7234 = vperm.xlu1 %10052, %v13037_v25   ;;  %5784 = vperm.xlu0 %10116, %v13353_v9  }
 0x6d0   :  { %v13403_v4 = vpop.permute.xlu1 %5243  ;;  %v13405_v21 = vpop.permute.xlu0 %5986 }
 0x6d1   :  { %16711 = vst [vmem:[#allocation295_spill] sm:$0xff] %v13403_v4  ;;  %16712 = vst [vmem:[#allocation296_spill] sm:$0xff] %v13405_v21  ;;  %10053 = vset.pattern.permute.xlu1 %v16653_v49  ;;  %10118 = vset.pattern.permute.xlu0 %v16446_v46 }
 0x6d2   :  { %7339 = vperm.xlu1 %10053, %v13037_v25   ;;  %5994 = vperm.xlu0 %10118, %v13353_v9  }
 0x6d5   :  { %v13411_v11 = vpop.permute.xlu1 %5453  ;;  %v13413_v53 = vpop.permute.xlu0 %6196 }
 0x6d6   :  { %16713 = vst [vmem:[#allocation297_spill] sm:$0xff] %v13411_v11  ;;  %16714 = vst [vmem:[#allocation298_spill] sm:$0xff] %v13413_v53  ;;  %10054 = vset.pattern.permute.xlu1 %v16428_v16  ;;  %10120 = vset.pattern.permute.xlu0 %v16449_v22 }
 0x6d7   :  { %4619 = vperm.xlu1 %10054, %v13145_v33   ;;  %6204 = vperm.xlu0 %10120, %v13353_v9  }
 0x6da   :  { %v13419_v21 = vpop.permute.xlu1 %5663  ;;  %v13421_v4 = vpop.permute.xlu0 %6406 }
 0x6db   :  { %16715 = vst [vmem:[#allocation299_spill] sm:$0xff] %v13419_v21  ;;  %16716 = vst [vmem:[#allocation300_spill] sm:$0xff] %v13421_v4  ;;  %10056 = vset.pattern.permute.xlu1 %v16431_v61  ;;  %10122 = vset.pattern.permute.xlu0 %v16453_v1 }
 0x6dc   :  { %4831 = vperm.xlu1 %10056, %v13145_v33   ;;  %6414 = vperm.xlu0 %10122, %v13353_v9  }
 0x6df   :  { %v13427_v53 = vpop.permute.xlu1 %5873  ;;  %v13429_v11 = vpop.permute.xlu0 %6616 }
 0x6e0   :  { %16717 = vst [vmem:[#allocation301_spill] sm:$0xff] %v13427_v53  ;;  %16718 = vst [vmem:[#allocation302_spill] sm:$0xff] %v13429_v11  ;;  %10058 = vset.pattern.permute.xlu1 %v16438_v41  ;;  %10124 = vset.pattern.permute.xlu0 %v16456_v31 }
 0x6e1   :  { %5041 = vperm.xlu1 %10058, %v13145_v33   ;;  %6624 = vperm.xlu0 %10124, %v13353_v9  }
 0x6e4   :  { %v13435_v4 = vpop.permute.xlu1 %6083  ;;  %v13437_v21 = vpop.permute.xlu0 %6826 }
 0x6e5   :  { %16719 = vst [vmem:[#allocation303_spill] sm:$0xff] %v13435_v4  ;;  %16720 = vst [vmem:[#allocation304_spill] sm:$0xff] %v13437_v21  ;;  %10060 = vset.pattern.permute.xlu1 %v16445_v14  ;;  %10126 = vset.pattern.permute.xlu0 %v16460_v18  ;;  %v13453_v21 = vadd.f32 %v4510_v19, %v16389_v12 }
 0x6e6   :  { %5251 = vperm.xlu1 %10060, %v13145_v33   ;;  %6834 = vperm.xlu0 %10126, %v13353_v9  }
 0x6e7   :  { %16723 = vst [vmem:[#allocation307_spill] sm:$0xff] %v13453_v21 }
 0x6e9   :  { %v13443_v11 = vpop.permute.xlu1 %6293  ;;  %v13445_v53 = vpop.permute.xlu0 %7036 }
 0x6ea   :  { %16721 = vst [vmem:[#allocation305_spill] sm:$0xff] %v13443_v11  ;;  %16722 = vst [vmem:[#allocation306_spill] sm:$0xff] %v13445_v53  ;;  %10062 = vset.pattern.permute.xlu1 %v16452_v2  ;;  %10128 = vset.pattern.permute.xlu0 %v16463_v26 }
 0x6eb   :  { %5461 = vperm.xlu1 %10062, %v13145_v33   ;;  %7044 = vperm.xlu0 %10128, %v13353_v9  }
 0x6ee   :  { %v13455_v4 = vpop.permute.xlu1 %6503  ;;  %v13457_v50 = vpop.permute.xlu0 %4614 }
 0x6ef   :  { %16724 = vst [vmem:[#allocation308_spill] sm:$0xff] %v13455_v4  ;;  %16725 = vst [vmem:[#allocation309_spill] sm:$0xff] %v13457_v50  ;;  %10064 = vset.pattern.permute.xlu1 %v16459_v36  ;;  %10130 = vset.pattern.permute.xlu0 %v16428_v16 }
 0x6f0   :  { %5671 = vperm.xlu1 %10064, %v13145_v33   ;;  %4624 = vperm.xlu0 %10130, %v13453_v21  }
 0x6f3   :  { %v13463_v38 = vpop.permute.xlu1 %6713  ;;  %v13465_v53 = vpop.permute.xlu0 %4827 }
 0x6f4   :  { %16726 = vst [vmem:[#allocation310_spill] sm:$0xff] %v13463_v38  ;;  %16727 = vst [vmem:[#allocation311_spill] sm:$0xff] %v13465_v53  ;;  %10066 = vset.pattern.permute.xlu1 %v16466_v63  ;;  %10132 = vset.pattern.permute.xlu0 %v16431_v61 }
 0x6f5   :  { %5881 = vperm.xlu1 %10066, %v13145_v33   ;;  %4835 = vperm.xlu0 %10132, %v13453_v21  }
 0x6f8   :  { %v13471_v12 = vpop.permute.xlu1 %6923  ;;  %v13473_v19 = vpop.permute.xlu0 %5037 }
 0x6f9   :  { %16728 = vst [vmem:[#allocation312_spill] sm:$0xff] %v13471_v12  ;;  %16729 = vst [vmem:[#allocation313_spill] sm:$0xff] %v13473_v19  ;;  %10068 = vset.pattern.permute.xlu1 %v16472_v23  ;;  %10134 = vset.pattern.permute.xlu0 %v16438_v41 }
 0x6fa   :  { %6091 = vperm.xlu1 %10068, %v13145_v33   ;;  %5045 = vperm.xlu0 %10134, %v13453_v21  }
 0x6fd   :  { %v13479_v53 = vpop.permute.xlu1 %7133  ;;  %v13481_v50 = vpop.permute.xlu0 %5247 }
 0x6fe   :  { %16730 = vst [vmem:[#allocation314_spill] sm:$0xff] %v13479_v53  ;;  %16731 = vst [vmem:[#allocation315_spill] sm:$0xff] %v13481_v50  ;;  %10070 = vset.pattern.permute.xlu1 %v16477_v6  ;;  %10136 = vset.pattern.permute.xlu0 %v16445_v14 }
 0x6ff   :  { %6301 = vperm.xlu1 %10070, %v13145_v33   ;;  %5255 = vperm.xlu0 %10136, %v13453_v21  }
 0x702   :  { %v13487_v19 = vpop.permute.xlu1 %7238  ;;  %v13489_v12 = vpop.permute.xlu0 %5457 }
 0x703   :  { %16732 = vst [vmem:[#allocation316_spill] sm:$0xff] %v13487_v19  ;;  %16733 = vst [vmem:[#allocation317_spill] sm:$0xff] %v13489_v12  ;;  %10072 = vset.pattern.permute.xlu1 %v16482_v35  ;;  %10138 = vset.pattern.permute.xlu0 %v16452_v2 }
 0x704   :  { %6511 = vperm.xlu1 %10072, %v13145_v33   ;;  %5465 = vperm.xlu0 %10138, %v13453_v21  }
 0x707   :  { %v13495_v50 = vpop.permute.xlu1 %7343  ;;  %v13497_v53 = vpop.permute.xlu0 %5667 }
 0x708   :  { %16734 = vst [vmem:[#allocation318_spill] sm:$0xff] %v13495_v50  ;;  %16735 = vst [vmem:[#allocation319_spill] sm:$0xff] %v13497_v53  ;;  %10074 = vset.pattern.permute.xlu1 %v16487_v47  ;;  %10140 = vset.pattern.permute.xlu0 %v16459_v36 }
 0x709   :  { %6721 = vperm.xlu1 %10074, %v13145_v33   ;;  %5675 = vperm.xlu0 %10140, %v13453_v21  }
 0x70c   :  { %v13503_v12 = vpop.permute.xlu1 %4714  ;;  %v13505_v19 = vpop.permute.xlu0 %5877 }
 0x70d   :  { %16736 = vst [vmem:[#allocation320_spill] sm:$0xff] %v13503_v12  ;;  %16737 = vst [vmem:[#allocation321_spill] sm:$0xff] %v13505_v19  ;;  %10076 = vset.pattern.permute.xlu1 %v16421_v54  ;;  %10142 = vset.pattern.permute.xlu0 %v16466_v63 }
 0x70e   :  { %6931 = vperm.xlu1 %10076, %v13145_v33   ;;  %5885 = vperm.xlu0 %10142, %v13453_v21  }
 0x711   :  { %v13511_v53 = vpop.permute.xlu1 %4924  ;;  %v13513_v50 = vpop.permute.xlu0 %6087 }
 0x712   :  { %16738 = vst [vmem:[#allocation322_spill] sm:$0xff] %v13511_v53  ;;  %16739 = vst [vmem:[#allocation323_spill] sm:$0xff] %v13513_v50  ;;  %10078 = vset.pattern.permute.xlu1 %v16424_v34  ;;  %10144 = vset.pattern.permute.xlu0 %v16472_v23  ;;  %v16225_v53 = vmov 28  }
 0x713   :  { %7141 = vperm.xlu1 %10078, %v13145_v33   ;;  %6095 = vperm.xlu0 %10144, %v13453_v21  }
 0x716   :  { %v13519_v19 = vpop.permute.xlu1 %5134  ;;  %v13521_v38 = vpop.permute.xlu0 %6297 }
 0x717   :  { %16740 = vst [vmem:[#allocation324_spill] sm:$0xff] %v13519_v19  ;;  %16741 = vst [vmem:[#allocation325_spill] sm:$0xff] %v13521_v38  ;;  %10080 = vset.pattern.permute.xlu1 %v16427_v8  ;;  %10146 = vset.pattern.permute.xlu0 %v16477_v6 }
 0x718   :  { %4722 = vperm.xlu1 %10080, %v13245_v5   ;;  %6305 = vperm.xlu0 %10146, %v13453_v21  }
 0x71b   :  { %v13527_v50 = vpop.permute.xlu1 %5344  ;;  %v13529_v4 = vpop.permute.xlu0 %6507 }
 0x71c   :  { %16742 = vst [vmem:[#allocation326_spill] sm:$0xff] %v13527_v50  ;;  %16743 = vst [vmem:[#allocation327_spill] sm:$0xff] %v13529_v4  ;;  %10082 = vset.pattern.permute.xlu1 %v16429_v56  ;;  %10148 = vset.pattern.permute.xlu0 %v16482_v35 }
 0x71d   :  { %4932 = vperm.xlu1 %10082, %v13245_v5   ;;  %6515 = vperm.xlu0 %10148, %v13453_v21  }
 0x720   :  { %v13535_v38 = vpop.permute.xlu1 %5554  ;;  %v13537_v11 = vpop.permute.xlu0 %6717 }
 0x721   :  { %16744 = vst [vmem:[#allocation328_spill] sm:$0xff] %v13535_v38  ;;  %16745 = vst [vmem:[#allocation329_spill] sm:$0xff] %v13537_v11  ;;  %10084 = vset.pattern.permute.xlu1 %v16432_v43  ;;  %10150 = vset.pattern.permute.xlu0 %v16487_v47 }
 0x722   :  { %5142 = vperm.xlu1 %10084, %v13245_v5   ;;  %6725 = vperm.xlu0 %10150, %v13453_v21  }
 0x725   :  { %v13543_v4 = vpop.permute.xlu1 %5764  ;;  %v13545_v50 = vpop.permute.xlu0 %6927 }
 0x726   :  { %16746 = vst [vmem:[#allocation330_spill] sm:$0xff] %v13543_v4  ;;  %16747 = vst [vmem:[#allocation331_spill] sm:$0xff] %v13545_v50  ;;  %10086 = vset.pattern.permute.xlu1 %v16435_v59  ;;  %10152 = vset.pattern.permute.xlu0 %v16421_v54 }
 0x727   :  { %5352 = vperm.xlu1 %10086, %v13245_v5   ;;  %6935 = vperm.xlu0 %10152, %v13453_v21  }
 0x72a   :  { %v13551_v11 = vpop.permute.xlu1 %5974  ;;  %v13553_v38 = vpop.permute.xlu0 %7137 }
 0x72b   :  { %16748 = vst [vmem:[#allocation332_spill] sm:$0xff] %v13551_v11  ;;  %16749 = vst [vmem:[#allocation333_spill] sm:$0xff] %v13553_v38  ;;  %10088 = vset.pattern.permute.xlu1 %v16439_v17  ;;  %10161 = vset.pattern.permute.xlu0 %v16424_v34 }
 0x72c   :  { %5562 = vperm.xlu1 %10088, %v13245_v5   ;;  %7145 = vperm.xlu0 %10161, %v13453_v21  }
 0x72f   :  { %v13559_v50 = vpop.permute.xlu1 %6184  ;;  %v13561_v4 = vpop.permute.xlu0 %4734 }
 0x730   :  { %16750 = vst [vmem:[#allocation334_spill] sm:$0xff] %v13559_v50  ;;  %16751 = vst [vmem:[#allocation335_spill] sm:$0xff] %v13561_v4  ;;  %10090 = vset.pattern.permute.xlu1 %v16442_v30  ;;  %10168 = vset.pattern.permute.xlu0 %v16423_v51 }
 0x731   :  { %5772 = vperm.xlu1 %10090, %v13245_v5   ;;  %7254 = vperm.xlu0 %10168, %v13353_v9  }
 0x734   :  { %v13567_v38 = vpop.permute.xlu1 %6394  ;;  %v13569_v11 = vpop.permute.xlu0 %4944 }
 0x735   :  { %16752 = vst [vmem:[#allocation336_spill] sm:$0xff] %v13567_v38  ;;  %16753 = vst [vmem:[#allocation337_spill] sm:$0xff] %v13569_v11  ;;  %10092 = vset.pattern.permute.xlu1 %v16446_v46  ;;  %10169 = vset.pattern.permute.xlu0 %v16653_v49 }
 0x736   :  { %5982 = vperm.xlu1 %10092, %v13245_v5   ;;  %7283 = vperm.xlu0 %10169, %v12109_v55  }
 0x739   :  { %v13575_v4 = vpop.permute.xlu1 %6604  ;;  %v13577_v50 = vpop.permute.xlu0 %5154 }
 0x73a   :  { %16754 = vst [vmem:[#allocation338_spill] sm:$0xff] %v13575_v4  ;;  %16755 = vst [vmem:[#allocation339_spill] sm:$0xff] %v13577_v50  ;;  %10094 = vset.pattern.permute.xlu1 %v16449_v22  ;;  %7335 = vperm.xlu0 %10169, %v12721_v58  }
 0x73b   :  { %6192 = vperm.xlu1 %10094, %v13245_v5  }
 0x73e   :  { %v13582_v38 = vpop.permute.xlu1 %6814  ;;  %7291 = vperm.xlu0 %10169, %v12286_v62   ;;  %v13585_v11 = vpop.permute.xlu0 %5364 }
 0x73f   :  { %16756 = vst [vmem:[#allocation340_spill] sm:$0xff] %v13582_v38  ;;  %16757 = vst [vmem:[#allocation341_spill] sm:$0xff] %v13585_v11  ;;  %10096 = vset.pattern.permute.xlu1 %v16453_v1 }
 0x740   :  { %6402 = vperm.xlu1 %10096, %v13245_v5  }
 0x742   :  { %7295 = vperm.xlu0 %10169, %v12177_v52  }
 0x743   :  { %v13590_v4 = vpop.permute.xlu1 %7024  ;;  %v13592_v50 = vpop.permute.xlu0 %5574 }
 0x744   :  { %16758 = vst [vmem:[#allocation342_spill] sm:$0xff] %v13590_v4  ;;  %16759 = vst [vmem:[#allocation343_spill] sm:$0xff] %v13592_v50  ;;  %10098 = vset.pattern.permute.xlu1 %v16456_v31 }
 0x745   :  { %6612 = vperm.xlu1 %10098, %v13245_v5  }
 0x746   :  { %7299 = vperm.xlu0 %10169, %v12397_v24  }
 0x748   :  { %v13597_v38 = vpop.permute.xlu1 %7234  ;;  %v13599_v19 = vpop.permute.xlu0 %5784 }
 0x749   :  { %16760 = vst [vmem:[#allocation344_spill] sm:$0xff] %v13597_v38  ;;  %16761 = vst [vmem:[#allocation345_spill] sm:$0xff] %v13599_v19  ;;  %10100 = vset.pattern.permute.xlu1 %v16460_v18 }
 0x74a   :  { %6822 = vperm.xlu1 %10100, %v13245_v5   ;;  %7303 = vperm.xlu0 %10169, %v12289_v3  }
 0x74d   :  { %v13604_v11 = vpop.permute.xlu1 %7339  ;;  %v13606_v4 = vpop.permute.xlu0 %5994 }
 0x74e   :  { %16762 = vst [vmem:[#allocation346_spill] sm:$0xff] %v13604_v11  ;;  %16763 = vst [vmem:[#allocation347_spill] sm:$0xff] %v13606_v4  ;;  %10102 = vset.pattern.permute.xlu1 %v16463_v26  ;;  %7311 = vperm.xlu0 %10169, %v12505_v13  }
 0x74f   :  { %7032 = vperm.xlu1 %10102, %v13245_v5  }
 0x752   :  { %v13611_v50 = vpop.permute.xlu1 %4619  ;;  %10176 = vset.pattern.permute.xlu0 %v16655_v40  ;;  %v13614_v19 = vpop.permute.xlu0 %6204 }
 0x753   :  { %16764 = vst [vmem:[#allocation348_spill] sm:$0xff] %v13611_v50  ;;  %16765 = vst [vmem:[#allocation349_spill] sm:$0xff] %v13614_v19  ;;  %10104 = vset.pattern.permute.xlu1 %v16423_v51  ;;  %7388 = vperm.xlu0 %10176, %v12109_v55  }
 0x754   :  { %7242 = vperm.xlu1 %10104, %v13245_v5  }
 0x757   :  { %v13619_v11 = vpop.permute.xlu1 %4831  ;;  %7440 = vperm.xlu0 %10176, %v12721_v58   ;;  %v13622_v4 = vpop.permute.xlu0 %6414 }
 0x758   :  { %16766 = vst [vmem:[#allocation350_spill] sm:$0xff] %v13619_v11  ;;  %16767 = vst [vmem:[#allocation351_spill] sm:$0xff] %v13622_v4  ;;  %10105 = vset.pattern.permute.xlu1 %v16428_v16  ;;  %v8451_v16 = vld [vmem:[%s16120_s5 + $0x40] sm:$0xff] }
 0x759   :  { %4629 = vperm.xlu1 %10105, %v13353_v9   ;;  %v4689_v4 = vmul.f32 %v8451_v16, %v12277_v27 }
 0x75b   :  { %7444 = vperm.xlu0 %10176, %v13037_v25  }
 0x75c   :  { %v13627_v38 = vpop.permute.xlu1 %5041  ;;  %v13629_v19 = vpop.permute.xlu0 %6624 }
 0x75d   :  { %16768 = vst [vmem:[#allocation352_spill] sm:$0xff] %v13627_v38  ;;  %16769 = vst [vmem:[#allocation353_spill] sm:$0xff] %v13629_v19  ;;  %10107 = vset.pattern.permute.xlu1 %v16431_v61  ;;  %v4529_v38 = vld [vmem:[%s16120_s5 + $0x8] sm:$0xff] }
 0x75e   :  { %4839 = vperm.xlu1 %10107, %v13353_v9   ;;  %v4633_v27 = vmul.f32 %v13147_v60, %v4529_v38 }
 0x75f   :  { %7448 = vperm.xlu0 %10176, %v12937_v15  }
 0x761   :  { %v13634_v11 = vpop.permute.xlu1 %5251  ;;  %v13636_v50 = vpop.permute.xlu0 %6834 }
 0x762   :  { %16770 = vst [vmem:[#allocation354_spill] sm:$0xff] %v13634_v11  ;;  %16771 = vst [vmem:[#allocation355_spill] sm:$0xff] %v13636_v50  ;;  %10109 = vset.pattern.permute.xlu1 %v16438_v41  ;;  %v4528_v41 = vld [vmem:[%s16120_s5] sm:$0xff] }
 0x763   :  { %5049 = vperm.xlu1 %10109, %v13353_v9   ;;  %7452 = vperm.xlu0 %10176, %v13245_v5   ;;  %v8459_v50 = vld [vmem:[%s16120_s5 + $0x80] sm:$0xff] }
 0x766   :  { %v13644_v19 = vpop.permute.xlu1 %5461  ;;  %v13646_v61 = vpop.permute.xlu0 %7044 }
 0x767   :  { %16772 = vst [vmem:[#allocation356_spill] sm:$0xff] %v13644_v19  ;;  %16773 = vst [vmem:[#allocation357_spill] sm:$0xff] %v13646_v61  ;;  %10111 = vset.pattern.permute.xlu1 %v16445_v14  ;;  %7408 = vperm.xlu0 %10176, %v12289_v3   ;;  %v4576_v19 = vmul.f32 %v12269_v29, %v4528_v41  ;;  %v4794_v61 = vmul.f32 %v8459_v50, %v12291_v39  ;;  %v8467_v29 = vld [vmem:[%s16120_s5 + $0xc0] sm:$0xff] }
 0x768   :  { %5259 = vperm.xlu1 %10111, %v13353_v9   ;;  %v8475_v50 = vld [vmem:[%s16120_s5 + $0x100] sm:$0xff] }
 0x769   :  { %v4697_v3 = vadd.f32 %v4689_v4, %v4576_v19  ;;  %v8460_v4 = vld [vmem:[%s16120_s5 + $0x88] sm:$0xff]  ;;  %v5004_v41 = vmul.f32 %v8475_v50, %v12299_v28 }
 0x76a   :  { %v4843_v38 = vmul.f32 %v8460_v4, %v13155_v32 }
 0x76b   :  { %v13660_v11 = vpop.permute.xlu1 %5671  ;;  %7460 = vperm.xlu0 %10176, %v13453_v21   ;;  %v13663_v14 = vpop.permute.xlu0 %4624  ;;  %v4802_v39 = vadd.f32 %v4794_v61, %v4697_v3  ;;  %v4899_v3 = vmul.f32 %v8467_v29, %v12293_v37  ;;  %v8491_v29 = vld [vmem:[%s16120_s5 + $0x180] sm:$0xff] }
 0x76c   :  { %16774 = vst [vmem:[#allocation358_spill] sm:$0xff] %v13660_v11  ;;  %10113 = vset.pattern.permute.xlu1 %v16452_v2  ;;  %v8452_v2 = vld [vmem:[%s16120_s5 + $0x48] sm:$0xff]  ;;  %v5214_v50 = vmul.f32 %v8491_v29, %v12307_v45 }
 0x76d   :  { %5469 = vperm.xlu1 %10113, %v13353_v9   ;;  %v4738_v60 = vmul.f32 %v8452_v2, %v12929_v10  ;;  %v4907_v61 = vadd.f32 %v4899_v3, %v4802_v39  ;;  %v8483_v10 = vld [vmem:[%s16120_s5 + $0x140] sm:$0xff]  ;;  %v4533_v3 = vld [vmem:[%s16120_s5 + $0x28] sm:$0xff] }
 0x76e   :  { %v5109_v39 = vmul.f32 %v8483_v10, %v12301_v57  ;;  %v8456_v57 = vld [vmem:[%s16120_s5 + $0x68] sm:$0xff] }
 0x76f   :  { %7416 = vperm.xlu0 %10176, %v12505_v13   ;;  %v4746_v11 = vadd.f32 %v4738_v60, %v4633_v27  ;;  %v5012_v28 = vadd.f32 %v5004_v41, %v4907_v61  ;;  %v8484_v45 = vld [vmem:[%s16120_s5 + $0x148] sm:$0xff]  ;;  %v4581_v60 = vmul.f32 %v12711_v20, %v4533_v3  ;;  %v16227_v20 = vmov 29   ;;  %v16783_v3 = vld [vmem:[#allocation240_spill] sm:$0xff] }
 0x770   :  { %v13684_v19 = vpop.permute.xlu1 %5881  ;;  %v13686_v16 = vpop.permute.xlu0 %4835  ;;  %v16778_v61 = vld [vmem:[#allocation190_spill] sm:$0xff] }
 0x771   :  { %16775 = vst [vmem:[#allocation359_spill] sm:$0xff] %v13684_v19  ;;  %10115 = vset.pattern.permute.xlu1 %v16459_v36  ;;  %v4851_v19 = vadd.f32 %v4843_v38, %v4746_v11  ;;  %v8468_v36 = vld [vmem:[%s16120_s5 + $0xc8] sm:$0xff]  ;;  %v5117_v4 = vadd.f32 %v5109_v39, %v5012_v28  ;;  %v5158_v41 = vmul.f32 %v8484_v45, %v16778_v61 }
 0x772   :  { %5679 = vperm.xlu1 %10115, %v13353_v9   ;;  %v4948_v32 = vmul.f32 %v8468_v36, %v12941_v7  ;;  %v8476_v11 = vld [vmem:[%s16120_s5 + $0x108] sm:$0xff] }
 0x773   :  { %10183 = vset.pattern.permute.xlu0 %v16225_v53  ;;  %v5222_v38 = vadd.f32 %v5214_v50, %v5117_v4  ;;  %v8492_v28 = vld [vmem:[%s16120_s5 + $0x188] sm:$0xff] }
 0x774   :  { %7541 = vperm.xlu0 %10183, %v12829_v42   ;;  %v4956_v27 = vadd.f32 %v4948_v32, %v4851_v19  ;;  %v8507_v32 = vld [vmem:[%s16120_s5 + $0x200] sm:$0xff]  ;;  %v5263_v45 = vmul.f32 %v8492_v28, %v16783_v3 }
 0x775   :  { %v13696_v12 = vpop.permute.xlu1 %6091  ;;  %v13698_v37 = vpop.permute.xlu0 %5045  ;;  %v16781_v39 = vld [vmem:[#allocation137_spill] sm:$0xff] }
 0x776   :  { %16776 = vst [vmem:[#allocation360_spill] sm:$0xff] %v13696_v12  ;;  %10117 = vset.pattern.permute.xlu1 %v16466_v63  ;;  %v5053_v63 = vmul.f32 %v8476_v11, %v13163_v44  ;;  %v8464_v44 = vld [vmem:[%s16120_s5 + $0xa8] sm:$0xff]  ;;  %v16780_v11 = vld [vmem:[#allocation83_spill] sm:$0xff] }
 0x777   :  { %5889 = vperm.xlu1 %10117, %v13353_v9   ;;  %v4694_v29 = vmul.f32 %v8456_v57, %v16780_v11  ;;  %v8515_v11 = vld [vmem:[%s16120_s5 + $0x240] sm:$0xff] }
 0x778   :  { %7557 = vperm.xlu0 %10183, %v13245_v5   ;;  %v5061_v19 = vadd.f32 %v5053_v63, %v4956_v27  ;;  %v4799_v27 = vmul.f32 %v8464_v44, %v16781_v39  ;;  %v16782_v63 = vld [vmem:[#allocation42_spill] sm:$0xff]  ;;  %v4535_v44 = vld [vmem:[%s16120_s5 + $0x38] sm:$0xff] }
 0x779   :  { %v4702_v61 = vadd.f32 %v4694_v29, %v4581_v60  ;;  %v8458_v60 = vld [vmem:[%s16120_s5 + $0x78] sm:$0xff]  ;;  %v16787_v29 = vld [vmem:[#allocation86_spill] sm:$0xff] }
 0x77a   :  { %v13718_v2 = vpop.permute.xlu1 %6301  ;;  %v13720_v7 = vpop.permute.xlu0 %5255  ;;  %v5166_v50 = vadd.f32 %v5158_v41, %v5061_v19 }
 0x77b   :  { %16777 = vst [vmem:[#allocation361_spill] sm:$0xff] %v13718_v2  ;;  %10119 = vset.pattern.permute.xlu1 %v16472_v23  ;;  %v8499_v23 = vld [vmem:[%s16120_s5 + $0x1c0] sm:$0xff]  ;;  %v16791_v2 = vld [vmem:[#allocation139_spill] sm:$0xff] }
 0x77c   :  { %6099 = vperm.xlu1 %10119, %v13353_v9   ;;  %7565 = vperm.xlu0 %10183, %v13453_v21   ;;  %v5319_v4 = vmul.f32 %v8499_v23, %v16782_v63  ;;  %v4807_v23 = vadd.f32 %v4799_v27, %v4702_v61  ;;  %v5271_v28 = vadd.f32 %v5263_v45, %v5166_v50  ;;  %v16788_v27 = vld [vmem:[#allocation187_spill] sm:$0xff]  ;;  %v16789_v50 = vld [vmem:[#allocation192_spill] sm:$0xff] }
 0x77d   :  { %v4583_v63 = vmul.f32 %v16788_v27, %v4535_v44  ;;  %v8523_v45 = vld [vmem:[%s16120_s5 + $0x280] sm:$0xff]  ;;  %v16793_v27 = vld [vmem:[#allocation10_spill] sm:$0xff] }
 0x77e   :  { %v5327_v53 = vadd.f32 %v5319_v4, %v5222_v38  ;;  %v8480_v38 = vld [vmem:[%s16120_s5 + $0x128] sm:$0xff]  ;;  %v16790_v61 = vld [vmem:[#allocation136_spill] sm:$0xff]  ;;  %v5529_v12 = vmul.f32 %v8515_v11, %v16793_v27 }
 0x77f   :  { %v13743_v36 = vpop.permute.xlu1 %6511  ;;  %v13745_v10 = vpop.permute.xlu0 %5465  ;;  %v8516_v11 = vld [vmem:[%s16120_s5 + $0x248] sm:$0xff] }
 0x780   :  { %16779 = vst [vmem:[#allocation190_spill] sm:$0xff] %v13743_v36  ;;  %10121 = vset.pattern.permute.xlu1 %v16477_v6  ;;  %10186 = vset.pattern.permute.xlu0 %v16227_v20  ;;  %v16784_v36 = vld [vmem:[#allocation45_spill] sm:$0xff]  ;;  %v4696_v20 = vmul.f32 %v8458_v60, %v16790_v61 }
 0x781   :  { %6309 = vperm.xlu1 %10121, %v13353_v9   ;;  %7598 = vperm.xlu0 %10186, %v12109_v55   ;;  %v5424_v57 = vmul.f32 %v8507_v32, %v16784_v36  ;;  %v8472_v6 = vld [vmem:[%s16120_s5 + $0xe8] sm:$0xff]  ;;  %v8466_v36 = vld [vmem:[%s16120_s5 + $0xb8] sm:$0xff]  ;;  %v8531_v61 = vld [vmem:[%s16120_s5 + $0x2c0] sm:$0xff] }
 0x782   :  { %v8500_v32 = vld [vmem:[%s16120_s5 + $0x1c8] sm:$0xff]  ;;  %v4904_v39 = vmul.f32 %v8472_v6, %v16787_v29  ;;  %v5009_v6 = vmul.f32 %v8480_v38, %v16791_v2  ;;  %v16792_v29 = vld [vmem:[#allocation188_spill] sm:$0xff] }
 0x783   :  { %v5432_v4 = vadd.f32 %v5424_v57, %v5327_v53  ;;  %v5368_v3 = vmul.f32 %v8500_v32, %v16789_v50  ;;  %v4801_v44 = vmul.f32 %v8466_v36, %v16792_v29  ;;  %v16794_v57 = vld [vmem:[#allocation242_spill] sm:$0xff]  ;;  %v8474_v38 = vld [vmem:[%s16120_s5 + $0xf8] sm:$0xff] }
 0x784   :  { %v13768_v19 = vpop.permute.xlu1 %6721  ;;  %v13770_v41 = vpop.permute.xlu0 %5675  ;;  %v8488_v2 = vld [vmem:[%s16120_s5 + $0x168] sm:$0xff] }
 0x785   :  { %16785 = vst [vmem:[#allocation83_spill] sm:$0xff] %v13768_v19  ;;  %16786 = vst [vmem:[#allocation137_spill] sm:$0xff] %v13770_v41  ;;  %10123 = vset.pattern.permute.xlu1 %v16482_v35  ;;  %7650 = vperm.xlu0 %10186, %v12721_v58   ;;  %v8508_v35 = vld [vmem:[%s16120_s5 + $0x208] sm:$0xff]  ;;  %v4912_v19 = vadd.f32 %v4904_v39, %v4807_v23  ;;  %v5376_v53 = vadd.f32 %v5368_v3, %v5271_v28  ;;  %v16796_v23 = vld [vmem:[#allocation44_spill] sm:$0xff] }
 0x786   :  { %6519 = vperm.xlu1 %10123, %v13353_v9   ;;  %v5473_v32 = vmul.f32 %v8508_v35, %v16794_v57  ;;  %v4704_v41 = vadd.f32 %v4696_v20, %v4583_v63  ;;  %v5537_v60 = vadd.f32 %v5529_v12, %v5432_v4  ;;  %v5634_v39 = vmul.f32 %v8523_v45, %v16796_v23  ;;  %v8496_v20 = vld [vmem:[%s16120_s5 + $0x1a8] sm:$0xff]  ;;  %v16797_v63 = vld [vmem:[#allocation88_spill] sm:$0xff] }
 0x787   :  { %v5017_v36 = vadd.f32 %v5009_v6, %v4912_v19  ;;  %v5114_v4 = vmul.f32 %v8488_v2, %v16797_v63  ;;  %v16798_v3 = vld [vmem:[#allocation138_spill] sm:$0xff]  ;;  %v16802_v23 = vld [vmem:[#allocation189_spill] sm:$0xff]  ;;  %v16805_v63 = vld [vmem:[#allocation47_spill] sm:$0xff] }
 0x788   :  { %v4809_v28 = vadd.f32 %v4801_v44, %v4704_v41  ;;  %v5481_v12 = vadd.f32 %v5473_v32, %v5376_v53  ;;  %v4906_v19 = vmul.f32 %v8474_v38, %v16798_v3  ;;  %v5642_v45 = vadd.f32 %v5634_v39, %v5537_v60  ;;  %v16800_v6 = vld [vmem:[#allocation194_spill] sm:$0xff]  ;;  %v16801_v53 = vld [vmem:[#allocation141_spill] sm:$0xff]  ;;  %v16803_v38 = vld [vmem:[#allocation244_spill] sm:$0xff] }
 0x789   :  { %v13804_v50 = vpop.permute.xlu1 %6931  ;;  %7606 = vperm.xlu0 %10186, %v12286_v62   ;;  %v13807_v48 = vpop.permute.xlu0 %5885  ;;  %v5578_v29 = vmul.f32 %v8516_v11, %v16800_v6  ;;  %v8524_v44 = vld [vmem:[%s16120_s5 + $0x288] sm:$0xff]  ;;  %v5122_v27 = vadd.f32 %v5114_v4, %v5017_v36  ;;  %v5219_v57 = vmul.f32 %v8496_v20, %v16801_v53  ;;  %v8539_v60 = vld [vmem:[%s16120_s5 + $0x300] sm:$0xff]  ;;  %v5739_v3 = vmul.f32 %v8531_v61, %v16805_v63  ;;  %v16811_v63 = vld [vmem:[#allocation143_spill] sm:$0xff] }
 0x78a   :  { %16795 = vst [vmem:[#allocation42_spill] sm:$0xff] %v13804_v50  ;;  %10125 = vset.pattern.permute.xlu1 %v16487_v47  ;;  %v8482_v47 = vld [vmem:[%s16120_s5 + $0x138] sm:$0xff]  ;;  %v4914_v32 = vadd.f32 %v4906_v19, %v4809_v28  ;;  %v5683_v11 = vmul.f32 %v8524_v44, %v16803_v38  ;;  %v8504_v36 = vld [vmem:[%s16120_s5 + $0x1e8] sm:$0xff] }
 0x78b   :  { %6729 = vperm.xlu1 %10125, %v13353_v9   ;;  %v5011_v2 = vmul.f32 %v8482_v47, %v16802_v23  ;;  %v5586_v39 = vadd.f32 %v5578_v29, %v5481_v12  ;;  %v8490_v28 = vld [vmem:[%s16120_s5 + $0x178] sm:$0xff]  ;;  %v5747_v4 = vadd.f32 %v5739_v3, %v5642_v45  ;;  %v5227_v6 = vadd.f32 %v5219_v57, %v5122_v27  ;;  %v8512_v61 = vld [vmem:[%s16120_s5 + $0x228] sm:$0xff]  ;;  %v8547_v57 = vld [vmem:[%s16120_s5 + $0x340] sm:$0xff] }
 0x78c   :  { %v16807_v12 = vld [vmem:[#allocation12_spill] sm:$0xff]  ;;  %v8532_v53 = vld [vmem:[%s16120_s5 + $0x2c8] sm:$0xff]  ;;  %v5429_v3 = vmul.f32 %v8512_v61, %v16811_v63 }
 0x78d   :  { %7614 = vperm.xlu0 %10186, %v12397_v24   ;;  %v5844_v19 = vmul.f32 %v8539_v60, %v16807_v12  ;;  %v5019_v29 = vadd.f32 %v5011_v2, %v4914_v32  ;;  %v5691_v44 = vadd.f32 %v5683_v11, %v5586_v39  ;;  %v16808_v45 = vld [vmem:[#allocation90_spill] sm:$0xff]  ;;  %v16809_v60 = vld [vmem:[#allocation140_spill] sm:$0xff] }
 0x78e   :  { %v13830_v41 = vpop.permute.xlu1 %7141  ;;  %v13832_v35 = vpop.permute.xlu0 %6095  ;;  %v5324_v23 = vmul.f32 %v8504_v36, %v16808_v45  ;;  %v5116_v27 = vmul.f32 %v8490_v28, %v16809_v60  ;;  %v16810_v32 = vld [vmem:[#allocation196_spill] sm:$0xff]  ;;  %v8540_v39 = vld [vmem:[%s16120_s5 + $0x308] sm:$0xff]  ;;  %v16813_v60 = vld [vmem:[#allocation191_spill] sm:$0xff] }
 0x78f   :  { %16799 = vst [vmem:[#allocation240_spill] sm:$0xff] %v13830_v41  ;;  %10127 = vset.pattern.permute.xlu1 %v16421_v54  ;;  %v16804_v54 = vld [vmem:[#allocation111_spill] sm:$0xff]  ;;  %v5788_v2 = vmul.f32 %v8532_v53, %v16810_v32  ;;  %v5852_v38 = vadd.f32 %v5844_v19, %v5747_v4  ;;  %v8555_v45 = vld [vmem:[%s16120_s5 + $0x380] sm:$0xff]  ;;  %v16814_v32 = vld [vmem:[#allocation246_spill] sm:$0xff]  ;;  %v16229_v4 = vmov 30  }
 0x790   :  { %6939 = vperm.xlu1 %10127, %v13353_v9   ;;  %v5332_v11 = vadd.f32 %v5324_v23, %v5227_v6  ;;  %v5124_v36 = vadd.f32 %v5116_v27, %v5019_v29  ;;  %v5893_v50 = vmul.f32 %v8540_v39, %v16814_v32  ;;  %v16815_v19 = vld [vmem:[#allocation46_spill] sm:$0xff]  ;;  %v16817_v27 = vld [vmem:[#allocation49_spill] sm:$0xff] }
 0x791   :  { %7622 = vperm.xlu0 %10186, %v16804_v54   ;;  %v5796_v53 = vadd.f32 %v5788_v2, %v5691_v44  ;;  %v5949_v6 = vmul.f32 %v8547_v57, %v16815_v19  ;;  %v16816_v29 = vld [vmem:[#allocation22_spill] sm:$0xff]  ;;  %v6054_v44 = vmul.f32 %v8555_v45, %v16817_v27  ;;  %v16820_v45 = vld [vmem:[#allocation92_spill] sm:$0xff]  ;;  %v16823_v27 = vld [vmem:[#allocation145_spill] sm:$0xff] }
 0x792   :  { %v8520_v61 = vld [vmem:[%s16120_s5 + $0x268] sm:$0xff] }
 0x793   :  { %v13857_v20 = vpop.permute.xlu1 %4722  ;;  %v13859_v47 = vpop.permute.xlu0 %6305  ;;  %v5957_v23 = vadd.f32 %v5949_v6, %v5852_v38  ;;  %v8528_v57 = vld [vmem:[%s16120_s5 + $0x2a8] sm:$0xff]  ;;  %v5901_v39 = vadd.f32 %v5893_v50, %v5796_v53  ;;  %v5534_v32 = vmul.f32 %v8520_v61, %v16820_v45  ;;  %v8563_v50 = vld [vmem:[%s16120_s5 + $0x3c0] sm:$0xff] }
 0x794   :  { %16806 = vst [vmem:[#allocation45_spill] sm:$0xff] %v13857_v20  ;;  %10129 = vset.pattern.permute.xlu1 %v16424_v34  ;;  %v8498_v34 = vld [vmem:[%s16120_s5 + $0x1b8] sm:$0xff]  ;;  %v8548_v38 = vld [vmem:[%s16120_s5 + $0x348] sm:$0xff]  ;;  %v8571_v45 = vld [vmem:[%s16120_s5 + $0x400] sm:$0xff] }
 0x795   :  { %7149 = vperm.xlu1 %10129, %v13353_v9   ;;  %7626 = vperm.xlu0 %10186, %v12505_v13   ;;  %v5221_v41 = vmul.f32 %v8498_v34, %v16813_v60  ;;  %v5437_v34 = vadd.f32 %v5429_v3, %v5332_v11  ;;  %v8514_v11 = vld [vmem:[%s16120_s5 + $0x238] sm:$0xff]  ;;  %v8556_v19 = vld [vmem:[%s16120_s5 + $0x388] sm:$0xff]  ;;  %v6062_v6 = vadd.f32 %v6054_v44, %v5957_v23 }
 0x796   :  { %v8536_v44 = vld [vmem:[%s16120_s5 + $0x2e8] sm:$0xff] }
 0x797   :  { %v5229_v2 = vadd.f32 %v5221_v41, %v5124_v36  ;;  %v16821_v41 = vld [vmem:[#allocation142_spill] sm:$0xff]  ;;  %v5542_v61 = vadd.f32 %v5534_v32, %v5437_v34 }
 0x798   :  { %v13884_v28 = vpop.permute.xlu1 %4932  ;;  %v13886_v12 = vpop.permute.xlu0 %6515  ;;  %v16822_v36 = vld [vmem:[#allocation198_spill] sm:$0xff] }
 0x799   :  { %16812 = vst [vmem:[#allocation86_spill] sm:$0xff] %v13884_v28  ;;  %10131 = vset.pattern.permute.xlu1 %v16427_v8  ;;  %10194 = vset.pattern.permute.xlu0 %v16229_v4  ;;  %v8506_v8 = vld [vmem:[%s16120_s5 + $0x1f8] sm:$0xff]  ;;  %v5998_v53 = vmul.f32 %v8548_v38, %v16822_v36  ;;  %v16826_v36 = vld [vmem:[#allocation14_spill] sm:$0xff] }
 0x79a   :  { %4730 = vperm.xlu1 %10131, %v13453_v21   ;;  %7707 = vperm.xlu0 %10194, %v16816_v29   ;;  %v5326_v3 = vmul.f32 %v8506_v8, %v16821_v41  ;;  %v16825_v41 = vld [vmem:[#allocation248_spill] sm:$0xff]  ;;  %v6159_v20 = vmul.f32 %v8563_v50, %v16826_v36  ;;  %v8544_v32 = vld [vmem:[%s16120_s5 + $0x328] sm:$0xff] }
 0x79b   :  { %v6006_v8 = vadd.f32 %v5998_v53, %v5901_v39  ;;  %v6103_v38 = vmul.f32 %v8556_v19, %v16825_v41  ;;  %v8522_v39 = vld [vmem:[%s16120_s5 + $0x278] sm:$0xff]  ;;  %v8579_v19 = vld [vmem:[%s16120_s5 + $0x440] sm:$0xff] }
 0x79c   :  { %v5334_v4 = vadd.f32 %v5326_v3, %v5229_v2  ;;  %v6167_v34 = vadd.f32 %v6159_v20, %v6062_v6  ;;  %v16829_v20 = vld [vmem:[#allocation94_spill] sm:$0xff]  ;;  %v8530_v53 = vld [vmem:[%s16120_s5 + $0x2b8] sm:$0xff] }
 0x79d   :  { %v13908_v63 = vpop.permute.xlu1 %5142  ;;  %v13910_v60 = vpop.permute.xlu0 %6725  ;;  %v6111_v50 = vadd.f32 %v6103_v38, %v6006_v8  ;;  %v5744_v3 = vmul.f32 %v8536_v44, %v16829_v20  ;;  %v16830_v6 = vld [vmem:[#allocation144_spill] sm:$0xff]  ;;  %v16833_v38 = vld [vmem:[#allocation147_spill] sm:$0xff] }
 0x79e   :  { %16818 = vst [vmem:[#allocation187_spill] sm:$0xff] %v13908_v63  ;;  %16819 = vst [vmem:[#allocation192_spill] sm:$0xff] %v13910_v60  ;;  %10133 = vset.pattern.permute.xlu1 %v16429_v56  ;;  %7711 = vperm.xlu0 %10194, %v12286_v62   ;;  %v5639_v56 = vmul.f32 %v8528_v57, %v16823_v27  ;;  %v16824_v63 = vld [vmem:[#allocation193_spill] sm:$0xff]  ;;  %v16828_v57 = vld [vmem:[#allocation48_spill] sm:$0xff]  ;;  %v5849_v36 = vmul.f32 %v8544_v32, %v16833_v38 }
 0x79f   :  { %4940 = vperm.xlu1 %10133, %v13453_v21   ;;  %v5431_v28 = vmul.f32 %v8514_v11, %v16824_v63  ;;  %v6264_v2 = vmul.f32 %v8571_v45, %v16828_v57  ;;  %v8572_v45 = vld [vmem:[%s16120_s5 + $0x408] sm:$0xff]  ;;  %v8587_v44 = vld [vmem:[%s16120_s5 + $0x480] sm:$0xff]  ;;  %v8538_v32 = vld [vmem:[%s16120_s5 + $0x2f8] sm:$0xff] }
 0x7a0   :  { %v5647_v63 = vadd.f32 %v5639_v56, %v5542_v61  ;;  %v5536_v61 = vmul.f32 %v8522_v39, %v16830_v6  ;;  %v16834_v39 = vld [vmem:[#allocation195_spill] sm:$0xff]  ;;  %v16835_v6 = vld [vmem:[#allocation250_spill] sm:$0xff] }
 0x7a1   :  { %v5439_v11 = vadd.f32 %v5431_v28, %v5334_v4  ;;  %v16831_v28 = vld [vmem:[#allocation200_spill] sm:$0xff]  ;;  %v6272_v8 = vadd.f32 %v6264_v2, %v6167_v34  ;;  %v16842_v38 = vld [vmem:[#allocation202_spill] sm:$0xff] }
 0x7a2   :  { %v13937_v60 = vpop.permute.xlu1 %5352  ;;  %7763 = vperm.xlu0 %10194, %v12937_v15   ;;  %v13940_v23 = vpop.permute.xlu0 %6935  ;;  %v5752_v41 = vadd.f32 %v5744_v3, %v5647_v63  ;;  %v16837_v2 = vld [vmem:[#allocation16_spill] sm:$0xff] }
 0x7a3   :  { %16827 = vst [vmem:[#allocation136_spill] sm:$0xff] %v13937_v60  ;;  %10135 = vset.pattern.permute.xlu1 %v16432_v43  ;;  %v8564_v43 = vld [vmem:[%s16120_s5 + $0x3c8] sm:$0xff]  ;;  %v5544_v57 = vadd.f32 %v5536_v61, %v5439_v11  ;;  %v6474_v63 = vmul.f32 %v8587_v44, %v16837_v2 }
 0x7a4   :  { %5150 = vperm.xlu1 %10135, %v13453_v21   ;;  %v6208_v4 = vmul.f32 %v8564_v43, %v16831_v28  ;;  %v5641_v43 = vmul.f32 %v8530_v53, %v16834_v39  ;;  %v6313_v28 = vmul.f32 %v8572_v45, %v16835_v6  ;;  %v5857_v11 = vadd.f32 %v5849_v36, %v5752_v41  ;;  %v8560_v53 = vld [vmem:[%s16120_s5 + $0x3a8] sm:$0xff]  ;;  %v8546_v45 = vld [vmem:[%s16120_s5 + $0x338] sm:$0xff]  ;;  %v8603_v6 = vld [vmem:[%s16120_s5 + $0x500] sm:$0xff] }
 0x7a5   :  { %v16841_v41 = vld [vmem:[#allocation146_spill] sm:$0xff] }
 0x7a6   :  { %7719 = vperm.xlu0 %10194, %v12397_v24   ;;  %v6216_v20 = vadd.f32 %v6208_v4, %v6111_v50  ;;  %v16840_v4 = vld [vmem:[#allocation96_spill] sm:$0xff]  ;;  %v8588_v44 = vld [vmem:[%s16120_s5 + $0x488] sm:$0xff] }
 0x7a7   :  { %v13967_v27 = vpop.permute.xlu1 %5562  ;;  %v13969_v56 = vpop.permute.xlu0 %7145 }
 0x7a8   :  { %16832 = vst [vmem:[#allocation139_spill] sm:$0xff] %v13967_v27  ;;  %10137 = vset.pattern.permute.xlu1 %v16435_v59  ;;  %v16836_v27 = vld [vmem:[#allocation51_spill] sm:$0xff]  ;;  %v8552_v59 = vld [vmem:[%s16120_s5 + $0x368] sm:$0xff]  ;;  %v6321_v61 = vadd.f32 %v6313_v28, %v6216_v20 }
 0x7a9   :  { %5360 = vperm.xlu1 %10137, %v13453_v21   ;;  %v6369_v60 = vmul.f32 %v8579_v19, %v16836_v27  ;;  %v5649_v19 = vadd.f32 %v5641_v43, %v5544_v57  ;;  %v5954_v27 = vmul.f32 %v8552_v59, %v16840_v4  ;;  %v16843_v43 = vld [vmem:[#allocation149_spill] sm:$0xff] }
 0x7aa   :  { %7771 = vperm.xlu0 %10194, %v13145_v33   ;;  %v6059_v20 = vmul.f32 %v8560_v53, %v16843_v43  ;;  %v16844_v59 = vld [vmem:[#allocation197_spill] sm:$0xff]  ;;  %v16851_v43 = vld [vmem:[#allocation148_spill] sm:$0xff] }
 0x7ab   :  { %v6377_v34 = vadd.f32 %v6369_v60, %v6272_v8  ;;  %v8580_v60 = vld [vmem:[%s16120_s5 + $0x448] sm:$0xff]  ;;  %v8595_v8 = vld [vmem:[%s16120_s5 + $0x4c0] sm:$0xff]  ;;  %v5962_v39 = vadd.f32 %v5954_v27, %v5857_v11  ;;  %v5851_v2 = vmul.f32 %v8546_v45, %v16844_v59 }
 0x7ac   :  { %v13991_v50 = vpop.permute.xlu1 %5772  ;;  %v13993_v3 = vpop.permute.xlu0 %7254  ;;  %v6418_v36 = vmul.f32 %v8580_v60, %v16842_v38  ;;  %v16847_v38 = vld [vmem:[#allocation50_spill] sm:$0xff] }
 0x7ad   :  { %16838 = vst [vmem:[#allocation188_spill] sm:$0xff] %v13991_v50  ;;  %16839 = vst [vmem:[#allocation10_spill] sm:$0xff] %v13993_v3  ;;  %10139 = vset.pattern.permute.xlu1 %v16439_v17  ;;  %v5746_v17 = vmul.f32 %v8538_v32, %v16841_v41  ;;  %v6482_v57 = vadd.f32 %v6474_v63, %v6377_v34  ;;  %v16845_v3 = vld [vmem:[#allocation252_spill] sm:$0xff]  ;;  %v6579_v50 = vmul.f32 %v8595_v8, %v16847_v38  ;;  %v8568_v34 = vld [vmem:[%s16120_s5 + $0x3e8] sm:$0xff] }
 0x7ae   :  { %5570 = vperm.xlu1 %10139, %v13453_v21   ;;  %7775 = vperm.xlu0 %10194, %v13453_v21   ;;  %v6426_v4 = vadd.f32 %v6418_v36, %v6321_v61  ;;  %v6523_v32 = vmul.f32 %v8588_v44, %v16845_v3  ;;  %v16848_v11 = vld [vmem:[#allocation18_spill] sm:$0xff]  ;;  %v8554_v3 = vld [vmem:[%s16120_s5 + $0x378] sm:$0xff] }
 0x7af   :  { %v5754_v28 = vadd.f32 %v5746_v17, %v5649_v19  ;;  %v6587_v63 = vadd.f32 %v6579_v50, %v6482_v57  ;;  %v6684_v53 = vmul.f32 %v8603_v6, %v16848_v11  ;;  %v6067_v19 = vadd.f32 %v6059_v20, %v5962_v39  ;;  %v8596_v8 = vld [vmem:[%s16120_s5 + $0x4c8] sm:$0xff]  ;;  %v8562_v36 = vld [vmem:[%s16120_s5 + $0x3b8] sm:$0xff]  ;;  %v8611_v39 = vld [vmem:[%s16120_s5 + $0x540] sm:$0xff] }
 0x7b0   :  { %v6531_v27 = vadd.f32 %v6523_v32, %v6426_v4  ;;  %v16849_v50 = vld [vmem:[#allocation98_spill] sm:$0xff]  ;;  %v16231_v57 = vmov 31   ;;  %v5956_v20 = vmul.f32 %v8554_v3, %v16851_v43  ;;  %v16852_v6 = vld [vmem:[#allocation204_spill] sm:$0xff]  ;;  %v16853_v32 = vld [vmem:[#allocation151_spill] sm:$0xff] }
 0x7b1   :  { %v14022_v41 = vpop.permute.xlu1 %5982  ;;  %v14024_v60 = vpop.permute.xlu0 %7283  ;;  %v5859_v61 = vadd.f32 %v5851_v2, %v5754_v28  ;;  %v6164_v17 = vmul.f32 %v8568_v34, %v16849_v50  ;;  %v6628_v28 = vmul.f32 %v8596_v8, %v16852_v6  ;;  %v8604_v59 = vld [vmem:[%s16120_s5 + $0x508] sm:$0xff]  ;;  %v6692_v2 = vadd.f32 %v6684_v53, %v6587_v63  ;;  %v8619_v34 = vld [vmem:[%s16120_s5 + $0x580] sm:$0xff]  ;;  %v16854_v3 = vld [vmem:[#allocation199_spill] sm:$0xff] }
 0x7b2   :  { %16846 = vst [vmem:[#allocation242_spill] sm:$0xff] %v14022_v41  ;;  %10141 = vset.pattern.permute.xlu1 %v16442_v30  ;;  %7731 = vperm.xlu0 %10194, %v12505_v13   ;;  %v8576_v30 = vld [vmem:[%s16120_s5 + $0x428] sm:$0xff]  ;;  %v6061_v8 = vmul.f32 %v8562_v36, %v16854_v3  ;;  %v14417_v13 = vld [vmem:[%s16120_s5 + $0x1b0] sm:$0xff] }
 0x7b3   :  { %5780 = vperm.xlu1 %10141, %v13453_v21   ;;  %v6172_v4 = vadd.f32 %v6164_v17, %v6067_v19  ;;  %v6269_v38 = vmul.f32 %v8576_v30, %v16853_v32  ;;  %v5964_v11 = vadd.f32 %v5956_v20, %v5859_v61  ;;  %v16855_v50 = vld [vmem:[#allocation254_spill] sm:$0xff]  ;;  %v16859_v30 = vld [vmem:[#allocation19_spill] sm:$0xff]  ;;  %16928 = vst [vmem:[#allocation16_spill] sm:$0xff] %v14417_v13 }
 0x7b4   :  { %v6733_v43 = vmul.f32 %v8604_v59, %v16855_v50  ;;  %v8584_v63 = vld [vmem:[%s16120_s5 + $0x468] sm:$0xff]  ;;  %v6894_v61 = vmul.f32 %v8619_v34, %v16859_v30 }
 0x7b5   :  { %v14040_v45 = vpop.permute.xlu0 %7335  ;;  %v6277_v17 = vadd.f32 %v6269_v38, %v6172_v4  ;;  %v8592_v36 = vld [vmem:[%s16120_s5 + $0x4a8] sm:$0xff] }
 0x7b6   :  { %v14049_v44 = vpop.permute.xlu1 %6192  ;;  %10198 = vset.pattern.permute.xlu0 %v16231_v57  ;;  %v16857_v57 = vld [vmem:[#allocation52_spill] sm:$0xff]  ;;  %v16862_v4 = vld [vmem:[#allocation150_spill] sm:$0xff] }
 0x7b7   :  { %16850 = vst [vmem:[#allocation44_spill] sm:$0xff] %v14049_v44  ;;  %10143 = vset.pattern.permute.xlu1 %v16446_v46  ;;  %7812 = vperm.xlu0 %10198, %v16816_v29   ;;  %v6636_v46 = vadd.f32 %v6628_v28, %v6531_v27  ;;  %v6789_v44 = vmul.f32 %v8611_v39, %v16857_v57  ;;  %v8570_v27 = vld [vmem:[%s16120_s5 + $0x3f8] sm:$0xff]  ;;  %v16863_v38 = vld [vmem:[#allocation206_spill] sm:$0xff] }
 0x7b8   :  { %5990 = vperm.xlu1 %10143, %v13453_v21   ;;  %v6069_v57 = vadd.f32 %v6061_v8, %v5964_v11  ;;  %v16861_v28 = vld [vmem:[#allocation100_spill] sm:$0xff]  ;;  %v6166_v32 = vmul.f32 %v8570_v27, %v16862_v4  ;;  %v8620_v11 = vld [vmem:[%s16120_s5 + $0x588] sm:$0xff] }
 0x7b9   :  { %v14069_v6 = vpop.permute.xlu0 %7291  ;;  %v6797_v19 = vadd.f32 %v6789_v44, %v6692_v2  ;;  %v6741_v39 = vadd.f32 %v6733_v43, %v6636_v46  ;;  %v8612_v44 = vld [vmem:[%s16120_s5 + $0x548] sm:$0xff]  ;;  %v6374_v59 = vmul.f32 %v8584_v63, %v16861_v28  ;;  %v8627_v2 = vld [vmem:[%s16120_s5 + $0x5c0] sm:$0xff]  ;;  %v6943_v4 = vmul.f32 %v8620_v11, %v13235_v0  ;;  %v8586_v0 = vld [vmem:[%s16120_s5 + $0x478] sm:$0xff] }
 0x7ba   :  { %16856 = vst [vmem:[#allocation88_spill] sm:$0xff] %v14069_v6  ;;  %v6838_v34 = vmul.f32 %v8612_v44, %v16863_v38  ;;  %v16864_v46 = vld [vmem:[#allocation153_spill] sm:$0xff]  ;;  %v6174_v30 = vadd.f32 %v6166_v32, %v6069_v57  ;;  %v16869_v57 = vld [vmem:[#allocation7_spill] sm:$0xff] }
 0x7bb   :  { %v14075_v53 = vpop.permute.xlu1 %6402  ;;  %7868 = vperm.xlu0 %10198, %v12937_v15   ;;  %v6902_v3 = vadd.f32 %v6894_v61, %v6797_v19  ;;  %v6382_v8 = vadd.f32 %v6374_v59, %v6277_v17  ;;  %v6479_v50 = vmul.f32 %v8592_v36, %v16864_v46  ;;  %v8635_v63 = vld [vmem:[%s16120_s5 + $0x600] sm:$0xff]  ;;  %v8600_v17 = vld [vmem:[%s16120_s5 + $0x4e8] sm:$0xff] }
 0x7bc   :  { %16858 = vst [vmem:[#allocation138_spill] sm:$0xff] %v14075_v53  ;;  %10145 = vset.pattern.permute.xlu1 %v16449_v22  ;;  %v8578_v22 = vld [vmem:[%s16120_s5 + $0x438] sm:$0xff]  ;;  %v16866_v27 = vld [vmem:[#allocation201_spill] sm:$0xff]  ;;  %v6846_v44 = vadd.f32 %v6838_v34, %v6741_v39  ;;  %v7104_v59 = vmul.f32 %v8635_v63, %v16869_v57 }
 0x7bd   :  { %6200 = vperm.xlu1 %10145, %v13453_v21   ;;  %v14087_v20 = vpop.permute.xlu0 %7295  ;;  %v6271_v28 = vmul.f32 %v8578_v22, %v16866_v27  ;;  %v16868_v19 = vld [vmem:[#allocation20_spill] sm:$0xff]  ;;  %v8608_v39 = vld [vmem:[%s16120_s5 + $0x528] sm:$0xff] }
 0x7be   :  { %16860 = vst [vmem:[#allocation194_spill] sm:$0xff] %v14087_v20  ;;  %v6999_v61 = vmul.f32 %v8627_v2, %v16868_v19  ;;  %v6951_v2 = vadd.f32 %v6943_v4, %v6846_v44  ;;  %v8628_v11 = vld [vmem:[%s16120_s5 + $0x5c8] sm:$0xff]  ;;  %v8643_v4 = vld [vmem:[%s16120_s5 + $0x640] sm:$0xff] }
 0x7bf   :  { %7832 = vperm.xlu0 %10198, %v16804_v54   ;;  %v6279_v22 = vadd.f32 %v6271_v28, %v6174_v30  ;;  %v16873_v30 = vld [vmem:[#allocation208_spill] sm:$0xff]  ;;  %v8636_v28 = vld [vmem:[%s16120_s5 + $0x608] sm:$0xff] }
 0x7c0   :  { %v14106_v43 = vpop.permute.xlu1 %6612  ;;  %v7007_v36 = vadd.f32 %v6999_v61, %v6902_v3  ;;  %v16871_v3 = vld [vmem:[#allocation102_spill] sm:$0xff]  ;;  %v7048_v27 = vmul.f32 %v8628_v11, %v16873_v30  ;;  %v16874_v61 = vld [vmem:[#allocation155_spill] sm:$0xff]  ;;  %v8651_v6 = vld [vmem:[%s16120_s5 + $0x680] sm:$0xff] }
 0x7c1   :  { %16865 = vst [vmem:[#allocation141_spill] sm:$0xff] %v14106_v43  ;;  %10147 = vset.pattern.permute.xlu1 %v16453_v1  ;;  %v14114_v38 = vpop.permute.xlu0 %7299  ;;  %v6487_v1 = vadd.f32 %v6479_v50, %v6382_v8  ;;  %v6584_v46 = vmul.f32 %v8600_v17, %v16871_v3  ;;  %v8594_v8 = vld [vmem:[%s16120_s5 + $0x4b8] sm:$0xff]  ;;  %v6689_v17 = vmul.f32 %v8608_v39, %v16874_v61  ;;  %v10207_v20 = vld [vmem:[%s16120_s5 + $0x88] sm:$0xff] }
 0x7c2   :  { %16867 = vst [vmem:[#allocation189_spill] sm:$0xff] %v14114_v38  ;;  %6410 = vperm.xlu1 %10147, %v13453_v21   ;;  %v16872_v50 = vld [vmem:[#allocation152_spill] sm:$0xff]  ;;  %v7112_v44 = vadd.f32 %v7104_v59, %v7007_v36  ;;  %v16878_v59 = vld [vmem:[#allocation9_spill] sm:$0xff] }
 0x7c3   :  { %7884 = vperm.xlu0 %10198, %v13353_v9   ;;  %v6376_v63 = vmul.f32 %v8586_v0, %v16872_v50  ;;  %v6592_v19 = vadd.f32 %v6584_v46, %v6487_v1  ;;  %v7056_v0 = vadd.f32 %v7048_v27, %v6951_v2  ;;  %v16876_v50 = vld [vmem:[#allocation257_spill] sm:$0xff]  ;;  %v8602_v39 = vld [vmem:[%s16120_s5 + $0x4f8] sm:$0xff] }
 0x7c4   :  { %v7153_v11 = vmul.f32 %v8636_v28, %v16876_v50  ;;  %v8616_v1 = vld [vmem:[%s16120_s5 + $0x568] sm:$0xff] }
 0x7c5   :  { %v14129_v32 = vpop.permute.xlu1 %6822  ;;  %v14131_v34 = vpop.permute.xlu0 %7303  ;;  %v6384_v57 = vadd.f32 %v6376_v63, %v6279_v22  ;;  %v7314_v22 = vmul.f32 %v8651_v6, %v14024_v60  ;;  %v6697_v2 = vadd.f32 %v6689_v17, %v6592_v19  ;;  %v8644_v46 = vld [vmem:[%s16120_s5 + $0x648] sm:$0xff] }
 0x7c6   :  { %16870 = vst [vmem:[#allocation244_spill] sm:$0xff] %v14129_v32  ;;  %10149 = vset.pattern.permute.xlu1 %v16456_v31  ;;  %v16875_v31 = vld [vmem:[#allocation203_spill] sm:$0xff]  ;;  %v7209_v32 = vmul.f32 %v8643_v4, %v16878_v59  ;;  %v8624_v63 = vld [vmem:[%s16120_s5 + $0x5a8] sm:$0xff]  ;;  %v7161_v28 = vadd.f32 %v7153_v11, %v7056_v0  ;;  %v16879_v4 = vld [vmem:[#allocation104_spill] sm:$0xff] }
 0x7c7   :  { %6620 = vperm.xlu1 %10149, %v13453_v21   ;;  %v6481_v3 = vmul.f32 %v8594_v8, %v16875_v31  ;;  %v6794_v61 = vmul.f32 %v8616_v1, %v16879_v4  ;;  %v16880_v31 = vld [vmem:[#allocation154_spill] sm:$0xff]  ;;  %v16883_v59 = vld [vmem:[#allocation157_spill] sm:$0xff] }
 0x7c8   :  { %v7217_v8 = vadd.f32 %v7209_v32, %v7112_v44  ;;  %v6586_v60 = vmul.f32 %v8602_v39, %v16880_v31  ;;  %v8652_v6 = vld [vmem:[%s16120_s5 + $0x688] sm:$0xff]  ;;  %v8659_v32 = vld [vmem:[%s16120_s5 + $0x6c0] sm:$0xff]  ;;  %v6899_v1 = vmul.f32 %v8624_v63, %v16883_v59 }
 0x7c9   :  { %v14153_v30 = vpop.permute.xlu0 %7311  ;;  %v6489_v27 = vadd.f32 %v6481_v3, %v6384_v57  ;;  %v16881_v19 = vld [vmem:[#allocation210_spill] sm:$0xff]  ;;  %v7363_v3 = vmul.f32 %v8652_v6, %v14040_v45  ;;  %v6802_v11 = vadd.f32 %v6794_v61, %v6697_v2  ;;  %v16884_v4 = vld [vmem:[#allocation205_spill] sm:$0xff] }
 0x7ca   :  { %v14158_v36 = vpop.permute.xlu1 %7032  ;;  %v7258_v17 = vmul.f32 %v8644_v46, %v16881_v19  ;;  %v7322_v57 = vadd.f32 %v7314_v22, %v7217_v8  ;;  %v8660_v45 = vld [vmem:[%s16120_s5 + $0x6c8] sm:$0xff] }
 0x7cb   :  { %16877 = vst [vmem:[#allocation111_spill] sm:$0xff] %v14158_v36  ;;  %10151 = vset.pattern.permute.xlu1 %v16460_v18  ;;  %v8610_v18 = vld [vmem:[%s16120_s5 + $0x538] sm:$0xff]  ;;  %v6594_v39 = vadd.f32 %v6586_v60, %v6489_v27  ;;  %v8632_v2 = vld [vmem:[%s16120_s5 + $0x5e8] sm:$0xff]  ;;  %v6907_v27 = vadd.f32 %v6899_v1, %v6802_v11 }
 0x7cc   :  { %6830 = vperm.xlu1 %10151, %v13453_v21   ;;  %v6691_v31 = vmul.f32 %v8610_v18, %v16884_v4  ;;  %v7266_v36 = vadd.f32 %v7258_v17, %v7161_v28  ;;  %v8626_v60 = vld [vmem:[%s16120_s5 + $0x5b8] sm:$0xff]  ;;  %v16889_v6 = vld [vmem:[#allocation106_spill] sm:$0xff] }
 0x7cd   :  { %v16892_v11 = vld [vmem:[#allocation207_spill] sm:$0xff] }
 0x7ce   :  { %v7389_v44 = vpop.permute.xlu0 %7388  ;;  %v7371_v46 = vadd.f32 %v7363_v3, %v7266_v36  ;;  %v6699_v28 = vadd.f32 %v6691_v31, %v6594_v39  ;;  %v8640_v36 = vld [vmem:[%s16120_s5 + $0x628] sm:$0xff]  ;;  %v6901_v59 = vmul.f32 %v8626_v60, %v16892_v11  ;;  %v16894_v39 = vmov 28  }
 0x7cf   :  { %v7419_v0 = vmul.f32 %v8659_v32, %v7389_v44  ;;  %v14189_v50 = vpop.permute.xlu1 %7242  ;;  %v7004_v32 = vmul.f32 %v8632_v2, %v16889_v6  ;;  %v16890_v44 = vld [vmem:[#allocation156_spill] sm:$0xff]  ;;  %v8648_v31 = vld [vmem:[%s16120_s5 + $0x668] sm:$0xff] }
 0x7d0   :  { %16882 = vst [vmem:[#allocation47_spill] sm:$0xff] %v14189_v50  ;;  %10153 = vset.pattern.permute.xlu1 %v16463_v26  ;;  %v8618_v26 = vld [vmem:[%s16120_s5 + $0x578] sm:$0xff]  ;;  %v16899_v60 = vld [vmem:[#allocation158_spill] sm:$0xff] }
 0x7d1   :  { %v14194_v43 = vadd.f32 %v7419_v0, %v7322_v57  ;;  %7040 = vperm.xlu1 %10153, %v13453_v21   ;;  %v6796_v19 = vmul.f32 %v8618_v26, %v16890_v44  ;;  %v7012_v17 = vadd.f32 %v7004_v32, %v6907_v27  ;;  %v16891_v57 = vld [vmem:[#allocation159_spill] sm:$0xff]  ;;  %v8664_v44 = vld [vmem:[%s16120_s5 + $0x6e8] sm:$0xff] }
 0x7d2   :  { %v7441_v22 = vpop.permute.xlu0 %7440  ;;  %v7109_v3 = vmul.f32 %v8640_v36, %v16891_v57  ;;  %v8642_v2 = vld [vmem:[%s16120_s5 + $0x638] sm:$0xff] }
 0x7d3   :  { %16885 = vst [vmem:[#allocation12_spill] sm:$0xff] %v14194_v43  ;;  %v7468_v8 = vmul.f32 %v8660_v45, %v7441_v22  ;;  %v6804_v0 = vadd.f32 %v6796_v19, %v6699_v28  ;;  %v8634_v45 = vld [vmem:[%s16120_s5 + $0x5f8] sm:$0xff]  ;;  %v8656_v22 = vld [vmem:[%s16120_s5 + $0x6a8] sm:$0xff] }
 0x7d4   :  { %v14206_v63 = vpop.permute.xlu1 %4629  ;;  %v16898_v28 = vld [vmem:[#allocation108_spill] sm:$0xff]  ;;  %v7006_v6 = vmul.f32 %v8634_v45, %v16899_v60  ;;  %v7319_v32 = vmul.f32 %v8656_v22, %v14131_v34 }
 0x7d5   :  { %16886 = vst [vmem:[#allocation90_spill] sm:$0xff] %v14206_v63  ;;  %v14208_v61 = vadd.f32 %v7468_v8, %v7371_v46  ;;  %10154 = vset.pattern.permute.xlu1 %v16655_v40  ;;  %v7117_v46 = vadd.f32 %v7109_v3, %v7012_v17  ;;  %v6909_v8 = vadd.f32 %v6901_v59, %v6804_v0  ;;  %v16900_v17 = vld [vmem:[#allocation209_spill] sm:$0xff]  ;;  %v8650_v34 = vld [vmem:[%s16120_s5 + $0x678] sm:$0xff] }
 0x7d6   :  { %7396 = vperm.xlu1 %10154, %v12286_v62   ;;  %v14218_v18 = vpop.permute.xlu0 %7444  ;;  %v7214_v36 = vmul.f32 %v8648_v31, %v16898_v28  ;;  %v7111_v57 = vmul.f32 %v8642_v2, %v16900_v17  ;;  %v8658_v45 = vld [vmem:[%s16120_s5 + $0x6b8] sm:$0xff] }
 0x7d7   :  { %16887 = vst [vmem:[#allocation140_spill] sm:$0xff] %v14208_v61  ;;  %16888 = vst [vmem:[#allocation196_spill] sm:$0xff] %v14218_v18  ;;  %v7014_v19 = vadd.f32 %v7006_v6, %v6909_v8  ;;  %v8666_v6 = vld [vmem:[%s16120_s5 + $0x6f8] sm:$0xff] }
 0x7d8   :  { %v7222_v3 = vadd.f32 %v7214_v36, %v7117_v46  ;;  %v16904_v46 = vld [vmem:[#allocation160_spill] sm:$0xff]  ;;  %v7321_v36 = vmul.f32 %v8658_v45, %v14153_v30 }
 0x7d9   :  { %v14224_v1 = vpop.permute.xlu1 %4839  ;;  %v7119_v22 = vadd.f32 %v7111_v57, %v7014_v19  ;;  %v7216_v28 = vmul.f32 %v8650_v34, %v16904_v46  ;;  %v14310_v46 = vld [vmem:[%s16120_s5 + $0x18] sm:$0xff] }
 0x7da   :  { %16893 = vst [vmem:[#allocation143_spill] sm:$0xff] %v14224_v1  ;;  %10155 = vset.pattern.permute.xlu1 %v16894_v39  ;;  %v14227_v4 = vpop.permute.xlu0 %7448  ;;  %v7327_v11 = vadd.f32 %v7319_v32, %v7222_v3 }
 0x7db   :  { %16895 = vst [vmem:[#allocation191_spill] sm:$0xff] %v14227_v4  ;;  %7493 = vperm.xlu1 %10155, %v12109_v55   ;;  %v7224_v32 = vadd.f32 %v7216_v28, %v7119_v22  ;;  %v14305_v22 = vld [vmem:[%s16120_s5 + $0x58] sm:$0xff]  ;;  %v16933_v4 = vld [vmem:[#allocation30_spill] sm:$0xff] }
 0x7dc   :  { %v14317_v28 = vld [vmem:[%s16120_s5 + $0x98] sm:$0xff] }
 0x7dd   :  { %v7329_v19 = vadd.f32 %v7321_v36, %v7224_v32 }
 0x7de   :  { %v14242_v26 = vpop.permute.xlu1 %5049  ;;  %v14244_v27 = vpop.permute.xlu0 %7452 }
 0x7df   :  { %16896 = vst [vmem:[#allocation246_spill] sm:$0xff] %v14242_v26  ;;  %16897 = vst [vmem:[#allocation46_spill] sm:$0xff] %v14244_v27  ;;  %7497 = vperm.xlu1 %10155, %v16816_v29   ;;  %v14333_v27 = vld [vmem:[%s16120_s5 + $0xd8] sm:$0xff]  ;;  %v16940_v26 = vld [vmem:[#allocation65_spill] sm:$0xff] }
 0x7e2   :  { %v7409_v0 = vpop.permute.xlu0 %7408 }
 0x7e3   :  { %v7424_v59 = vmul.f32 %v8664_v44, %v7409_v0  ;;  %7545 = vperm.xlu1 %10155, %v12721_v58   ;;  %v14255_v31 = vpop.permute.xlu1 %5259 }
 0x7e4   :  { %16901 = vst [vmem:[#allocation22_spill] sm:$0xff] %v14255_v31 }
 0x7e5   :  { %v14263_v8 = vadd.f32 %v7424_v59, %v7327_v11  ;;  %v16911_v59 = vmov 29  }
 0x7e6   :  { %v14265_v2 = vpop.permute.xlu0 %7460 }
 0x7e7   :  { %16902 = vst [vmem:[#allocation49_spill] sm:$0xff] %v14263_v8  ;;  %16903 = vst [vmem:[#allocation92_spill] sm:$0xff] %v14265_v2  ;;  %10156 = vset.pattern.permute.xlu1 %v16423_v51  ;;  %v16919_v8 = vld [vmem:[#allocation17_spill] sm:$0xff]  ;;  %v14406_v2 = vld [vmem:[%s16120_s5 + $0x170] sm:$0xff] }
 0x7e8   :  { %7246 = vperm.xlu1 %10156, %v13145_v33   ;;  %v14271_v60 = vpop.permute.xlu1 %5469  ;;  %v4902_v50 = vmul.f32 %v14333_v27, %v16919_v8  ;;  %16925 = vst [vmem:[#allocation51_spill] sm:$0xff] %v14406_v2 }
 0x7e9   :  { %16905 = vst [vmem:[#allocation142_spill] sm:$0xff] %v14271_v60  ;;  %v10206_v60 = vld [vmem:[%s16120_s5 + $0x8] sm:$0xff] }
 0x7ea   :  { %v7417_v44 = vpop.permute.xlu0 %7416 }
 0x7eb   :  { %v7426_v17 = vmul.f32 %v8666_v6, %v7417_v44  ;;  %v16916_v6 = vld [vmem:[#allocation13_spill] sm:$0xff] }
 0x7ec   :  { %10157 = vset.pattern.permute.xlu1 %v16653_v49  ;;  %v4579_v32 = vmul.f32 %v16916_v6, %v14310_v46  ;;  %v16917_v44 = vld [vmem:[#allocation21_spill] sm:$0xff]  ;;  %v14339_v6 = vld [vmem:[%s16120_s5 + $0x118] sm:$0xff] }
 0x7ed   :  { %v14277_v57 = vadd.f32 %v7426_v17, %v7329_v19  ;;  %7347 = vperm.xlu1 %10157, %v13245_v5   ;;  %v14280_v30 = vpop.permute.xlu1 %5679  ;;  %v4797_v19 = vmul.f32 %v14317_v28, %v16917_v44  ;;  %v14344_v44 = vld [vmem:[%s16120_s5 + $0x70] sm:$0xff] }
 0x7ee   :  { %16907 = vst [vmem:[#allocation145_spill] sm:$0xff] %v14280_v30 }
 0x7ef   :  { %16906 = vst [vmem:[#allocation198_spill] sm:$0xff] %v14277_v57 }
 0x7f1   :  { %10158 = vset.pattern.permute.xlu1 %v16655_v40 }
 0x7f2   :  { %7400 = vperm.xlu1 %10158, %v12177_v52   ;;  %v14284_v3 = vpop.permute.xlu1 %5889 }
 0x7f3   :  { %16908 = vst [vmem:[#allocation193_spill] sm:$0xff] %v14284_v3  ;;  %v16926_v3 = vld [vmem:[#allocation63_spill] sm:$0xff] }
 0x7f6   :  { %10159 = vset.pattern.permute.xlu1 %v16894_v39 }
 0x7f7   :  { %7501 = vperm.xlu1 %10159, %v12286_v62   ;;  %v14288_v0 = vpop.permute.xlu1 %6099 }
 0x7f8   :  { %16909 = vst [vmem:[#allocation248_spill] sm:$0xff] %v14288_v0 }
 0x7fb   :  { %7549 = vperm.xlu1 %10159, %v13037_v25  }
 0x7fc   :  { %v14291_v11 = vpop.permute.xlu1 %6309 }
 0x7fd   :  { %16910 = vst [vmem:[#allocation14_spill] sm:$0xff] %v14291_v11 }
 0x7ff   :  { %10160 = vset.pattern.permute.xlu1 %v16911_v59 }
 0x800   :  { %7602 = vperm.xlu1 %10160, %v16816_v29  }
 0x801   :  { %v14295_v34 = vpop.permute.xlu1 %6519 }
 0x802   :  { %16912 = vst [vmem:[#allocation48_spill] sm:$0xff] %v14295_v34 }
 0x804   :  { %7646 = vperm.xlu1 %10160, %v12829_v42  }
 0x806   :  { %v14298_v45 = vpop.permute.xlu1 %6729 }
 0x807   :  { %16913 = vst [vmem:[#allocation94_spill] sm:$0xff] %v14298_v45  ;;  %v16920_v45 = vld [vmem:[#allocation61_spill] sm:$0xff] }
 0x808   :  { %10162 = vset.pattern.permute.xlu1 %v16423_v51  ;;  %v16915_v51 = vld [vmem:[#allocation11_spill] sm:$0xff]  ;;  %v5007_v53 = vmul.f32 %v14339_v6, %v16920_v45 }
 0x809   :  { %7250 = vperm.xlu1 %10162, %v13453_v21   ;;  %v4692_v36 = vmul.f32 %v14305_v22, %v16915_v51 }
 0x80b   :  { %v14312_v29 = vpop.permute.xlu1 %6939  ;;  %v4700_v57 = vadd.f32 %v4692_v36, %v4579_v32  ;;  %v14349_v36 = vld [vmem:[%s16120_s5 + $0x30] sm:$0xff] }
 0x80c   :  { %16914 = vst [vmem:[#allocation144_spill] sm:$0xff] %v14312_v29 }
 0x80d   :  { %10163 = vset.pattern.permute.xlu1 %v16653_v49  ;;  %v4805_v51 = vadd.f32 %v4797_v19, %v4700_v57  ;;  %v4638_v57 = vmul.f32 %v13663_v14, %v14349_v36  ;;  %v14370_v14 = vld [vmem:[%s16120_s5 + $0xf0] sm:$0xff] }
 0x80e   :  { %7351 = vperm.xlu1 %10163, %v13145_v33  }
 0x80f   :  { %v4910_v29 = vadd.f32 %v4902_v50, %v4805_v51  ;;  %v14375_v50 = vld [vmem:[%s16120_s5 + $0x158] sm:$0xff] }
 0x810   :  { %v14327_v17 = vpop.permute.xlu1 %7149 }
 0x811   :  { %16918 = vst [vmem:[#allocation200_spill] sm:$0xff] %v14327_v17  ;;  %v14359_v17 = vld [vmem:[%s16120_s5 + $0xb0] sm:$0xff]  ;;  %v5015_v51 = vadd.f32 %v5007_v53, %v4910_v29 }
 0x812   :  { %10164 = vset.pattern.permute.xlu1 %v16655_v40  ;;  %v4848_v34 = vmul.f32 %v14359_v17, %v13686_v16  ;;  %v14381_v16 = vld [vmem:[%s16120_s5 + $0x130] sm:$0xff] }
 0x813   :  { %7404 = vperm.xlu1 %10164, %v12397_v24   ;;  %16921 = vst [vmem:[#allocation147_spill] sm:$0xff] %v14381_v16  ;;  %v5058_v53 = vmul.f32 %v14381_v16, %v13698_v37 }
 0x815   :  { %v4731_v32 = vpop.permute.xlu1 %4730 }
 0x816   :  { %v4743_v19 = vmul.f32 %v14344_v44, %v4731_v32 }
 0x817   :  { %10165 = vset.pattern.permute.xlu1 %v16894_v39 }
 0x818   :  { %v4751_v8 = vadd.f32 %v4743_v19, %v4638_v57  ;;  %7505 = vperm.xlu1 %10165, %v12177_v52   ;;  %v14387_v57 = vld [vmem:[%s16120_s5 + $0x198] sm:$0xff] }
 0x819   :  { %v16923_v19 = vld [vmem:[#allocation31_spill] sm:$0xff]  ;;  %v5217_v37 = vmul.f32 %v14387_v57, %v16926_v3  ;;  %v5268_v3 = vmul.f32 %v14417_v13, %v13720_v7 }
 0x81a   :  { %v4941_v32 = vpop.permute.xlu1 %4940  ;;  %v4856_v11 = vadd.f32 %v4848_v34, %v4751_v8  ;;  %v14392_v34 = vld [vmem:[%s16120_s5 + $0x60] sm:$0xff]  ;;  %v5112_v8 = vmul.f32 %v14375_v50, %v16923_v19 }
 0x81b   :  { %v4953_v45 = vmul.f32 %v14370_v14, %v4941_v32  ;;  %16922 = vst [vmem:[#allocation195_spill] sm:$0xff] %v14392_v34  ;;  %v14401_v32 = vld [vmem:[%s16120_s5 + $0x20] sm:$0xff] }
 0x81c   :  { %7553 = vperm.xlu1 %10165, %v12937_v15   ;;  %16924 = vst [vmem:[#allocation250_spill] sm:$0xff] %v14401_v32  ;;  %v5120_v61 = vadd.f32 %v5112_v8, %v5015_v51  ;;  %v14432_v8 = vld [vmem:[%s16120_s5 + $0xa0] sm:$0xff] }
 0x81d   :  { %v4961_v29 = vadd.f32 %v4953_v45, %v4856_v11  ;;  %v16927_v11 = vld [vmem:[#allocation161_spill] sm:$0xff]  ;;  %16930 = vst [vmem:[#allocation96_spill] sm:$0xff] %v14432_v8 }
 0x81e   :  { %v4693_v45 = vmul.f32 %v14392_v34, %v16927_v11  ;;  %v5225_v11 = vadd.f32 %v5217_v37, %v5120_v61  ;;  %v4577_v61 = vmul.f32 %v10206_v60, %v16933_v4  ;;  %v14450_v37 = vld [vmem:[%s16120_s5 + $0x218] sm:$0xff]  ;;  %v14466_v60 = vld [vmem:[%s16120_s5 + $0x230] sm:$0xff] }
 0x81f   :  { %v5151_v41 = vpop.permute.xlu1 %5150  ;;  %v5066_v0 = vadd.f32 %v5058_v53, %v4961_v29  ;;  %v16929_v53 = vld [vmem:[#allocation110_spill] sm:$0xff]  ;;  %16938 = vst [vmem:[#allocation149_spill] sm:$0xff] %v14466_v60  ;;  %v5478_v38 = vmul.f32 %v14466_v60, %v13745_v10 }
 0x820   :  { %v5163_v19 = vmul.f32 %v14406_v2, %v5151_v41  ;;  %10166 = vset.pattern.permute.xlu1 %v16911_v59  ;;  %v4580_v51 = vmul.f32 %v16929_v53, %v14401_v32  ;;  %v14427_v41 = vld [vmem:[%s16120_s5 + $0x1d8] sm:$0xff]  ;;  %v14437_v53 = vld [vmem:[%s16120_s5 + $0x1f0] sm:$0xff] }
 0x821   :  { %7654 = vperm.xlu1 %10166, %v13037_v25   ;;  %16931 = vst [vmem:[#allocation146_spill] sm:$0xff] %v14437_v53  ;;  %v16941_v32 = vld [vmem:[#allocation163_spill] sm:$0xff] }
 0x822   :  { %v5171_v29 = vadd.f32 %v5163_v19, %v5066_v0  ;;  %v4701_v43 = vadd.f32 %v4693_v45, %v4580_v51  ;;  %v10205_v0 = vld [vmem:[%s16120_s5 + $0x48] sm:$0xff]  ;;  %v16932_v19 = vld [vmem:[#allocation28_spill] sm:$0xff]  ;;  %v8521_v34 = vld [vmem:[%s16120_s5 + $0x270] sm:$0xff] }
 0x823   :  { %v4690_v18 = vmul.f32 %v10205_v0, %v16932_v19  ;;  %v14455_v45 = vld [vmem:[%s16120_s5 + $0xe0] sm:$0xff] }
 0x824   :  { %v5361_v30 = vpop.permute.xlu1 %5360  ;;  %v5276_v7 = vadd.f32 %v5268_v3, %v5171_v29  ;;  %16934 = vst [vmem:[#allocation202_spill] sm:$0xff] %v14455_v45  ;;  %v16935_v3 = vmov 30   ;;  %v16936_v29 = vld [vmem:[#allocation62_spill] sm:$0xff]  ;;  %v16937_v19 = vld [vmem:[#allocation113_spill] sm:$0xff]  ;;  %v4903_v13 = vmul.f32 %v14455_v45, %v16941_v32 }
 0x825   :  { %v5373_v51 = vmul.f32 %v14437_v53, %v5361_v30  ;;  %10167 = vset.pattern.permute.xlu1 %v16935_v3  ;;  %v5322_v0 = vmul.f32 %v14427_v41, %v16936_v29  ;;  %v4798_v4 = vmul.f32 %v14432_v8, %v16937_v19  ;;  %v16939_v30 = vld [vmem:[#allocation24_spill] sm:$0xff]  ;;  %v5427_v19 = vmul.f32 %v14450_v37, %v16940_v26 }
 0x826   :  { %7703 = vperm.xlu1 %10167, %v12109_v55   ;;  %v4795_v31 = vmul.f32 %v10207_v20, %v16939_v30  ;;  %v4698_v2 = vadd.f32 %v4690_v18, %v4577_v61  ;;  %v8529_v18 = vld [vmem:[%s16120_s5 + $0x2b0] sm:$0xff]  ;;  %v14504_v61 = vld [vmem:[%s16120_s5 + $0x298] sm:$0xff] }
 0x827   :  { %v5381_v29 = vadd.f32 %v5373_v51, %v5276_v7  ;;  %v5330_v53 = vadd.f32 %v5322_v0, %v5225_v11  ;;  %v4806_v8 = vadd.f32 %v4798_v4, %v4701_v43  ;;  %v14486_v11 = vld [vmem:[%s16120_s5 + $0x258] sm:$0xff]  ;;  %v14491_v43 = vld [vmem:[%s16120_s5 + $0x120] sm:$0xff] }
 0x828   :  { %v4803_v10 = vadd.f32 %v4795_v31, %v4698_v2  ;;  %16942 = vst [vmem:[#allocation197_spill] sm:$0xff] %v14491_v43  ;;  %v10208_v31 = vld [vmem:[%s16120_s5 + $0xc8] sm:$0xff]  ;;  %v16945_v51 = vld [vmem:[#allocation64_spill] sm:$0xff]  ;;  %v16946_v4 = vld [vmem:[#allocation115_spill] sm:$0xff] }
 0x829   :  { %v5571_v62 = vpop.permute.xlu1 %5570  ;;  %v5486_v16 = vadd.f32 %v5478_v38, %v5381_v29  ;;  %v5435_v26 = vadd.f32 %v5427_v19, %v5330_v53  ;;  %v4911_v38 = vadd.f32 %v4903_v13, %v4806_v8  ;;  %v16944_v2 = vld [vmem:[#allocation33_spill] sm:$0xff]  ;;  %v5532_v0 = vmul.f32 %v14486_v11, %v16945_v51  ;;  %v8537_v8 = vld [vmem:[%s16120_s5 + $0x2f0] sm:$0xff] }
 0x82a   :  { %v5583_v20 = vmul.f32 %v8521_v34, %v5571_v62  ;;  %7751 = vperm.xlu1 %10167, %v12829_v42   ;;  %v16943_v62 = vld [vmem:[#allocation137_spill] sm:$0xff]  ;;  %v4900_v7 = vmul.f32 %v10208_v31, %v16944_v2  ;;  %v5008_v13 = vmul.f32 %v14491_v43, %v16946_v4  ;;  %v16949_v31 = vld [vmem:[#allocation259_spill] sm:$0xff] }
 0x82b   :  { %v5688_v34 = vmul.f32 %v8529_v18, %v16943_v62  ;;  %v10209_v19 = vld [vmem:[%s16120_s5 + $0x108] sm:$0xff]  ;;  %v10210_v62 = vld [vmem:[%s16120_s5 + $0x40] sm:$0xff]  ;;  %v5540_v4 = vadd.f32 %v5532_v0, %v5435_v26  ;;  %v16950_v43 = vld [vmem:[#allocation67_spill] sm:$0xff] }
 0x82c   :  { %v5591_v32 = vadd.f32 %v5583_v20, %v5486_v16  ;;  %v14513_v16 = vld [vmem:[%s16120_s5 + $0x160] sm:$0xff]  ;;  %v4908_v29 = vadd.f32 %v4900_v7, %v4803_v10  ;;  %v4737_v2 = vmul.f32 %v10210_v62, %v16949_v31  ;;  %v5637_v45 = vmul.f32 %v14504_v61, %v16950_v43  ;;  %v8545_v10 = vld [vmem:[%s16120_s5 + $0x330] sm:$0xff] }
 0x82d   :  { %16947 = vst [vmem:[#allocation252_spill] sm:$0xff] %v14513_v16  ;;  %v16948_v20 = vld [vmem:[#allocation53_spill] sm:$0xff]  ;;  %v5016_v60 = vadd.f32 %v5008_v13, %v4911_v38  ;;  %v16952_v26 = vld [vmem:[#allocation212_spill] sm:$0xff]  ;;  %v5898_v43 = vmul.f32 %v8545_v10, %v13807_v48  ;;  %v4530_v31 = vld [vmem:[%s16120_s5 + $0x10] sm:$0xff] }
 0x82e   :  { %7755 = vperm.xlu1 %10167, %v12721_v58   ;;  %v5781_v53 = vpop.permute.xlu1 %5780  ;;  %v5696_v30 = vadd.f32 %v5688_v34, %v5591_v32  ;;  %v5005_v18 = vmul.f32 %v10209_v19, %v16948_v20  ;;  %v8453_v34 = vld [vmem:[%s16120_s5 + $0x50] sm:$0xff]  ;;  %v16951_v32 = vld [vmem:[#allocation165_spill] sm:$0xff]  ;;  %v16954_v19 = vld [vmem:[#allocation320_spill] sm:$0xff] }
 0x82f   :  { %v5793_v51 = vmul.f32 %v8537_v8, %v5781_v53  ;;  %v5113_v7 = vmul.f32 %v14513_v16, %v16951_v32  ;;  %v10211_v8 = vld [vmem:[%s16120_s5] sm:$0xff]  ;;  %v4739_v20 = vmul.f32 %v8453_v34, %v16954_v19  ;;  %v8553_v32 = vld [vmem:[%s16120_s5 + $0x370] sm:$0xff]  ;;  %v5645_v19 = vadd.f32 %v5637_v45, %v5540_v4 }
 0x830   :  { %v4632_v0 = vmul.f32 %v10211_v8, %v16952_v26  ;;  %v16953_v13 = vld [vmem:[#allocation289_spill] sm:$0xff]  ;;  %v5013_v62 = vadd.f32 %v5005_v18, %v4908_v29  ;;  %v16957_v18 = vld [vmem:[#allocation258_spill] sm:$0xff]  ;;  %v16958_v34 = vld [vmem:[#allocation291_spill] sm:$0xff] }
 0x831   :  { %v5801_v38 = vadd.f32 %v5793_v51, %v5696_v30  ;;  %v4635_v53 = vmul.f32 %v16953_v13, %v14310_v46  ;;  %v14556_v46 = vld [vmem:[%s16120_s5 + $0x1a0] sm:$0xff]  ;;  %v4634_v10 = vmul.f32 %v16957_v18, %v4530_v31  ;;  %v4845_v26 = vmul.f32 %v14317_v28, %v16958_v34  ;;  %v16960_v31 = vld [vmem:[#allocation214_spill] sm:$0xff] }
 0x832   :  { %10170 = vset.pattern.permute.xlu1 %v16653_v49  ;;  %v4745_v8 = vadd.f32 %v4737_v2, %v4632_v0  ;;  %16955 = vst [vmem:[#allocation50_spill] sm:$0xff] %v14556_v46  ;;  %v16956_v51 = vld [vmem:[#allocation237_spill] sm:$0xff]  ;;  %v16959_v0 = vld [vmem:[#allocation23_spill] sm:$0xff]  ;;  %v5121_v16 = vadd.f32 %v5113_v7, %v5016_v60 }
 0x833   :  { %7307 = vperm.xlu1 %10170, %v16804_v54   ;;  %v5991_v48 = vpop.permute.xlu1 %5990  ;;  %v5906_v30 = vadd.f32 %v5898_v43, %v5801_v38  ;;  %v4740_v29 = vmul.f32 %v14305_v22, %v16956_v51  ;;  %v10212_v2 = vld [vmem:[%s16120_s5 + $0x148] sm:$0xff]  ;;  %v14570_v38 = vld [vmem:[%s16120_s5 + $0x2d8] sm:$0xff]  ;;  %v10213_v22 = vld [vmem:[%s16120_s5 + $0x80] sm:$0xff]  ;;  %v4747_v18 = vadd.f32 %v4739_v20, %v4634_v10 }
 0x834   :  { %v6003_v13 = vmul.f32 %v8553_v32, %v5991_v48  ;;  %v5110_v43 = vmul.f32 %v10212_v2, %v16959_v0  ;;  %v4842_v28 = vmul.f32 %v10213_v22, %v16960_v31  ;;  %v8561_v32 = vld [vmem:[%s16120_s5 + $0x3b0] sm:$0xff]  ;;  %v14582_v48 = vld [vmem:[%s16120_s5 + $0x1e0] sm:$0xff]  ;;  %v14600_v20 = vld [vmem:[%s16120_s5 + $0x318] sm:$0xff] }
 0x835   :  { %v4748_v51 = vadd.f32 %v4740_v29, %v4635_v53  ;;  %v6108_v45 = vmul.f32 %v8561_v32, %v13832_v35  ;;  %v8461_v7 = vld [vmem:[%s16120_s5 + $0x90] sm:$0xff]  ;;  %v16961_v34 = vld [vmem:[#allocation117_spill] sm:$0xff] }
 0x836   :  { %v6011_v60 = vadd.f32 %v6003_v13, %v5906_v30  ;;  %v5118_v4 = vadd.f32 %v5110_v43, %v5013_v62  ;;  %v5218_v2 = vmul.f32 %v14556_v46, %v16961_v34  ;;  %v4850_v0 = vadd.f32 %v4842_v28, %v4745_v8  ;;  %v10214_v22 = vld [vmem:[%s16120_s5 + $0xc0] sm:$0xff]  ;;  %v16963_v53 = vld [vmem:[#allocation66_spill] sm:$0xff] }
 0x837   :  { %v16962_v31 = vld [vmem:[#allocation261_spill] sm:$0xff]  ;;  %7355 = vperm.xlu1 %10170, %v13453_v21   ;;  %v5742_v35 = vmul.f32 %v14570_v38, %v16963_v53  ;;  %v8569_v62 = vld [vmem:[%s16120_s5 + $0x3f0] sm:$0xff]  ;;  %v16964_v8 = vld [vmem:[#allocation260_spill] sm:$0xff]  ;;  %v4853_v29 = vadd.f32 %v4845_v26, %v4748_v51 }
 0x838   :  { %v4947_v1 = vmul.f32 %v10214_v22, %v16962_v31  ;;  %v4844_v30 = vmul.f32 %v8461_v7, %v16964_v8  ;;  %v6201_v10 = vpop.permute.xlu1 %6200  ;;  %v6116_v13 = vadd.f32 %v6108_v45, %v6011_v60  ;;  %v10215_v43 = vld [vmem:[%s16120_s5 + $0x188] sm:$0xff]  ;;  %v8469_v34 = vld [vmem:[%s16120_s5 + $0xd0] sm:$0xff]  ;;  %v5226_v22 = vadd.f32 %v5218_v2, %v5121_v16 }
 0x839   :  { %v16965_v28 = vld [vmem:[#allocation25_spill] sm:$0xff]  ;;  %v16966_v31 = vld [vmem:[#allocation167_spill] sm:$0xff]  ;;  %v6213_v21 = vmul.f32 %v8569_v62, %v6201_v10  ;;  %v5750_v46 = vadd.f32 %v5742_v35, %v5645_v19  ;;  %v16967_v7 = vld [vmem:[#allocation238_spill] sm:$0xff] }
 0x83a   :  { %v5215_v32 = vmul.f32 %v10215_v43, %v16965_v28  ;;  %v5323_v53 = vmul.f32 %v14582_v48, %v16966_v31  ;;  %v4950_v26 = vmul.f32 %v14333_v27, %v16967_v7  ;;  %v4852_v51 = vadd.f32 %v4844_v30, %v4747_v18  ;;  %v16968_v45 = vld [vmem:[#allocation322_spill] sm:$0xff]  ;;  %v16969_v43 = vld [vmem:[#allocation69_spill] sm:$0xff]  ;;  %v16972_v7 = vld [vmem:[#allocation119_spill] sm:$0xff] }
 0x83b   :  { %v4949_v60 = vmul.f32 %v8469_v34, %v16968_v45  ;;  %v8577_v8 = vld [vmem:[%s16120_s5 + $0x430] sm:$0xff]  ;;  %v5847_v28 = vmul.f32 %v14600_v20, %v16969_v43  ;;  %v4955_v63 = vadd.f32 %v4947_v1, %v4850_v0  ;;  %v6221_v2 = vadd.f32 %v6213_v21, %v6116_v13  ;;  %10171 = vset.pattern.permute.xlu1 %v16655_v40  ;;  %v14628_v27 = vld [vmem:[%s16120_s5 + $0x220] sm:$0xff] }
 0x83c   :  { %v6318_v16 = vmul.f32 %v8577_v8, %v13859_v47  ;;  %v4958_v19 = vadd.f32 %v4950_v26, %v4853_v29  ;;  %v16970_v18 = vld [vmem:[#allocation293_spill] sm:$0xff]  ;;  %7456 = vperm.xlu1 %10171, %v13145_v33   ;;  %v5331_v62 = vadd.f32 %v5323_v53, %v5226_v22  ;;  %v16971_v47 = vld [vmem:[#allocation216_spill] sm:$0xff]  ;;  %v8585_v0 = vld [vmem:[%s16120_s5 + $0x470] sm:$0xff]  ;;  %v5223_v13 = vadd.f32 %v5215_v32, %v5118_v4 }
 0x83d   :  { %v5055_v35 = vmul.f32 %v14339_v6, %v16970_v18  ;;  %v10216_v1 = vld [vmem:[%s16120_s5 + $0x100] sm:$0xff]  ;;  %v6411_v30 = vpop.permute.xlu1 %6410  ;;  %v14643_v6 = vld [vmem:[%s16120_s5 + $0x358] sm:$0xff]  ;;  %v8477_v29 = vld [vmem:[%s16120_s5 + $0x110] sm:$0xff]  ;;  %v4957_v22 = vadd.f32 %v4949_v60, %v4852_v51  ;;  %v5855_v53 = vadd.f32 %v5847_v28, %v5750_v46  ;;  %v5428_v4 = vmul.f32 %v14628_v27, %v16972_v7 }
 0x83e   :  { %v5052_v21 = vmul.f32 %v10216_v1, %v16971_v47  ;;  %v6326_v10 = vadd.f32 %v6318_v16, %v6221_v2  ;;  %v14651_v34 = vld [vmem:[%s16120_s5 + $0x260] sm:$0xff]  ;;  %v6423_v31 = vmul.f32 %v8585_v0, %v6411_v30  ;;  %v16973_v32 = vld [vmem:[#allocation262_spill] sm:$0xff]  ;;  %v16974_v16 = vld [vmem:[#allocation263_spill] sm:$0xff] }
 0x83f   :  { %v5054_v26 = vmul.f32 %v8477_v29, %v16973_v32  ;;  %v8593_v8 = vld [vmem:[%s16120_s5 + $0x4b0] sm:$0xff]  ;;  %v10217_v43 = vld [vmem:[%s16120_s5 + $0x140] sm:$0xff]  ;;  %v5063_v18 = vadd.f32 %v5055_v35, %v4958_v19  ;;  %v5436_v0 = vadd.f32 %v5428_v4, %v5331_v62  ;;  %v14680_v35 = vld [vmem:[%s16120_s5 + $0x398] sm:$0xff] }
 0x840   :  { %v5060_v45 = vadd.f32 %v5052_v21, %v4955_v63  ;;  %v5157_v2 = vmul.f32 %v10217_v43, %v16974_v16  ;;  %v6528_v51 = vmul.f32 %v8593_v8, %v13886_v12  ;;  %v6431_v46 = vadd.f32 %v6423_v31, %v6326_v10  ;;  %10172 = vset.pattern.permute.xlu1 %v16894_v39  ;;  %v10218_v63 = vld [vmem:[%s16120_s5 + $0x1c8] sm:$0xff]  ;;  %v16976_v1 = vld [vmem:[#allocation68_spill] sm:$0xff]  ;;  %v8485_v21 = vld [vmem:[%s16120_s5 + $0x150] sm:$0xff] }
 0x841   :  { %v16975_v60 = vld [vmem:[#allocation54_spill] sm:$0xff]  ;;  %v5952_v47 = vmul.f32 %v14643_v6, %v16976_v1  ;;  %v16977_v19 = vld [vmem:[#allocation169_spill] sm:$0xff]  ;;  %7509 = vperm.xlu1 %10172, %v12397_v24   ;;  %v16978_v10 = vld [vmem:[#allocation239_spill] sm:$0xff]  ;;  %v5062_v31 = vadd.f32 %v5054_v26, %v4957_v22 }
 0x842   :  { %v5320_v28 = vmul.f32 %v10218_v63, %v16975_v60  ;;  %v5533_v12 = vmul.f32 %v14651_v34, %v16977_v19  ;;  %v8601_v30 = vld [vmem:[%s16120_s5 + $0x4f0] sm:$0xff]  ;;  %v5160_v29 = vmul.f32 %v14375_v50, %v16978_v10  ;;  %v16979_v7 = vld [vmem:[#allocation324_spill] sm:$0xff]  ;;  %v6621_v4 = vpop.permute.xlu1 %6620  ;;  %v6536_v32 = vadd.f32 %v6528_v51, %v6431_v46  ;;  %v10219_v43 = vld [vmem:[%s16120_s5 + $0x208] sm:$0xff] }
 0x843   :  { %v5159_v62 = vmul.f32 %v8485_v21, %v16979_v7  ;;  %v16980_v16 = vld [vmem:[#allocation35_spill] sm:$0xff]  ;;  %v6633_v60 = vmul.f32 %v8601_v30, %v6621_v4  ;;  %v5960_v1 = vadd.f32 %v5952_v47, %v5855_v53  ;;  %v14695_v19 = vld [vmem:[%s16120_s5 + $0x2a0] sm:$0xff]  ;;  %v5165_v50 = vadd.f32 %v5157_v2, %v5060_v45 }
 0x844   :  { %v5328_v8 = vadd.f32 %v5320_v28, %v5223_v13  ;;  %v5425_v63 = vmul.f32 %v10219_v43, %v16980_v16  ;;  %16981 = vst [vmem:[#allocation18_spill] sm:$0xff] %v14695_v19  ;;  %v5168_v22 = vadd.f32 %v5160_v29, %v5063_v18  ;;  %v16982_v26 = vld [vmem:[#allocation295_spill] sm:$0xff]  ;;  %v5541_v28 = vadd.f32 %v5533_v12, %v5436_v0  ;;  %v16984_v30 = vld [vmem:[#allocation192_spill] sm:$0xff]  ;;  %v16986_v18 = vld [vmem:[#allocation218_spill] sm:$0xff] }
 0x845   :  { %v5265_v21 = vmul.f32 %v14387_v57, %v16982_v26  ;;  %v8609_v13 = vld [vmem:[%s16120_s5 + $0x530] sm:$0xff]  ;;  %v6641_v47 = vadd.f32 %v6633_v60, %v6536_v32  ;;  %10173 = vset.pattern.permute.xlu1 %v16911_v59  ;;  %v14712_v57 = vld [vmem:[%s16120_s5 + $0x2e0] sm:$0xff]  ;;  %v5167_v12 = vadd.f32 %v5159_v62, %v5062_v31  ;;  %v14728_v26 = vld [vmem:[%s16120_s5 + $0x3d8] sm:$0xff] }
 0x846   :  { %v16983_v51 = vld [vmem:[#allocation71_spill] sm:$0xff]  ;;  %v6738_v53 = vmul.f32 %v8609_v13, %v16984_v30  ;;  %16985 = vst [vmem:[#allocation98_spill] sm:$0xff] %v14712_v57  ;;  %v10220_v2 = vld [vmem:[%s16120_s5 + $0x180] sm:$0xff]  ;;  %7610 = vperm.xlu1 %10173, %v12177_v52   ;;  %v5433_v10 = vadd.f32 %v5425_v63, %v5328_v8 }
 0x847   :  { %v6057_v46 = vmul.f32 %v14680_v35, %v16983_v51  ;;  %v8493_v45 = vld [vmem:[%s16120_s5 + $0x190] sm:$0xff]  ;;  %v5262_v0 = vmul.f32 %v10220_v2, %v16986_v18  ;;  %v16987_v29 = vld [vmem:[#allocation121_spill] sm:$0xff]  ;;  %v16988_v32 = vld [vmem:[#allocation264_spill] sm:$0xff]  ;;  %v6831_v16 = vpop.permute.xlu1 %6830  ;;  %v5273_v13 = vadd.f32 %v5265_v21, %v5168_v22 }
 0x848   :  { %v5638_v7 = vmul.f32 %v14695_v19, %v16987_v29  ;;  %v8617_v4 = vld [vmem:[%s16120_s5 + $0x570] sm:$0xff]  ;;  %v5264_v43 = vmul.f32 %v8493_v45, %v16988_v32  ;;  %v6746_v60 = vadd.f32 %v6738_v53, %v6641_v47  ;;  %v10221_v62 = vld [vmem:[%s16120_s5 + $0x1c0] sm:$0xff] }
 0x849   :  { %v5270_v31 = vadd.f32 %v5262_v0, %v5165_v50  ;;  %v16989_v8 = vld [vmem:[#allocation265_spill] sm:$0xff]  ;;  %v6843_v51 = vmul.f32 %v8617_v4, %v6831_v16  ;;  %v6065_v30 = vadd.f32 %v6057_v46, %v5960_v1  ;;  %v8501_v45 = vld [vmem:[%s16120_s5 + $0x1d0] sm:$0xff] }
 0x84a   :  { %v5367_v63 = vmul.f32 %v10221_v62, %v16989_v8  ;;  %v5646_v53 = vadd.f32 %v5638_v7, %v5541_v28  ;;  %v16990_v47 = vld [vmem:[#allocation171_spill] sm:$0xff]  ;;  %v16991_v18 = vld [vmem:[#allocation241_spill] sm:$0xff]  ;;  %v5272_v29 = vadd.f32 %v5264_v43, %v5167_v12  ;;  %v16992_v32 = vld [vmem:[#allocation326_spill] sm:$0xff]  ;;  %7658 = vperm.xlu1 %10173, %v12937_v15  }
 0x84b   :  { %v5743_v2 = vmul.f32 %v14712_v57, %v16990_v47  ;;  %v5370_v50 = vmul.f32 %v14427_v41, %v16991_v18  ;;  %v8625_v0 = vld [vmem:[%s16120_s5 + $0x5b0] sm:$0xff]  ;;  %v5369_v22 = vmul.f32 %v8501_v45, %v16992_v32  ;;  %v6851_v21 = vadd.f32 %v6843_v51, %v6746_v60  ;;  %v10222_v46 = vld [vmem:[%s16120_s5 + $0x248] sm:$0xff]  ;;  %v16993_v28 = vld [vmem:[#allocation32_spill] sm:$0xff] }
 0x84c   :  { %v6948_v1 = vmul.f32 %v8625_v0, %v13940_v23  ;;  %v5530_v7 = vmul.f32 %v10222_v46, %v16993_v28  ;;  %v16994_v4 = vld [vmem:[#allocation70_spill] sm:$0xff]  ;;  %v14756_v12 = vld [vmem:[%s16120_s5 + $0x418] sm:$0xff]  ;;  %v14761_v23 = vld [vmem:[%s16120_s5 + $0x320] sm:$0xff]  ;;  %v5375_v43 = vadd.f32 %v5367_v63, %v5270_v31  ;;  %v7041_v8 = vpop.permute.xlu1 %7040 }
 0x84d   :  { %v6162_v41 = vmul.f32 %v14728_v26, %v16994_v4  ;;  %16995 = vst [vmem:[#allocation148_spill] sm:$0xff] %v14761_v23  ;;  %v8633_v15 = vld [vmem:[%s16120_s5 + $0x5f0] sm:$0xff]  ;;  %v5378_v16 = vadd.f32 %v5370_v50, %v5273_v13  ;;  %v16996_v60 = vld [vmem:[#allocation297_spill] sm:$0xff]  ;;  %v5751_v47 = vadd.f32 %v5743_v2, %v5646_v53  ;;  %v16999_v63 = vld [vmem:[#allocation220_spill] sm:$0xff]  ;;  %v5377_v13 = vadd.f32 %v5369_v22, %v5272_v29 }
 0x84e   :  { %v5475_v62 = vmul.f32 %v14450_v37, %v16996_v60  ;;  %v6956_v51 = vadd.f32 %v6948_v1, %v6851_v21  ;;  %v5538_v45 = vadd.f32 %v5530_v7, %v5433_v10  ;;  %v7053_v18 = vmul.f32 %v8633_v15, %v7041_v8  ;;  %v10223_v0 = vld [vmem:[%s16120_s5 + $0x288] sm:$0xff]  ;;  %v14775_v31 = vld [vmem:[%s16120_s5 + $0x360] sm:$0xff]  ;;  %v8641_v53 = vld [vmem:[%s16120_s5 + $0x630] sm:$0xff]  ;;  %10174 = vset.pattern.permute.xlu1 %v16935_v3 }
 0x84f   :  { %v16997_v32 = vld [vmem:[#allocation26_spill] sm:$0xff]  ;;  %v6170_v28 = vadd.f32 %v6162_v41, %v6065_v30  ;;  %16998 = vst [vmem:[#allocation204_spill] sm:$0xff] %v14775_v31  ;;  %v10224_v37 = vld [vmem:[%s16120_s5 + $0x200] sm:$0xff]  ;;  %v17001_v1 = vld [vmem:[#allocation123_spill] sm:$0xff]  ;;  %v7158_v7 = vmul.f32 %v8641_v53, %v13969_v56  ;;  %7759 = vperm.xlu1 %10174, %v13037_v25  }
 0x850   :  { %v5635_v46 = vmul.f32 %v10223_v0, %v16997_v32  ;;  %v5472_v10 = vmul.f32 %v10224_v37, %v16999_v63  ;;  %v17000_v2 = vld [vmem:[#allocation73_spill] sm:$0xff]  ;;  %v8509_v50 = vld [vmem:[%s16120_s5 + $0x210] sm:$0xff]  ;;  %v5848_v21 = vmul.f32 %v14761_v23, %v17001_v1  ;;  %v7061_v4 = vadd.f32 %v7053_v18, %v6956_v51 }
 0x851   :  { %v6267_v30 = vmul.f32 %v14756_v12, %v17000_v2  ;;  %v17002_v29 = vld [vmem:[#allocation266_spill] sm:$0xff]  ;;  %v10225_v15 = vld [vmem:[%s16120_s5 + $0x240] sm:$0xff]  ;;  %v17003_v60 = vld [vmem:[#allocation267_spill] sm:$0xff]  ;;  %v5483_v0 = vadd.f32 %v5475_v62, %v5378_v16  ;;  %v14804_v51 = vpop.permute.xlu1 %7396  ;;  %v17008_v1 = vmov 31  }
 0x852   :  { %v5474_v22 = vmul.f32 %v8509_v50, %v17002_v29  ;;  %v5480_v41 = vadd.f32 %v5472_v10, %v5375_v43  ;;  %v5577_v8 = vmul.f32 %v10225_v15, %v17003_v60  ;;  %v8517_v32 = vld [vmem:[%s16120_s5 + $0x250] sm:$0xff]  ;;  %v5856_v37 = vadd.f32 %v5848_v21, %v5751_v47  ;;  %v17004_v63 = vld [vmem:[#allocation173_spill] sm:$0xff]  ;;  %17005 = vst [vmem:[#allocation151_spill] sm:$0xff] %v14804_v51  ;;  %v14811_v10 = vld [vmem:[%s16120_s5 + $0x458] sm:$0xff] }
 0x853   :  { %v5953_v56 = vmul.f32 %v14775_v31, %v17004_v63  ;;  %v14806_v18 = vadd.f32 %v7158_v7, %v7061_v4  ;;  %v5643_v43 = vadd.f32 %v5635_v46, %v5538_v45  ;;  %v17006_v53 = vld [vmem:[#allocation243_spill] sm:$0xff]  ;;  %v17007_v2 = vld [vmem:[#allocation328_spill] sm:$0xff]  ;;  %v6275_v47 = vadd.f32 %v6267_v30, %v6170_v28  ;;  %10175 = vset.pattern.permute.xlu1 %v17008_v1  ;;  %v10226_v21 = vld [vmem:[%s16120_s5 + $0x2c8] sm:$0xff] }
 0x854   :  { %v5580_v16 = vmul.f32 %v14486_v11, %v17006_v53  ;;  %v5482_v62 = vadd.f32 %v5474_v22, %v5377_v13  ;;  %v5579_v50 = vmul.f32 %v8517_v32, %v17007_v2  ;;  %v17009_v7 = vld [vmem:[#allocation27_spill] sm:$0xff]  ;;  %v14824_v46 = vld [vmem:[%s16120_s5 + $0x3a0] sm:$0xff]  ;;  %v5585_v4 = vadd.f32 %v5577_v8, %v5480_v41  ;;  %7808 = vperm.xlu1 %10175, %v12109_v55   ;;  %v10227_v15 = vld [vmem:[%s16120_s5 + $0x28] sm:$0xff] }
 0x855   :  { %v5740_v45 = vmul.f32 %v10226_v21, %v17009_v7  ;;  %17010 = vst [vmem:[#allocation199_spill] sm:$0xff] %v14824_v46  ;;  %v17011_v11 = vld [vmem:[#allocation299_spill] sm:$0xff]  ;;  %v17012_v28 = vld [vmem:[#allocation72_spill] sm:$0xff]  ;;  %v5961_v22 = vadd.f32 %v5953_v56, %v5856_v37  ;;  %v10228_v41 = vld [vmem:[%s16120_s5 + $0x308] sm:$0xff] }
 0x856   :  { %v5588_v29 = vadd.f32 %v5580_v16, %v5483_v0  ;;  %v5685_v13 = vmul.f32 %v14504_v61, %v17011_v11  ;;  %v6372_v30 = vmul.f32 %v14811_v10, %v17012_v28  ;;  %v17013_v60 = vld [vmem:[#allocation348_spill] sm:$0xff]  ;;  %v17014_v8 = vld [vmem:[#allocation29_spill] sm:$0xff]  ;;  %v17016_v56 = vld [vmem:[#allocation222_spill] sm:$0xff]  ;;  %v5587_v53 = vadd.f32 %v5579_v50, %v5482_v62  ;;  %v14853_v16 = vpop.permute.xlu1 %7493 }
 0x857   :  { %v4637_v32 = vmul.f32 %v10227_v15, %v17013_v60  ;;  %v5748_v63 = vadd.f32 %v5740_v45, %v5643_v43  ;;  %v5845_v0 = vmul.f32 %v10228_v41, %v17014_v8  ;;  %v14842_v55 = vld [vmem:[%s16120_s5 + $0x498] sm:$0xff]  ;;  %v14847_v61 = vld [vmem:[%s16120_s5 + $0x3e0] sm:$0xff]  ;;  %v8525_v21 = vld [vmem:[%s16120_s5 + $0x290] sm:$0xff] }
 0x858   :  { %17015 = vst [vmem:[#allocation254_spill] sm:$0xff] %v14847_v61  ;;  %v10229_v37 = vld [vmem:[%s16120_s5 + $0x280] sm:$0xff]  ;;  %v6380_v2 = vadd.f32 %v6372_v30, %v6275_v47  ;;  %v10230_v11 = vld [vmem:[%s16120_s5 + $0x68] sm:$0xff]  ;;  %7856 = vperm.xlu1 %10175, %v12829_v42   ;;  %v17022_v51 = vld [vmem:[#allocation75_spill] sm:$0xff] }
 0x859   :  { %v5682_v43 = vmul.f32 %v10229_v37, %v17016_v56  ;;  %v17017_v7 = vld [vmem:[#allocation125_spill] sm:$0xff]  ;;  %v17018_v28 = vld [vmem:[#allocation284_spill] sm:$0xff]  ;;  %v17019_v50 = vld [vmem:[#allocation350_spill] sm:$0xff] }
 0x85a   :  { %v6058_v45 = vmul.f32 %v14824_v46, %v17017_v7  ;;  %v4742_v15 = vmul.f32 %v10230_v11, %v17018_v28  ;;  %v10231_v62 = vld [vmem:[%s16120_s5 + $0xa8] sm:$0xff]  ;;  %v17020_v47 = vld [vmem:[#allocation268_spill] sm:$0xff]  ;;  %v5693_v7 = vadd.f32 %v5685_v13, %v5588_v29  ;;  %v6477_v11 = vmul.f32 %v14842_v55, %v17022_v51  ;;  %v8533_v28 = vld [vmem:[%s16120_s5 + $0x2d0] sm:$0xff]  ;;  %v14884_v42 = vpop.permute.xlu1 %7497 }
 0x85b   :  { %v4847_v60 = vmul.f32 %v10231_v62, %v17019_v50  ;;  %v5684_v30 = vmul.f32 %v8525_v21, %v17020_v47  ;;  %v5690_v41 = vadd.f32 %v5682_v43, %v5585_v4  ;;  %v10232_v8 = vld [vmem:[%s16120_s5 + $0x2c0] sm:$0xff]  ;;  %v17023_v50 = vld [vmem:[#allocation175_spill] sm:$0xff]  ;;  %v5853_v21 = vadd.f32 %v5845_v0, %v5748_v63  ;;  %v17025_v29 = vld [vmem:[#allocation330_spill] sm:$0xff]  ;;  %17026 = vst [vmem:[#allocation52_spill] sm:$0xff] %v14884_v42 }
 0x85c   :  { %v17021_v37 = vld [vmem:[#allocation269_spill] sm:$0xff]  ;;  %v6066_v62 = vadd.f32 %v6058_v45, %v5961_v22  ;;  %v6163_v4 = vmul.f32 %v14847_v61, %v17023_v50  ;;  %v4750_v43 = vadd.f32 %v4742_v15, %v4637_v32  ;;  %v5789_v13 = vmul.f32 %v8533_v28, %v17025_v29  ;;  %v17027_v24 = vld [vmem:[#allocation55_spill] sm:$0xff]  ;;  %7860 = vperm.xlu1 %10175, %v12721_v58  }
 0x85d   :  { %v5787_v56 = vmul.f32 %v10232_v8, %v17021_v37  ;;  %v17024_v47 = vld [vmem:[#allocation245_spill] sm:$0xff]  ;;  %v5692_v8 = vadd.f32 %v5684_v30, %v5587_v53  ;;  %v14893_v32 = vld [vmem:[%s16120_s5 + $0x4d8] sm:$0xff]  ;;  %v6485_v15 = vadd.f32 %v6477_v11, %v6380_v2  ;;  %v17030_v30 = vld [vmem:[#allocation286_spill] sm:$0xff] }
 0x85e   :  { %v5790_v46 = vmul.f32 %v14570_v38, %v17024_v47  ;;  %v4855_v37 = vadd.f32 %v4847_v60, %v4750_v43  ;;  %v10233_v51 = vld [vmem:[%s16120_s5 + $0x348] sm:$0xff]  ;;  %v14898_v38 = vld [vmem:[%s16120_s5 + $0x420] sm:$0xff]  ;;  %v6171_v60 = vadd.f32 %v6163_v4, %v6066_v62  ;;  %v14925_v62 = vpop.permute.xlu1 %7545  ;;  %v14932_v47 = vld [vmem:[%s16120_s5 + $0x310] sm:$0xff] }
 0x85f   :  { %v5950_v22 = vmul.f32 %v10233_v51, %v17027_v24  ;;  %17028 = vst [vmem:[#allocation19_spill] sm:$0xff] %v14898_v38  ;;  %v5795_v63 = vadd.f32 %v5787_v56, %v5690_v41  ;;  %v17029_v53 = vld [vmem:[#allocation301_spill] sm:$0xff]  ;;  %v17033_v56 = vld [vmem:[#allocation224_spill] sm:$0xff]  ;;  %v5797_v11 = vadd.f32 %v5789_v13, %v5692_v8  ;;  %v17034_v4 = vld [vmem:[#allocation74_spill] sm:$0xff] }
 0x860   :  { %v5798_v0 = vadd.f32 %v5790_v46, %v5693_v7  ;;  %v5895_v45 = vmul.f32 %v14600_v20, %v17029_v53  ;;  %v10234_v24 = vld [vmem:[%s16120_s5 + $0xe8] sm:$0xff]  ;;  %v14914_v20 = vld [vmem:[%s16120_s5 + $0x518] sm:$0xff]  ;;  %v14919_v58 = vld [vmem:[%s16120_s5 + $0x460] sm:$0xff]  ;;  %17035 = vst [vmem:[#allocation150_spill] sm:$0xff] %v14932_v47  ;;  %10177 = vset.pattern.permute.xlu1 %v16653_v49 }
 0x861   :  { %v4952_v28 = vmul.f32 %v10234_v24, %v17030_v30  ;;  %v5958_v50 = vadd.f32 %v5950_v22, %v5853_v21  ;;  %v10235_v43 = vld [vmem:[%s16120_s5 + $0x388] sm:$0xff]  ;;  %17032 = vst [vmem:[#allocation100_spill] sm:$0xff] %v14919_v58  ;;  %v10236_v2 = vld [vmem:[%s16120_s5 + $0x300] sm:$0xff]  ;;  %v6582_v21 = vmul.f32 %v14893_v32, %v17034_v4  ;;  %v17036_v29 = vld [vmem:[#allocation127_spill] sm:$0xff]  ;;  %7359 = vperm.xlu1 %10177, %v13353_v9  }
 0x862   :  { %v17031_v41 = vld [vmem:[#allocation37_spill] sm:$0xff]  ;;  %v5892_v7 = vmul.f32 %v10236_v2, %v17033_v56  ;;  %v6268_v51 = vmul.f32 %v14898_v38, %v17036_v29  ;;  %v17037_v24 = vld [vmem:[#allocation352_spill] sm:$0xff]  ;;  %v17038_v13 = vld [vmem:[#allocation270_spill] sm:$0xff]  ;;  %v5903_v4 = vadd.f32 %v5895_v45, %v5798_v0 }
 0x863   :  { %v6055_v46 = vmul.f32 %v10235_v43, %v17031_v41  ;;  %v4960_v22 = vadd.f32 %v4952_v28, %v4855_v37  ;;  %v10237_v53 = vld [vmem:[%s16120_s5 + $0x128] sm:$0xff]  ;;  %v5894_v30 = vmul.f32 %v14932_v47, %v17038_v13  ;;  %v10238_v41 = vld [vmem:[%s16120_s5 + $0x340] sm:$0xff]  ;;  %v17039_v2 = vld [vmem:[#allocation271_spill] sm:$0xff]  ;;  %v6590_v37 = vadd.f32 %v6582_v21, %v6485_v15 }
 0x864   :  { %v5057_v8 = vmul.f32 %v10237_v53, %v17037_v24  ;;  %v5900_v43 = vadd.f32 %v5892_v7, %v5795_v63  ;;  %v5997_v56 = vmul.f32 %v10238_v41, %v17039_v2  ;;  %v17040_v28 = vld [vmem:[#allocation77_spill] sm:$0xff]  ;;  %v14952_v53 = vld [vmem:[%s16120_s5 + $0x350] sm:$0xff]  ;;  %v6276_v24 = vadd.f32 %v6268_v51, %v6171_v60  ;;  %v17044_v45 = vld [vmem:[#allocation332_spill] sm:$0xff]  ;;  %v14961_v2 = vpop.permute.xlu1 %7246 }
 0x865   :  { %v6687_v29 = vmul.f32 %v14914_v20, %v17040_v28  ;;  %17041 = vst [vmem:[#allocation206_spill] sm:$0xff] %v14952_v53  ;;  %v17042_v63 = vld [vmem:[#allocation177_spill] sm:$0xff]  ;;  %v6063_v13 = vadd.f32 %v6055_v46, %v5958_v50  ;;  %v17043_v41 = vld [vmem:[#allocation247_spill] sm:$0xff]  ;;  %v5902_v49 = vadd.f32 %v5894_v30, %v5797_v11  ;;  %v5999_v15 = vmul.f32 %v14952_v53, %v17044_v45  ;;  %v17046_v51 = vld [vmem:[#allocation34_spill] sm:$0xff] }
 0x866   :  { %v6373_v7 = vmul.f32 %v14919_v58, %v17042_v63  ;;  %v6000_v0 = vmul.f32 %v14643_v6, %v17043_v41  ;;  %v5065_v21 = vadd.f32 %v5057_v8, %v4960_v22  ;;  %17045 = vst [vmem:[#allocation153_spill] sm:$0xff] %v14961_v2  ;;  %v10239_v60 = vld [vmem:[%s16120_s5 + $0x3c8] sm:$0xff]  ;;  %v14970_v50 = vld [vmem:[%s16120_s5 + $0x558] sm:$0xff]  ;;  %v14975_v6 = vld [vmem:[%s16120_s5 + $0x4a0] sm:$0xff]  ;;  %v6005_v46 = vadd.f32 %v5997_v56, %v5900_v43 }
 0x867   :  { %v6160_v28 = vmul.f32 %v10239_v60, %v17046_v51  ;;  %17047 = vst [vmem:[#allocation201_spill] sm:$0xff] %v14975_v6  ;;  %v17048_v22 = vld [vmem:[#allocation303_spill] sm:$0xff]  ;;  %v6695_v30 = vadd.f32 %v6687_v29, %v6590_v37  ;;  %v10240_v41 = vld [vmem:[%s16120_s5 + $0x168] sm:$0xff]  ;;  %v17049_v45 = vld [vmem:[#allocation288_spill] sm:$0xff]  ;;  %10178 = vset.pattern.permute.xlu1 %v16655_v40 }
 0x868   :  { %v6008_v11 = vadd.f32 %v6000_v0, %v5903_v4  ;;  %v6105_v8 = vmul.f32 %v14680_v35, %v17048_v22  ;;  %v6381_v63 = vadd.f32 %v6373_v7, %v6276_v24  ;;  %v5162_v60 = vmul.f32 %v10240_v41, %v17049_v45  ;;  %v10241_v53 = vld [vmem:[%s16120_s5 + $0x408] sm:$0xff]  ;;  %v14991_v35 = vld [vmem:[%s16120_s5 + $0x598] sm:$0xff]  ;;  %v14996_v4 = vld [vmem:[%s16120_s5 + $0x4e0] sm:$0xff]  ;;  %7412 = vperm.xlu1 %10178, %v16804_v54   ;;  %v15022_v38 = vpop.permute.xlu1 %7347 }
 0x869   :  { %v6168_v51 = vadd.f32 %v6160_v28, %v6063_v13  ;;  %v17050_v43 = vld [vmem:[#allocation57_spill] sm:$0xff]  ;;  %17051 = vst [vmem:[#allocation20_spill] sm:$0xff] %v14996_v4  ;;  %v17052_v29 = vld [vmem:[#allocation226_spill] sm:$0xff]  ;;  %v6007_v7 = vadd.f32 %v5999_v15, %v5902_v49  ;;  %v17057_v15 = vld [vmem:[#allocation272_spill] sm:$0xff] }
 0x86a   :  { %v6265_v56 = vmul.f32 %v10241_v53, %v17050_v43  ;;  %v10242_v37 = vld [vmem:[%s16120_s5 + $0x380] sm:$0xff]  ;;  %v15008_v0 = vld [vmem:[%s16120_s5 + $0x390] sm:$0xff]  ;;  %v5170_v41 = vadd.f32 %v5162_v60, %v5065_v21  ;;  %v10243_v45 = vld [vmem:[%s16120_s5 + $0x1a8] sm:$0xff]  ;;  %v6113_v58 = vadd.f32 %v6105_v8, %v6008_v11  ;;  %17059 = vst [vmem:[#allocation102_spill] sm:$0xff] %v15022_v38 }
 0x86b   :  { %v6102_v24 = vmul.f32 %v10242_v37, %v17052_v29  ;;  %v17053_v53 = vld [vmem:[#allocation76_spill] sm:$0xff]  ;;  %17054 = vst [vmem:[#allocation7_spill] sm:$0xff] %v15008_v0  ;;  %v17055_v28 = vld [vmem:[#allocation129_spill] sm:$0xff]  ;;  %v17056_v43 = vld [vmem:[#allocation354_spill] sm:$0xff]  ;;  %v6104_v37 = vmul.f32 %v15008_v0, %v17057_v15 }
 0x86c   :  { %v6792_v13 = vmul.f32 %v14970_v50, %v17053_v53  ;;  %v6478_v22 = vmul.f32 %v14975_v6, %v17055_v28  ;;  %v5267_v49 = vmul.f32 %v10243_v45, %v17056_v43  ;;  %v10244_v53 = vld [vmem:[%s16120_s5 + $0x3c0] sm:$0xff]  ;;  %v17060_v60 = vld [vmem:[#allocation79_spill] sm:$0xff]  ;;  %v6273_v15 = vadd.f32 %v6265_v56, %v6168_v51  ;;  %v17064_v8 = vld [vmem:[#allocation334_spill] sm:$0xff]  ;;  %10179 = vset.pattern.permute.xlu1 %v16894_v39 }
 0x86d   :  { %v6110_v29 = vadd.f32 %v6102_v24, %v6005_v46  ;;  %v17058_v47 = vld [vmem:[#allocation273_spill] sm:$0xff]  ;;  %v6897_v28 = vmul.f32 %v14991_v35, %v17060_v60  ;;  %v15029_v45 = vld [vmem:[%s16120_s5 + $0x3d0] sm:$0xff]  ;;  %v6112_v11 = vadd.f32 %v6104_v37, %v6007_v7  ;;  %v17065_v60 = vld [vmem:[#allocation8_spill] sm:$0xff]  ;;  %v15061_v38 = vpop.permute.xlu1 %7400 }
 0x86e   :  { %v6207_v42 = vmul.f32 %v10244_v53, %v17058_v47  ;;  %v6800_v21 = vadd.f32 %v6792_v13, %v6695_v30  ;;  %17061 = vst [vmem:[#allocation152_spill] sm:$0xff] %v15029_v45  ;;  %v6486_v43 = vadd.f32 %v6478_v22, %v6381_v63  ;;  %v17062_v46 = vld [vmem:[#allocation179_spill] sm:$0xff]  ;;  %v17063_v0 = vld [vmem:[#allocation249_spill] sm:$0xff]  ;;  %v6209_v30 = vmul.f32 %v15029_v45, %v17064_v8  ;;  %v15038_v53 = vpop.permute.xlu0 %7541  ;;  %v17066_v22 = vld [vmem:[#allocation56_spill] sm:$0xff] }
 0x86f   :  { %v6583_v24 = vmul.f32 %v14996_v4, %v17062_v46  ;;  %v6210_v47 = vmul.f32 %v14728_v26, %v17063_v0  ;;  %v5275_v13 = vadd.f32 %v5267_v49, %v5170_v41  ;;  %7513 = vperm.xlu1 %10179, %v17065_v60   ;;  %v10245_v63 = vld [vmem:[%s16120_s5 + $0x448] sm:$0xff]  ;;  %v15048_v26 = vld [vmem:[%s16120_s5 + $0x5d8] sm:$0xff]  ;;  %v15053_v56 = vld [vmem:[%s16120_s5 + $0x520] sm:$0xff] }
 0x870   :  { %v6370_v51 = vmul.f32 %v10245_v63, %v17066_v22  ;;  %17067 = vst [vmem:[#allocation208_spill] sm:$0xff] %v15053_v56  ;;  %v6215_v7 = vadd.f32 %v6207_v42, %v6110_v29  ;;  %v17068_v41 = vld [vmem:[#allocation305_spill] sm:$0xff]  ;;  %v6905_v37 = vadd.f32 %v6897_v28, %v6800_v21  ;;  %v17069_v63 = vld [vmem:[#allocation290_spill] sm:$0xff]  ;;  %v17070_v42 = vld [vmem:[#allocation39_spill] sm:$0xff] }
 0x871   :  { %v6218_v0 = vadd.f32 %v6210_v47, %v6113_v58  ;;  %v6315_v49 = vmul.f32 %v14756_v12, %v17068_v41  ;;  %v6591_v46 = vadd.f32 %v6583_v24, %v6486_v43  ;;  %v10246_v8 = vld [vmem:[%s16120_s5 + $0x1e8] sm:$0xff]  ;;  %v15070_v12 = vld [vmem:[%s16120_s5 + $0x560] sm:$0xff]  ;;  %v6217_v43 = vadd.f32 %v6209_v30, %v6112_v11  ;;  %v15081_v47 = vld [vmem:[%s16120_s5 + $0x618] sm:$0xff] }
 0x872   :  { %v5372_v22 = vmul.f32 %v10246_v8, %v17069_v63  ;;  %v6378_v45 = vadd.f32 %v6370_v51, %v6273_v15  ;;  %v10247_v4 = vld [vmem:[%s16120_s5 + $0x488] sm:$0xff]  ;;  %17071 = vst [vmem:[#allocation155_spill] sm:$0xff] %v15070_v12  ;;  %v10248_v29 = vld [vmem:[%s16120_s5 + $0x400] sm:$0xff]  ;;  %v17075_v51 = vld [vmem:[#allocation131_spill] sm:$0xff] }
 0x873   :  { %v6475_v58 = vmul.f32 %v10247_v4, %v17070_v42  ;;  %v17072_v21 = vld [vmem:[#allocation228_spill] sm:$0xff]  ;;  %v17073_v24 = vld [vmem:[#allocation78_spill] sm:$0xff]  ;;  %v6688_v41 = vmul.f32 %v15053_v56, %v17075_v51  ;;  %7561 = vperm.xlu1 %10179, %v13145_v33   ;;  %v17078_v6 = vld [vmem:[#allocation275_spill] sm:$0xff]  ;;  %v6323_v51 = vadd.f32 %v6315_v49, %v6218_v0 }
 0x874   :  { %v6312_v28 = vmul.f32 %v10248_v29, %v17072_v21  ;;  %v7002_v15 = vmul.f32 %v15048_v26, %v17073_v24  ;;  %v15086_v4 = vld [vmem:[%s16120_s5 + $0x410] sm:$0xff]  ;;  %v5380_v8 = vadd.f32 %v5372_v22, %v5275_v13  ;;  %v10249_v11 = vld [vmem:[%s16120_s5 + $0x228] sm:$0xff]  ;;  %v17076_v30 = vld [vmem:[#allocation356_spill] sm:$0xff] }
 0x875   :  { %17074 = vst [vmem:[#allocation203_spill] sm:$0xff] %v15086_v4  ;;  %v5477_v63 = vmul.f32 %v10249_v11, %v17076_v30  ;;  %v17077_v42 = vld [vmem:[#allocation274_spill] sm:$0xff]  ;;  %v10250_v24 = vld [vmem:[%s16120_s5 + $0x440] sm:$0xff]  ;;  %v6696_v11 = vadd.f32 %v6688_v41, %v6591_v46  ;;  %v17081_v2 = vld [vmem:[#allocation211_spill] sm:$0xff] }
 0x876   :  { %v6314_v29 = vmul.f32 %v15086_v4, %v17077_v42  ;;  %v6320_v21 = vadd.f32 %v6312_v28, %v6215_v7  ;;  %v6417_v61 = vmul.f32 %v10250_v24, %v17078_v6  ;;  %v7010_v13 = vadd.f32 %v7002_v15, %v6905_v37  ;;  %v15104_v22 = vld [vmem:[%s16120_s5 + $0x450] sm:$0xff]  ;;  %v17080_v30 = vld [vmem:[#allocation181_spill] sm:$0xff]  ;;  %v15110_v28 = vpop.permute.xlu0 %7557  ;;  %v17085_v37 = vld [vmem:[#allocation336_spill] sm:$0xff]  ;;  %v15118_v24 = vpop.permute.xlu1 %7501 }
 0x877   :  { %17079 = vst [vmem:[#allocation257_spill] sm:$0xff] %v15104_v22  ;;  %v6793_v56 = vmul.f32 %v15070_v12, %v17080_v30  ;;  %v4695_v7 = vmul.f32 %v14344_v44, %v17081_v2  ;;  %17082 = vst [vmem:[#allocation9_spill] sm:$0xff] %v15110_v28  ;;  %v17083_v42 = vld [vmem:[#allocation81_spill] sm:$0xff]  ;;  %v17084_v6 = vld [vmem:[#allocation251_spill] sm:$0xff]  ;;  %v6419_v15 = vmul.f32 %v15104_v22, %v17085_v37  ;;  %10180 = vset.pattern.permute.xlu1 %v16911_v59 }
 0x878   :  { %v7107_v4 = vmul.f32 %v15081_v47, %v17083_v42  ;;  %v6420_v0 = vmul.f32 %v14811_v10, %v17084_v6  ;;  %v6322_v49 = vadd.f32 %v6314_v29, %v6217_v43  ;;  %17086 = vst [vmem:[#allocation104_spill] sm:$0xff] %v15118_v24  ;;  %v5485_v46 = vadd.f32 %v5477_v63, %v5380_v8  ;;  %v17087_v41 = vld [vmem:[#allocation162_spill] sm:$0xff]  ;;  %v15126_v44 = vld [vmem:[%s16120_s5 + $0x5a0] sm:$0xff]  ;;  %v17129_v31 = vld [vmem:[#allocation255_spill] sm:$0xff] }
 0x879   :  { %v4582_v30 = vmul.f32 %v17087_v41, %v14349_v36  ;;  %17088 = vst [vmem:[#allocation154_spill] sm:$0xff] %v15126_v44  ;;  %v6425_v2 = vadd.f32 %v6417_v61, %v6320_v21  ;;  %v17089_v10 = vld [vmem:[#allocation308_spill] sm:$0xff]  ;;  %7662 = vperm.xlu1 %10180, %v13245_v5   ;;  %v10251_v8 = vld [vmem:[%s16120_s5 + $0x4c8] sm:$0xff]  ;;  %v6801_v29 = vadd.f32 %v6793_v56, %v6696_v11 }
 0x87a   :  { %v6428_v42 = vadd.f32 %v6420_v0, %v6323_v51  ;;  %v6525_v43 = vmul.f32 %v14842_v55, %v17089_v10  ;;  %v17090_v63 = vld [vmem:[#allocation36_spill] sm:$0xff]  ;;  %v10252_v6 = vld [vmem:[%s16120_s5 + $0x268] sm:$0xff]  ;;  %v6483_v21 = vadd.f32 %v6475_v58, %v6378_v45  ;;  %v7115_v51 = vadd.f32 %v7107_v4, %v7010_v13 }
 0x87b   :  { %v6580_v36 = vmul.f32 %v10251_v8, %v17090_v63  ;;  %v17091_v37 = vld [vmem:[#allocation292_spill] sm:$0xff]  ;;  %v4703_v61 = vadd.f32 %v4695_v7, %v4582_v30  ;;  %v17092_v10 = vld [vmem:[#allocation230_spill] sm:$0xff]  ;;  %v6427_v11 = vadd.f32 %v6419_v15, %v6322_v49  ;;  %v15148_v8 = vpop.permute.xlu1 %7549  ;;  %v17094_v45 = vld [vmem:[#allocation133_spill] sm:$0xff] }
 0x87c   :  { %v5582_v41 = vmul.f32 %v10252_v6, %v17091_v37  ;;  %v15142_v55 = vld [vmem:[%s16120_s5 + $0x658] sm:$0xff]  ;;  %v10253_v0 = vld [vmem:[%s16120_s5 + $0x480] sm:$0xff]  ;;  %v15153_v7 = vld [vmem:[%s16120_s5 + $0x490] sm:$0xff]  ;;  %v6898_v58 = vmul.f32 %v15126_v44, %v17094_v45  ;;  %v15168_v37 = vpop.permute.xlu0 %7565  ;;  %v6533_v28 = vadd.f32 %v6525_v43, %v6428_v42 }
 0x87d   :  { %v6522_v56 = vmul.f32 %v10253_v0, %v17092_v10  ;;  %17093 = vst [vmem:[#allocation210_spill] sm:$0xff] %v15153_v7  ;;  %v15160_v4 = vld [vmem:[%s16120_s5 + $0x5e0] sm:$0xff]  ;;  %v10254_v49 = vld [vmem:[%s16120_s5 + $0x2a8] sm:$0xff]  ;;  %17098 = vst [vmem:[#allocation205_spill] sm:$0xff] %v15168_v37  ;;  %10181 = vset.pattern.permute.xlu1 %v16935_v3  ;;  %v15198_v22 = vadd.f32 %v6580_v36, %v6483_v21 }
 0x87e   :  { %17095 = vst [vmem:[#allocation157_spill] sm:$0xff] %v15160_v4  ;;  %v5590_v13 = vadd.f32 %v5582_v41, %v5485_v46  ;;  %v17096_v15 = vld [vmem:[#allocation358_spill] sm:$0xff]  ;;  %v17097_v63 = vld [vmem:[#allocation164_spill] sm:$0xff]  ;;  %v17100_v46 = vld [vmem:[#allocation277_spill] sm:$0xff]  ;;  %7715 = vperm.xlu1 %10181, %v12177_v52  }
 0x87f   :  { %v5687_v30 = vmul.f32 %v10254_v49, %v17096_v15  ;;  %v4800_v6 = vmul.f32 %v14359_v17, %v17097_v63  ;;  %v17099_v0 = vld [vmem:[#allocation276_spill] sm:$0xff]  ;;  %v6530_v45 = vadd.f32 %v6522_v56, %v6425_v2  ;;  %v15182_v17 = vld [vmem:[%s16120_s5 + $0x4d0] sm:$0xff]  ;;  %v6906_v56 = vadd.f32 %v6898_v58, %v6801_v29  ;;  %v17104_v15 = vld [vmem:[#allocation213_spill] sm:$0xff] }
 0x880   :  { %v6524_v10 = vmul.f32 %v15153_v7, %v17099_v0  ;;  %v10255_v24 = vld [vmem:[%s16120_s5 + $0x4c0] sm:$0xff]  ;;  %17102 = vst [vmem:[#allocation106_spill] sm:$0xff] %v15182_v17  ;;  %v17105_v43 = vld [vmem:[#allocation183_spill] sm:$0xff]  ;;  %v17107_v37 = vld [vmem:[#allocation338_spill] sm:$0xff] }
 0x881   :  { %v6627_v41 = vmul.f32 %v10255_v24, %v17100_v46  ;;  %v17101_v44 = vld [vmem:[#allocation80_spill] sm:$0xff]  ;;  %v4905_v24 = vmul.f32 %v14370_v14, %v17104_v15  ;;  %v4808_v42 = vadd.f32 %v4800_v6, %v4703_v61  ;;  %v17106_v63 = vld [vmem:[#allocation253_spill] sm:$0xff]  ;;  %v6629_v7 = vmul.f32 %v15182_v17, %v17107_v37  ;;  %v17108_v61 = vld [vmem:[#allocation90_spill] sm:$0xff]  ;;  %v15206_v6 = vpop.permute.xlu1 %7602 }
 0x882   :  { %v7212_v49 = vmul.f32 %v15142_v55, %v17101_v44  ;;  %v15187_v2 = vld [vmem:[%s16120_s5 + $0x620] sm:$0xff]  ;;  %v7003_v44 = vmul.f32 %v15160_v4, %v17105_v43  ;;  %v6630_v0 = vmul.f32 %v14893_v32, %v17106_v63  ;;  %v6532_v46 = vadd.f32 %v6524_v10, %v6427_v11  ;;  %v10256_v14 = vld [vmem:[%s16120_s5 + $0x38] sm:$0xff]  ;;  %17109 = vst [vmem:[#allocation159_spill] sm:$0xff] %v15206_v6  ;;  %v17111_v43 = vld [vmem:[#allocation310_spill] sm:$0xff] }
 0x883   :  { %17103 = vst [vmem:[#allocation156_spill] sm:$0xff] %v15187_v2  ;;  %v5695_v12 = vadd.f32 %v5687_v30, %v5590_v13  ;;  %v4639_v58 = vmul.f32 %v10256_v14, %v17108_v61  ;;  %v17110_v15 = vld [vmem:[#allocation135_spill] sm:$0xff]  ;;  %v6635_v11 = vadd.f32 %v6627_v41, %v6530_v45  ;;  %v6735_v36 = vmul.f32 %v14914_v20, %v17111_v43  ;;  %v10257_v21 = vld [vmem:[%s16120_s5 + $0x2e8] sm:$0xff]  ;;  %v15224_v20 = vpop.permute.xlu0 %7598 }
 0x884   :  { %v15200_v29 = vadd.f32 %v7212_v49, %v7115_v51  ;;  %v7108_v32 = vmul.f32 %v15187_v2, %v17110_v15  ;;  %v6638_v10 = vadd.f32 %v6630_v0, %v6533_v28  ;;  %v17112_v51 = vld [vmem:[#allocation294_spill] sm:$0xff]  ;;  %v10258_v30 = vld [vmem:[%s16120_s5 + $0x78] sm:$0xff]  ;;  %v4913_v63 = vadd.f32 %v4905_v24, %v4808_v42  ;;  %10182 = vset.pattern.permute.xlu1 %v17008_v1  ;;  %v10260_v24 = vld [vmem:[%s16120_s5 + $0x500] sm:$0xff] }
 0x885   :  { %v5792_v13 = vmul.f32 %v10257_v21, %v17112_v51  ;;  %v17113_v37 = vld [vmem:[#allocation335_spill] sm:$0xff]  ;;  %v7011_v14 = vadd.f32 %v7003_v44, %v6906_v56  ;;  %v17116_v42 = vld [vmem:[#allocation232_spill] sm:$0xff]  ;;  %v6637_v15 = vadd.f32 %v6629_v7, %v6532_v46  ;;  %v17117_v43 = vld [vmem:[#allocation166_spill] sm:$0xff]  ;;  %v15245_v4 = vpop.permute.xlu1 %7646 }
 0x886   :  { %v4744_v49 = vmul.f32 %v10258_v30, %v17113_v37  ;;  %v10259_v28 = vld [vmem:[%s16120_s5 + $0xb8] sm:$0xff]  ;;  %v15230_v0 = vld [vmem:[%s16120_s5 + $0x510] sm:$0xff]  ;;  %v6732_v61 = vmul.f32 %v10260_v24, %v17116_v42  ;;  %v10261_v56 = vld [vmem:[%s16120_s5 + $0x328] sm:$0xff]  ;;  %v6743_v42 = vadd.f32 %v6735_v36, %v6638_v10 }
 0x887   :  { %v17114_v45 = vld [vmem:[#allocation143_spill] sm:$0xff]  ;;  %17115 = vst [vmem:[#allocation207_spill] sm:$0xff] %v15230_v0  ;;  %v17120_v37 = vld [vmem:[#allocation278_spill] sm:$0xff]  ;;  %v15250_v7 = vld [vmem:[%s16120_s5 + $0x660] sm:$0xff]  ;;  %v7116_v57 = vadd.f32 %v7108_v32, %v7011_v14 }
 0x888   :  { %v4849_v41 = vmul.f32 %v10259_v28, %v17114_v45  ;;  %v17118_v21 = vld [vmem:[#allocation147_spill] sm:$0xff]  ;;  %v6734_v28 = vmul.f32 %v15230_v0, %v17120_v37  ;;  %v5800_v45 = vadd.f32 %v5792_v13, %v5695_v12  ;;  %v4752_v17 = vadd.f32 %v4744_v49, %v4639_v58  ;;  %v10262_v24 = vld [vmem:[%s16120_s5 + $0x540] sm:$0xff]  ;;  %v17130_v10 = vld [vmem:[#allocation250_spill] sm:$0xff] }
 0x889   :  { %v5010_v51 = vmul.f32 %v17118_v21, %v17117_v43  ;;  %v17119_v30 = vld [vmem:[#allocation43_spill] sm:$0xff]  ;;  %v6740_v46 = vadd.f32 %v6732_v61, %v6635_v11  ;;  %v17123_v43 = vld [vmem:[#allocation45_spill] sm:$0xff]  ;;  %v17127_v11 = vld [vmem:[#allocation168_spill] sm:$0xff] }
 0x88a   :  { %7816 = vperm.xlu1 %10182, %v17119_v30   ;;  %v17121_v44 = vld [vmem:[#allocation359_spill] sm:$0xff]  ;;  %v17128_v61 = vld [vmem:[#allocation16_spill] sm:$0xff]  ;;  %v4857_v6 = vadd.f32 %v4849_v41, %v4752_v17  ;;  %v17131_v36 = vld [vmem:[#allocation309_spill] sm:$0xff] }
 0x88b   :  { %v5897_v2 = vmul.f32 %v10261_v56, %v17121_v44  ;;  %v17122_v12 = vld [vmem:[#allocation279_spill] sm:$0xff]  ;;  %v5018_v44 = vadd.f32 %v5010_v51, %v4913_v63  ;;  %v5220_v0 = vmul.f32 %v17128_v61, %v17127_v11  ;;  %v17133_v19 = vld [vmem:[#allocation185_spill] sm:$0xff]  ;;  %v17136_v14 = vld [vmem:[#allocation296_spill] sm:$0xff] }
 0x88c   :  { %v6837_v13 = vmul.f32 %v10262_v24, %v17122_v12  ;;  %v17124_v21 = vld [vmem:[#allocation195_spill] sm:$0xff]  ;;  %v6840_v24 = vmul.f32 %v14970_v50, %v17129_v31  ;;  %v4636_v12 = vmul.f32 %v17131_v36, %v17130_v10  ;;  %v7213_v63 = vmul.f32 %v15250_v7, %v17133_v19  ;;  %v17134_v41 = vld [vmem:[#allocation337_spill] sm:$0xff]  ;;  %v15280_v50 = vpop.permute.xlu0 %7650  ;;  %v7251_v19 = vpop.permute.xlu1 %7250  ;;  %v17139_v61 = vld [vmem:[#allocation96_spill] sm:$0xff] }
 0x88d   :  { %v4741_v30 = vmul.f32 %v17124_v21, %v17123_v43  ;;  %v15261_v58 = vld [vmem:[%s16120_s5 + $0x550] sm:$0xff]  ;;  %v6742_v43 = vadd.f32 %v6734_v28, %v6637_v15  ;;  %v17132_v21 = vld [vmem:[#allocation340_spill] sm:$0xff]  ;;  %v5905_v31 = vadd.f32 %v5897_v2, %v5800_v45  ;;  %v10264_v32 = vld [vmem:[%s16120_s5 + $0x368] sm:$0xff] }
 0x88e   :  { %v17125_v49 = vld [vmem:[#allocation215_spill] sm:$0xff]  ;;  %v6839_v23 = vmul.f32 %v15261_v58, %v17132_v21  ;;  %7864 = vperm.xlu1 %10182, %v13037_v25   ;;  %v6848_v15 = vadd.f32 %v6840_v24, %v6743_v42  ;;  %v17135_v28 = vld [vmem:[#allocation312_spill] sm:$0xff]  ;;  %v6002_v2 = vmul.f32 %v10264_v32, %v17136_v14  ;;  %v17141_v21 = vld [vmem:[#allocation149_spill] sm:$0xff] }
 0x88f   :  { %v17126_v37 = vld [vmem:[#allocation51_spill] sm:$0xff]  ;;  %v4749_v11 = vadd.f32 %v4741_v30, %v4636_v12  ;;  %v17140_v12 = vld [vmem:[#allocation170_spill] sm:$0xff] }
 0x890   :  { %v5115_v56 = vmul.f32 %v17126_v37, %v17125_v49  ;;  %v10263_v17 = vld [vmem:[%s16120_s5 + $0xf8] sm:$0xff]  ;;  %v6845_v49 = vadd.f32 %v6837_v13, %v6740_v46  ;;  %v6945_v37 = vmul.f32 %v14991_v35, %v17135_v28  ;;  %v15287_v25 = vld [vmem:[%s16120_s5 + $0x670] sm:$0xff]  ;;  %v6847_v10 = vadd.f32 %v6839_v23, %v6742_v43  ;;  %v10267_v23 = vld [vmem:[%s16120_s5 + $0x3a8] sm:$0xff] }
 0x891   :  { %v4954_v51 = vmul.f32 %v10263_v17, %v17134_v41  ;;  %v10265_v46 = vld [vmem:[%s16120_s5 + $0x138] sm:$0xff]  ;;  %v17137_v13 = vld [vmem:[#allocation246_spill] sm:$0xff]  ;;  %v7263_v42 = vmul.f32 %v15287_v25, %v7251_v19  ;;  %v15302_v17 = vmul.f32 %v17141_v21, %v17140_v12  ;;  %v10266_v41 = vld [vmem:[%s16120_s5 + $0x580] sm:$0xff]  ;;  %v6010_v19 = vadd.f32 %v6002_v2, %v5905_v31  ;;  %v15340_v12 = vpop.permute.xlu0 %7606  ;;  %v15342_v21 = vpop.permute.xlu1 %7351 }
 0x892   :  { %v5059_v35 = vmul.f32 %v10265_v46, %v17137_v13  ;;  %v17138_v30 = vld [vmem:[#allocation311_spill] sm:$0xff]  ;;  %v5123_v36 = vadd.f32 %v5115_v56, %v5018_v44  ;;  %10184 = vset.pattern.permute.xlu1 %v16655_v40  ;;  %v17143_v56 = vld [vmem:[#allocation360_spill] sm:$0xff]  ;;  %v6953_v14 = vadd.f32 %v6945_v37, %v6848_v15  ;;  %v17145_v13 = vld [vmem:[#allocation86_spill] sm:$0xff]  ;;  %v7221_v2 = vadd.f32 %v7213_v63, %v7116_v57 }
 0x893   :  { %v4962_v45 = vadd.f32 %v4954_v51, %v4857_v6  ;;  %v4846_v24 = vmul.f32 %v17139_v61, %v17138_v30  ;;  %v15308_v6 = vld [vmem:[%s16120_s5 + $0x590] sm:$0xff]  ;;  %v6107_v44 = vmul.f32 %v10267_v23, %v17143_v56  ;;  %v15319_v40 = vadd.f32 %v7263_v42, %v14806_v18  ;;  %7464 = vperm.xlu1 %10184, %v13353_v9   ;;  %v17144_v43 = vld [vmem:[#allocation280_spill] sm:$0xff]  ;;  %v17148_v37 = vld [vmem:[#allocation281_spill] sm:$0xff] }
 0x894   :  { %v17142_v51 = vld [vmem:[#allocation234_spill] sm:$0xff]  ;;  %v6944_v32 = vmul.f32 %v15308_v6, %v17144_v43  ;;  %v15329_v31 = vld [vmem:[%s16120_s5 + $0x6a0] sm:$0xff]  ;;  %17149 = vst [vmem:[#allocation158_spill] sm:$0xff] %v15340_v12  ;;  %v5228_v57 = vadd.f32 %v5220_v0, %v5123_v36 }
 0x895   :  { %v6942_v28 = vmul.f32 %v10266_v41, %v17142_v51  ;;  %v4854_v46 = vadd.f32 %v4846_v24, %v4749_v11  ;;  %v17146_v30 = vld [vmem:[#allocation202_spill] sm:$0xff]  ;;  %17147 = vst [vmem:[#allocation108_spill] sm:$0xff] %v15329_v31  ;;  %v10268_v15 = vld [vmem:[%s16120_s5 + $0x5c0] sm:$0xff]  ;;  %v5067_v24 = vadd.f32 %v5059_v35, %v4962_v45  ;;  %v17154_v45 = vld [vmem:[#allocation339_spill] sm:$0xff] }
 0x896   :  { %v4951_v61 = vmul.f32 %v17146_v30, %v17145_v13  ;;  %v15334_v18 = vld [vmem:[%s16120_s5 + $0x5d0] sm:$0xff]  ;;  %v7047_v11 = vmul.f32 %v10268_v15, %v17148_v37  ;;  %v17150_v41 = vld [vmem:[#allocation256_spill] sm:$0xff]  ;;  %v6952_v23 = vadd.f32 %v6944_v32, %v6847_v10  ;;  %v17152_v63 = vld [vmem:[#allocation217_spill] sm:$0xff]  ;;  %v6115_v30 = vadd.f32 %v6107_v44, %v6010_v19 }
 0x897   :  { %v6950_v42 = vadd.f32 %v6942_v28, %v6845_v49  ;;  %v7050_v51 = vmul.f32 %v15048_v26, %v17150_v41  ;;  %v17151_v56 = vld [vmem:[#allocation342_spill] sm:$0xff]  ;;  %v10269_v13 = vld [vmem:[%s16120_s5 + $0x178] sm:$0xff]  ;;  %v17155_v15 = vld [vmem:[#allocation189_spill] sm:$0xff]  ;;  %10185 = vset.pattern.permute.xlu1 %v16894_v39 }
 0x898   :  { %v7049_v43 = vmul.f32 %v15334_v18, %v17151_v56  ;;  %v17153_v49 = vld [vmem:[#allocation146_spill] sm:$0xff]  ;;  %v5164_v35 = vmul.f32 %v10269_v13, %v17154_v45  ;;  %v7318_v37 = vmul.f32 %v15329_v31, %v17155_v15  ;;  %v10270_v26 = vld [vmem:[%s16120_s5 + $0x600] sm:$0xff]  ;;  %v4959_v56 = vadd.f32 %v4951_v61, %v4854_v46  ;;  %7517 = vperm.xlu1 %10185, %v16804_v54   ;;  %v8654_v13 = vld [vmem:[%s16120_s5 + $0x698] sm:$0xff] }
 0x899   :  { %v5325_v28 = vmul.f32 %v17153_v49, %v17152_v63  ;;  %v17156_v0 = vld [vmem:[#allocation236_spill] sm:$0xff]  ;;  %v7058_v36 = vadd.f32 %v7050_v51, %v6953_v14  ;;  %v17157_v32 = vld [vmem:[#allocation314_spill] sm:$0xff]  ;;  %v7055_v63 = vadd.f32 %v7047_v11, %v6950_v42  ;;  %v17160_v61 = vld [vmem:[#allocation313_spill] sm:$0xff] }
 0x89a   :  { %v7152_v10 = vmul.f32 %v10270_v26, %v17156_v0  ;;  %v7155_v41 = vmul.f32 %v15081_v47, %v17157_v32  ;;  %v10271_v19 = vld [vmem:[%s16120_s5 + $0x3e8] sm:$0xff]  ;;  %v5172_v45 = vadd.f32 %v5164_v35, %v5067_v24  ;;  %v10272_v14 = vld [vmem:[%s16120_s5 + $0x1b8] sm:$0xff]  ;;  %v7057_v26 = vadd.f32 %v7049_v43, %v6952_v23  ;;  %v7405_v24 = vpop.permute.xlu1 %7404  ;;  %v15392_v23 = vpop.permute.xlu0 %7614 }
 0x89b   :  { %v17158_v44 = vld [vmem:[#allocation298_spill] sm:$0xff]  ;;  %v17161_v51 = vld [vmem:[#allocation197_spill] sm:$0xff]  ;;  %v17162_v11 = vld [vmem:[#allocation316_spill] sm:$0xff]  ;;  %17166 = vst [vmem:[#allocation160_spill] sm:$0xff] %v15392_v23 }
 0x89c   :  { %v6212_v49 = vmul.f32 %v10271_v19, %v17158_v44  ;;  %v17159_v47 = vld [vmem:[#allocation22_spill] sm:$0xff]  ;;  %v5056_v42 = vmul.f32 %v17161_v51, %v17160_v61  ;;  %v7260_v15 = vmul.f32 %v15142_v55, %v17162_v11  ;;  %v15383_v19 = vld [vmem:[%s16120_s5 + $0x6e0] sm:$0xff]  ;;  %v7326_v61 = vadd.f32 %v7318_v37, %v7221_v2  ;;  %v8662_v55 = vld [vmem:[%s16120_s5 + $0x6d8] sm:$0xff]  ;;  %10187 = vset.pattern.permute.xlu1 %v16911_v59 }
 0x89d   :  { %v5269_v46 = vmul.f32 %v10272_v14, %v17159_v47  ;;  %v17163_v0 = vld [vmem:[#allocation194_spill] sm:$0xff]  ;;  %17164 = vst [vmem:[#allocation209_spill] sm:$0xff] %v15383_v19  ;;  %v17165_v14 = vld [vmem:[#allocation361_spill] sm:$0xff]  ;;  %v7423_v43 = vmul.f32 %v15383_v19, %v7405_v24  ;;  %v17168_v11 = vld [vmem:[#allocation187_spill] sm:$0xff]  ;;  %v7422_v2 = vmul.f32 %v8662_v55, %v15061_v38  ;;  %7618 = vperm.xlu1 %10187, %v17065_v60  }
 0x89e   :  { %v7317_v32 = vmul.f32 %v8654_v13, %v17163_v0  ;;  %v6220_v35 = vadd.f32 %v6212_v49, %v6115_v30  ;;  %v10273_v44 = vld [vmem:[%s16120_s5 + $0x428] sm:$0xff]  ;;  %v15398_v51 = vld [vmem:[%s16120_s5 + $0x610] sm:$0xff]  ;;  %v7163_v30 = vadd.f32 %v7155_v41, %v7058_v36  ;;  %v5064_v49 = vadd.f32 %v5056_v42, %v4959_v56  ;;  %v17169_v0 = vld [vmem:[#allocation252_spill] sm:$0xff]  ;;  %v15446_v19 = vpop.permute.xlu0 %7622 }
 0x89f   :  { %v6317_v47 = vmul.f32 %v10273_v44, %v17165_v14  ;;  %17167 = vst [vmem:[#allocation11_spill] sm:$0xff] %v15398_v51  ;;  %v5161_v12 = vmul.f32 %v17169_v0, %v17168_v11  ;;  %v17170_v37 = vld [vmem:[#allocation282_spill] sm:$0xff]  ;;  %v5333_v14 = vadd.f32 %v5325_v28, %v5228_v57  ;;  %v5277_v23 = vadd.f32 %v5269_v46, %v5172_v45  ;;  %v8670_v36 = vld [vmem:[%s16120_s5 + $0x718] sm:$0xff] }
 0x8a0   :  { %v7154_v44 = vmul.f32 %v15398_v51, %v17170_v37  ;;  %v15406_v24 = vadd.f32 %v7423_v43, %v7326_v61  ;;  %v15415_v41 = vld [vmem:[%s16120_s5 + $0x650] sm:$0xff]  ;;  %v7160_v38 = vadd.f32 %v7152_v10, %v7055_v63  ;;  %v7268_v56 = vadd.f32 %v7260_v15, %v7163_v30  ;;  %v10274_v42 = vld [vmem:[%s16120_s5 + $0x1f8] sm:$0xff]  ;;  %v17174_v61 = vld [vmem:[#allocation341_spill] sm:$0xff]  ;;  %v7506_v15 = vpop.permute.xlu1 %7505  ;;  %17180 = vst [vmem:[#allocation17_spill] sm:$0xff] %v15446_v19 }
 0x8a1   :  { %17171 = vst [vmem:[#allocation13_spill] sm:$0xff] %v15415_v41  ;;  %v15420_v57 = vld [vmem:[%s16120_s5 + $0x690] sm:$0xff]  ;;  %v7325_v46 = vadd.f32 %v7317_v32, %v15200_v29  ;;  %v5374_v43 = vmul.f32 %v10274_v42, %v17174_v61  ;;  %v17175_v0 = vld [vmem:[#allocation344_spill] sm:$0xff]  ;;  %v6325_v63 = vadd.f32 %v6317_v47, %v6220_v35  ;;  %v5169_v30 = vadd.f32 %v5161_v12, %v5064_v49  ;;  %v10275_v42 = vld [vmem:[%s16120_s5 + $0x468] sm:$0xff] }
 0x8a2   :  { %17172 = vst [vmem:[#allocation21_spill] sm:$0xff] %v15420_v57  ;;  %v17173_v28 = vld [vmem:[#allocation318_spill] sm:$0xff]  ;;  %v7162_v11 = vadd.f32 %v7154_v44, %v7057_v26  ;;  %v7259_v10 = vmul.f32 %v15415_v41, %v17175_v0  ;;  %v17177_v26 = vld [vmem:[#allocation300_spill] sm:$0xff]  ;;  %7666 = vperm.xlu1 %10187, %v13145_v33  }
 0x8a3   :  { %v7365_v45 = vmul.f32 %v8654_v13, %v17173_v28  ;;  %v15433_v37 = vld [vmem:[%s16120_s5 + $0x6d0] sm:$0xff]  ;;  %v7430_v32 = vadd.f32 %v7422_v2, %v7325_v46  ;;  %v7527_v28 = vmul.f32 %v8670_v36, %v7506_v15  ;;  %v6422_v44 = vmul.f32 %v10275_v42, %v17177_v26  ;;  %v10276_v12 = vld [vmem:[%s16120_s5 + $0x238] sm:$0xff] }
 0x8a4   :  { %v17176_v13 = vld [vmem:[#allocation191_spill] sm:$0xff]  ;;  %v17178_v61 = vld [vmem:[#allocation346_spill] sm:$0xff]  ;;  %v5382_v47 = vadd.f32 %v5374_v43, %v5277_v23  ;;  %v7267_v26 = vadd.f32 %v7259_v10, %v7162_v11  ;;  %v7554_v51 = vpop.permute.xlu1 %7553  ;;  %v17187_v10 = vld [vmem:[#allocation60_spill] sm:$0xff] }
 0x8a5   :  { %v7470_v29 = vmul.f32 %v8662_v55, %v17176_v13  ;;  %v7364_v35 = vmul.f32 %v15420_v57, %v17178_v61  ;;  %v17179_v49 = vld [vmem:[#allocation142_spill] sm:$0xff]  ;;  %v10277_v55 = vld [vmem:[%s16120_s5 + $0x640] sm:$0xff]  ;;  %v17181_v2 = vld [vmem:[#allocation283_spill] sm:$0xff]  ;;  %v7373_v23 = vadd.f32 %v7365_v45, %v7268_v56  ;;  %v15455_v43 = vadd.f32 %v7527_v28, %v7430_v32 }
 0x8a6   :  { %v5479_v0 = vmul.f32 %v10276_v12, %v17179_v49  ;;  %v7257_v46 = vmul.f32 %v10277_v55, %v17181_v2  ;;  %v17182_v15 = vld [vmem:[#allocation315_spill] sm:$0xff]  ;;  %v17183_v13 = vld [vmem:[#allocation50_spill] sm:$0xff]  ;;  %v6430_v61 = vadd.f32 %v6422_v44, %v6325_v63  ;;  %v17185_v57 = vld [vmem:[#allocation196_spill] sm:$0xff]  ;;  %v7575_v45 = vmul.f32 %v8670_v36, %v7554_v51  ;;  %10188 = vset.pattern.permute.xlu1 %v16935_v3 }
 0x8a7   :  { %v5266_v42 = vmul.f32 %v17183_v13, %v17182_v15  ;;  %v10278_v12 = vld [vmem:[%s16120_s5 + $0x4a8] sm:$0xff]  ;;  %v7469_v41 = vmul.f32 %v15433_v37, %v17185_v57  ;;  %v17186_v55 = vld [vmem:[#allocation136_spill] sm:$0xff]  ;;  %v7478_v15 = vadd.f32 %v7470_v29, %v7373_v23  ;;  %v15468_v56 = vld [vmem:[%s16120_s5 + $0x710] sm:$0xff]  ;;  %v7372_v57 = vadd.f32 %v7364_v35, %v7267_v26  ;;  %7767 = vperm.xlu1 %10188, %v13245_v5  }
 0x8a8   :  { %v17184_v49 = vld [vmem:[#allocation190_spill] sm:$0xff]  ;;  %v5371_v2 = vmul.f32 %v14582_v48, %v17186_v55  ;;  %v5487_v32 = vadd.f32 %v5479_v0, %v5382_v47  ;;  %v8667_v48 = vld [vmem:[%s16120_s5 + $0x700] sm:$0xff]  ;;  %v5438_v28 = vadd.f32 %v15302_v17, %v5333_v14  ;;  %v17189_v47 = vld [vmem:[#allocation219_spill] sm:$0xff] }
 0x8a9   :  { %v6527_v19 = vmul.f32 %v10278_v12, %v17184_v49  ;;  %v5274_v31 = vadd.f32 %v5266_v42, %v5169_v30  ;;  %v10279_v11 = vld [vmem:[%s16120_s5 + $0x548] sm:$0xff]  ;;  %v7574_v30 = vmul.f32 %v15468_v56, %v15148_v8  ;;  %v7524_v44 = vmul.f32 %v8667_v48, %v14853_v16  ;;  %v10281_v8 = vld [vmem:[%s16120_s5 + $0x270] sm:$0xff]  ;;  %v10282_v13 = vld [vmem:[%s16120_s5 + $0x278] sm:$0xff]  ;;  %v15503_v12 = vpop.permute.xlu0 %7626 }
 0x8aa   :  { %v15474_v63 = vmul.f32 %v10279_v11, %v17187_v10  ;;  %v10280_v51 = vld [vmem:[%s16120_s5 + $0x508] sm:$0xff]  ;;  %v15488_v35 = vadd.f32 %v7575_v45, %v7478_v15  ;;  %v5535_v0 = vmul.f32 %v10281_v8, %v17189_v47  ;;  %v17190_v42 = vld [vmem:[#allocation343_spill] sm:$0xff]  ;;  %v10283_v16 = vld [vmem:[%s16120_s5 + $0x680] sm:$0xff]  ;;  %v7477_v26 = vadd.f32 %v7469_v41, %v7372_v57  ;;  %17192 = vst [vmem:[#allocation61_spill] sm:$0xff] %v15503_v12 }
 0x8ab   :  { %v17188_v36 = vld [vmem:[#allocation58_spill] sm:$0xff]  ;;  %v5584_v23 = vmul.f32 %v10282_v13, %v17190_v42  ;;  %v17191_v17 = vld [vmem:[#allocation285_spill] sm:$0xff]  ;;  %v7265_v49 = vadd.f32 %v7257_v46, %v7160_v38  ;;  %v6535_v55 = vadd.f32 %v6527_v19, %v6430_v61  ;;  %v5379_v15 = vadd.f32 %v5371_v2, %v5274_v31  ;;  %v17193_v11 = vld [vmem:[#allocation287_spill] sm:$0xff]  ;;  %10189 = vset.pattern.permute.xlu1 %v17008_v1 }
 0x8ac   :  { %v6685_v29 = vmul.f32 %v10280_v51, %v17188_v36  ;;  %v7362_v14 = vmul.f32 %v10283_v16, %v17191_v17  ;;  %v10284_v45 = vld [vmem:[%s16120_s5 + $0x6c0] sm:$0xff]  ;;  %v15512_v51 = vld [vmem:[%s16120_s5 + $0x750] sm:$0xff]  ;;  %v7655_v36 = vpop.permute.xlu1 %7654  ;;  %v10285_v41 = vld [vmem:[%s16120_s5 + $0x2b8] sm:$0xff]  ;;  %v7582_v46 = vadd.f32 %v7574_v30, %v7477_v26  ;;  %7820 = vperm.xlu1 %10189, %v12177_v52  }
 0x8ad   :  { %v7467_v10 = vmul.f32 %v10284_v45, %v17193_v11  ;;  %v5592_v8 = vadd.f32 %v5584_v23, %v5487_v32  ;;  %v17194_v38 = vld [vmem:[#allocation145_spill] sm:$0xff]  ;;  %v7679_v61 = vmul.f32 %v15512_v51, %v7655_v36  ;;  %v17195_v32 = vld [vmem:[#allocation302_spill] sm:$0xff]  ;;  %v17196_v42 = vld [vmem:[#allocation172_spill] sm:$0xff] }
 0x8ae   :  { %v5689_v19 = vmul.f32 %v10285_v41, %v17194_v38  ;;  %v8675_v31 = vld [vmem:[%s16120_s5 + $0x740] sm:$0xff]  ;;  %v6693_v2 = vadd.f32 %v6685_v29, %v15198_v22  ;;  %v10286_v57 = vld [vmem:[%s16120_s5 + $0x4e8] sm:$0xff]  ;;  %v10287_v13 = vld [vmem:[%s16120_s5 + $0x2b0] sm:$0xff]  ;;  %v5543_v22 = vadd.f32 %v5535_v0, %v5438_v28  ;;  %v7370_v29 = vadd.f32 %v7362_v14, %v7265_v49 }
 0x8af   :  { %v6632_v47 = vmul.f32 %v10286_v57, %v17195_v32  ;;  %v5640_v23 = vmul.f32 %v10287_v13, %v17196_v42  ;;  %v17197_v16 = vld [vmem:[#allocation12_spill] sm:$0xff]  ;;  %v17198_v30 = vld [vmem:[#allocation317_spill] sm:$0xff]  ;;  %v15535_v45 = vadd.f32 %v7679_v61, %v7582_v46  ;;  %v17199_v41 = vld [vmem:[#allocation83_spill] sm:$0xff]  ;;  %v7572_v57 = vmul.f32 %v8667_v48, %v15038_v53  ;;  %v15549_v46 = vpop.permute.xlu0 %7707 }
 0x8b0   :  { %v7532_v17 = vadd.f32 %v7524_v44, %v17197_v16  ;;  %v5476_v26 = vmul.f32 %v14628_v27, %v17198_v30  ;;  %v8683_v11 = vld [vmem:[%s16120_s5 + $0x780] sm:$0xff]  ;;  %v10288_v44 = vld [vmem:[%s16120_s5 + $0x528] sm:$0xff]  ;;  %v7629_v27 = vmul.f32 %v8675_v31, %v15224_v20  ;;  %v17200_v0 = vld [vmem:[#allocation139_spill] sm:$0xff]  ;;  %v5697_v52 = vadd.f32 %v5689_v19, %v5592_v8  ;;  %v7704_v61 = vpop.permute.xlu1 %7703  ;;  %10190 = vset.pattern.permute.xlu1 %v16894_v39 }
 0x8b1   :  { %v6640_v36 = vadd.f32 %v6632_v47, %v6535_v55  ;;  %v6737_v38 = vmul.f32 %v10288_v44, %v17199_v41  ;;  %v5581_v14 = vmul.f32 %v14651_v34, %v17200_v0  ;;  %v7475_v49 = vadd.f32 %v7467_v10, %v7370_v29  ;;  %v15554_v55 = vld [vmem:[%s16120_s5 + $0x708] sm:$0xff]  ;;  %v10289_v34 = vld [vmem:[%s16120_s5 + $0x2f0] sm:$0xff]  ;;  %v10290_v8 = vld [vmem:[%s16120_s5 + $0x2f8] sm:$0xff] }
 0x8b2   :  { %v5484_v28 = vadd.f32 %v5476_v26, %v5379_v15  ;;  %v7573_v32 = vmul.f32 %v15554_v55, %v14925_v62  ;;  %v7677_v53 = vmul.f32 %v8675_v31, %v15245_v4  ;;  %v7637_v20 = vadd.f32 %v7629_v27, %v7532_v17  ;;  %v17201_v15 = vld [vmem:[#allocation221_spill] sm:$0xff]  ;;  %v17203_v16 = vld [vmem:[#allocation84_spill] sm:$0xff]  ;;  %v17204_v30 = vld [vmem:[#allocation38_spill] sm:$0xff] }
 0x8b3   :  { %v7734_v48 = vmul.f32 %v8683_v11, %v7704_v61  ;;  %v5745_v10 = vmul.f32 %v10289_v34, %v17201_v15  ;;  %v17202_v19 = vld [vmem:[#allocation345_spill] sm:$0xff]  ;;  %v5648_v13 = vadd.f32 %v5640_v23, %v5543_v22  ;;  %v6798_v62 = vadd.f32 %v15474_v63, %v6693_v2  ;;  %7521 = vperm.xlu1 %10190, %v17203_v16   ;;  %v17205_v22 = vld [vmem:[#allocation304_spill] sm:$0xff]  ;;  %v17208_v61 = vld [vmem:[#allocation319_spill] sm:$0xff]  ;;  %v15592_v34 = vpop.permute.xlu0 %7711 }
 0x8b4   :  { %v5794_v47 = vmul.f32 %v10290_v8, %v17202_v19  ;;  %v6745_v4 = vadd.f32 %v6737_v38, %v6640_v36  ;;  %v7580_v31 = vadd.f32 %v7572_v57, %v7475_v49  ;;  %v10291_v17 = vld [vmem:[%s16120_s5 + $0x588] sm:$0xff]  ;;  %v10293_v63 = vld [vmem:[%s16120_s5 + $0x338] sm:$0xff]  ;;  %v7752_v41 = vpop.permute.xlu1 %7751  ;;  %v5589_v38 = vadd.f32 %v5581_v14, %v5484_v28 }
 0x8b5   :  { %v15569_v42 = vadd.f32 %v7734_v48, %v7637_v20  ;;  %v6895_v26 = vmul.f32 %v10291_v17, %v17204_v30  ;;  %v10292_v23 = vld [vmem:[%s16120_s5 + $0x568] sm:$0xff]  ;;  %v17207_v57 = vld [vmem:[#allocation140_spill] sm:$0xff]  ;;  %v7782_v49 = vmul.f32 %v8683_v11, %v7752_v41  ;;  %v5753_v48 = vadd.f32 %v5745_v10, %v5648_v13 }
 0x8b6   :  { %v6842_v39 = vmul.f32 %v10292_v23, %v17205_v22  ;;  %v5802_v29 = vadd.f32 %v5794_v47, %v5697_v52  ;;  %v17206_v2 = vld [vmem:[#allocation193_spill] sm:$0xff]  ;;  %v7581_v27 = vadd.f32 %v7573_v32, %v17207_v57  ;;  %v7685_v0 = vadd.f32 %v7677_v53, %v7580_v31  ;;  %v17209_v20 = vld [vmem:[#allocation18_spill] sm:$0xff]  ;;  %v10298_v41 = vld [vmem:[%s16120_s5 + $0x378] sm:$0xff] }
 0x8b7   :  { %v5899_v36 = vmul.f32 %v10293_v63, %v17206_v2  ;;  %v15587_v44 = vld [vmem:[%s16120_s5 + $0x748] sm:$0xff]  ;;  %v5686_v52 = vmul.f32 %v17209_v20, %v17208_v61  ;;  %7569 = vperm.xlu1 %10190, %v13353_v9   ;;  %v6903_v11 = vadd.f32 %v6895_v26, %v6798_v62  ;;  %v10295_v32 = vld [vmem:[%s16120_s5 + $0x330] sm:$0xff] }
 0x8b8   :  { %v6850_v15 = vadd.f32 %v6842_v39, %v6745_v4  ;;  %v10294_v8 = vld [vmem:[%s16120_s5 + $0x5a8] sm:$0xff]  ;;  %v7678_v28 = vmul.f32 %v15587_v44, %v15280_v50  ;;  %v15600_v14 = vadd.f32 %v7782_v49, %v7685_v0  ;;  %v7756_v31 = vpop.permute.xlu1 %7755  ;;  %v17212_v50 = vld [vmem:[#allocation188_spill] sm:$0xff]  ;;  %v10296_v26 = vld [vmem:[%s16120_s5 + $0x50] sm:$0xff] }
 0x8b9   :  { %v17210_v19 = vld [vmem:[#allocation42_spill] sm:$0xff]  ;;  %v5907_v13 = vadd.f32 %v5899_v36, %v5802_v29  ;;  %v5694_v17 = vadd.f32 %v5686_v52, %v5589_v38  ;;  %v17214_v39 = vld [vmem:[#allocation85_spill] sm:$0xff]  ;;  %v17215_v2 = vld [vmem:[#allocation223_spill] sm:$0xff] }
 0x8ba   :  { %v6947_v47 = vmul.f32 %v10294_v8, %v17210_v19  ;;  %v17211_v53 = vld [vmem:[#allocation174_spill] sm:$0xff]  ;;  %v7686_v22 = vadd.f32 %v7678_v28, %v7581_v27  ;;  %v4691_v63 = vmul.f32 %v10296_v26, %v17214_v39  ;;  %v17216_v38 = vld [vmem:[#allocation347_spill] sm:$0xff]  ;;  %v17217_v49 = vld [vmem:[#allocation5_spill] sm:$0xff] }
 0x8bb   :  { %v5850_v10 = vmul.f32 %v10295_v32, %v17211_v53  ;;  %v15610_v4 = vld [vmem:[%s16120_s5 + $0x788] sm:$0xff]  ;;  %v10297_v29 = vld [vmem:[%s16120_s5 + $0x370] sm:$0xff]  ;;  %v6004_v57 = vmul.f32 %v10298_v41, %v17216_v38  ;;  %10191 = vset.pattern.permute.xlu1 %v16911_v59 }
 0x8bc   :  { %v17213_v30 = vld [vmem:[#allocation98_spill] sm:$0xff]  ;;  %v7783_v62 = vmul.f32 %v15610_v4, %v7756_v31  ;;  %v5955_v36 = vmul.f32 %v10297_v29, %v17215_v2  ;;  %v6955_v20 = vadd.f32 %v6947_v47, %v6850_v15  ;;  %v17219_v32 = vld [vmem:[#allocation87_spill] sm:$0xff]  ;;  %v17220_v47 = vld [vmem:[#allocation248_spill] sm:$0xff]  ;;  %v15653_v29 = vpop.permute.xlu1 %7307 }
 0x8bd   :  { %v5791_v23 = vmul.f32 %v17213_v30, %v17212_v50  ;;  %v5858_v27 = vadd.f32 %v5850_v10, %v5753_v48  ;;  %v10299_v0 = vld [vmem:[%s16120_s5 + $0x5c8] sm:$0xff]  ;;  %v10300_v8 = vld [vmem:[%s16120_s5 + $0x10] sm:$0xff]  ;;  %v6012_v10 = vadd.f32 %v6004_v57, %v5907_v13  ;;  %v10302_v15 = vld [vmem:[%s16120_s5 + $0x3b8] sm:$0xff]  ;;  %v15646_v50 = vpop.permute.xlu0 %7763 }
 0x8be   :  { %v7000_v61 = vmul.f32 %v10299_v0, %v17217_v49  ;;  %v15631_v52 = vadd.f32 %v7783_v62, %v7686_v22  ;;  %v17218_v19 = vld [vmem:[#allocation82_spill] sm:$0xff]  ;;  %v6109_v31 = vmul.f32 %v10302_v15, %v17220_v47  ;;  %v17221_v30 = vld [vmem:[#allocation307_spill] sm:$0xff]  ;;  %v17223_v57 = vld [vmem:[#allocation89_spill] sm:$0xff] }
 0x8bf   :  { %v4578_v28 = vmul.f32 %v10300_v8, %v17218_v19  ;;  %v10301_v48 = vld [vmem:[%s16120_s5 + $0x90] sm:$0xff]  ;;  %7670 = vperm.xlu1 %10191, %v17221_v30   ;;  %v10303_v22 = vld [vmem:[%s16120_s5 + $0x5e8] sm:$0xff]  ;;  %v5799_v39 = vadd.f32 %v5791_v23, %v5694_v17  ;;  %v5963_v41 = vadd.f32 %v5955_v36, %v5858_v27  ;;  %v17225_v8 = vld [vmem:[#allocation148_spill] sm:$0xff] }
 0x8c0   :  { %v4796_v53 = vmul.f32 %v10301_v48, %v17219_v32  ;;  %v17222_v62 = vld [vmem:[#allocation306_spill] sm:$0xff]  ;;  %v7008_v13 = vadd.f32 %v7000_v61, %v6903_v11  ;;  %v17224_v49 = vld [vmem:[#allocation321_spill] sm:$0xff]  ;;  %v17226_v17 = vld [vmem:[#allocation240_spill] sm:$0xff] }
 0x8c1   :  { %v7052_v26 = vmul.f32 %v10303_v22, %v17222_v62  ;;  %v4699_v2 = vadd.f32 %v4691_v63, %v4578_v28  ;;  %v10304_v38 = vld [vmem:[%s16120_s5 + $0xd0] sm:$0xff]  ;;  %v5896_v19 = vmul.f32 %v17225_v8, %v17224_v49  ;;  %v10305_v32 = vld [vmem:[%s16120_s5 + $0x628] sm:$0xff]  ;;  %v17228_v28 = vld [vmem:[#allocation176_spill] sm:$0xff] }
 0x8c2   :  { %v4901_v0 = vmul.f32 %v10304_v38, %v17223_v57  ;;  %v7157_v23 = vmul.f32 %v10305_v32, %v17226_v17  ;;  %v10306_v11 = vld [vmem:[%s16120_s5 + $0x608] sm:$0xff]  ;;  %v17227_v63 = vld [vmem:[#allocation59_spill] sm:$0xff]  ;;  %v17231_v57 = vld [vmem:[#allocation204_spill] sm:$0xff] }
 0x8c3   :  { %v7060_v48 = vadd.f32 %v7052_v26, %v6955_v20  ;;  %v7105_v36 = vmul.f32 %v10306_v11, %v17227_v63  ;;  %v4804_v27 = vadd.f32 %v4796_v53, %v4699_v2  ;;  %v10307_v61 = vld [vmem:[%s16120_s5 + $0x3b0] sm:$0xff]  ;;  %v6117_v20 = vadd.f32 %v6109_v31, %v6012_v10  ;;  %10192 = vset.pattern.permute.xlu1 %v16935_v3  ;;  %v10309_v10 = vld [vmem:[%s16120_s5 + $0x668] sm:$0xff]  ;;  %v10311_v11 = vld [vmem:[%s16120_s5 + $0x3f8] sm:$0xff] }
 0x8c4   :  { %v6060_v15 = vmul.f32 %v10307_v61, %v17228_v28  ;;  %v10308_v47 = vld [vmem:[%s16120_s5 + $0x110] sm:$0xff]  ;;  %v5904_v26 = vadd.f32 %v5896_v19, %v5799_v39  ;;  %v17232_v31 = vld [vmem:[#allocation153_spill] sm:$0xff]  ;;  %7723 = vperm.xlu1 %10192, %v17065_v60   ;;  %v7356_v39 = vpop.permute.xlu1 %7355 }
 0x8c5   :  { %v17229_v22 = vld [vmem:[#allocation91_spill] sm:$0xff]  ;;  %v17230_v38 = vld [vmem:[#allocation242_spill] sm:$0xff]  ;;  %v7262_v2 = vmul.f32 %v10309_v10, %v17232_v31  ;;  %v17233_v32 = vld [vmem:[#allocation225_spill] sm:$0xff] }
 0x8c6   :  { %v5006_v62 = vmul.f32 %v10308_v47, %v17229_v22  ;;  %v6001_v49 = vmul.f32 %v17231_v57, %v17230_v38  ;;  %v15683_v53 = vld [vmem:[%s16120_s5 + $0x6f0] sm:$0xff]  ;;  %v17234_v63 = vld [vmem:[#allocation349_spill] sm:$0xff]  ;;  %v6068_v28 = vadd.f32 %v6060_v15, %v5963_v41  ;;  %v15703_v47 = vpop.permute.xlu0 %7719  ;;  %v4909_v38 = vadd.f32 %v4901_v0, %v4804_v27  ;;  %v10313_v41 = vld [vmem:[%s16120_s5 + $0x438] sm:$0xff] }
 0x8c7   :  { %v15692_v8 = vld [vmem:[%s16120_s5 + $0x6b0] sm:$0xff]  ;;  %v6214_v61 = vmul.f32 %v10311_v11, %v17234_v63  ;;  %17235 = vst [vmem:[#allocation31_spill] sm:$0xff] %v15703_v47  ;;  %v7165_v57 = vadd.f32 %v7157_v23, %v7060_v48  ;;  %v10312_v10 = vld [vmem:[%s16120_s5 + $0x6a8] sm:$0xff]  ;;  %v7113_v63 = vadd.f32 %v7105_v36, %v7008_v13 }
 0x8c8   :  { %v10310_v19 = vld [vmem:[%s16120_s5 + $0x3f0] sm:$0xff]  ;;  %v7368_v22 = vmul.f32 %v15692_v8, %v7356_v39  ;;  %v7367_v31 = vmul.f32 %v10312_v10, %v15342_v21  ;;  %v17238_v48 = vld [vmem:[#allocation93_spill] sm:$0xff]  ;;  %v6009_v27 = vadd.f32 %v6001_v49, %v5904_v26  ;;  %10193 = vset.pattern.permute.xlu1 %v17008_v1 }
 0x8c9   :  { %v6165_v17 = vmul.f32 %v10310_v19, %v17233_v32  ;;  %v17236_v19 = vld [vmem:[#allocation92_spill] sm:$0xff]  ;;  %v6222_v12 = vadd.f32 %v6214_v61, %v6117_v20  ;;  %v17237_v15 = vld [vmem:[#allocation14_spill] sm:$0xff]  ;;  %v7270_v21 = vadd.f32 %v7262_v2, %v7165_v57  ;;  %v5014_v20 = vadd.f32 %v5006_v62, %v4909_v38  ;;  %v17241_v47 = vld [vmem:[#allocation323_spill] sm:$0xff] }
 0x8ca   :  { %v7473_v32 = vmul.f32 %v15683_v53, %v17236_v19  ;;  %v6319_v11 = vmul.f32 %v10313_v41, %v17237_v15  ;;  %v7376_v39 = vadd.f32 %v7368_v22, %v15319_v40  ;;  %v10314_v0 = vld [vmem:[%s16120_s5 + $0x150] sm:$0xff]  ;;  %v7457_v41 = vpop.permute.xlu1 %7456  ;;  %v10316_v13 = vld [vmem:[%s16120_s5 + $0x6e8] sm:$0xff] }
 0x8cb   :  { %v5111_v23 = vmul.f32 %v10314_v0, %v17238_v48  ;;  %v6173_v61 = vadd.f32 %v6165_v17, %v6068_v28  ;;  %v17239_v19 = vld [vmem:[#allocation15_spill] sm:$0xff]  ;;  %v7375_v49 = vadd.f32 %v7367_v31, %v7270_v21  ;;  %v7472_v36 = vmul.f32 %v10316_v13, %v7457_v41  ;;  %v10317_v62 = vld [vmem:[%s16120_s5 + $0x648] sm:$0xff]  ;;  %v17245_v48 = vld [vmem:[#allocation44_spill] sm:$0xff] }
 0x8cc   :  { %v15722_v10 = vadd.f32 %v7473_v32, %v7376_v39  ;;  %7824 = vperm.xlu1 %10193, %v17239_v19   ;;  %v10315_v40 = vld [vmem:[%s16120_s5 + $0x190] sm:$0xff]  ;;  %v17243_v2 = vld [vmem:[#allocation41_spill] sm:$0xff]  ;;  %v6327_v32 = vadd.f32 %v6319_v11, %v6222_v12 }
 0x8cd   :  { %v17240_v22 = vld [vmem:[#allocation95_spill] sm:$0xff]  ;;  %v7210_v17 = vmul.f32 %v10317_v62, %v17243_v2  ;;  %v17244_v38 = vld [vmem:[#allocation178_spill] sm:$0xff]  ;;  %v5119_v31 = vadd.f32 %v5111_v23, %v5014_v20  ;;  %v15746_v41 = vadd.f32 %v7472_v36, %v7375_v49 }
 0x8ce   :  { %v5216_v15 = vmul.f32 %v10315_v40, %v17240_v22  ;;  %v17242_v0 = vld [vmem:[#allocation199_spill] sm:$0xff]  ;;  %v17246_v21 = vld [vmem:[#allocation254_spill] sm:$0xff]  ;;  %v17247_v22 = vld [vmem:[#allocation97_spill] sm:$0xff] }
 0x8cf   :  { %v6106_v26 = vmul.f32 %v17242_v0, %v17241_v47  ;;  %v10318_v28 = vld [vmem:[%s16120_s5 + $0x430] sm:$0xff]  ;;  %v15742_v47 = vpop.permute.xlu0 %7771  ;;  %v6211_v19 = vmul.f32 %v17246_v21, %v17245_v48  ;;  %v10321_v23 = vld [vmem:[%s16120_s5 + $0x478] sm:$0xff]  ;;  %v7218_v49 = vadd.f32 %v7210_v17, %v7113_v63  ;;  %v10322_v62 = vld [vmem:[%s16120_s5 + $0x688] sm:$0xff]  ;;  %v7510_v48 = vpop.permute.xlu1 %7509 }
 0x8d0   :  { %v6270_v57 = vmul.f32 %v10318_v28, %v17244_v38  ;;  %v10319_v40 = vld [vmem:[%s16120_s5 + $0x1d0] sm:$0xff]  ;;  %7872 = vperm.xlu1 %10193, %v13245_v5   ;;  %v5224_v36 = vadd.f32 %v5216_v15, %v5119_v31  ;;  %v15768_v38 = vld [vmem:[%s16120_s5 + $0x720] sm:$0xff]  ;;  %v10324_v15 = vld [vmem:[%s16120_s5 + $0x4b8] sm:$0xff] }
 0x8d1   :  { %v6114_v39 = vadd.f32 %v6106_v26, %v6009_v27  ;;  %v5321_v0 = vmul.f32 %v10319_v40, %v17247_v22  ;;  %v10320_v13 = vld [vmem:[%s16120_s5 + $0x470] sm:$0xff]  ;;  %v17252_v17 = vld [vmem:[#allocation48_spill] sm:$0xff]  ;;  %v7528_v21 = vmul.f32 %v15768_v38, %v7510_v48 }
 0x8d2   :  { %v17248_v12 = vld [vmem:[#allocation227_spill] sm:$0xff]  ;;  %v6278_v26 = vadd.f32 %v6270_v57, %v6173_v61  ;;  %v17250_v2 = vld [vmem:[#allocation6_spill] sm:$0xff]  ;;  %v6529_v31 = vmul.f32 %v10324_v15, %v17252_v17  ;;  %v17260_v17 = vld [vmem:[#allocation100_spill] sm:$0xff] }
 0x8d3   :  { %v6375_v11 = vmul.f32 %v10320_v13, %v17248_v12  ;;  %v17249_v27 = vld [vmem:[#allocation351_spill] sm:$0xff]  ;;  %v7315_v28 = vmul.f32 %v10322_v62, %v17250_v2  ;;  %v6219_v40 = vadd.f32 %v6211_v19, %v6114_v39  ;;  %v5329_v22 = vadd.f32 %v5321_v0, %v5224_v36  ;;  %v15779_v12 = vpop.permute.xlu0 %7775  ;;  %v10325_v39 = vld [vmem:[%s16120_s5 + $0x6c8] sm:$0xff]  ;;  %v17256_v19 = vld [vmem:[#allocation40_spill] sm:$0xff] }
 0x8d4   :  { %v6424_v20 = vmul.f32 %v10321_v23, %v17249_v27  ;;  %v10323_v61 = vld [vmem:[%s16120_s5 + $0x210] sm:$0xff]  ;;  %17253 = vst [vmem:[#allocation63_spill] sm:$0xff] %v15779_v12  ;;  %v15782_v23 = vadd.f32 %v7528_v21, %v15406_v24  ;;  %10195 = vset.pattern.permute.xlu1 %v16911_v59  ;;  %v17254_v27 = vld [vmem:[#allocation325_spill] sm:$0xff]  ;;  %v7420_v0 = vmul.f32 %v10325_v39, %v17256_v19 }
 0x8d5   :  { %v17251_v57 = vld [vmem:[#allocation99_spill] sm:$0xff]  ;;  %v6383_v13 = vadd.f32 %v6375_v11, %v6278_v26  ;;  %v7323_v2 = vadd.f32 %v7315_v28, %v7218_v49  ;;  %7674 = vperm.xlu1 %10195, %v13353_v9   ;;  %v17257_v11 = vld [vmem:[#allocation101_spill] sm:$0xff]  ;;  %v17258_v49 = vld [vmem:[#allocation180_spill] sm:$0xff] }
 0x8d6   :  { %v5426_v5 = vmul.f32 %v10323_v61, %v17251_v57  ;;  %v6432_v63 = vadd.f32 %v6424_v20, %v6327_v32  ;;  %v8678_v32 = vld [vmem:[%s16120_s5 + $0x758] sm:$0xff]  ;;  %v10326_v59 = vld [vmem:[%s16120_s5 + $0x250] sm:$0xff]  ;;  %v7611_v61 = vpop.permute.xlu1 %7610 }
 0x8d7   :  { %v17255_v20 = vld [vmem:[#allocation19_spill] sm:$0xff]  ;;  %v5531_v26 = vmul.f32 %v10326_v59, %v17257_v11  ;;  %v17259_v15 = vld [vmem:[#allocation138_spill] sm:$0xff] }
 0x8d8   :  { %v6316_v62 = vmul.f32 %v17255_v20, %v17254_v27  ;;  %v5434_v24 = vadd.f32 %v5426_v5, %v5329_v22  ;;  %v10327_v36 = vld [vmem:[%s16120_s5 + $0x4b0] sm:$0xff]  ;;  %v6537_v48 = vadd.f32 %v6529_v31, %v6432_v63  ;;  %v6421_v21 = vmul.f32 %v17260_v17, %v17259_v15  ;;  %v17261_v27 = vld [vmem:[#allocation52_spill] sm:$0xff]  ;;  %v17263_v63 = vld [vmem:[#allocation229_spill] sm:$0xff] }
 0x8d9   :  { %v6480_v28 = vmul.f32 %v10327_v36, %v17258_v49  ;;  %v7525_v5 = vmul.f32 %v15554_v55, %v17261_v27  ;;  %v7632_v22 = vmul.f32 %v8678_v32, %v7611_v61  ;;  %v10328_v20 = vld [vmem:[%s16120_s5 + $0x290] sm:$0xff]  ;;  %v7428_v36 = vadd.f32 %v7420_v0, %v7323_v2  ;;  %10196 = vset.pattern.permute.xlu1 %v16935_v3 }
 0x8da   :  { %v6324_v57 = vadd.f32 %v6316_v62, %v6219_v40  ;;  %v17262_v39 = vld [vmem:[#allocation103_spill] sm:$0xff]  ;;  %v17264_v62 = vld [vmem:[#allocation353_spill] sm:$0xff]  ;;  %v5539_v17 = vadd.f32 %v5531_v26, %v5434_v24  ;;  %v17267_v2 = vld [vmem:[#allocation94_spill] sm:$0xff]  ;;  %7727 = vperm.xlu1 %10196, %v16804_v54  }
 0x8db   :  { %v5636_v19 = vmul.f32 %v10328_v20, %v17262_v39  ;;  %v10329_v59 = vld [vmem:[%s16120_s5 + $0x4f0] sm:$0xff]  ;;  %v10330_v40 = vld [vmem:[%s16120_s5 + $0x4f8] sm:$0xff]  ;;  %v6488_v55 = vadd.f32 %v6480_v28, %v6383_v13  ;;  %v15822_v15 = vadd.f32 %v7632_v22, %v15455_v43  ;;  %v17266_v20 = vld [vmem:[#allocation105_spill] sm:$0xff]  ;;  %v7659_v43 = vpop.permute.xlu1 %7658  ;;  %v7533_v24 = vadd.f32 %v7525_v5, %v7428_v36 }
 0x8dc   :  { %v6585_v31 = vmul.f32 %v10329_v59, %v17263_v63  ;;  %v6634_v11 = vmul.f32 %v10330_v40, %v17264_v62  ;;  %v17265_v49 = vld [vmem:[#allocation159_spill] sm:$0xff]  ;;  %v6429_v28 = vadd.f32 %v6421_v21, %v6324_v57  ;;  %v7680_v26 = vmul.f32 %v8678_v32, %v7659_v43  ;;  %v17269_v62 = vld [vmem:[#allocation150_spill] sm:$0xff]  ;;  %v17273_v5 = vld [vmem:[#allocation109_spill] sm:$0xff] }
 0x8dd   :  { %v7630_v61 = vmul.f32 %v15587_v44, %v17265_v49  ;;  %v10331_v27 = vld [vmem:[%s16120_s5 + $0x2d0] sm:$0xff]  ;;  %v10332_v13 = vld [vmem:[%s16120_s5 + $0x538] sm:$0xff]  ;;  %v15833_v44 = vpop.permute.xlu0 %7731  ;;  %v5644_v22 = vadd.f32 %v5636_v19, %v5539_v17  ;;  %v17275_v36 = vld [vmem:[#allocation141_spill] sm:$0xff] }
 0x8de   :  { %v5741_v39 = vmul.f32 %v10331_v27, %v17266_v20  ;;  %v6642_v59 = vadd.f32 %v6634_v11, %v6537_v48  ;;  %v6739_v0 = vmul.f32 %v10332_v13, %v17267_v2  ;;  %v6593_v63 = vadd.f32 %v6585_v31, %v6488_v55  ;;  %v17268_v40 = vld [vmem:[#allocation107_spill] sm:$0xff]  ;;  %v17271_v11 = vld [vmem:[#allocation201_spill] sm:$0xff]  ;;  %v17272_v57 = vld [vmem:[#allocation182_spill] sm:$0xff]  ;;  %10197 = vset.pattern.permute.xlu1 %v17008_v1 }
 0x8df   :  { %v5846_v49 = vmul.f32 %v17269_v62, %v17268_v40  ;;  %v17270_v48 = vld [vmem:[#allocation327_spill] sm:$0xff]  ;;  %v7638_v20 = vadd.f32 %v7630_v61, %v7533_v24  ;;  %v15841_v12 = vadd.f32 %v7680_v26, %v15488_v35  ;;  %v17274_v19 = vld [vmem:[#allocation206_spill] sm:$0xff]  ;;  %v17276_v17 = vld [vmem:[#allocation20_spill] sm:$0xff]  ;;  %v7735_v35 = vmul.f32 %v15610_v4, %v15549_v46  ;;  %7828 = vperm.xlu1 %10197, %v17065_v60  }
 0x8e0   :  { %v6526_v27 = vmul.f32 %v17271_v11, %v17270_v48  ;;  %v5749_v13 = vadd.f32 %v5741_v39, %v5644_v22  ;;  %v10333_v54 = vld [vmem:[%s16120_s5 + $0x530] sm:$0xff]  ;;  %v6747_v32 = vadd.f32 %v6739_v0, %v6642_v59  ;;  %v5951_v31 = vmul.f32 %v17274_v19, %v17273_v5  ;;  %v7760_v59 = vpop.permute.xlu1 %7759  ;;  %v8692_v26 = vld [vmem:[%s16120_s5 + $0x7c8] sm:$0xff]  ;;  %v17279_v48 = vld [vmem:[#allocation112_spill] sm:$0xff] }
 0x8e1   :  { %v6690_v21 = vmul.f32 %v10333_v54, %v17272_v57  ;;  %v6631_v61 = vmul.f32 %v17276_v17, %v17275_v36  ;;  %v15857_v39 = vld [vmem:[%s16120_s5 + $0x790] sm:$0xff]  ;;  %v7813_v22 = vpop.permute.xlu0 %7812  ;;  %v7743_v62 = vadd.f32 %v7735_v35, %v7638_v20  ;;  %v10336_v57 = vld [vmem:[%s16120_s5 + $0x5b8] sm:$0xff] }
 0x8e2   :  { %v6534_v55 = vadd.f32 %v6526_v27, %v6429_v28  ;;  %v10334_v2 = vld [vmem:[%s16120_s5 + $0x570] sm:$0xff]  ;;  %v10335_v28 = vld [vmem:[%s16120_s5 + $0x578] sm:$0xff]  ;;  %v7784_v60 = vmul.f32 %v15857_v39, %v7760_v59  ;;  %v5854_v40 = vadd.f32 %v5846_v49, %v5749_v13  ;;  %v7840_v49 = vmul.f32 %v8692_v26, %v7813_v22 }
 0x8e3   :  { %v17277_v0 = vld [vmem:[#allocation231_spill] sm:$0xff]  ;;  %v6698_v4 = vadd.f32 %v6690_v21, %v6593_v63  ;;  %v17281_v5 = vld [vmem:[#allocation144_spill] sm:$0xff]  ;;  %7876 = vperm.xlu1 %10197, %v13145_v33   ;;  %v17282_v13 = vld [vmem:[#allocation114_spill] sm:$0xff] }
 0x8e4   :  { %v6795_v43 = vmul.f32 %v10334_v2, %v17277_v0  ;;  %v17278_v24 = vld [vmem:[#allocation355_spill] sm:$0xff]  ;;  %v6949_v19 = vmul.f32 %v10336_v57, %v17281_v5  ;;  %v15879_v63 = vadd.f32 %v7784_v60, %v15535_v45  ;;  %v8691_v21 = vld [vmem:[%s16120_s5 + $0x7c0] sm:$0xff]  ;;  %v6639_v36 = vadd.f32 %v6631_v61, %v6534_v55  ;;  %v7809_v59 = vpop.permute.xlu1 %7808 }
 0x8e5   :  { %v6844_v46 = vmul.f32 %v10335_v28, %v17278_v24  ;;  %v17280_v11 = vld [vmem:[#allocation7_spill] sm:$0xff]  ;;  %v5959_v20 = vadd.f32 %v5951_v31, %v5854_v40  ;;  %v17284_v2 = vld [vmem:[#allocation329_spill] sm:$0xff]  ;;  %v17285_v0 = vld [vmem:[#allocation208_spill] sm:$0xff]  ;;  %v7848_v24 = vadd.f32 %v7840_v49, %v7743_v62  ;;  %v7839_v45 = vmul.f32 %v8691_v21, %v7809_v59 }
 0x8e6   :  { %v6056_v27 = vmul.f32 %v17280_v11, %v17279_v48  ;;  %v6803_v35 = vadd.f32 %v6795_v43, %v6698_v4  ;;  %v6736_v28 = vmul.f32 %v17285_v0, %v17284_v2  ;;  %v10337_v60 = vld [vmem:[%s16120_s5 + $0x5b0] sm:$0xff]  ;;  %v17286_v55 = vld [vmem:[#allocation184_spill] sm:$0xff]  ;;  %v17291_v5 = vld [vmem:[#allocation357_spill] sm:$0xff] }
 0x8e7   :  { %v6852_v54 = vadd.f32 %v6844_v46, %v6747_v32  ;;  %v17283_v32 = vld [vmem:[#allocation152_spill] sm:$0xff]  ;;  %v6900_v61 = vmul.f32 %v10337_v60, %v17286_v55  ;;  %v17288_v40 = vld [vmem:[#allocation155_spill] sm:$0xff]  ;;  %v7847_v43 = vadd.f32 %v7839_v45, %v15569_v42  ;;  %10199 = vset.pattern.permute.xlu1 %v16935_v3  ;;  %v17294_v59 = vld [vmem:[#allocation257_spill] sm:$0xff] }
 0x8e8   :  { %v6161_v17 = vmul.f32 %v17283_v32, %v17282_v13  ;;  %v6064_v46 = vadd.f32 %v6056_v27, %v5959_v20  ;;  %v6744_v33 = vadd.f32 %v6736_v28, %v6639_v36  ;;  %v17287_v31 = vld [vmem:[#allocation244_spill] sm:$0xff]  ;;  %v17290_v62 = vld [vmem:[#allocation203_spill] sm:$0xff]  ;;  %7779 = vperm.xlu1 %10199, %v13353_v9   ;;  %v7904_v13 = vsel %vm274_vm1, %v7848_v24, 0.0 }
 0x8e9   :  { %v6957_v22 = vadd.f32 %v6949_v19, %v6852_v54  ;;  %v6841_v48 = vmul.f32 %v17288_v40, %v17287_v31  ;;  %v17289_v11 = vld [vmem:[#allocation116_spill] sm:$0xff]  ;;  %v6908_v20 = vadd.f32 %v6900_v61, %v6803_v35  ;;  %v7857_v54 = vpop.permute.xlu1 %7856  ;;  %v10339_v42 = vld [vmem:[%s16120_s5 + $0x5f0] sm:$0xff]  ;;  %v17292_v19 = vld [vmem:[#allocation233_spill] sm:$0xff]  ;;  %v7903_v36 = vsel %vm274_vm1, %v7847_v43, 0.0 }
 0x8ea   :  { %v6169_v4 = vadd.f32 %v6161_v17, %v6064_v46  ;;  %v6266_v57 = vmul.f32 %v17290_v62, %v17289_v11  ;;  %v10338_v27 = vld [vmem:[%s16120_s5 + $0x5f8] sm:$0xff]  ;;  %v7005_v3 = vmul.f32 %v10339_v42, %v17292_v19  ;;  %v7887_v32 = vmul.f32 %v8691_v21, %v7857_v54  ;;  %v17293_v17 = vld [vmem:[#allocation118_spill] sm:$0xff] }
 0x8eb   :  { %v7054_v49 = vmul.f32 %v10338_v27, %v17291_v5  ;;  %v6371_v2 = vmul.f32 %v17294_v59, %v17293_v17  ;;  %v10340_v9 = vld [vmem:[%s16120_s5 + $0x638] sm:$0xff]  ;;  %v15916_v45 = vadd.f32 %v7904_v13, %v7903_v36  ;;  %v6849_v46 = vadd.f32 %v6841_v48, %v6744_v33  ;;  %v17297_v31 = vld [vmem:[#allocation210_spill] sm:$0xff] }
 0x8ec   :  { %v17295_v35 = vld [vmem:[#allocation200_spill] sm:$0xff]  ;;  %v7895_v60 = vadd.f32 %v7887_v32, %v15600_v14  ;;  %v6274_v55 = vadd.f32 %v6266_v57, %v6169_v4  ;;  %10200 = vset.pattern.permute.xlu1 %v17008_v1  ;;  %v17298_v40 = vld [vmem:[#allocation331_spill] sm:$0xff]  ;;  %v7013_v11 = vadd.f32 %v7005_v3, %v6908_v20  ;;  %v17300_v33 = vld [vmem:[#allocation186_spill] sm:$0xff] }
 0x8ed   :  { %v7062_v0 = vadd.f32 %v7054_v49, %v6957_v22  ;;  %v7159_v28 = vmul.f32 %v10340_v9, %v17295_v35  ;;  %v17296_v61 = vld [vmem:[#allocation120_spill] sm:$0xff]  ;;  %v7861_v21 = vpop.permute.xlu1 %7860  ;;  %v17299_v22 = vld [vmem:[#allocation154_spill] sm:$0xff]  ;;  %7880 = vperm.xlu1 %10200, %v17221_v30   ;;  %v17301_v57 = vld [vmem:[#allocation111_spill] sm:$0xff] }
 0x8ee   :  { %v6476_v24 = vmul.f32 %v17297_v31, %v17296_v61  ;;  %v6946_v43 = vmul.f32 %v17299_v22, %v17298_v40  ;;  %v7888_v62 = vmul.f32 %v8692_v26, %v7861_v21  ;;  %v6379_v27 = vadd.f32 %v6371_v2, %v6274_v55  ;;  %v10341_v14 = vld [vmem:[%s16120_s5 + $0x630] sm:$0xff]  ;;  %v17302_v49 = vld [vmem:[#allocation157_spill] sm:$0xff]  ;;  %v10342_v30 = vld [vmem:[%s16120_s5 + $0x678] sm:$0xff] }
 0x8ef   :  { %v7167_v5 = vadd.f32 %v7159_v28, %v7062_v0  ;;  %v7110_v48 = vmul.f32 %v10341_v14, %v17300_v33  ;;  %v7051_v1 = vmul.f32 %v17302_v49, %v17301_v57  ;;  %v17303_v19 = vld [vmem:[#allocation122_spill] sm:$0xff]  ;;  %v17306_v32 = vld [vmem:[#allocation235_spill] sm:$0xff]  ;;  %v7926_v59 = vsel %vm274_vm1, %v7895_v60, 0.0  ;;  %v17307_v0 = vld [vmem:[#allocation124_spill] sm:$0xff] }
 0x8f0   :  { %v6954_v4 = vadd.f32 %v6946_v43, %v6849_v46  ;;  %v7896_v54 = vadd.f32 %v7888_v62, %v15631_v52  ;;  %v6484_v42 = vadd.f32 %v6476_v24, %v6379_v27  ;;  %v17304_v20 = vld [vmem:[#allocation106_spill] sm:$0xff]  ;;  %v7215_v17 = vmul.f32 %v15287_v25, %v17306_v32  ;;  %v17308_v9 = vld [vmem:[#allocation207_spill] sm:$0xff]  ;;  %v17310_v40 = vld [vmem:[#allocation333_spill] sm:$0xff] }
 0x8f1   :  { %v6581_v26 = vmul.f32 %v17304_v20, %v17303_v19  ;;  %v17305_v3 = vld [vmem:[#allocation10_spill] sm:$0xff]  ;;  %v7118_v13 = vadd.f32 %v7110_v48, %v7013_v11  ;;  %7836 = vperm.xlu1 %10200, %v17203_v16   ;;  %v7360_v52 = vpop.permute.xlu1 %7359  ;;  %v6686_v35 = vmul.f32 %v17308_v9, %v17307_v0  ;;  %v10343_v55 = vld [vmem:[%s16120_s5 + $0x6b8] sm:$0xff]  ;;  %v7320_v25 = vmul.f32 %v15692_v8, %v15653_v29 }
 0x8f2   :  { %v7264_v36 = vmul.f32 %v10342_v30, %v17305_v3  ;;  %v7927_v2 = vsel %vm274_vm1, %v7896_v54, 0.0  ;;  %v7369_v61 = vmul.f32 %v10343_v55, %v7360_v52  ;;  %v7059_v31 = vadd.f32 %v7051_v1, %v6954_v4  ;;  %v17309_v16 = vld [vmem:[#allocation126_spill] sm:$0xff]  ;;  %v17311_v22 = vld [vmem:[#allocation156_spill] sm:$0xff]  ;;  %v17313_v48 = vld [vmem:[#allocation47_spill] sm:$0xff] }
 0x8f3   :  { %v15945_v28 = vadd.f32 %v7927_v2, %v7926_v59  ;;  %v6589_v60 = vadd.f32 %v6581_v26, %v6484_v42  ;;  %v6791_v21 = vmul.f32 %v15261_v58, %v17309_v16  ;;  %v7156_v43 = vmul.f32 %v17311_v22, %v17310_v40  ;;  %v17312_v27 = vld [vmem:[#allocation128_spill] sm:$0xff]  ;;  %v17314_v49 = vld [vmem:[#allocation130_spill] sm:$0xff]  ;;  %v17318_v30 = vld [vmem:[#allocation11_spill] sm:$0xff] }
 0x8f4   :  { %v7272_v46 = vadd.f32 %v7264_v36, %v7167_v5  ;;  %v7223_v11 = vadd.f32 %v7215_v17, %v7118_v13  ;;  %v6896_v5 = vmul.f32 %v15308_v6, %v17312_v27  ;;  %v7261_v4 = vmul.f32 %v15250_v7, %v17313_v48  ;;  %v17315_v1 = vld [vmem:[#allocation102_spill] sm:$0xff]  ;;  %v17316_v54 = vld [vmem:[#allocation108_spill] sm:$0xff]  ;;  %v17320_v17 = vld [vmem:[#allocation13_spill] sm:$0xff] }
 0x8f5   :  { %v6694_v62 = vadd.f32 %v6686_v35, %v6589_v60  ;;  %v7413_v14 = vpop.permute.xlu1 %7412  ;;  %v7164_v33 = vadd.f32 %v7156_v43, %v7059_v31  ;;  %v7001_v58 = vmul.f32 %v15334_v18, %v17314_v49  ;;  %v7366_v42 = vmul.f32 %v17316_v54, %v17315_v1  ;;  %v8672_v6 = vld [vmem:[%s16120_s5 + $0x728] sm:$0xff]  ;;  %v17317_v26 = vld [vmem:[#allocation132_spill] sm:$0xff]  ;;  %v7960_v40 = vld [vmem:[%s16121_s7 + $0x10] sm:$0xff] }
 0x8f6   :  { %v15952_v24 = vadd.f32 %v7369_v61, %v7272_v46  ;;  %v7328_v29 = vadd.f32 %v7320_v25, %v7223_v11  ;;  %v7425_v8 = vmul.f32 %v15683_v53, %v7413_v14  ;;  %v7106_v7 = vmul.f32 %v17318_v30, %v17317_v26  ;;  %v17319_v32 = vld [vmem:[#allocation134_spill] sm:$0xff]  ;;  %v7961_v2 = vld [vmem:[%s16121_s7 + $0x18] sm:$0xff]  ;;  %v17321_v52 = vld [vmem:[#allocation49_spill] sm:$0xff] }
 0x8f7   :  { %v6799_v57 = vadd.f32 %v6791_v21, %v6694_v62  ;;  %v7269_v3 = vadd.f32 %v7261_v4, %v7164_v33  ;;  %v7211_v18 = vmul.f32 %v17320_v17, %v17319_v32  ;;  %9690 = vmatpush3.msra.mxu1 %v7961_v2  ;;  %v17322_v35 = vld [vmem:[#allocation88_spill] sm:$0xff]  ;;  %v17323_v46 = vld [vmem:[#allocation21_spill] sm:$0xff]  ;;  %v17324_v61 = vld [vmem:[#allocation46_spill] sm:$0xff]  ;;  %v17326_v16 = vmov 0.0   ;;  %v7869_v17 = vpop.permute.xlu0 %7868 }
 0x8f8   :  { %v15967_v19 = vadd.f32 %v7425_v8, %v7328_v29  ;;  %v7316_v55 = vmul.f32 %v17323_v46, %v17322_v35  ;;  %v17325_v31 = vld [vmem:[#allocation209_spill] sm:$0xff]  ;;  %9691 = vmatprep.subr.mxu1 %v17326_v16  ;;  %v17327_v11 = vld [vmem:[#allocation151_spill] sm:$0xff]  ;;  %9697 = vmatprep.mubr.msk.f32.mxu1 %vm10378_vm2, %v17326_v16  ;;  %v17329_v29 = vld [vmem:[#allocation104_spill] sm:$0xff] }
 0x8f9   :  { %v6904_v20 = vadd.f32 %v6896_v5, %v6799_v57  ;;  %v7514_v36 = vpop.permute.xlu1 %7513  ;;  %v7374_v59 = vadd.f32 %v7366_v42, %v7269_v3  ;;  %v7471_v25 = vmul.f32 %v17325_v31, %v17324_v61  ;;  %v7959_v22 = vld [vmem:[%s16121_s7 + $0x8] sm:$0xff]  ;;  %v7421_v62 = vmul.f32 %v15433_v37, %v17327_v11  ;;  %9692 = vmatpush3.msra.mxu1 %v7960_v40  ;;  %v7958_v14 = vld [vmem:[%s16121_s7] sm:$0xff]  ;;  %v8694_v32 = vld [vmem:[%s16120_s5 + $0x7d8] sm:$0xff] }
 0x8fa   :  { %v7529_v53 = vmul.f32 %v8672_v6, %v7514_v36  ;;  %9693 = vmatprep.subr.mxu1 %v17326_v16  ;;  %v17328_v48 = vld [vmem:[#allocation9_spill] sm:$0xff]  ;;  %v7526_v37 = vmul.f32 %v15468_v56, %v17329_v29  ;;  %v17330_v42 = vld [vmem:[#allocation158_spill] sm:$0xff]  ;;  %v8686_v56 = vld [vmem:[%s16120_s5 + $0x798] sm:$0xff]  ;;  %v7736_v3 = vmul.f32 %v15857_v39, %v15592_v34  ;;  %v7890_v2 = vmul.f32 %v8694_v32, %v7869_v17 }
 0x8fb   :  { %v7009_v13 = vadd.f32 %v7001_v58, %v6904_v20  ;;  %v7479_v27 = vadd.f32 %v7471_v25, %v7374_v59  ;;  %v7576_v4 = vmul.f32 %v15768_v38, %v17328_v48  ;;  %9694 = vmatpush3.msra.mxu1 %v7959_v22  ;;  %v8679_v8 = vld [vmem:[%s16120_s5 + $0x760] sm:$0xff]  ;;  %v7631_v38 = vmul.f32 %v15512_v51, %v17330_v42  ;;  %v17332_v29 = vld [vmem:[#allocation31_spill] sm:$0xff] }
 0x8fc   :  { %v15980_v0 = vadd.f32 %v7529_v53, %v17321_v52  ;;  %9695 = vmatprep.subr.mxu1 %v17326_v16  ;;  %v7785_v53 = vmul.f32 %v8686_v56, %v15646_v50 }
 0x8fd   :  { %v7114_v9 = vadd.f32 %v7106_v7, %v7009_v13  ;;  %v7562_v60 = vpop.permute.xlu1 %7561  ;;  %v7584_v49 = vadd.f32 %v7576_v4, %v7479_v27  ;;  %9696 = vmatpush3.msra.mxu1 %v7958_v14  ;;  %v8693_v7 = vld [vmem:[%s16120_s5 + $0x7d0] sm:$0xff]  ;;  %v17331_v27 = vld [vmem:[#allocation160_spill] sm:$0xff] }
 0x8fe   :  { %v7577_v21 = vmul.f32 %v8672_v6, %v7562_v60  ;;  %v7633_v14 = vmul.f32 %v8679_v8, %v17331_v27  ;;  %v8695_v4 = vld [vmem:[%s16120_s5 + $0x7e0] sm:$0xff] }
 0x8ff   :  { %v7219_v43 = vadd.f32 %v7211_v18, %v7114_v9  ;;  %v7793_v18 = vadd.f32 %v7785_v53, %v15841_v12 }
 0x900   :  { %v15997_v5 = vadd.f32 %v7577_v21, %v15746_v41  ;;  %v7641_v48 = vadd.f32 %v7633_v14, %v15782_v23  ;;  %v8673_v23 = vld [vmem:[%s16120_s5 + $0x730] sm:$0xff] }
 0x901   :  { %v7324_v33 = vadd.f32 %v7316_v55, %v7219_v43  ;;  %v7663_v41 = vpop.permute.xlu1 %7662  ;;  %v7898_v39 = vadd.f32 %v7890_v2, %v7793_v18 }
 0x902   :  { %v7681_v58 = vmul.f32 %v8679_v8, %v7663_v41 }
 0x903   :  { %v7429_v57 = vadd.f32 %v7421_v62, %v7324_v33  ;;  %v7931_v61 = vsel %vm274_vm1, %v7898_v39, 0.0  ;;  %v8696_v39 = vld [vmem:[%s16120_s5 + $0x7e8] sm:$0xff] }
 0x904   :  { %v7689_v54 = vadd.f32 %v7681_v58, %v7584_v49 }
 0x905   :  { %v7534_v1 = vadd.f32 %v7526_v37, %v7429_v57  ;;  %v7716_v6 = vpop.permute.xlu1 %7715 }
 0x906   :  { %v7737_v20 = vmul.f32 %v8686_v56, %v7716_v6 }
 0x907   :  { %v7639_v26 = vadd.f32 %v7631_v38, %v7534_v1 }
 0x908   :  { %v7745_v30 = vadd.f32 %v7737_v20, %v15822_v15 }
 0x909   :  { %v7817_v36 = vpop.permute.xlu1 %7816  ;;  %v7744_v51 = vadd.f32 %v7736_v3, %v7639_v26 }
 0x90a   :  { %v7841_v13 = vmul.f32 %v8693_v7, %v7817_v36  ;;  %v8681_v36 = vld [vmem:[%s16120_s5 + $0x770] sm:$0xff] }
 0x90c   :  { %v7849_v15 = vadd.f32 %v7841_v13, %v7744_v51  ;;  %v17333_v51 = vld [vmem:[#allocation17_spill] sm:$0xff] }
 0x90d   :  { %v7865_v59 = vpop.permute.xlu1 %7864  ;;  %v7635_v13 = vmul.f32 %v8681_v36, %v17333_v51 }
 0x90e   :  { %v7906_v52 = vsel %vm274_vm1, %v7849_v15, 0.0  ;;  %v7889_v9 = vmul.f32 %v8693_v7, %v7865_v59  ;;  %v8688_v15 = vld [vmem:[%s16120_s5 + $0x7a8] sm:$0xff] }
 0x90f   :  { %v7907_v34 = vadd.f32 %v7906_v52, %v15916_v45 }
 0x910   :  { %v7897_v50 = vadd.f32 %v7889_v9, %v15879_v63 }
 0x911   :  { %v7465_v46 = vpop.permute.xlu1 %7464 }
 0x912   :  { %v7929_v35 = vsel %vm274_vm1, %v7897_v50, 0.0 }
 0x913   :  { %v7930_v55 = vadd.f32 %v7929_v35, %v15945_v28  ;;  %v8687_v28 = vld [vmem:[%s16120_s5 + $0x7a0] sm:$0xff] }
 0x914   :  { %v7738_v37 = vmul.f32 %v8687_v28, %v17332_v29 }
 0x915   :  { %v7932_v31 = vadd.f32 %v7931_v61, %v7930_v55  ;;  %v7518_v12 = vpop.permute.xlu1 %7517 }
 0x916   :  { %v7746_v49 = vadd.f32 %v7738_v37, %v7641_v48  ;;  %v7530_v26 = vmul.f32 %v8673_v23, %v7518_v12 }
 0x918   :  { %v7538_v53 = vadd.f32 %v7530_v26, %v15967_v19  ;;  %v8697_v19 = vld [vmem:[%s16120_s5 + $0x7f0] sm:$0xff]  ;;  %v17336_v26 = vld [vmem:[#allocation61_spill] sm:$0xff] }
 0x919   :  { %v7619_v25 = vpop.permute.xlu1 %7618 }
 0x91a   :  { %v7643_v9 = vadd.f32 %v7635_v13, %v7538_v53 }
 0x91d   :  { %v7667_v60 = vpop.permute.xlu1 %7666 }
 0x922   :  { %v7768_v16 = vpop.permute.xlu1 %7767 }
 0x923   :  { %v7786_v57 = vmul.f32 %v8687_v28, %v7768_v16 }
 0x925   :  { %v7794_v8 = vadd.f32 %v7786_v57, %v7689_v54  ;;  %v8680_v54 = vld [vmem:[%s16120_s5 + $0x768] sm:$0xff] }
 0x926   :  { %v7634_v17 = vmul.f32 %v8680_v54, %v7619_v25  ;;  %v7682_v2 = vmul.f32 %v8680_v54, %v7667_v60  ;;  %v10344_v60 = vld [vmem:[%s16120_s5 + $0x6f8] sm:$0xff] }
 0x927   :  { %v7821_v21 = vpop.permute.xlu1 %7820  ;;  %v7474_v16 = vmul.f32 %v10344_v60, %v7465_v46  ;;  %v8682_v46 = vld [vmem:[%s16120_s5 + $0x778] sm:$0xff] }
 0x928   :  { %v7842_v40 = vmul.f32 %v8694_v32, %v7821_v21  ;;  %v8689_v32 = vld [vmem:[%s16120_s5 + $0x7b0] sm:$0xff]  ;;  %v7642_v50 = vadd.f32 %v7634_v17, %v15980_v0  ;;  %v7787_v21 = vmul.f32 %v8688_v15, %v15742_v47 }
 0x929   :  { %v7482_v47 = vadd.f32 %v7474_v16, %v15952_v24 }
 0x92a   :  { %v7850_v22 = vadd.f32 %v7842_v40, %v7745_v30  ;;  %v8674_v40 = vld [vmem:[%s16120_s5 + $0x738] sm:$0xff] }
 0x92c   :  { %v7908_v45 = vsel %vm274_vm1, %v7850_v22, 0.0 }
 0x92d   :  { %v7909_v11 = vadd.f32 %v7908_v45, %v7907_v34  ;;  %v7833_v34 = vpop.permute.xlu0 %7832 }
 0x92e   :  { %v7522_v43 = vpop.permute.xlu1 %7521  ;;  %v7845_v61 = vmul.f32 %v8697_v19, %v7833_v34 }
 0x92f   :  { %v7531_v48 = vmul.f32 %v8674_v40, %v7522_v43  ;;  %v17335_v43 = vld [vmem:[#allocation198_spill] sm:$0xff] }
 0x932   :  { %v7570_v63 = vpop.permute.xlu1 %7569 }
 0x93a   :  { %v7671_v62 = vpop.permute.xlu1 %7670 }
 0x93b   :  { %v7683_v29 = vmul.f32 %v8681_v36, %v7671_v62 }
 0x93f   :  { %v7724_v33 = vpop.permute.xlu1 %7723 }
 0x940   :  { %v7739_v52 = vmul.f32 %v8688_v15, %v7724_v33  ;;  %v17334_v33 = vld [vmem:[#allocation205_spill] sm:$0xff] }
 0x941   :  { %v7578_v28 = vmul.f32 %v8673_v23, %v17334_v33  ;;  %v8698_v23 = vld [vmem:[%s16120_s5 + $0x7f8] sm:$0xff]  ;;  %v8700_v33 = vld [vmem:[%s16124_s8] ss:$0 sm:$0xff] }
 0x942   :  { %v7747_v12 = vadd.f32 %v7739_v52, %v7642_v50 }
 0x947   :  { %v7825_v41 = vpop.permute.xlu1 %7824 }
 0x948   :  { %v7843_v58 = vmul.f32 %v8695_v4, %v7825_v41 }
 0x94a   :  { %v7851_v1 = vadd.f32 %v7843_v58, %v7746_v49  ;;  %v8690_v49 = vld [vmem:[%s16120_s5 + $0x7b8] sm:$0xff] }
 0x94b   :  { %v7873_v42 = vpop.permute.xlu1 %7872  ;;  %v7741_v17 = vmul.f32 %v8690_v49, %v15833_v44 }
 0x94c   :  { %v7910_v38 = vsel %vm274_vm1, %v7851_v1, 0.0  ;;  %v7891_v56 = vmul.f32 %v8695_v4, %v7873_v42  ;;  %v7586_v1 = vadd.f32 %v7578_v28, %v15722_v10 }
 0x94d   :  { %v7911_v6 = vadd.f32 %v7910_v38, %v7909_v11  ;;  %v7579_v11 = vmul.f32 %v8674_v40, %v7570_v63 }
 0x94e   :  { %v7899_v20 = vadd.f32 %v7891_v56, %v7794_v8  ;;  %v7539_v56 = vadd.f32 %v7531_v48, %v17335_v43  ;;  %v7691_v62 = vadd.f32 %v7683_v29, %v7586_v1 }
 0x94f   :  { %v7587_v58 = vadd.f32 %v7579_v11, %v7482_v47  ;;  %v8702_v47 = vld [vmem:[%s16125_s9] ss:$0 sm:$0xff] }
 0x950   :  { %v7933_v30 = vsel %vm274_vm1, %v7899_v20, 0.0  ;;  %v7675_v7 = vpop.permute.xlu1 %7674  ;;  %v7885_v20 = vpop.permute.xlu0 %7884 }
 0x951   :  { %v7934_v3 = vadd.f32 %v7933_v30, %v7932_v31  ;;  %v7690_v31 = vadd.f32 %v7682_v2, %v15997_v5  ;;  %v7684_v37 = vmul.f32 %v8682_v46, %v7675_v7  ;;  %v7636_v30 = vmul.f32 %v8682_v46, %v17336_v26  ;;  %v17337_v7 = vld [vmem:[#allocation63_spill] sm:$0xff] }
 0x952   :  { %v7788_v36 = vmul.f32 %v8689_v32, %v17337_v7  ;;  %v7894_v53 = vmul.f32 %v8698_v23, %v7885_v20 }
 0x953   :  { %v7795_v5 = vadd.f32 %v7787_v21, %v7690_v31  ;;  %v7644_v51 = vadd.f32 %v7636_v30, %v7539_v56 }
 0x954   :  { %v7796_v13 = vadd.f32 %v7788_v36, %v7691_v62 }
 0x955   :  { %v7728_v18 = vpop.permute.xlu1 %7727  ;;  %v7749_v52 = vadd.f32 %v7741_v17, %v7644_v51 }
 0x956   :  { %v7740_v59 = vmul.f32 %v8689_v32, %v7728_v18 }
 0x958   :  { %v7748_v35 = vadd.f32 %v7740_v59, %v7643_v9 }
 0x95a   :  { %v7829_v55 = vpop.permute.xlu1 %7828  ;;  %v7853_v22 = vadd.f32 %v7845_v61, %v7748_v35 }
 0x95b   :  { %v7844_v25 = vmul.f32 %v8696_v39, %v7829_v55 }
 0x95c   :  { %v7914_v41 = vsel %vm274_vm1, %v7853_v22, 0.0 }
 0x95d   :  { %v7852_v0 = vadd.f32 %v7844_v25, %v7747_v12 }
 0x95e   :  { %v7877_v45 = vpop.permute.xlu1 %7876 }
 0x95f   :  { %v7912_v27 = vsel %vm274_vm1, %v7852_v0, 0.0  ;;  %v7892_v14 = vmul.f32 %v8696_v39, %v7877_v45  ;;  %v8699_v45 = vld [vmem:[%s16122_s6] ss:$0 sm:$0xff] }
 0x960   :  { %v7913_v4 = vadd.f32 %v7912_v27, %v7911_v6  ;;  %v7692_v6 = vadd.f32 %v7684_v37, %v7587_v58 }
 0x961   :  { %v7900_v57 = vadd.f32 %v7892_v14, %v7795_v5  ;;  %v16_v14 = vstv %s16123_s10 }
 0x962   :  { %v7915_v63 = vadd.f32 %v7914_v41, %v7913_v4  ;;  %17 = vst [vmem:[#allocation4] sm:$0x1] %v16_v14 }
 0x963   :  { %v7935_v42 = vsel %vm274_vm1, %v7900_v57, 0.0  ;;  %v7780_v8 = vpop.permute.xlu1 %7779 }
 0x964   :  { %v7936_v38 = vadd.f32 %v7935_v42, %v7934_v3  ;;  %v7789_v24 = vmul.f32 %v8690_v49, %v7780_v8 }
 0x966   :  { %v7797_v54 = vadd.f32 %v7789_v24, %v7692_v6 }
 0x968   :  { %v7881_v10 = vpop.permute.xlu1 %7880  ;;  %v7902_v18 = vadd.f32 %v7894_v53, %v7797_v54 }
 0x969   :  { %v7893_v3 = vmul.f32 %v8697_v19, %v7881_v10  ;;  %v8703_v41 = vld [vmem:[#allocation4] ss:$0 sm:$0xff] }
 0x96a   :  { %v7939_v39 = vsel %vm274_vm1, %v7902_v18, 0.0 }
 0x96b   :  { %v7901_v15 = vadd.f32 %v7893_v3, %v7796_v13 }
 0x96c   :  { %v7837_v59 = vpop.permute.xlu1 %7836 }
 0x96d   :  { %v7937_v2 = vsel %vm274_vm1, %v7901_v15, 0.0  ;;  %v7846_v9 = vmul.f32 %v8698_v23, %v7837_v59 }
 0x96e   :  { %v7938_v34 = vadd.f32 %v7937_v2, %v7936_v38 }
 0x96f   :  { %v7854_v50 = vadd.f32 %v7846_v9, %v7749_v52 }
 0x970   :  { %v7940_v32 = vadd.f32 %v7939_v39, %v7938_v34 }
 0x971   :  { %v7916_v35 = vsel %vm274_vm1, %v7854_v50, 0.0 }
 0x972   :  { %v7941_v55 = vrot.slane %v7940_v32, 4  ;;  %v7917_v61 = vadd.f32 %v7916_v35, %v7915_v63 }
 0x974   :  { %v7942_v31 = vadd.f32 %v7941_v55, %v7940_v32  ;;  %v7918_v19 = vrot.slane %v7917_v61, 4 }
 0x976   :  { %v7943_v12 = vrot.slane %v7942_v31, 2  ;;  %v7919_v44 = vadd.f32 %v7918_v19, %v7917_v61 }
 0x978   :  { %v7944_v25 = vadd.f32 %v7943_v12, %v7942_v31  ;;  %v7920_v60 = vrot.slane %v7919_v44, 2 }
 0x97a   :  { %v7945_v16 = vrot.slane %v7944_v25, 1  ;;  %v7921_v21 = vadd.f32 %v7920_v60, %v7919_v44 }
 0x97c   :  { %v7946_v40 = vadd.f32 %v7945_v16, %v7944_v25  ;;  %v7922_v22 = vrot.slane %v7921_v21, 1 }
 0x97e   :  { %v7923_v0 = vadd.f32 %v7922_v22, %v7921_v21  ;;  %7947 = vst.msk [vmem:[#allocation3 + $0x1] sm:$0x1] %vm7924_vm3, %v7946_v40 }
 0x980   :  { %7925 = vst.msk [vmem:[#allocation3] sm:$0x1] %vm7924_vm3, %v7923_v0 }
 0x987   :  { %v7948_v11 = vld [vmem:[#allocation3] sm:$0x3] }
 0x988   :  { %v7956_v27 = vadd.f32 %v8699_v45, %v7948_v11 }
 0x98a   :  { %v7957_v5 = vmax.f32 %v7956_v27, 0.0 }
 0x98c   :  { %9698 = vmatmul.mubr.msk.f32.vlgmr.msra.gmra.mxu1 %vm274_vm1, %v7957_v5 }
 0xa4c   :  { %v8038_v28 = vpop.f32.mrf.mxu1 }
 0xa4d   :  { %v8039_v46 = vadd.f32 %v8700_v33, %v8038_v28 }
 0xa4e   :  { %v9699_v48 = vpop.f32.mrf.mxu1 }
 0xa4f   :  { %v8042_v4 = vmax.f32 %v8039_v46, 0.0 }
 0xa51   :  { %v8050_v29 = vmul.f32 %v8702_v47, %v8042_v4 }
 0xa53   :  { %v8052_v37 = vsel %vm8051_vm4, %v8050_v29, 0.0 }
 0xa54   :  { %8053 = vadd.xlane.f32.xlu1 %v8052_v37 }
 0xadd   :  { %v8054_v57 = vpop.xlane.xlu1 %8053 }
 0xade   :  { %v8062_v63 = vadd.f32 %v8703_v41, %v8054_v57 }
 0xae0   :  { %v8704_v49 = vmul.f32 -1.442695, %v8062_v63 }
 0xae2   :  { %10201 = vpow2.f32 %v8704_v49 }
 0xaef   :  { %v10202_v58 = vpop.eup %10201 }
 0xaf0   :  { %v8066_v1 = vadd.f32 1.0, %v10202_v58 }
 0xaf2   :  { %10203 = vrcp.f32 %v8066_v1 }
 0xaff   :  { %v10204_v42 = vpop.eup %10203 }
 0xb00   :  { %8070 = vst.msk [vmem:[%s16126_s11] sm:$0x3] %vm8069_vm5, %v10204_v42 }

</bundles_post_ra>
